<compile_context>
chip_gen: v7x
topology: tpu7x:2x2x1
jax: 0.10.0
libtpu: 0.0.40
codegen_flags: <defaults>
</compile_context>

<pallas_src>
import functools
import math

import jax
import jax.numpy as jnp
from jax.experimental import pallas as pl
from jax.experimental.pallas import tpu as pltpu


LANES = 128
EPS = 1e-5

LATENT_IMG_CHANNELS = 32
# (in_channels, out_channels, stride) for the 6 single-block layers.
BLOCK_CFG = [
    (64, 64, 1),
    (64, 64, 1),
    (64, 128, 2),
    (128, 128, 2),
    (128, 256, 1),
    (256, LATENT_IMG_CHANNELS, 2),
]


def _round_up(v, m):
    return ((v + m - 1) // m) * m


# ------------------------- Pallas kernels -------------------------

def _conv_bn_relu_kernel(p_ref, w_ref, gamma_ref, beta_ref, o_ref, *,
                         inv_count, eps):
    """Fused conv (as one im2col matmul) + BatchNorm(train stats) + ReLU.

    p_ref:      (M, K)    bf16 im2col patches (M = N*Ho*Wo, K = 9*Cin padded)
    w_ref:      (K, 128)  bf16 weights for this 128-lane output-channel tile
    gamma/beta: (1, 128)  f32 BN affine parameters
    o_ref:      (M, 128)  f32 output tile (lane-dense)
    """
    y = jnp.dot(p_ref[...], w_ref[...], preferred_element_type=jnp.float32)
    # Single-pass batch statistics (biased variance, exactly what PyTorch uses
    # to normalize in training mode).  Stats math stays in f32.
    mean = jnp.sum(y, axis=0, keepdims=True) * inv_count
    ex2 = jnp.sum(y * y, axis=0, keepdims=True) * inv_count
    var = jnp.maximum(ex2 - mean * mean, 0.0)
    scale = gamma_ref[...] * jax.lax.rsqrt(var + eps)
    shift = beta_ref[...] - mean * scale
    o_ref[...] = jnp.maximum(y * scale + shift, 0.0)


def _stem_kernel(p_ref, w_ref, gamma_ref, beta_ref, o_ref, zp_ref, *,
                 n, h, w, inv_count, eps):
    """Stem: conv3x3(circular) + BN + ReLU + 3x3 max-pool sliding windows.

    The activation never leaves VMEM: it is written zero-padded into `zp_ref`
    and the 3x3 sliding max is computed from 9 statically-offset row slices.
    The output holds the window max for every padded position; the wrapper
    keeps only the stride-2 window starts (even ip, jp).
    """
    hp, wp = h + 2, w + 2

    # conv + BN(train) + ReLU (same math as _conv_bn_relu_kernel)
    y = jnp.dot(p_ref[...], w_ref[...], preferred_element_type=jnp.float32)
    mean = jnp.sum(y, axis=0, keepdims=True) * inv_count
    ex2 = jnp.sum(y * y, axis=0, keepdims=True) * inv_count
    var = jnp.maximum(ex2 - mean * mean, 0.0)
    scale = gamma_ref[...] * jax.lax.rsqrt(var + eps)
    shift = beta_ref[...] - mean * scale
    a = jnp.maximum(y * scale + shift, 0.0)            # (n*h*w, Cp), all >= 0

    # Zero-padded copy of the activation into VMEM scratch
    # (zero padding is equivalent to -inf padding because a >= 0).
    zp_ref[...] = jnp.zeros(zp_ref.shape, zp_ref.dtype)
    for ni in range(n):
        for i in range(h):
            dst = (ni * hp + i + 1) * wp + 1
            src = (ni * h + i) * w
            zp_ref[pl.ds(dst, w), :] = a[src:src + w, :]

    # 3x3 elementwise max over 9 statically shifted views of the padded grid.
    rows = n * hp * wp
    r = zp_ref[pl.ds(0, rows), :]
    for kh in range(3):
        for kw in range(3):
            if kh == 0 and kw == 0:
                continue
            r = jnp.maximum(r, zp_ref[pl.ds(kh * wp + kw, rows), :])
    o_ref[...] = r


# ------------------------- Pallas wrappers -------------------------

def _im2col_circular(x, stride):
    """Circular-pad 3x3 im2col at output (decimated) resolution. NHWC input."""
    n, h, w, c = x.shape
    ho = (h - 1) // stride + 1
    wo = (w - 1) // stride + 1
    xp = jnp.pad(x, ((0, 0), (1, 1), (1, 1), (0, 0)), mode="wrap")
    taps = [
        xp[:, kh:kh + stride * (ho - 1) + 1:stride,
           kw:kw + stride * (wo - 1) + 1:stride, :]
        for kh in range(3) for kw in range(3)
    ]
    patches = jnp.concatenate(taps, axis=-1).reshape(n * ho * wo, 9 * c)
    return patches, ho, wo


def _prep_conv_operands(x, w, gamma, beta, stride):
    """Build bf16 patch/weight matrices padded to TPU-friendly shapes."""
    n, h, wd, cin = x.shape
    cout = w.shape[-1]
    patches, ho, wo = _im2col_circular(x, stride)
    k = 9 * cin
    kp = _round_up(k, 16)                 # bf16 sublane-pack friendly K
    cout_p = _round_up(cout, LANES)       # lane-dense output tiles
    p = jnp.pad(patches, ((0, 0), (0, kp - k))).astype(jnp.bfloat16)
    wk = jnp.pad(w.reshape(k, cout),
                 ((0, kp - k), (0, cout_p - cout))).astype(jnp.bfloat16)
    g = jnp.pad(gamma, (0, cout_p - cout)).reshape(1, cout_p)
    b = jnp.pad(beta, (0, cout_p - cout)).reshape(1, cout_p)
    return p, wk, g, b, (n, ho, wo, cout, cout_p, kp)


def conv3x3_circ_bn_relu(x, w, gamma, beta, stride, eps=EPS):
    """nn.Conv2d(k=3, p=1, circular, stride) -> BatchNorm2d(train) -> ReLU.

    x: (N, H, W, Cin) NHWC, w: (3, 3, Cin, Cout), gamma/beta: (Cout,).
    Conv bias intentionally omitted (cancelled by training-mode BN).
    """
    p, wk, g, b, (n, ho, wo, cout, cout_p, kp) = _prep_conv_operands(
        x, w, gamma, beta, stride)
    m = n * ho * wo
    kern = functools.partial(_conv_bn_relu_kernel,
                             inv_count=1.0 / float(m), eps=float(eps))
    out = pl.pallas_call(
        kern,
        out_shape=jax.ShapeDtypeStruct((m, cout_p), jnp.float32),
        grid=(cout_p // LANES,),
        in_specs=[
            pl.BlockSpec((m, kp), lambda c: (0, 0)),
            pl.BlockSpec((kp, LANES), lambda c: (0, c)),
            pl.BlockSpec((1, LANES), lambda c: (0, c)),
            pl.BlockSpec((1, LANES), lambda c: (0, c)),
        ],
        out_specs=pl.BlockSpec((m, LANES), lambda c: (0, c)),
        compiler_params=pltpu.CompilerParams(dimension_semantics=("parallel",)),
    )(p, wk, g, b)
    return out[:, :cout].reshape(n, ho, wo, cout)


def stem_conv_bn_relu_maxpool(x, w, gamma, beta, eps=EPS):
    """in_layer: conv3x3(circular, s=1, no bias) -> BN -> ReLU -> MaxPool(3,2,1),
    all inside one Pallas kernel."""
    n, h, wd, _ = x.shape
    cout = w.shape[-1]
    p, wk, g, b, (_, _, _, _, cout_p, kp) = _prep_conv_operands(
        x, w, gamma, beta, 1)
    m = n * h * wd
    hp, wp = h + 2, wd + 2
    rows_out = n * hp * wp
    scratch_rows = _round_up(rows_out + 2 * wp + 3, 8)

    kern = functools.partial(_stem_kernel, n=n, h=h, w=wd,
                             inv_count=1.0 / float(m), eps=float(eps))
    out = pl.pallas_call(
        kern,
        out_shape=jax.ShapeDtypeStruct((rows_out, cout_p), jnp.float32),
        grid=(1,),
        in_specs=[
            pl.BlockSpec((m, kp), lambda c: (0, 0)),
            pl.BlockSpec((kp, cout_p), lambda c: (0, 0)),
            pl.BlockSpec((1, cout_p), lambda c: (0, 0)),
            pl.BlockSpec((1, cout_p), lambda c: (0, 0)),
        ],
        out_specs=pl.BlockSpec((rows_out, cout_p), lambda c: (0, 0)),
        scratch_shapes=[pltpu.VMEM((scratch_rows, cout_p), jnp.float32)],
        compiler_params=pltpu.CompilerParams(dimension_semantics=("arbitrary",)),
    )(p, wk, g, b)

    # Keep only the stride-2 pooling-window starts: padded (ip, jp) = (2io, 2jo).
    ho = (h - 1) // 2 + 1
    wo = (wd - 1) // 2 + 1
    pooled = out.reshape(n, hp, wp, cout_p)[:, 0:2 * ho:2, 0:2 * wo:2, :cout]
    return pooled


# ------------------------- Model -------------------------

def resnet_block(x, p, stride):
    # Reference ResnetBlock.forward: conv -> BN -> ReLU -> conv -> BN -> ReLU
    # (self.shortcut is constructed but never used in forward, so no residual).
    # Conv biases (p["b1"], p["b2"]) are cancelled by the training-mode BN
    # that follows each conv, so they are not applied.
    y = conv3x3_circ_bn_relu(x, p["w1"], p["g1"], p["be1"], stride)
    y = conv3x3_circ_bn_relu(y, p["w2"], p["g2"], p["be2"], 1)
    return y


def resnet_forward(x_nchw, params):
    x = jnp.transpose(x_nchw, (0, 2, 3, 1))      # NCHW -> NHWC
    g, b = params["in_bn"]
    y = stem_conv_bn_relu_maxpool(x, params["in_conv_w"], g, b)
    for blk, (_, _, stride) in zip(params["blocks"], BLOCK_CFG):
        y = resnet_block(y, blk, stride)
    return jnp.transpose(y, (0, 3, 1, 2))        # NHWC -> NCHW


def init_params(key, in_channels):
    keys = jax.random.split(key, 64)
    it = iter(keys)

    def conv_w(cin, cout):
        k = next(it)
        return jax.random.normal(k, (3, 3, cin, cout), jnp.float32) * (
            1.0 / math.sqrt(9 * cin)
        )

    def conv_b(cout):
        k = next(it)
        return jax.random.normal(k, (cout,), jnp.float32) * 0.01

    params = {
        "in_conv_w": conv_w(in_channels, 64),
        # BatchNorm affine params (PyTorch default init: gamma=1, beta=0).
        "in_bn": (jnp.ones((64,), jnp.float32), jnp.zeros((64,), jnp.float32)),
        "blocks": [],
    }
    for cin, cout, _ in BLOCK_CFG:
        params["blocks"].append(
            dict(
                w1=conv_w(cin, cout),
                # Conv biases kept for parity with the torch module but are a
                # no-op under the training-mode BN that follows each conv.
                b1=conv_b(cout),
                g1=jnp.ones((cout,), jnp.float32),
                be1=jnp.zeros((cout,), jnp.float32),
                w2=conv_w(cout, cout),
                b2=conv_b(cout),
                g2=jnp.ones((cout,), jnp.float32),
                be2=jnp.zeros((cout,), jnp.float32),
            )
        )
    return params


if __name__ == "__main__":
    key = jax.random.PRNGKey(0)
    k_x, k_p = jax.random.split(key)
    in_channels = 4
    x = jax.random.normal(k_x, (2, in_channels, 16, 16), jnp.float32)  # NCHW
    params = init_params(k_p, in_channels)

    fwd = jax.jit(resnet_forward)
    out = fwd(x, params)
    jax.block_until_ready(out)

    assert out.shape == (2, LATENT_IMG_CHANNELS, 1, 1), out.shape
    assert bool(jnp.all(jnp.isfinite(out)))
    print("KERNEL_OK")
</pallas_src>

<mosaic_0001>
module attributes {stable_mosaic.version = 11 : i64} {
  func.func @_stem_kernel(%arg0: i32, %arg1: memref<512x48xbf16, #tpu.memory_space<vmem>>, %arg2: memref<48x128xbf16, #tpu.memory_space<vmem>>, %arg3: memref<1x128xf32, #tpu.memory_space<vmem>>, %arg4: memref<1x128xf32, #tpu.memory_space<vmem>>, %arg5: memref<648x128xf32, #tpu.memory_space<vmem>>, %arg6: memref<688x128xf32, #tpu.memory_space<vmem>>) attributes {dimension_semantics = [#tpu.dimension_semantics<arbitrary>], iteration_bounds = array<i64: 1>, scalar_prefetch = 0 : i64, scratch_operands = 1 : i64, tpu.core_type = #tpu.core_type<tc>, window_params = [{pipeline_mode = #tpu.pipeline_mode<synchronous>, transform_indices = @transform_0, window_bounds = array<i64: 512, 48>}, {pipeline_mode = #tpu.pipeline_mode<synchronous>, transform_indices = @transform_1, window_bounds = array<i64: 48, 128>}, {pipeline_mode = #tpu.pipeline_mode<synchronous>, transform_indices = @transform_2, window_bounds = array<i64: 1, 128>}, {pipeline_mode = #tpu.pipeline_mode<synchronous>, transform_indices = @transform_3, window_bounds = array<i64: 1, 128>}, {pipeline_mode = #tpu.pipeline_mode<synchronous>, transform_indices = @transform_4, window_bounds = array<i64: 648, 128>}]} {
    %c0 = arith.constant 0 : index
    %c0_0 = arith.constant 0 : index
    %0 = vector.load %arg1[%c0, %c0_0] : memref<512x48xbf16, #tpu.memory_space<vmem>>, vector<512x48xbf16>
    %c0_1 = arith.constant 0 : index
    %c0_2 = arith.constant 0 : index
    %1 = vector.load %arg2[%c0_1, %c0_2] : memref<48x128xbf16, #tpu.memory_space<vmem>>, vector<48x128xbf16>
    %cst = arith.constant dense<0.000000e+00> : vector<512x128xf32>
    %2 = tpu.matmul %0, %1, %cst {dimension_numbers = #tpu.dot_dimension_numbers<[1], [0], [0], [1], [0, 0, 1, 1], [], []>} : vector<512x48xbf16>, vector<48x128xbf16>, vector<512x128xf32> -> vector<512x128xf32>
    %cst_3 = arith.constant dense<0.000000e+00> : vector<128xf32>
    %3 = vector.multi_reduction <add>, %2, %cst_3 [0] : vector<512x128xf32> to vector<128xf32>
    %4 = vector.shape_cast %3 : vector<128xf32> to vector<1x128xf32>
    %cst_4 = arith.constant 0.001953125 : f32
    %5 = vector.broadcast %cst_4 : f32 to vector<1x128xf32>
    %6 = arith.mulf %4, %5 : vector<1x128xf32>
    %7 = arith.mulf %2, %2 : vector<512x128xf32>
    %cst_5 = arith.constant dense<0.000000e+00> : vector<128xf32>
    %8 = vector.multi_reduction <add>, %7, %cst_5 [0] : vector<512x128xf32> to vector<128xf32>
    %9 = vector.shape_cast %8 : vector<128xf32> to vector<1x128xf32>
    %cst_6 = arith.constant 0.001953125 : f32
    %10 = vector.broadcast %cst_6 : f32 to vector<1x128xf32>
    %11 = arith.mulf %9, %10 : vector<1x128xf32>
    %12 = arith.mulf %6, %6 : vector<1x128xf32>
    %13 = arith.subf %11, %12 : vector<1x128xf32>
    %cst_7 = arith.constant 0.000000e+00 : f32
    %14 = vector.broadcast %cst_7 : f32 to vector<1x128xf32>
    %15 = arith.maximumf %13, %14 : vector<1x128xf32>
    %c0_8 = arith.constant 0 : index
    %c0_9 = arith.constant 0 : index
    %16 = vector.load %arg3[%c0_8, %c0_9] : memref<1x128xf32, #tpu.memory_space<vmem>>, vector<1x128xf32>
    %cst_10 = arith.constant 9.99999974E-6 : f32
    %17 = vector.broadcast %cst_10 : f32 to vector<1x128xf32>
    %18 = arith.addf %15, %17 : vector<1x128xf32>
    %19 = math.rsqrt %18 : vector<1x128xf32>
    %20 = arith.mulf %16, %19 : vector<1x128xf32>
    %c0_11 = arith.constant 0 : index
    %c0_12 = arith.constant 0 : index
    %21 = vector.load %arg4[%c0_11, %c0_12] : memref<1x128xf32, #tpu.memory_space<vmem>>, vector<1x128xf32>
    %22 = arith.mulf %6, %20 : vector<1x128xf32>
    %23 = arith.subf %21, %22 : vector<1x128xf32>
    %24 = vector.broadcast %20 : vector<1x128xf32> to vector<512x128xf32>
    %25 = arith.mulf %2, %24 : vector<512x128xf32>
    %26 = vector.broadcast %23 : vector<1x128xf32> to vector<512x128xf32>
    %27 = arith.addf %25, %26 : vector<512x128xf32>
    %cst_13 = arith.constant 0.000000e+00 : f32
    %28 = vector.broadcast %cst_13 : f32 to vector<512x128xf32>
    %29 = arith.maximumf %27, %28 : vector<512x128xf32>
    %cst_14 = arith.constant 0.000000e+00 : f32
    %30 = vector.broadcast %cst_14 : f32 to vector<688x128xf32>
    %c0_15 = arith.constant 0 : index
    %c0_16 = arith.constant 0 : index
    %31 = vector.load %arg6[%c0_15, %c0_16] : memref<688x128xf32, #tpu.memory_space<vmem>>, vector<688x128xf32>
    tpu.vector_store %arg6[%c0_15, %c0_16], %30 {strides = array<i32>} : memref<688x128xf32, #tpu.memory_space<vmem>>, vector<688x128xf32>,
    %32 = vector.extract_strided_slice %29 {offsets = [0, 0], sizes = [16, 128], strides = [1, 1]} : vector<512x128xf32> to vector<16x128xf32>
    %c19 = arith.constant 19 : index
    %c0_17 = arith.constant 0 : index
    %33 = vector.load %arg6[%c19, %c0_17] : memref<688x128xf32, #tpu.memory_space<vmem>>, vector<16x128xf32>
    tpu.vector_store %arg6[%c19, %c0_17], %32 {strides = array<i32>} : memref<688x128xf32, #tpu.memory_space<vmem>>, vector<16x128xf32>,
    %34 = vector.extract_strided_slice %29 {offsets = [16, 0], sizes = [16, 128], strides = [1, 1]} : vector<512x128xf32> to vector<16x128xf32>
    %c37 = arith.constant 37 : index
    %c0_18 = arith.constant 0 : index
    %35 = vector.load %arg6[%c37, %c0_18] : memref<688x128xf32, #tpu.memory_space<vmem>>, vector<16x128xf32>
    tpu.vector_store %arg6[%c37, %c0_18], %34 {strides = array<i32>} : memref<688x128xf32, #tpu.memory_space<vmem>>, vector<16x128xf32>,
    %36 = vector.extract_strided_slice %29 {offsets = [32, 0], sizes = [16, 128], strides = [1, 1]} : vector<512x128xf32> to vector<16x128xf32>
    %c55 = arith.constant 55 : index
    %c0_19 = arith.constant 0 : index
    %37 = vector.load %arg6[%c55, %c0_19] : memref<688x128xf32, #tpu.memory_space<vmem>>, vector<16x128xf32>
    tpu.vector_store %arg6[%c55, %c0_19], %36 {strides = array<i32>} : memref<688x128xf32, #tpu.memory_space<vmem>>, vector<16x128xf32>,
    %38 = vector.extract_strided_slice %29 {offsets = [48, 0], sizes = [16, 128], strides = [1, 1]} : vector<512x128xf32> to vector<16x128xf32>
    %c73 = arith.constant 73 : index
    %c0_20 = arith.constant 0 : index
    %39 = vector.load %arg6[%c73, %c0_20] : memref<688x128xf32, #tpu.memory_space<vmem>>, vector<16x128xf32>
    tpu.vector_store %arg6[%c73, %c0_20], %38 {strides = array<i32>} : memref<688x128xf32, #tpu.memory_space<vmem>>, vector<16x128xf32>,
    %40 = vector.extract_strided_slice %29 {offsets = [64, 0], sizes = [16, 128], strides = [1, 1]} : vector<512x128xf32> to vector<16x128xf32>
    %c91 = arith.constant 91 : index
    %c0_21 = arith.constant 0 : index
    %41 = vector.load %arg6[%c91, %c0_21] : memref<688x128xf32, #tpu.memory_space<vmem>>, vector<16x128xf32>
    tpu.vector_store %arg6[%c91, %c0_21], %40 {strides = array<i32>} : memref<688x128xf32, #tpu.memory_space<vmem>>, vector<16x128xf32>,
    %42 = vector.extract_strided_slice %29 {offsets = [80, 0], sizes = [16, 128], strides = [1, 1]} : vector<512x128xf32> to vector<16x128xf32>
    %c109 = arith.constant 109 : index
    %c0_22 = arith.constant 0 : index
    %43 = vector.load %arg6[%c109, %c0_22] : memref<688x128xf32, #tpu.memory_space<vmem>>, vector<16x128xf32>
    tpu.vector_store %arg6[%c109, %c0_22], %42 {strides = array<i32>} : memref<688x128xf32, #tpu.memory_space<vmem>>, vector<16x128xf32>,
    %44 = vector.extract_strided_slice %29 {offsets = [96, 0], sizes = [16, 128], strides = [1, 1]} : vector<512x128xf32> to vector<16x128xf32>
    %c127 = arith.constant 127 : index
    %c0_23 = arith.constant 0 : index
    %45 = vector.load %arg6[%c127, %c0_23] : memref<688x128xf32, #tpu.memory_space<vmem>>, vector<16x128xf32>
    tpu.vector_store %arg6[%c127, %c0_23], %44 {strides = array<i32>} : memref<688x128xf32, #tpu.memory_space<vmem>>, vector<16x128xf32>,
    %46 = vector.extract_strided_slice %29 {offsets = [112, 0], sizes = [16, 128], strides = [1, 1]} : vector<512x128xf32> to vector<16x128xf32>
    %c145 = arith.constant 145 : index
    %c0_24 = arith.constant 0 : index
    %47 = vector.load %arg6[%c145, %c0_24] : memref<688x128xf32, #tpu.memory_space<vmem>>, vector<16x128xf32>
    tpu.vector_store %arg6[%c145, %c0_24], %46 {strides = array<i32>} : memref<688x128xf32, #tpu.memory_space<vmem>>, vector<16x128xf32>,
    %48 = vector.extract_strided_slice %29 {offsets = [128, 0], sizes = [16, 128], strides = [1, 1]} : vector<512x128xf32> to vector<16x128xf32>
    %c163 = arith.constant 163 : index
    %c0_25 = arith.constant 0 : index
    %49 = vector.load %arg6[%c163, %c0_25] : memref<688x128xf32, #tpu.memory_space<vmem>>, vector<16x128xf32>
    tpu.vector_store %arg6[%c163, %c0_25], %48 {strides = array<i32>} : memref<688x128xf32, #tpu.memory_space<vmem>>, vector<16x128xf32>,
    %50 = vector.extract_strided_slice %29 {offsets = [144, 0], sizes = [16, 128], strides = [1, 1]} : vector<512x128xf32> to vector<16x128xf32>
    %c181 = arith.constant 181 : index
    %c0_26 = arith.constant 0 : index
    %51 = vector.load %arg6[%c181, %c0_26] : memref<688x128xf32, #tpu.memory_space<vmem>>, vector<16x128xf32>
    tpu.vector_store %arg6[%c181, %c0_26], %50 {strides = array<i32>} : memref<688x128xf32, #tpu.memory_space<vmem>>, vector<16x128xf32>,
    %52 = vector.extract_strided_slice %29 {offsets = [160, 0], sizes = [16, 128], strides = [1, 1]} : vector<512x128xf32> to vector<16x128xf32>
    %c199 = arith.constant 199 : index
    %c0_27 = arith.constant 0 : index
    %53 = vector.load %arg6[%c199, %c0_27] : memref<688x128xf32, #tpu.memory_space<vmem>>, vector<16x128xf32>
    tpu.vector_store %arg6[%c199, %c0_27], %52 {strides = array<i32>} : memref<688x128xf32, #tpu.memory_space<vmem>>, vector<16x128xf32>,
    %54 = vector.extract_strided_slice %29 {offsets = [176, 0], sizes = [16, 128], strides = [1, 1]} : vector<512x128xf32> to vector<16x128xf32>
    %c217 = arith.constant 217 : index
    %c0_28 = arith.constant 0 : index
    %55 = vector.load %arg6[%c217, %c0_28] : memref<688x128xf32, #tpu.memory_space<vmem>>, vector<16x128xf32>
    tpu.vector_store %arg6[%c217, %c0_28], %54 {strides = array<i32>} : memref<688x128xf32, #tpu.memory_space<vmem>>, vector<16x128xf32>,
    %56 = vector.extract_strided_slice %29 {offsets = [192, 0], sizes = [16, 128], strides = [1, 1]} : vector<512x128xf32> to vector<16x128xf32>
    %c235 = arith.constant 235 : index
    %c0_29 = arith.constant 0 : index
    %57 = vector.load %arg6[%c235, %c0_29] : memref<688x128xf32, #tpu.memory_space<vmem>>, vector<16x128xf32>
    tpu.vector_store %arg6[%c235, %c0_29], %56 {strides = array<i32>} : memref<688x128xf32, #tpu.memory_space<vmem>>, vector<16x128xf32>,
    %58 = vector.extract_strided_slice %29 {offsets = [208, 0], sizes = [16, 128], strides = [1, 1]} : vector<512x128xf32> to vector<16x128xf32>
    %c253 = arith.constant 253 : index
    %c0_30 = arith.constant 0 : index
    %59 = vector.load %arg6[%c253, %c0_30] : memref<688x128xf32, #tpu.memory_space<vmem>>, vector<16x128xf32>
    tpu.vector_store %arg6[%c253, %c0_30], %58 {strides = array<i32>} : memref<688x128xf32, #tpu.memory_space<vmem>>, vector<16x128xf32>,
    %60 = vector.extract_strided_slice %29 {offsets = [224, 0], sizes = [16, 128], strides = [1, 1]} : vector<512x128xf32> to vector<16x128xf32>
    %c271 = arith.constant 271 : index
    %c0_31 = arith.constant 0 : index
    %61 = vector.load %arg6[%c271, %c0_31] : memref<688x128xf32, #tpu.memory_space<vmem>>, vector<16x128xf32>
    tpu.vector_store %arg6[%c271, %c0_31], %60 {strides = array<i32>} : memref<688x128xf32, #tpu.memory_space<vmem>>, vector<16x128xf32>,
    %62 = vector.extract_strided_slice %29 {offsets = [240, 0], sizes = [16, 128], strides = [1, 1]} : vector<512x128xf32> to vector<16x128xf32>
    %c289 = arith.constant 289 : index
    %c0_32 = arith.constant 0 : index
    %63 = vector.load %arg6[%c289, %c0_32] : memref<688x128xf32, #tpu.memory_space<vmem>>, vector<16x128xf32>
    tpu.vector_store %arg6[%c289, %c0_32], %62 {strides = array<i32>} : memref<688x128xf32, #tpu.memory_space<vmem>>, vector<16x128xf32>,
    %64 = vector.extract_strided_slice %29 {offsets = [256, 0], sizes = [16, 128], strides = [1, 1]} : vector<512x128xf32> to vector<16x128xf32>
    %c343 = arith.constant 343 : index
    %c0_33 = arith.constant 0 : index
    %65 = vector.load %arg6[%c343, %c0_33] : memref<688x128xf32, #tpu.memory_space<vmem>>, vector<16x128xf32>
    tpu.vector_store %arg6[%c343, %c0_33], %64 {strides = array<i32>} : memref<688x128xf32, #tpu.memory_space<vmem>>, vector<16x128xf32>,
    %66 = vector.extract_strided_slice %29 {offsets = [272, 0], sizes = [16, 128], strides = [1, 1]} : vector<512x128xf32> to vector<16x128xf32>
    %c361 = arith.constant 361 : index
    %c0_34 = arith.constant 0 : index
    %67 = vector.load %arg6[%c361, %c0_34] : memref<688x128xf32, #tpu.memory_space<vmem>>, vector<16x128xf32>
    tpu.vector_store %arg6[%c361, %c0_34], %66 {strides = array<i32>} : memref<688x128xf32, #tpu.memory_space<vmem>>, vector<16x128xf32>,
    %68 = vector.extract_strided_slice %29 {offsets = [288, 0], sizes = [16, 128], strides = [1, 1]} : vector<512x128xf32> to vector<16x128xf32>
    %c379 = arith.constant 379 : index
    %c0_35 = arith.constant 0 : index
    %69 = vector.load %arg6[%c379, %c0_35] : memref<688x128xf32, #tpu.memory_space<vmem>>, vector<16x128xf32>
    tpu.vector_store %arg6[%c379, %c0_35], %68 {strides = array<i32>} : memref<688x128xf32, #tpu.memory_space<vmem>>, vector<16x128xf32>,
    %70 = vector.extract_strided_slice %29 {offsets = [304, 0], sizes = [16, 128], strides = [1, 1]} : vector<512x128xf32> to vector<16x128xf32>
    %c397 = arith.constant 397 : index
    %c0_36 = arith.constant 0 : index
    %71 = vector.load %arg6[%c397, %c0_36] : memref<688x128xf32, #tpu.memory_space<vmem>>, vector<16x128xf32>
    tpu.vector_store %arg6[%c397, %c0_36], %70 {strides = array<i32>} : memref<688x128xf32, #tpu.memory_space<vmem>>, vector<16x128xf32>,
    %72 = vector.extract_strided_slice %29 {offsets = [320, 0], sizes = [16, 128], strides = [1, 1]} : vector<512x128xf32> to vector<16x128xf32>
    %c415 = arith.constant 415 : index
    %c0_37 = arith.constant 0 : index
    %73 = vector.load %arg6[%c415, %c0_37] : memref<688x128xf32, #tpu.memory_space<vmem>>, vector<16x128xf32>
    tpu.vector_store %arg6[%c415, %c0_37], %72 {strides = array<i32>} : memref<688x128xf32, #tpu.memory_space<vmem>>, vector<16x128xf32>,
    %74 = vector.extract_strided_slice %29 {offsets = [336, 0], sizes = [16, 128], strides = [1, 1]} : vector<512x128xf32> to vector<16x128xf32>
    %c433 = arith.constant 433 : index
    %c0_38 = arith.constant 0 : index
    %75 = vector.load %arg6[%c433, %c0_38] : memref<688x128xf32, #tpu.memory_space<vmem>>, vector<16x128xf32>
    tpu.vector_store %arg6[%c433, %c0_38], %74 {strides = array<i32>} : memref<688x128xf32, #tpu.memory_space<vmem>>, vector<16x128xf32>,
    %76 = vector.extract_strided_slice %29 {offsets = [352, 0], sizes = [16, 128], strides = [1, 1]} : vector<512x128xf32> to vector<16x128xf32>
    %c451 = arith.constant 451 : index
    %c0_39 = arith.constant 0 : index
    %77 = vector.load %arg6[%c451, %c0_39] : memref<688x128xf32, #tpu.memory_space<vmem>>, vector<16x128xf32>
    tpu.vector_store %arg6[%c451, %c0_39], %76 {strides = array<i32>} : memref<688x128xf32, #tpu.memory_space<vmem>>, vector<16x128xf32>,
    %78 = vector.extract_strided_slice %29 {offsets = [368, 0], sizes = [16, 128], strides = [1, 1]} : vector<512x128xf32> to vector<16x128xf32>
    %c469 = arith.constant 469 : index
    %c0_40 = arith.constant 0 : index
    %79 = vector.load %arg6[%c469, %c0_40] : memref<688x128xf32, #tpu.memory_space<vmem>>, vector<16x128xf32>
    tpu.vector_store %arg6[%c469, %c0_40], %78 {strides = array<i32>} : memref<688x128xf32, #tpu.memory_space<vmem>>, vector<16x128xf32>,
    %80 = vector.extract_strided_slice %29 {offsets = [384, 0], sizes = [16, 128], strides = [1, 1]} : vector<512x128xf32> to vector<16x128xf32>
    %c487 = arith.constant 487 : index
    %c0_41 = arith.constant 0 : index
    %81 = vector.load %arg6[%c487, %c0_41] : memref<688x128xf32, #tpu.memory_space<vmem>>, vector<16x128xf32>
    tpu.vector_store %arg6[%c487, %c0_41], %80 {strides = array<i32>} : memref<688x128xf32, #tpu.memory_space<vmem>>, vector<16x128xf32>,
    %82 = vector.extract_strided_slice %29 {offsets = [400, 0], sizes = [16, 128], strides = [1, 1]} : vector<512x128xf32> to vector<16x128xf32>
    %c505 = arith.constant 505 : index
    %c0_42 = arith.constant 0 : index
    %83 = vector.load %arg6[%c505, %c0_42] : memref<688x128xf32, #tpu.memory_space<vmem>>, vector<16x128xf32>
    tpu.vector_store %arg6[%c505, %c0_42], %82 {strides = array<i32>} : memref<688x128xf32, #tpu.memory_space<vmem>>, vector<16x128xf32>,
    %84 = vector.extract_strided_slice %29 {offsets = [416, 0], sizes = [16, 128], strides = [1, 1]} : vector<512x128xf32> to vector<16x128xf32>
    %c523 = arith.constant 523 : index
    %c0_43 = arith.constant 0 : index
    %85 = vector.load %arg6[%c523, %c0_43] : memref<688x128xf32, #tpu.memory_space<vmem>>, vector<16x128xf32>
    tpu.vector_store %arg6[%c523, %c0_43], %84 {strides = array<i32>} : memref<688x128xf32, #tpu.memory_space<vmem>>, vector<16x128xf32>,
    %86 = vector.extract_strided_slice %29 {offsets = [432, 0], sizes = [16, 128], strides = [1, 1]} : vector<512x128xf32> to vector<16x128xf32>
    %c541 = arith.constant 541 : index
    %c0_44 = arith.constant 0 : index
    %87 = vector.load %arg6[%c541, %c0_44] : memref<688x128xf32, #tpu.memory_space<vmem>>, vector<16x128xf32>
    tpu.vector_store %arg6[%c541, %c0_44], %86 {strides = array<i32>} : memref<688x128xf32, #tpu.memory_space<vmem>>, vector<16x128xf32>,
    %88 = vector.extract_strided_slice %29 {offsets = [448, 0], sizes = [16, 128], strides = [1, 1]} : vector<512x128xf32> to vector<16x128xf32>
    %c559 = arith.constant 559 : index
    %c0_45 = arith.constant 0 : index
    %89 = vector.load %arg6[%c559, %c0_45] : memref<688x128xf32, #tpu.memory_space<vmem>>, vector<16x128xf32>
    tpu.vector_store %arg6[%c559, %c0_45], %88 {strides = array<i32>} : memref<688x128xf32, #tpu.memory_space<vmem>>, vector<16x128xf32>,
    %90 = vector.extract_strided_slice %29 {offsets = [464, 0], sizes = [16, 128], strides = [1, 1]} : vector<512x128xf32> to vector<16x128xf32>
    %c577 = arith.constant 577 : index
    %c0_46 = arith.constant 0 : index
    %91 = vector.load %arg6[%c577, %c0_46] : memref<688x128xf32, #tpu.memory_space<vmem>>, vector<16x128xf32>
    tpu.vector_store %arg6[%c577, %c0_46], %90 {strides = array<i32>} : memref<688x128xf32, #tpu.memory_space<vmem>>, vector<16x128xf32>,
    %92 = vector.extract_strided_slice %29 {offsets = [480, 0], sizes = [16, 128], strides = [1, 1]} : vector<512x128xf32> to vector<16x128xf32>
    %c595 = arith.constant 595 : index
    %c0_47 = arith.constant 0 : index
    %93 = vector.load %arg6[%c595, %c0_47] : memref<688x128xf32, #tpu.memory_space<vmem>>, vector<16x128xf32>
    tpu.vector_store %arg6[%c595, %c0_47], %92 {strides = array<i32>} : memref<688x128xf32, #tpu.memory_space<vmem>>, vector<16x128xf32>,
    %94 = vector.extract_strided_slice %29 {offsets = [496, 0], sizes = [16, 128], strides = [1, 1]} : vector<512x128xf32> to vector<16x128xf32>
    %c613 = arith.constant 613 : index
    %c0_48 = arith.constant 0 : index
    %95 = vector.load %arg6[%c613, %c0_48] : memref<688x128xf32, #tpu.memory_space<vmem>>, vector<16x128xf32>
    tpu.vector_store %arg6[%c613, %c0_48], %94 {strides = array<i32>} : memref<688x128xf32, #tpu.memory_space<vmem>>, vector<16x128xf32>,
    %c0_49 = arith.constant 0 : index
    %c0_50 = arith.constant 0 : index
    %96 = vector.load %arg6[%c0_49, %c0_50] : memref<688x128xf32, #tpu.memory_space<vmem>>, vector<648x128xf32>
    %c1 = arith.constant 1 : index
    %c0_51 = arith.constant 0 : index
    %97 = vector.load %arg6[%c1, %c0_51] : memref<688x128xf32, #tpu.memory_space<vmem>>, vector<648x128xf32>
    %98 = arith.maximumf %96, %97 : vector<648x128xf32>
    %c2 = arith.constant 2 : index
    %c0_52 = arith.constant 0 : index
    %99 = vector.load %arg6[%c2, %c0_52] : memref<688x128xf32, #tpu.memory_space<vmem>>, vector<648x128xf32>
    %100 = arith.maximumf %98, %99 : vector<648x128xf32>
    %c18 = arith.constant 18 : index
    %c0_53 = arith.constant 0 : index
    %101 = vector.load %arg6[%c18, %c0_53] : memref<688x128xf32, #tpu.memory_space<vmem>>, vector<648x128xf32>
    %102 = arith.maximumf %100, %101 : vector<648x128xf32>
    %c19_54 = arith.constant 19 : index
    %c0_55 = arith.constant 0 : index
    %103 = vector.load %arg6[%c19_54, %c0_55] : memref<688x128xf32, #tpu.memory_space<vmem>>, vector<648x128xf32>
    %104 = arith.maximumf %102, %103 : vector<648x128xf32>
    %c20 = arith.constant 20 : index
    %c0_56 = arith.constant 0 : index
    %105 = vector.load %arg6[%c20, %c0_56] : memref<688x128xf32, #tpu.memory_space<vmem>>, vector<648x128xf32>
    %106 = arith.maximumf %104, %105 : vector<648x128xf32>
    %c36 = arith.constant 36 : index
    %c0_57 = arith.constant 0 : index
    %107 = vector.load %arg6[%c36, %c0_57] : memref<688x128xf32, #tpu.memory_space<vmem>>, vector<648x128xf32>
    %108 = arith.maximumf %106, %107 : vector<648x128xf32>
    %c37_58 = arith.constant 37 : index
    %c0_59 = arith.constant 0 : index
    %109 = vector.load %arg6[%c37_58, %c0_59] : memref<688x128xf32, #tpu.memory_space<vmem>>, vector<648x128xf32>
    %110 = arith.maximumf %108, %109 : vector<648x128xf32>
    %c38 = arith.constant 38 : index
    %c0_60 = arith.constant 0 : index
    %111 = vector.load %arg6[%c38, %c0_60] : memref<688x128xf32, #tpu.memory_space<vmem>>, vector<648x128xf32>
    %112 = arith.maximumf %110, %111 : vector<648x128xf32>
    %c0_61 = arith.constant 0 : index
    %c0_62 = arith.constant 0 : index
    %113 = vector.load %arg5[%c0_61, %c0_62] : memref<648x128xf32, #tpu.memory_space<vmem>>, vector<648x128xf32>
    tpu.vector_store %arg5[%c0_61, %c0_62], %112 {strides = array<i32>} : memref<648x128xf32, #tpu.memory_space<vmem>>, vector<648x128xf32>,
    return
  }
  func.func @transform_0(%arg0: i32) -> (i32, i32) {
    %c0_i32 = arith.constant 0 : i32
    %c0_i32_0 = arith.constant 0 : i32
    %c0_i32_1 = arith.constant 0 : i32
    return %c0_i32, %c0_i32_0 : i32, i32
  }
  func.func @transform_1(%arg0: i32) -> (i32, i32) {
    %c0_i32 = arith.constant 0 : i32
    %c0_i32_0 = arith.constant 0 : i32
    %c0_i32_1 = arith.constant 0 : i32
    return %c0_i32, %c0_i32_0 : i32, i32
  }
  func.func @transform_2(%arg0: i32) -> (i32, i32) {
    %c0_i32 = arith.constant 0 : i32
    %c0_i32_0 = arith.constant 0 : i32
    %c0_i32_1 = arith.constant 0 : i32
    return %c0_i32, %c0_i32_0 : i32, i32
  }
  func.func @transform_3(%arg0: i32) -> (i32, i32) {
    %c0_i32 = arith.constant 0 : i32
    %c0_i32_0 = arith.constant 0 : i32
    %c0_i32_1 = arith.constant 0 : i32
    return %c0_i32, %c0_i32_0 : i32, i32
  }
  func.func @transform_4(%arg0: i32) -> (i32, i32) {
    %c0_i32 = arith.constant 0 : i32
    %c0_i32_0 = arith.constant 0 : i32
    %c0_i32_1 = arith.constant 0 : i32
    return %c0_i32, %c0_i32_0 : i32, i32
  }
}

module attributes {stable_mosaic.version = 11 : i64} {
  func.func @_conv_bn_relu_kernel(%arg0: i32, %arg1: memref<128x576xbf16, #tpu.memory_space<vmem>>, %arg2: memref<576x128xbf16, #tpu.memory_space<vmem>>, %arg3: memref<1x128xf32, #tpu.memory_space<vmem>>, %arg4: memref<1x128xf32, #tpu.memory_space<vmem>>, %arg5: memref<128x128xf32, #tpu.memory_space<vmem>>) attributes {dimension_semantics = [#tpu.dimension_semantics<parallel>], iteration_bounds = array<i64: 1>, scalar_prefetch = 0 : i64, scratch_operands = 0 : i64, tpu.core_type = #tpu.core_type<tc>, window_params = [{pipeline_mode = #tpu.pipeline_mode<synchronous>, transform_indices = @transform_0, window_bounds = array<i64: 128, 576>}, {transform_indices = @transform_1, window_bounds = array<i64: 576, 128>}, {transform_indices = @transform_2, window_bounds = array<i64: 1, 128>}, {transform_indices = @transform_3, window_bounds = array<i64: 1, 128>}, {transform_indices = @transform_4, window_bounds = array<i64: 128, 128>}]} {
    %c0 = arith.constant 0 : index
    %c0_0 = arith.constant 0 : index
    %0 = vector.load %arg1[%c0, %c0_0] : memref<128x576xbf16, #tpu.memory_space<vmem>>, vector<128x576xbf16>
    %c0_1 = arith.constant 0 : index
    %c0_2 = arith.constant 0 : index
    %1 = vector.load %arg2[%c0_1, %c0_2] : memref<576x128xbf16, #tpu.memory_space<vmem>>, vector<576x128xbf16>
    %cst = arith.constant dense<0.000000e+00> : vector<128x128xf32>
    %2 = tpu.matmul %0, %1, %cst {dimension_numbers = #tpu.dot_dimension_numbers<[1], [0], [0], [1], [0, 0, 1, 1], [], []>} : vector<128x576xbf16>, vector<576x128xbf16>, vector<128x128xf32> -> vector<128x128xf32>
    %cst_3 = arith.constant dense<0.000000e+00> : vector<128xf32>
    %3 = vector.multi_reduction <add>, %2, %cst_3 [0] : vector<128x128xf32> to vector<128xf32>
    %4 = vector.shape_cast %3 : vector<128xf32> to vector<1x128xf32>
    %cst_4 = arith.constant 7.812500e-03 : f32
    %5 = vector.broadcast %cst_4 : f32 to vector<1x128xf32>
    %6 = arith.mulf %4, %5 : vector<1x128xf32>
    %7 = arith.mulf %2, %2 : vector<128x128xf32>
    %cst_5 = arith.constant dense<0.000000e+00> : vector<128xf32>
    %8 = vector.multi_reduction <add>, %7, %cst_5 [0] : vector<128x128xf32> to vector<128xf32>
    %9 = vector.shape_cast %8 : vector<128xf32> to vector<1x128xf32>
    %cst_6 = arith.constant 7.812500e-03 : f32
    %10 = vector.broadcast %cst_6 : f32 to vector<1x128xf32>
    %11 = arith.mulf %9, %10 : vector<1x128xf32>
    %12 = arith.mulf %6, %6 : vector<1x128xf32>
    %13 = arith.subf %11, %12 : vector<1x128xf32>
    %cst_7 = arith.constant 0.000000e+00 : f32
    %14 = vector.broadcast %cst_7 : f32 to vector<1x128xf32>
    %15 = arith.maximumf %13, %14 : vector<1x128xf32>
    %c0_8 = arith.constant 0 : index
    %c0_9 = arith.constant 0 : index
    %16 = vector.load %arg3[%c0_8, %c0_9] : memref<1x128xf32, #tpu.memory_space<vmem>>, vector<1x128xf32>
    %cst_10 = arith.constant 9.99999974E-6 : f32
    %17 = vector.broadcast %cst_10 : f32 to vector<1x128xf32>
    %18 = arith.addf %15, %17 : vector<1x128xf32>
    %19 = math.rsqrt %18 : vector<1x128xf32>
    %20 = arith.mulf %16, %19 : vector<1x128xf32>
    %c0_11 = arith.constant 0 : index
    %c0_12 = arith.constant 0 : index
    %21 = vector.load %arg4[%c0_11, %c0_12] : memref<1x128xf32, #tpu.memory_space<vmem>>, vector<1x128xf32>
    %22 = arith.mulf %6, %20 : vector<1x128xf32>
    %23 = arith.subf %21, %22 : vector<1x128xf32>
    %24 = vector.broadcast %20 : vector<1x128xf32> to vector<128x128xf32>
    %25 = arith.mulf %2, %24 : vector<128x128xf32>
    %26 = vector.broadcast %23 : vector<1x128xf32> to vector<128x128xf32>
    %27 = arith.addf %25, %26 : vector<128x128xf32>
    %cst_13 = arith.constant 0.000000e+00 : f32
    %28 = vector.broadcast %cst_13 : f32 to vector<128x128xf32>
    %29 = arith.maximumf %27, %28 : vector<128x128xf32>
    %c0_14 = arith.constant 0 : index
    %c0_15 = arith.constant 0 : index
    %30 = vector.load %arg5[%c0_14, %c0_15] : memref<128x128xf32, #tpu.memory_space<vmem>>, vector<128x128xf32>
    tpu.vector_store %arg5[%c0_14, %c0_15], %29 {strides = array<i32>} : memref<128x128xf32, #tpu.memory_space<vmem>>, vector<128x128xf32>,
    return
  }
  func.func @transform_0(%arg0: i32) -> (i32, i32) {
    %c0_i32 = arith.constant 0 : i32
    %c0_i32_0 = arith.constant 0 : i32
    %c0_i32_1 = arith.constant 0 : i32
    return %c0_i32, %c0_i32_0 : i32, i32
  }
  func.func @transform_1(%arg0: i32) -> (i32, i32) {
    %c0_i32 = arith.constant 0 : i32
    %c0_i32_0 = arith.constant 0 : i32
    return %c0_i32, %arg0 : i32, i32
  }
  func.func @transform_2(%arg0: i32) -> (i32, i32) {
    %c0_i32 = arith.constant 0 : i32
    %c0_i32_0 = arith.constant 0 : i32
    return %c0_i32, %arg0 : i32, i32
  }
  func.func @transform_3(%arg0: i32) -> (i32, i32) {
    %c0_i32 = arith.constant 0 : i32
    %c0_i32_0 = arith.constant 0 : i32
    return %c0_i32, %arg0 : i32, i32
  }
  func.func @transform_4(%arg0: i32) -> (i32, i32) {
    %c0_i32 = arith.constant 0 : i32
    %c0_i32_0 = arith.constant 0 : i32
    return %c0_i32, %arg0 : i32, i32
  }
}

module attributes {stable_mosaic.version = 11 : i64} {
  func.func @_conv_bn_relu_kernel(%arg0: i32, %arg1: memref<32x576xbf16, #tpu.memory_space<vmem>>, %arg2: memref<576x128xbf16, #tpu.memory_space<vmem>>, %arg3: memref<1x128xf32, #tpu.memory_space<vmem>>, %arg4: memref<1x128xf32, #tpu.memory_space<vmem>>, %arg5: memref<32x128xf32, #tpu.memory_space<vmem>>) attributes {dimension_semantics = [#tpu.dimension_semantics<parallel>], iteration_bounds = array<i64: 1>, scalar_prefetch = 0 : i64, scratch_operands = 0 : i64, tpu.core_type = #tpu.core_type<tc>, window_params = [{pipeline_mode = #tpu.pipeline_mode<synchronous>, transform_indices = @transform_0, window_bounds = array<i64: 32, 576>}, {transform_indices = @transform_1, window_bounds = array<i64: 576, 128>}, {transform_indices = @transform_2, window_bounds = array<i64: 1, 128>}, {transform_indices = @transform_3, window_bounds = array<i64: 1, 128>}, {transform_indices = @transform_4, window_bounds = array<i64: 32, 128>}]} {
    %c0 = arith.constant 0 : index
    %c0_0 = arith.constant 0 : index
    %0 = vector.load %arg1[%c0, %c0_0] : memref<32x576xbf16, #tpu.memory_space<vmem>>, vector<32x576xbf16>
    %c0_1 = arith.constant 0 : index
    %c0_2 = arith.constant 0 : index
    %1 = vector.load %arg2[%c0_1, %c0_2] : memref<576x128xbf16, #tpu.memory_space<vmem>>, vector<576x128xbf16>
    %cst = arith.constant dense<0.000000e+00> : vector<32x128xf32>
    %2 = tpu.matmul %0, %1, %cst {dimension_numbers = #tpu.dot_dimension_numbers<[1], [0], [0], [1], [0, 0, 1, 1], [], []>} : vector<32x576xbf16>, vector<576x128xbf16>, vector<32x128xf32> -> vector<32x128xf32>
    %cst_3 = arith.constant dense<0.000000e+00> : vector<128xf32>
    %3 = vector.multi_reduction <add>, %2, %cst_3 [0] : vector<32x128xf32> to vector<128xf32>
    %4 = vector.shape_cast %3 : vector<128xf32> to vector<1x128xf32>
    %cst_4 = arith.constant 3.125000e-02 : f32
    %5 = vector.broadcast %cst_4 : f32 to vector<1x128xf32>
    %6 = arith.mulf %4, %5 : vector<1x128xf32>
    %7 = arith.mulf %2, %2 : vector<32x128xf32>
    %cst_5 = arith.constant dense<0.000000e+00> : vector<128xf32>
    %8 = vector.multi_reduction <add>, %7, %cst_5 [0] : vector<32x128xf32> to vector<128xf32>
    %9 = vector.shape_cast %8 : vector<128xf32> to vector<1x128xf32>
    %cst_6 = arith.constant 3.125000e-02 : f32
    %10 = vector.broadcast %cst_6 : f32 to vector<1x128xf32>
    %11 = arith.mulf %9, %10 : vector<1x128xf32>
    %12 = arith.mulf %6, %6 : vector<1x128xf32>
    %13 = arith.subf %11, %12 : vector<1x128xf32>
    %cst_7 = arith.constant 0.000000e+00 : f32
    %14 = vector.broadcast %cst_7 : f32 to vector<1x128xf32>
    %15 = arith.maximumf %13, %14 : vector<1x128xf32>
    %c0_8 = arith.constant 0 : index
    %c0_9 = arith.constant 0 : index
    %16 = vector.load %arg3[%c0_8, %c0_9] : memref<1x128xf32, #tpu.memory_space<vmem>>, vector<1x128xf32>
    %cst_10 = arith.constant 9.99999974E-6 : f32
    %17 = vector.broadcast %cst_10 : f32 to vector<1x128xf32>
    %18 = arith.addf %15, %17 : vector<1x128xf32>
    %19 = math.rsqrt %18 : vector<1x128xf32>
    %20 = arith.mulf %16, %19 : vector<1x128xf32>
    %c0_11 = arith.constant 0 : index
    %c0_12 = arith.constant 0 : index
    %21 = vector.load %arg4[%c0_11, %c0_12] : memref<1x128xf32, #tpu.memory_space<vmem>>, vector<1x128xf32>
    %22 = arith.mulf %6, %20 : vector<1x128xf32>
    %23 = arith.subf %21, %22 : vector<1x128xf32>
    %24 = vector.broadcast %20 : vector<1x128xf32> to vector<32x128xf32>
    %25 = arith.mulf %2, %24 : vector<32x128xf32>
    %26 = vector.broadcast %23 : vector<1x128xf32> to vector<32x128xf32>
    %27 = arith.addf %25, %26 : vector<32x128xf32>
    %cst_13 = arith.constant 0.000000e+00 : f32
    %28 = vector.broadcast %cst_13 : f32 to vector<32x128xf32>
    %29 = arith.maximumf %27, %28 : vector<32x128xf32>
    %c0_14 = arith.constant 0 : index
    %c0_15 = arith.constant 0 : index
    %30 = vector.load %arg5[%c0_14, %c0_15] : memref<32x128xf32, #tpu.memory_space<vmem>>, vector<32x128xf32>
    tpu.vector_store %arg5[%c0_14, %c0_15], %29 {strides = array<i32>} : memref<32x128xf32, #tpu.memory_space<vmem>>, vector<32x128xf32>,
    return
  }
  func.func @transform_0(%arg0: i32) -> (i32, i32) {
    %c0_i32 = arith.constant 0 : i32
    %c0_i32_0 = arith.constant 0 : i32
    %c0_i32_1 = arith.constant 0 : i32
    return %c0_i32, %c0_i32_0 : i32, i32
  }
  func.func @transform_1(%arg0: i32) -> (i32, i32) {
    %c0_i32 = arith.constant 0 : i32
    %c0_i32_0 = arith.constant 0 : i32
    return %c0_i32, %arg0 : i32, i32
  }
  func.func @transform_2(%arg0: i32) -> (i32, i32) {
    %c0_i32 = arith.constant 0 : i32
    %c0_i32_0 = arith.constant 0 : i32
    return %c0_i32, %arg0 : i32, i32
  }
  func.func @transform_3(%arg0: i32) -> (i32, i32) {
    %c0_i32 = arith.constant 0 : i32
    %c0_i32_0 = arith.constant 0 : i32
    return %c0_i32, %arg0 : i32, i32
  }
  func.func @transform_4(%arg0: i32) -> (i32, i32) {
    %c0_i32 = arith.constant 0 : i32
    %c0_i32_0 = arith.constant 0 : i32
    return %c0_i32, %arg0 : i32, i32
  }
}

module attributes {stable_mosaic.version = 11 : i64} {
  func.func @_conv_bn_relu_kernel(%arg0: i32, %arg1: memref<32x1152xbf16, #tpu.memory_space<vmem>>, %arg2: memref<1152x128xbf16, #tpu.memory_space<vmem>>, %arg3: memref<1x128xf32, #tpu.memory_space<vmem>>, %arg4: memref<1x128xf32, #tpu.memory_space<vmem>>, %arg5: memref<32x128xf32, #tpu.memory_space<vmem>>) attributes {dimension_semantics = [#tpu.dimension_semantics<parallel>], iteration_bounds = array<i64: 1>, scalar_prefetch = 0 : i64, scratch_operands = 0 : i64, tpu.core_type = #tpu.core_type<tc>, window_params = [{pipeline_mode = #tpu.pipeline_mode<synchronous>, transform_indices = @transform_0, window_bounds = array<i64: 32, 1152>}, {transform_indices = @transform_1, window_bounds = array<i64: 1152, 128>}, {transform_indices = @transform_2, window_bounds = array<i64: 1, 128>}, {transform_indices = @transform_3, window_bounds = array<i64: 1, 128>}, {transform_indices = @transform_4, window_bounds = array<i64: 32, 128>}]} {
    %c0 = arith.constant 0 : index
    %c0_0 = arith.constant 0 : index
    %0 = vector.load %arg1[%c0, %c0_0] : memref<32x1152xbf16, #tpu.memory_space<vmem>>, vector<32x1152xbf16>
    %c0_1 = arith.constant 0 : index
    %c0_2 = arith.constant 0 : index
    %1 = vector.load %arg2[%c0_1, %c0_2] : memref<1152x128xbf16, #tpu.memory_space<vmem>>, vector<1152x128xbf16>
    %cst = arith.constant dense<0.000000e+00> : vector<32x128xf32>
    %2 = tpu.matmul %0, %1, %cst {dimension_numbers = #tpu.dot_dimension_numbers<[1], [0], [0], [1], [0, 0, 1, 1], [], []>} : vector<32x1152xbf16>, vector<1152x128xbf16>, vector<32x128xf32> -> vector<32x128xf32>
    %cst_3 = arith.constant dense<0.000000e+00> : vector<128xf32>
    %3 = vector.multi_reduction <add>, %2, %cst_3 [0] : vector<32x128xf32> to vector<128xf32>
    %4 = vector.shape_cast %3 : vector<128xf32> to vector<1x128xf32>
    %cst_4 = arith.constant 3.125000e-02 : f32
    %5 = vector.broadcast %cst_4 : f32 to vector<1x128xf32>
    %6 = arith.mulf %4, %5 : vector<1x128xf32>
    %7 = arith.mulf %2, %2 : vector<32x128xf32>
    %cst_5 = arith.constant dense<0.000000e+00> : vector<128xf32>
    %8 = vector.multi_reduction <add>, %7, %cst_5 [0] : vector<32x128xf32> to vector<128xf32>
    %9 = vector.shape_cast %8 : vector<128xf32> to vector<1x128xf32>
    %cst_6 = arith.constant 3.125000e-02 : f32
    %10 = vector.broadcast %cst_6 : f32 to vector<1x128xf32>
    %11 = arith.mulf %9, %10 : vector<1x128xf32>
    %12 = arith.mulf %6, %6 : vector<1x128xf32>
    %13 = arith.subf %11, %12 : vector<1x128xf32>
    %cst_7 = arith.constant 0.000000e+00 : f32
    %14 = vector.broadcast %cst_7 : f32 to vector<1x128xf32>
    %15 = arith.maximumf %13, %14 : vector<1x128xf32>
    %c0_8 = arith.constant 0 : index
    %c0_9 = arith.constant 0 : index
    %16 = vector.load %arg3[%c0_8, %c0_9] : memref<1x128xf32, #tpu.memory_space<vmem>>, vector<1x128xf32>
    %cst_10 = arith.constant 9.99999974E-6 : f32
    %17 = vector.broadcast %cst_10 : f32 to vector<1x128xf32>
    %18 = arith.addf %15, %17 : vector<1x128xf32>
    %19 = math.rsqrt %18 : vector<1x128xf32>
    %20 = arith.mulf %16, %19 : vector<1x128xf32>
    %c0_11 = arith.constant 0 : index
    %c0_12 = arith.constant 0 : index
    %21 = vector.load %arg4[%c0_11, %c0_12] : memref<1x128xf32, #tpu.memory_space<vmem>>, vector<1x128xf32>
    %22 = arith.mulf %6, %20 : vector<1x128xf32>
    %23 = arith.subf %21, %22 : vector<1x128xf32>
    %24 = vector.broadcast %20 : vector<1x128xf32> to vector<32x128xf32>
    %25 = arith.mulf %2, %24 : vector<32x128xf32>
    %26 = vector.broadcast %23 : vector<1x128xf32> to vector<32x128xf32>
    %27 = arith.addf %25, %26 : vector<32x128xf32>
    %cst_13 = arith.constant 0.000000e+00 : f32
    %28 = vector.broadcast %cst_13 : f32 to vector<32x128xf32>
    %29 = arith.maximumf %27, %28 : vector<32x128xf32>
    %c0_14 = arith.constant 0 : index
    %c0_15 = arith.constant 0 : index
    %30 = vector.load %arg5[%c0_14, %c0_15] : memref<32x128xf32, #tpu.memory_space<vmem>>, vector<32x128xf32>
    tpu.vector_store %arg5[%c0_14, %c0_15], %29 {strides = array<i32>} : memref<32x128xf32, #tpu.memory_space<vmem>>, vector<32x128xf32>,
    return
  }
  func.func @transform_0(%arg0: i32) -> (i32, i32) {
    %c0_i32 = arith.constant 0 : i32
    %c0_i32_0 = arith.constant 0 : i32
    %c0_i32_1 = arith.constant 0 : i32
    return %c0_i32, %c0_i32_0 : i32, i32
  }
  func.func @transform_1(%arg0: i32) -> (i32, i32) {
    %c0_i32 = arith.constant 0 : i32
    %c0_i32_0 = arith.constant 0 : i32
    return %c0_i32, %arg0 : i32, i32
  }
  func.func @transform_2(%arg0: i32) -> (i32, i32) {
    %c0_i32 = arith.constant 0 : i32
    %c0_i32_0 = arith.constant 0 : i32
    return %c0_i32, %arg0 : i32, i32
  }
  func.func @transform_3(%arg0: i32) -> (i32, i32) {
    %c0_i32 = arith.constant 0 : i32
    %c0_i32_0 = arith.constant 0 : i32
    return %c0_i32, %arg0 : i32, i32
  }
  func.func @transform_4(%arg0: i32) -> (i32, i32) {
    %c0_i32 = arith.constant 0 : i32
    %c0_i32_0 = arith.constant 0 : i32
    return %c0_i32, %arg0 : i32, i32
  }
}

module attributes {stable_mosaic.version = 11 : i64} {
  func.func @_conv_bn_relu_kernel(%arg0: i32, %arg1: memref<8x1152xbf16, #tpu.memory_space<vmem>>, %arg2: memref<1152x128xbf16, #tpu.memory_space<vmem>>, %arg3: memref<1x128xf32, #tpu.memory_space<vmem>>, %arg4: memref<1x128xf32, #tpu.memory_space<vmem>>, %arg5: memref<8x128xf32, #tpu.memory_space<vmem>>) attributes {dimension_semantics = [#tpu.dimension_semantics<parallel>], iteration_bounds = array<i64: 1>, scalar_prefetch = 0 : i64, scratch_operands = 0 : i64, tpu.core_type = #tpu.core_type<tc>, window_params = [{pipeline_mode = #tpu.pipeline_mode<synchronous>, transform_indices = @transform_0, window_bounds = array<i64: 8, 1152>}, {transform_indices = @transform_1, window_bounds = array<i64: 1152, 128>}, {transform_indices = @transform_2, window_bounds = array<i64: 1, 128>}, {transform_indices = @transform_3, window_bounds = array<i64: 1, 128>}, {transform_indices = @transform_4, window_bounds = array<i64: 8, 128>}]} {
    %c0 = arith.constant 0 : index
    %c0_0 = arith.constant 0 : index
    %0 = vector.load %arg1[%c0, %c0_0] : memref<8x1152xbf16, #tpu.memory_space<vmem>>, vector<8x1152xbf16>
    %c0_1 = arith.constant 0 : index
    %c0_2 = arith.constant 0 : index
    %1 = vector.load %arg2[%c0_1, %c0_2] : memref<1152x128xbf16, #tpu.memory_space<vmem>>, vector<1152x128xbf16>
    %cst = arith.constant dense<0.000000e+00> : vector<8x128xf32>
    %2 = tpu.matmul %0, %1, %cst {dimension_numbers = #tpu.dot_dimension_numbers<[1], [0], [0], [1], [0, 0, 1, 1], [], []>} : vector<8x1152xbf16>, vector<1152x128xbf16>, vector<8x128xf32> -> vector<8x128xf32>
    %cst_3 = arith.constant dense<0.000000e+00> : vector<128xf32>
    %3 = vector.multi_reduction <add>, %2, %cst_3 [0] : vector<8x128xf32> to vector<128xf32>
    %4 = vector.shape_cast %3 : vector<128xf32> to vector<1x128xf32>
    %cst_4 = arith.constant 1.250000e-01 : f32
    %5 = vector.broadcast %cst_4 : f32 to vector<1x128xf32>
    %6 = arith.mulf %4, %5 : vector<1x128xf32>
    %7 = arith.mulf %2, %2 : vector<8x128xf32>
    %cst_5 = arith.constant dense<0.000000e+00> : vector<128xf32>
    %8 = vector.multi_reduction <add>, %7, %cst_5 [0] : vector<8x128xf32> to vector<128xf32>
    %9 = vector.shape_cast %8 : vector<128xf32> to vector<1x128xf32>
    %cst_6 = arith.constant 1.250000e-01 : f32
    %10 = vector.broadcast %cst_6 : f32 to vector<1x128xf32>
    %11 = arith.mulf %9, %10 : vector<1x128xf32>
    %12 = arith.mulf %6, %6 : vector<1x128xf32>
    %13 = arith.subf %11, %12 : vector<1x128xf32>
    %cst_7 = arith.constant 0.000000e+00 : f32
    %14 = vector.broadcast %cst_7 : f32 to vector<1x128xf32>
    %15 = arith.maximumf %13, %14 : vector<1x128xf32>
    %c0_8 = arith.constant 0 : index
    %c0_9 = arith.constant 0 : index
    %16 = vector.load %arg3[%c0_8, %c0_9] : memref<1x128xf32, #tpu.memory_space<vmem>>, vector<1x128xf32>
    %cst_10 = arith.constant 9.99999974E-6 : f32
    %17 = vector.broadcast %cst_10 : f32 to vector<1x128xf32>
    %18 = arith.addf %15, %17 : vector<1x128xf32>
    %19 = math.rsqrt %18 : vector<1x128xf32>
    %20 = arith.mulf %16, %19 : vector<1x128xf32>
    %c0_11 = arith.constant 0 : index
    %c0_12 = arith.constant 0 : index
    %21 = vector.load %arg4[%c0_11, %c0_12] : memref<1x128xf32, #tpu.memory_space<vmem>>, vector<1x128xf32>
    %22 = arith.mulf %6, %20 : vector<1x128xf32>
    %23 = arith.subf %21, %22 : vector<1x128xf32>
    %24 = vector.broadcast %20 : vector<1x128xf32> to vector<8x128xf32>
    %25 = arith.mulf %2, %24 : vector<8x128xf32>
    %26 = vector.broadcast %23 : vector<1x128xf32> to vector<8x128xf32>
    %27 = arith.addf %25, %26 : vector<8x128xf32>
    %cst_13 = arith.constant 0.000000e+00 : f32
    %28 = vector.broadcast %cst_13 : f32 to vector<8x128xf32>
    %29 = arith.maximumf %27, %28 : vector<8x128xf32>
    %c0_14 = arith.constant 0 : index
    %c0_15 = arith.constant 0 : index
    %30 = vector.load %arg5[%c0_14, %c0_15] : memref<8x128xf32, #tpu.memory_space<vmem>>, vector<8x128xf32>
    tpu.vector_store %arg5[%c0_14, %c0_15], %29 {strides = array<i32>} : memref<8x128xf32, #tpu.memory_space<vmem>>, vector<8x128xf32>,
    return
  }
  func.func @transform_0(%arg0: i32) -> (i32, i32) {
    %c0_i32 = arith.constant 0 : i32
    %c0_i32_0 = arith.constant 0 : i32
    %c0_i32_1 = arith.constant 0 : i32
    return %c0_i32, %c0_i32_0 : i32, i32
  }
  func.func @transform_1(%arg0: i32) -> (i32, i32) {
    %c0_i32 = arith.constant 0 : i32
    %c0_i32_0 = arith.constant 0 : i32
    return %c0_i32, %arg0 : i32, i32
  }
  func.func @transform_2(%arg0: i32) -> (i32, i32) {
    %c0_i32 = arith.constant 0 : i32
    %c0_i32_0 = arith.constant 0 : i32
    return %c0_i32, %arg0 : i32, i32
  }
  func.func @transform_3(%arg0: i32) -> (i32, i32) {
    %c0_i32 = arith.constant 0 : i32
    %c0_i32_0 = arith.constant 0 : i32
    return %c0_i32, %arg0 : i32, i32
  }
  func.func @transform_4(%arg0: i32) -> (i32, i32) {
    %c0_i32 = arith.constant 0 : i32
    %c0_i32_0 = arith.constant 0 : i32
    return %c0_i32, %arg0 : i32, i32
  }
}

module attributes {stable_mosaic.version = 11 : i64} {
  func.func @_conv_bn_relu_kernel(%arg0: i32, %arg1: memref<8x1152xbf16, #tpu.memory_space<vmem>>, %arg2: memref<1152x128xbf16, #tpu.memory_space<vmem>>, %arg3: memref<1x128xf32, #tpu.memory_space<vmem>>, %arg4: memref<1x128xf32, #tpu.memory_space<vmem>>, %arg5: memref<8x128xf32, #tpu.memory_space<vmem>>) attributes {dimension_semantics = [#tpu.dimension_semantics<parallel>], iteration_bounds = array<i64: 2>, scalar_prefetch = 0 : i64, scratch_operands = 0 : i64, tpu.core_type = #tpu.core_type<tc>, window_params = [{pipeline_mode = #tpu.pipeline_mode<synchronous>, transform_indices = @transform_0, window_bounds = array<i64: 8, 1152>}, {transform_indices = @transform_1, window_bounds = array<i64: 1152, 128>}, {transform_indices = @transform_2, window_bounds = array<i64: 1, 128>}, {transform_indices = @transform_3, window_bounds = array<i64: 1, 128>}, {transform_indices = @transform_4, window_bounds = array<i64: 8, 128>}]} {
    %c0 = arith.constant 0 : index
    %c0_0 = arith.constant 0 : index
    %0 = vector.load %arg1[%c0, %c0_0] : memref<8x1152xbf16, #tpu.memory_space<vmem>>, vector<8x1152xbf16>
    %c0_1 = arith.constant 0 : index
    %c0_2 = arith.constant 0 : index
    %1 = vector.load %arg2[%c0_1, %c0_2] : memref<1152x128xbf16, #tpu.memory_space<vmem>>, vector<1152x128xbf16>
    %cst = arith.constant dense<0.000000e+00> : vector<8x128xf32>
    %2 = tpu.matmul %0, %1, %cst {dimension_numbers = #tpu.dot_dimension_numbers<[1], [0], [0], [1], [0, 0, 1, 1], [], []>} : vector<8x1152xbf16>, vector<1152x128xbf16>, vector<8x128xf32> -> vector<8x128xf32>
    %cst_3 = arith.constant dense<0.000000e+00> : vector<128xf32>
    %3 = vector.multi_reduction <add>, %2, %cst_3 [0] : vector<8x128xf32> to vector<128xf32>
    %4 = vector.shape_cast %3 : vector<128xf32> to vector<1x128xf32>
    %cst_4 = arith.constant 1.250000e-01 : f32
    %5 = vector.broadcast %cst_4 : f32 to vector<1x128xf32>
    %6 = arith.mulf %4, %5 : vector<1x128xf32>
    %7 = arith.mulf %2, %2 : vector<8x128xf32>
    %cst_5 = arith.constant dense<0.000000e+00> : vector<128xf32>
    %8 = vector.multi_reduction <add>, %7, %cst_5 [0] : vector<8x128xf32> to vector<128xf32>
    %9 = vector.shape_cast %8 : vector<128xf32> to vector<1x128xf32>
    %cst_6 = arith.constant 1.250000e-01 : f32
    %10 = vector.broadcast %cst_6 : f32 to vector<1x128xf32>
    %11 = arith.mulf %9, %10 : vector<1x128xf32>
    %12 = arith.mulf %6, %6 : vector<1x128xf32>
    %13 = arith.subf %11, %12 : vector<1x128xf32>
    %cst_7 = arith.constant 0.000000e+00 : f32
    %14 = vector.broadcast %cst_7 : f32 to vector<1x128xf32>
    %15 = arith.maximumf %13, %14 : vector<1x128xf32>
    %c0_8 = arith.constant 0 : index
    %c0_9 = arith.constant 0 : index
    %16 = vector.load %arg3[%c0_8, %c0_9] : memref<1x128xf32, #tpu.memory_space<vmem>>, vector<1x128xf32>
    %cst_10 = arith.constant 9.99999974E-6 : f32
    %17 = vector.broadcast %cst_10 : f32 to vector<1x128xf32>
    %18 = arith.addf %15, %17 : vector<1x128xf32>
    %19 = math.rsqrt %18 : vector<1x128xf32>
    %20 = arith.mulf %16, %19 : vector<1x128xf32>
    %c0_11 = arith.constant 0 : index
    %c0_12 = arith.constant 0 : index
    %21 = vector.load %arg4[%c0_11, %c0_12] : memref<1x128xf32, #tpu.memory_space<vmem>>, vector<1x128xf32>
    %22 = arith.mulf %6, %20 : vector<1x128xf32>
    %23 = arith.subf %21, %22 : vector<1x128xf32>
    %24 = vector.broadcast %20 : vector<1x128xf32> to vector<8x128xf32>
    %25 = arith.mulf %2, %24 : vector<8x128xf32>
    %26 = vector.broadcast %23 : vector<1x128xf32> to vector<8x128xf32>
    %27 = arith.addf %25, %26 : vector<8x128xf32>
    %cst_13 = arith.constant 0.000000e+00 : f32
    %28 = vector.broadcast %cst_13 : f32 to vector<8x128xf32>
    %29 = arith.maximumf %27, %28 : vector<8x128xf32>
    %c0_14 = arith.constant 0 : index
    %c0_15 = arith.constant 0 : index
    %30 = vector.load %arg5[%c0_14, %c0_15] : memref<8x128xf32, #tpu.memory_space<vmem>>, vector<8x128xf32>
    tpu.vector_store %arg5[%c0_14, %c0_15], %29 {strides = array<i32>} : memref<8x128xf32, #tpu.memory_space<vmem>>, vector<8x128xf32>,
    return
  }
  func.func @transform_0(%arg0: i32) -> (i32, i32) {
    %c0_i32 = arith.constant 0 : i32
    %c0_i32_0 = arith.constant 0 : i32
    %c0_i32_1 = arith.constant 0 : i32
    return %c0_i32, %c0_i32_0 : i32, i32
  }
  func.func @transform_1(%arg0: i32) -> (i32, i32) {
    %c0_i32 = arith.constant 0 : i32
    %c0_i32_0 = arith.constant 0 : i32
    return %c0_i32, %arg0 : i32, i32
  }
  func.func @transform_2(%arg0: i32) -> (i32, i32) {
    %c0_i32 = arith.constant 0 : i32
    %c0_i32_0 = arith.constant 0 : i32
    return %c0_i32, %arg0 : i32, i32
  }
  func.func @transform_3(%arg0: i32) -> (i32, i32) {
    %c0_i32 = arith.constant 0 : i32
    %c0_i32_0 = arith.constant 0 : i32
    return %c0_i32, %arg0 : i32, i32
  }
  func.func @transform_4(%arg0: i32) -> (i32, i32) {
    %c0_i32 = arith.constant 0 : i32
    %c0_i32_0 = arith.constant 0 : i32
    return %c0_i32, %arg0 : i32, i32
  }
}

module attributes {stable_mosaic.version = 11 : i64} {
  func.func @_conv_bn_relu_kernel(%arg0: i32, %arg1: memref<8x2304xbf16, #tpu.memory_space<vmem>>, %arg2: memref<2304x128xbf16, #tpu.memory_space<vmem>>, %arg3: memref<1x128xf32, #tpu.memory_space<vmem>>, %arg4: memref<1x128xf32, #tpu.memory_space<vmem>>, %arg5: memref<8x128xf32, #tpu.memory_space<vmem>>) attributes {dimension_semantics = [#tpu.dimension_semantics<parallel>], iteration_bounds = array<i64: 2>, scalar_prefetch = 0 : i64, scratch_operands = 0 : i64, tpu.core_type = #tpu.core_type<tc>, window_params = [{pipeline_mode = #tpu.pipeline_mode<synchronous>, transform_indices = @transform_0, window_bounds = array<i64: 8, 2304>}, {transform_indices = @transform_1, window_bounds = array<i64: 2304, 128>}, {transform_indices = @transform_2, window_bounds = array<i64: 1, 128>}, {transform_indices = @transform_3, window_bounds = array<i64: 1, 128>}, {transform_indices = @transform_4, window_bounds = array<i64: 8, 128>}]} {
    %c0 = arith.constant 0 : index
    %c0_0 = arith.constant 0 : index
    %0 = vector.load %arg1[%c0, %c0_0] : memref<8x2304xbf16, #tpu.memory_space<vmem>>, vector<8x2304xbf16>
    %c0_1 = arith.constant 0 : index
    %c0_2 = arith.constant 0 : index
    %1 = vector.load %arg2[%c0_1, %c0_2] : memref<2304x128xbf16, #tpu.memory_space<vmem>>, vector<2304x128xbf16>
    %cst = arith.constant dense<0.000000e+00> : vector<8x128xf32>
    %2 = tpu.matmul %0, %1, %cst {dimension_numbers = #tpu.dot_dimension_numbers<[1], [0], [0], [1], [0, 0, 1, 1], [], []>} : vector<8x2304xbf16>, vector<2304x128xbf16>, vector<8x128xf32> -> vector<8x128xf32>
    %cst_3 = arith.constant dense<0.000000e+00> : vector<128xf32>
    %3 = vector.multi_reduction <add>, %2, %cst_3 [0] : vector<8x128xf32> to vector<128xf32>
    %4 = vector.shape_cast %3 : vector<128xf32> to vector<1x128xf32>
    %cst_4 = arith.constant 1.250000e-01 : f32
    %5 = vector.broadcast %cst_4 : f32 to vector<1x128xf32>
    %6 = arith.mulf %4, %5 : vector<1x128xf32>
    %7 = arith.mulf %2, %2 : vector<8x128xf32>
    %cst_5 = arith.constant dense<0.000000e+00> : vector<128xf32>
    %8 = vector.multi_reduction <add>, %7, %cst_5 [0] : vector<8x128xf32> to vector<128xf32>
    %9 = vector.shape_cast %8 : vector<128xf32> to vector<1x128xf32>
    %cst_6 = arith.constant 1.250000e-01 : f32
    %10 = vector.broadcast %cst_6 : f32 to vector<1x128xf32>
    %11 = arith.mulf %9, %10 : vector<1x128xf32>
    %12 = arith.mulf %6, %6 : vector<1x128xf32>
    %13 = arith.subf %11, %12 : vector<1x128xf32>
    %cst_7 = arith.constant 0.000000e+00 : f32
    %14 = vector.broadcast %cst_7 : f32 to vector<1x128xf32>
    %15 = arith.maximumf %13, %14 : vector<1x128xf32>
    %c0_8 = arith.constant 0 : index
    %c0_9 = arith.constant 0 : index
    %16 = vector.load %arg3[%c0_8, %c0_9] : memref<1x128xf32, #tpu.memory_space<vmem>>, vector<1x128xf32>
    %cst_10 = arith.constant 9.99999974E-6 : f32
    %17 = vector.broadcast %cst_10 : f32 to vector<1x128xf32>
    %18 = arith.addf %15, %17 : vector<1x128xf32>
    %19 = math.rsqrt %18 : vector<1x128xf32>
    %20 = arith.mulf %16, %19 : vector<1x128xf32>
    %c0_11 = arith.constant 0 : index
    %c0_12 = arith.constant 0 : index
    %21 = vector.load %arg4[%c0_11, %c0_12] : memref<1x128xf32, #tpu.memory_space<vmem>>, vector<1x128xf32>
    %22 = arith.mulf %6, %20 : vector<1x128xf32>
    %23 = arith.subf %21, %22 : vector<1x128xf32>
    %24 = vector.broadcast %20 : vector<1x128xf32> to vector<8x128xf32>
    %25 = arith.mulf %2, %24 : vector<8x128xf32>
    %26 = vector.broadcast %23 : vector<1x128xf32> to vector<8x128xf32>
    %27 = arith.addf %25, %26 : vector<8x128xf32>
    %cst_13 = arith.constant 0.000000e+00 : f32
    %28 = vector.broadcast %cst_13 : f32 to vector<8x128xf32>
    %29 = arith.maximumf %27, %28 : vector<8x128xf32>
    %c0_14 = arith.constant 0 : index
    %c0_15 = arith.constant 0 : index
    %30 = vector.load %arg5[%c0_14, %c0_15] : memref<8x128xf32, #tpu.memory_space<vmem>>, vector<8x128xf32>
    tpu.vector_store %arg5[%c0_14, %c0_15], %29 {strides = array<i32>} : memref<8x128xf32, #tpu.memory_space<vmem>>, vector<8x128xf32>,
    return
  }
  func.func @transform_0(%arg0: i32) -> (i32, i32) {
    %c0_i32 = arith.constant 0 : i32
    %c0_i32_0 = arith.constant 0 : i32
    %c0_i32_1 = arith.constant 0 : i32
    return %c0_i32, %c0_i32_0 : i32, i32
  }
  func.func @transform_1(%arg0: i32) -> (i32, i32) {
    %c0_i32 = arith.constant 0 : i32
    %c0_i32_0 = arith.constant 0 : i32
    return %c0_i32, %arg0 : i32, i32
  }
  func.func @transform_2(%arg0: i32) -> (i32, i32) {
    %c0_i32 = arith.constant 0 : i32
    %c0_i32_0 = arith.constant 0 : i32
    return %c0_i32, %arg0 : i32, i32
  }
  func.func @transform_3(%arg0: i32) -> (i32, i32) {
    %c0_i32 = arith.constant 0 : i32
    %c0_i32_0 = arith.constant 0 : i32
    return %c0_i32, %arg0 : i32, i32
  }
  func.func @transform_4(%arg0: i32) -> (i32, i32) {
    %c0_i32 = arith.constant 0 : i32
    %c0_i32_0 = arith.constant 0 : i32
    return %c0_i32, %arg0 : i32, i32
  }
}

module attributes {stable_mosaic.version = 11 : i64} {
  func.func @_conv_bn_relu_kernel(%arg0: i32, %arg1: memref<2x2304xbf16, #tpu.memory_space<vmem>>, %arg2: memref<2304x128xbf16, #tpu.memory_space<vmem>>, %arg3: memref<1x128xf32, #tpu.memory_space<vmem>>, %arg4: memref<1x128xf32, #tpu.memory_space<vmem>>, %arg5: memref<2x128xf32, #tpu.memory_space<vmem>>) attributes {dimension_semantics = [#tpu.dimension_semantics<parallel>], iteration_bounds = array<i64: 1>, scalar_prefetch = 0 : i64, scratch_operands = 0 : i64, tpu.core_type = #tpu.core_type<tc>, window_params = [{pipeline_mode = #tpu.pipeline_mode<synchronous>, transform_indices = @transform_0, window_bounds = array<i64: 2, 2304>}, {transform_indices = @transform_1, window_bounds = array<i64: 2304, 128>}, {transform_indices = @transform_2, window_bounds = array<i64: 1, 128>}, {transform_indices = @transform_3, window_bounds = array<i64: 1, 128>}, {transform_indices = @transform_4, window_bounds = array<i64: 2, 128>}]} {
    %c0 = arith.constant 0 : index
    %c0_0 = arith.constant 0 : index
    %0 = vector.load %arg1[%c0, %c0_0] : memref<2x2304xbf16, #tpu.memory_space<vmem>>, vector<2x2304xbf16>
    %c0_1 = arith.constant 0 : index
    %c0_2 = arith.constant 0 : index
    %1 = vector.load %arg2[%c0_1, %c0_2] : memref<2304x128xbf16, #tpu.memory_space<vmem>>, vector<2304x128xbf16>
    %cst = arith.constant dense<0.000000e+00> : vector<2x128xf32>
    %2 = tpu.matmul %0, %1, %cst {dimension_numbers = #tpu.dot_dimension_numbers<[1], [0], [0], [1], [0, 0, 1, 1], [], []>} : vector<2x2304xbf16>, vector<2304x128xbf16>, vector<2x128xf32> -> vector<2x128xf32>
    %cst_3 = arith.constant dense<0.000000e+00> : vector<128xf32>
    %3 = vector.multi_reduction <add>, %2, %cst_3 [0] : vector<2x128xf32> to vector<128xf32>
    %4 = vector.shape_cast %3 : vector<128xf32> to vector<1x128xf32>
    %cst_4 = arith.constant 5.000000e-01 : f32
    %5 = vector.broadcast %cst_4 : f32 to vector<1x128xf32>
    %6 = arith.mulf %4, %5 : vector<1x128xf32>
    %7 = arith.mulf %2, %2 : vector<2x128xf32>
    %cst_5 = arith.constant dense<0.000000e+00> : vector<128xf32>
    %8 = vector.multi_reduction <add>, %7, %cst_5 [0] : vector<2x128xf32> to vector<128xf32>
    %9 = vector.shape_cast %8 : vector<128xf32> to vector<1x128xf32>
    %cst_6 = arith.constant 5.000000e-01 : f32
    %10 = vector.broadcast %cst_6 : f32 to vector<1x128xf32>
    %11 = arith.mulf %9, %10 : vector<1x128xf32>
    %12 = arith.mulf %6, %6 : vector<1x128xf32>
    %13 = arith.subf %11, %12 : vector<1x128xf32>
    %cst_7 = arith.constant 0.000000e+00 : f32
    %14 = vector.broadcast %cst_7 : f32 to vector<1x128xf32>
    %15 = arith.maximumf %13, %14 : vector<1x128xf32>
    %c0_8 = arith.constant 0 : index
    %c0_9 = arith.constant 0 : index
    %16 = vector.load %arg3[%c0_8, %c0_9] : memref<1x128xf32, #tpu.memory_space<vmem>>, vector<1x128xf32>
    %cst_10 = arith.constant 9.99999974E-6 : f32
    %17 = vector.broadcast %cst_10 : f32 to vector<1x128xf32>
    %18 = arith.addf %15, %17 : vector<1x128xf32>
    %19 = math.rsqrt %18 : vector<1x128xf32>
    %20 = arith.mulf %16, %19 : vector<1x128xf32>
    %c0_11 = arith.constant 0 : index
    %c0_12 = arith.constant 0 : index
    %21 = vector.load %arg4[%c0_11, %c0_12] : memref<1x128xf32, #tpu.memory_space<vmem>>, vector<1x128xf32>
    %22 = arith.mulf %6, %20 : vector<1x128xf32>
    %23 = arith.subf %21, %22 : vector<1x128xf32>
    %24 = vector.broadcast %20 : vector<1x128xf32> to vector<2x128xf32>
    %25 = arith.mulf %2, %24 : vector<2x128xf32>
    %26 = vector.broadcast %23 : vector<1x128xf32> to vector<2x128xf32>
    %27 = arith.addf %25, %26 : vector<2x128xf32>
    %cst_13 = arith.constant 0.000000e+00 : f32
    %28 = vector.broadcast %cst_13 : f32 to vector<2x128xf32>
    %29 = arith.maximumf %27, %28 : vector<2x128xf32>
    %c0_14 = arith.constant 0 : index
    %c0_15 = arith.constant 0 : index
    %30 = vector.load %arg5[%c0_14, %c0_15] : memref<2x128xf32, #tpu.memory_space<vmem>>, vector<2x128xf32>
    tpu.vector_store %arg5[%c0_14, %c0_15], %29 {strides = array<i32>} : memref<2x128xf32, #tpu.memory_space<vmem>>, vector<2x128xf32>,
    return
  }
  func.func @transform_0(%arg0: i32) -> (i32, i32) {
    %c0_i32 = arith.constant 0 : i32
    %c0_i32_0 = arith.constant 0 : i32
    %c0_i32_1 = arith.constant 0 : i32
    return %c0_i32, %c0_i32_0 : i32, i32
  }
  func.func @transform_1(%arg0: i32) -> (i32, i32) {
    %c0_i32 = arith.constant 0 : i32
    %c0_i32_0 = arith.constant 0 : i32
    return %c0_i32, %arg0 : i32, i32
  }
  func.func @transform_2(%arg0: i32) -> (i32, i32) {
    %c0_i32 = arith.constant 0 : i32
    %c0_i32_0 = arith.constant 0 : i32
    return %c0_i32, %arg0 : i32, i32
  }
  func.func @transform_3(%arg0: i32) -> (i32, i32) {
    %c0_i32 = arith.constant 0 : i32
    %c0_i32_0 = arith.constant 0 : i32
    return %c0_i32, %arg0 : i32, i32
  }
  func.func @transform_4(%arg0: i32) -> (i32, i32) {
    %c0_i32 = arith.constant 0 : i32
    %c0_i32_0 = arith.constant 0 : i32
    return %c0_i32, %arg0 : i32, i32
  }
}

module attributes {stable_mosaic.version = 11 : i64} {
  func.func @_conv_bn_relu_kernel(%arg0: i32, %arg1: memref<2x288xbf16, #tpu.memory_space<vmem>>, %arg2: memref<288x128xbf16, #tpu.memory_space<vmem>>, %arg3: memref<1x128xf32, #tpu.memory_space<vmem>>, %arg4: memref<1x128xf32, #tpu.memory_space<vmem>>, %arg5: memref<2x128xf32, #tpu.memory_space<vmem>>) attributes {dimension_semantics = [#tpu.dimension_semantics<parallel>], iteration_bounds = array<i64: 1>, scalar_prefetch = 0 : i64, scratch_operands = 0 : i64, tpu.core_type = #tpu.core_type<tc>, window_params = [{pipeline_mode = #tpu.pipeline_mode<synchronous>, transform_indices = @transform_0, window_bounds = array<i64: 2, 288>}, {transform_indices = @transform_1, window_bounds = array<i64: 288, 128>}, {transform_indices = @transform_2, window_bounds = array<i64: 1, 128>}, {transform_indices = @transform_3, window_bounds = array<i64: 1, 128>}, {transform_indices = @transform_4, window_bounds = array<i64: 2, 128>}]} {
    %c0 = arith.constant 0 : index
    %c0_0 = arith.constant 0 : index
    %0 = vector.load %arg1[%c0, %c0_0] : memref<2x288xbf16, #tpu.memory_space<vmem>>, vector<2x288xbf16>
    %c0_1 = arith.constant 0 : index
    %c0_2 = arith.constant 0 : index
    %1 = vector.load %arg2[%c0_1, %c0_2] : memref<288x128xbf16, #tpu.memory_space<vmem>>, vector<288x128xbf16>
    %cst = arith.constant dense<0.000000e+00> : vector<2x128xf32>
    %2 = tpu.matmul %0, %1, %cst {dimension_numbers = #tpu.dot_dimension_numbers<[1], [0], [0], [1], [0, 0, 1, 1], [], []>} : vector<2x288xbf16>, vector<288x128xbf16>, vector<2x128xf32> -> vector<2x128xf32>
    %cst_3 = arith.constant dense<0.000000e+00> : vector<128xf32>
    %3 = vector.multi_reduction <add>, %2, %cst_3 [0] : vector<2x128xf32> to vector<128xf32>
    %4 = vector.shape_cast %3 : vector<128xf32> to vector<1x128xf32>
    %cst_4 = arith.constant 5.000000e-01 : f32
    %5 = vector.broadcast %cst_4 : f32 to vector<1x128xf32>
    %6 = arith.mulf %4, %5 : vector<1x128xf32>
    %7 = arith.mulf %2, %2 : vector<2x128xf32>
    %cst_5 = arith.constant dense<0.000000e+00> : vector<128xf32>
    %8 = vector.multi_reduction <add>, %7, %cst_5 [0] : vector<2x128xf32> to vector<128xf32>
    %9 = vector.shape_cast %8 : vector<128xf32> to vector<1x128xf32>
    %cst_6 = arith.constant 5.000000e-01 : f32
    %10 = vector.broadcast %cst_6 : f32 to vector<1x128xf32>
    %11 = arith.mulf %9, %10 : vector<1x128xf32>
    %12 = arith.mulf %6, %6 : vector<1x128xf32>
    %13 = arith.subf %11, %12 : vector<1x128xf32>
    %cst_7 = arith.constant 0.000000e+00 : f32
    %14 = vector.broadcast %cst_7 : f32 to vector<1x128xf32>
    %15 = arith.maximumf %13, %14 : vector<1x128xf32>
    %c0_8 = arith.constant 0 : index
    %c0_9 = arith.constant 0 : index
    %16 = vector.load %arg3[%c0_8, %c0_9] : memref<1x128xf32, #tpu.memory_space<vmem>>, vector<1x128xf32>
    %cst_10 = arith.constant 9.99999974E-6 : f32
    %17 = vector.broadcast %cst_10 : f32 to vector<1x128xf32>
    %18 = arith.addf %15, %17 : vector<1x128xf32>
    %19 = math.rsqrt %18 : vector<1x128xf32>
    %20 = arith.mulf %16, %19 : vector<1x128xf32>
    %c0_11 = arith.constant 0 : index
    %c0_12 = arith.constant 0 : index
    %21 = vector.load %arg4[%c0_11, %c0_12] : memref<1x128xf32, #tpu.memory_space<vmem>>, vector<1x128xf32>
    %22 = arith.mulf %6, %20 : vector<1x128xf32>
    %23 = arith.subf %21, %22 : vector<1x128xf32>
    %24 = vector.broadcast %20 : vector<1x128xf32> to vector<2x128xf32>
    %25 = arith.mulf %2, %24 : vector<2x128xf32>
    %26 = vector.broadcast %23 : vector<1x128xf32> to vector<2x128xf32>
    %27 = arith.addf %25, %26 : vector<2x128xf32>
    %cst_13 = arith.constant 0.000000e+00 : f32
    %28 = vector.broadcast %cst_13 : f32 to vector<2x128xf32>
    %29 = arith.maximumf %27, %28 : vector<2x128xf32>
    %c0_14 = arith.constant 0 : index
    %c0_15 = arith.constant 0 : index
    %30 = vector.load %arg5[%c0_14, %c0_15] : memref<2x128xf32, #tpu.memory_space<vmem>>, vector<2x128xf32>
    tpu.vector_store %arg5[%c0_14, %c0_15], %29 {strides = array<i32>} : memref<2x128xf32, #tpu.memory_space<vmem>>, vector<2x128xf32>,
    return
  }
  func.func @transform_0(%arg0: i32) -> (i32, i32) {
    %c0_i32 = arith.constant 0 : i32
    %c0_i32_0 = arith.constant 0 : i32
    %c0_i32_1 = arith.constant 0 : i32
    return %c0_i32, %c0_i32_0 : i32, i32
  }
  func.func @transform_1(%arg0: i32) -> (i32, i32) {
    %c0_i32 = arith.constant 0 : i32
    %c0_i32_0 = arith.constant 0 : i32
    return %c0_i32, %arg0 : i32, i32
  }
  func.func @transform_2(%arg0: i32) -> (i32, i32) {
    %c0_i32 = arith.constant 0 : i32
    %c0_i32_0 = arith.constant 0 : i32
    return %c0_i32, %arg0 : i32, i32
  }
  func.func @transform_3(%arg0: i32) -> (i32, i32) {
    %c0_i32 = arith.constant 0 : i32
    %c0_i32_0 = arith.constant 0 : i32
    return %c0_i32, %arg0 : i32, i32
  }
  func.func @transform_4(%arg0: i32) -> (i32, i32) {
    %c0_i32 = arith.constant 0 : i32
    %c0_i32_0 = arith.constant 0 : i32
    return %c0_i32, %arg0 : i32, i32
  }
}

</mosaic_0001>

<bundles_post_ra>
// kernel: resnet_forward.14
= control target key start
LH: loop header
LB: loop body
LE: loop exit
PB: predicated region body
PF: predicated region fallthrough
CT: control target
= control target key end

     0   :  { %vm554_vm0 = vcmask 523264   ;;  %s1805_s1 = inlined_call_operand.vmem [shape: bf16[576,128], index: 1, kind: input, shape index: {}]   ;;  %s1806_s0 = inlined_call_operand.vmem [shape: bf16[128,576], index: 0, kind: input, shape index: {}]   ;;  %s1807_s2 = inlined_call_operand.vmem [shape: f32[1,128], index: 2, kind: input, shape index: {}]   ;;  %s1808_s3 = inlined_call_operand.vmem [shape: f32[1,128], index: 3, kind: input, shape index: {}]   ;;  %s1809_s4 = inlined_call_operand.vmem [shape: f32[128,128], index: 4, kind: output, shape index: {}]  }
   0x1   :  { %v1276_v0 = vld [vmem:[%s1805_s1 + $0x40] sm:$0xff]   ;;  %v1280_v4 = vld [vmem:[%s1805_s1 + $0x48] sm:$0xff]   ;;  %v1284_v8 = vld [vmem:[%s1805_s1 + $0x50] sm:$0xff]  }
   0x2   :  { %v1277_v1 = vld [vmem:[%s1805_s1 + $0xc0] sm:$0xff]   ;;  %1104 = vmatprep.subr.bf16.mxu0 %v1276_v0  ;;  %v1281_v5 = vld [vmem:[%s1805_s1 + $0xc8] sm:$0xff]   ;;  %v1285_v9 = vld [vmem:[%s1805_s1 + $0xd0] sm:$0xff]  }
   0x3   :  { %v1278_v2 = vld [vmem:[%s1805_s1] sm:$0xff]   ;;  %1168 = vmatprep.subr.bf16.mxu1 %v1277_v1  ;;  %v1282_v6 = vld [vmem:[%s1805_s1 + $0x8] sm:$0xff]   ;;  %v1286_v10 = vld [vmem:[%s1805_s1 + $0x10] sm:$0xff]  }
   0x4   :  { %v1279_v3 = vld [vmem:[%s1805_s1 + $0x80] sm:$0xff]   ;;  %1105 = vmatpush3.bf16.msra.mxu0 %v1278_v2  ;;  %v1283_v7 = vld [vmem:[%s1805_s1 + $0x88] sm:$0xff]   ;;  %v1287_v11 = vld [vmem:[%s1805_s1 + $0x90] sm:$0xff]  }
   0x5   :  { %1169 = vmatpush3.bf16.msra.mxu1 %v1279_v3  ;;  %1106 = vmatprep.subr.bf16.mxu0 %v1280_v4  ;;  %v1288_v12 = vld [vmem:[%s1805_s1 + $0x58] sm:$0xff]   ;;  %v1292_v16 = vld [vmem:[%s1805_s1 + $0x60] sm:$0xff]   ;;  %v1296_v20 = vld [vmem:[%s1805_s1 + $0x68] sm:$0xff]  }
   0x6   :  { %1170 = vmatprep.subr.bf16.mxu1 %v1281_v5  ;;  %v1289_v13 = vld [vmem:[%s1805_s1 + $0xd8] sm:$0xff]   ;;  %v1293_v17 = vld [vmem:[%s1805_s1 + $0xe0] sm:$0xff]   ;;  %v1297_v21 = vld [vmem:[%s1805_s1 + $0xe8] sm:$0xff]  }
   0x7   :  { %v1290_v14 = vld [vmem:[%s1805_s1 + $0x18] sm:$0xff]   ;;  %v1294_v18 = vld [vmem:[%s1805_s1 + $0x20] sm:$0xff]   ;;  %v1298_v22 = vld [vmem:[%s1805_s1 + $0x28] sm:$0xff]  }
   0x8   :  { %1107 = vmatpush3.bf16.msra.mxu0 %v1282_v6  ;;  %v1291_v15 = vld [vmem:[%s1805_s1 + $0x98] sm:$0xff]   ;;  %v1295_v19 = vld [vmem:[%s1805_s1 + $0xa0] sm:$0xff]   ;;  %v1299_v23 = vld [vmem:[%s1805_s1 + $0xa8] sm:$0xff]  }
   0x9   :  { %1171 = vmatpush3.bf16.msra.mxu1 %v1283_v7  ;;  %1108 = vmatprep.subr.bf16.mxu0 %v1284_v8  ;;  %v1300_v24 = vld [vmem:[%s1805_s1 + $0x70] sm:$0xff]   ;;  %v1304_v28 = vld [vmem:[%s1805_s1 + $0x78] sm:$0xff]   ;;  %v1313_v35 = vld [vmem:[%s1806_s0 + $0xc] ss:$20 sps:$4 sm:$0xff]  }
   0xa   :  { %1172 = vmatprep.subr.bf16.mxu1 %v1285_v9  ;;  %v1301_v25 = vld [vmem:[%s1805_s1 + $0xf0] sm:$0xff]   ;;  %v1305_v29 = vld [vmem:[%s1805_s1 + $0xf8] sm:$0xff]   ;;  %v1314_v36 = vld [vmem:[%s1805_s1 + $0x100] sm:$0xff]   ;;  %708 = vmatprep.mubr.bf16.mxu1 %v1313_v35 }
   0xb   :  { %v1302_v26 = vld [vmem:[%s1805_s1 + $0x30] sm:$0xff]   ;;  %v1306_v30 = vld [vmem:[%s1805_s1 + $0x38] sm:$0xff]   ;;  %v1315_v37 = vld [vmem:[%s1806_s0 + $0x2c] ss:$20 sps:$4 sm:$0xff]  }
   0xc   :  { %1109 = vmatpush3.bf16.msra.mxu0 %v1286_v10  ;;  %v1303_v27 = vld [vmem:[%s1805_s1 + $0xb0] sm:$0xff]   ;;  %v1307_v31 = vld [vmem:[%s1805_s1 + $0xb8] sm:$0xff]   ;;  %v1327_v42 = vld [vmem:[%s1805_s1 + $0x108] sm:$0xff]  }
   0xd   :  { %1173 = vmatpush3.bf16.msra.mxu1 %v1287_v11  ;;  %1110 = vmatprep.subr.bf16.mxu0 %v1288_v12  ;;  %v1308_v32 = vld [vmem:[%s1806_s0] ss:$20 sps:$4 sm:$0xff]   ;;  %v1310_v33 = vld [vmem:[%s1806_s0 + $0x4] ss:$20 sps:$4 sm:$0xff]   ;;  %v1311_v34 = vld [vmem:[%s1806_s0 + $0x8] ss:$20 sps:$4 sm:$0xff]  }
   0xe   :  { %1174 = vmatprep.subr.bf16.mxu1 %v1289_v13  ;;  %611 = vmatprep.mubr.bf16.mxu0 %v1310_v33  ;;  %v1317_v38 = vld [vmem:[%s1806_s0 + $0x34] ss:$20 sps:$4 sm:$0xff]   ;;  %v1320_v40 = vld [vmem:[%s1806_s0 + $0x30] ss:$20 sps:$4 sm:$0xff]   ;;  %v1326_v45 = vld [vmem:[%s1806_s0 + $0x58] ss:$20 sps:$4 sm:$0xff]  }
   0xf   :  { %v1319_v39 = vld [vmem:[%s1806_s0 + $0x28] ss:$20 sps:$4 sm:$0xff]   ;;  %v1325_v44 = vld [vmem:[%s1806_s0 + $0x50] ss:$20 sps:$4 sm:$0xff]   ;;  %v1332_v50 = vld [vmem:[%s1806_s0 + $0x78] ss:$20 sps:$4 sm:$0xff]  }
  0x10   :  { %1111 = vmatpush3.bf16.msra.mxu0 %v1290_v14  ;;  %v1321_v41 = vld [vmem:[%s1806_s0 + $0x54] ss:$20 sps:$4 sm:$0xff]   ;;  %v1323_v43 = vld [vmem:[%s1806_s0 + $0x5c] ss:$20 sps:$4 sm:$0xff]   ;;  %v1330_v48 = vld [vmem:[%s1806_s0 + $0x84] ss:$20 sps:$4 sm:$0xff]  }
  0x11   :  { %1175 = vmatpush3.bf16.msra.mxu1 %v1291_v15  ;;  %1112 = vmatprep.subr.bf16.mxu0 %v1292_v16  ;;  %v1340_v46 = vld [vmem:[%s1805_s1 + $0x110] sm:$0xff]   ;;  %v1353_v49 = vld [vmem:[%s1805_s1 + $0x118] sm:$0xff]   ;;  %v1336_v53 = vld [vmem:[%s1806_s0 + $0xac] ss:$20 sps:$4 sm:$0xff]  }
  0x12   :  { %1176 = vmatprep.subr.bf16.mxu1 %v1293_v17  ;;  %v1328_v47 = vld [vmem:[%s1806_s0 + $0x7c] ss:$20 sps:$4 sm:$0xff]   ;;  %v1333_v51 = vld [vmem:[%s1806_s0 + $0x80] ss:$20 sps:$4 sm:$0xff]   ;;  %v1334_v52 = vld [vmem:[%s1806_s0 + $0xa4] ss:$20 sps:$4 sm:$0xff]  }
  0x13   :  { %v1338_v54 = vld [vmem:[%s1806_s0 + $0xa0] ss:$20 sps:$4 sm:$0xff]   ;;  %v1339_v55 = vld [vmem:[%s1806_s0 + $0xa8] ss:$20 sps:$4 sm:$0xff]   ;;  %v1346_v59 = vld [vmem:[%s1806_s0 + $0xd0] ss:$20 sps:$4 sm:$0xff]  }
  0x14   :  { %1113 = vmatpush3.bf16.msra.mxu0 %v1294_v18  ;;  %v1341_v56 = vld [vmem:[%s1806_s0 + $0xcc] ss:$20 sps:$4 sm:$0xff]   ;;  %v1343_v57 = vld [vmem:[%s1806_s0 + $0xd4] ss:$20 sps:$4 sm:$0xff]   ;;  %v1349_v61 = vld [vmem:[%s1806_s0 + $0xfc] ss:$20 sps:$4 sm:$0xff]  }
  0x15   :  { %1177 = vmatpush3.bf16.msra.mxu1 %v1295_v19  ;;  %1114 = vmatprep.subr.bf16.mxu0 %v1296_v20  ;;  %v1345_v58 = vld [vmem:[%s1806_s0 + $0xc8] ss:$20 sps:$4 sm:$0xff]   ;;  %v1351_v62 = vld [vmem:[%s1806_s0 + $0xf0] ss:$20 sps:$4 sm:$0xff]   ;;  %v1352_v63 = vld [vmem:[%s1806_s0 + $0xf8] ss:$20 sps:$4 sm:$0xff]  }
  0x16   :  { %1178 = vmatprep.subr.bf16.mxu1 %v1297_v21  ;;  %v1347_v60 = vld [vmem:[%s1806_s0 + $0xf4] ss:$20 sps:$4 sm:$0xff]   ;;  %v1354_v0 = vld [vmem:[%s1806_s0 + $0x11c] ss:$20 sps:$4 sm:$0xff]   ;;  %v1356_v1 = vld [vmem:[%s1806_s0 + $0x124] ss:$20 sps:$4 sm:$0xff]  }
  0x17   :  { %v1358_v2 = vld [vmem:[%s1806_s0 + $0x118] ss:$20 sps:$4 sm:$0xff]   ;;  %v1359_v3 = vld [vmem:[%s1806_s0 + $0x120] ss:$20 sps:$4 sm:$0xff]   ;;  %v1360_v4 = vld [vmem:[%s1806_s0 + $0x10] ss:$20 sps:$4 sm:$0xff]  }
  0x18   :  { %1115 = vmatpush3.bf16.msra.mxu0 %v1298_v22  ;;  %v1361_v5 = vld [vmem:[%s1806_s0 + $0xb0] ss:$20 sps:$4 sm:$0xff]   ;;  %v1362_v6 = vld [vmem:[%s1806_s0 + $0x38] ss:$20 sps:$4 sm:$0xff]   ;;  %v1364_v8 = vld [vmem:[%s1806_s0 + $0x60] ss:$20 sps:$4 sm:$0xff]  }
  0x19   :  { %1179 = vmatpush3.bf16.msra.mxu1 %v1299_v23  ;;  %1116 = vmatprep.subr.bf16.mxu0 %v1300_v24  ;;  %v1363_v7 = vld [vmem:[%s1806_s0 + $0xd8] ss:$20 sps:$4 sm:$0xff]   ;;  %v1365_v9 = vld [vmem:[%s1806_s0 + $0x100] ss:$20 sps:$4 sm:$0xff]   ;;  %v1366_v10 = vld [vmem:[%s1806_s0 + $0x88] ss:$20 sps:$4 sm:$0xff]  }
  0x1a   :  { %1180 = vmatprep.subr.bf16.mxu1 %v1301_v25  ;;  %v1367_v11 = vld [vmem:[%s1806_s0 + $0x128] ss:$20 sps:$4 sm:$0xff]  }
  0x1c   :  { %1117 = vmatpush3.bf16.msra.mxu0 %v1302_v26 }
  0x1d   :  { %1181 = vmatpush3.bf16.msra.mxu1 %v1303_v27  ;;  %1118 = vmatprep.subr.bf16.mxu0 %v1304_v28 }
  0x1e   :  { %1182 = vmatprep.subr.bf16.mxu1 %v1305_v29 }
  0x20   :  { %1119 = vmatpush3.bf16.msra.mxu0 %v1306_v30 }
  0x21   :  { %1183 = vmatpush3.bf16.msra.mxu1 %v1307_v31  ;;  %1244 = vmatprep.subr.bf16.mxu0 %v1314_v36 }
  0x22   :  { %1268 = vmatprep.subr.bf16.mxu1 %v1314_v36 }
  0x23   :  { %612 = vmatmul.mubr.bf16.vlgmr.msra.gmra.mrb[0].mxu0 %v1308_v32 }
  0x24   :  { %709 = vmatmul.mubr.bf16.vlgmr.msra.gmra.mrb[0].mxu1 %v1311_v34  ;;  %1245 = vmatpush3.bf16.msra.mxu0 %v1314_v36 }
  0x25   :  { %619 = vmatprep.mubr.bf16.mxu0 %v1315_v37  ;;  %716 = vmatprep.mubr.bf16.mxu1 %v1317_v38 }
  0x26   :  { %1272 = vmatpush3.bf16.msra.mxu1 %v1314_v36  ;;  %1246 = vmatprep.subr.bf16.mxu0 %v1327_v42 }
  0x27   :  { %1269 = vmatprep.subr.bf16.mxu1 %v1327_v42 }
  0x28   :  { %1247 = vmatpush3.bf16.msra.mxu0 %v1327_v42 }
  0x29   :  { %1248 = vmatprep.subr.bf16.mxu0 %v1340_v46 }
  0x2a   :  { %1273 = vmatpush3.bf16.msra.mxu1 %v1327_v42 }
  0x2b   :  { %620 = vmatmul.mubr.bf16.gmra.mrb[4].mxu0 %v1319_v39  ;;  %1270 = vmatprep.subr.bf16.mxu1 %v1340_v46 }
  0x2c   :  { %717 = vmatmul.mubr.bf16.gmra.mrb[4].mxu1 %v1320_v40  ;;  %627 = vmatprep.mubr.bf16.mxu0 %v1321_v41 }
  0x2d   :  { %724 = vmatprep.mubr.bf16.mxu1 %v1323_v43  ;;  %1249 = vmatpush3.bf16.msra.mxu0 %v1340_v46 }
  0x2e   :  { %1274 = vmatpush3.bf16.msra.mxu1 %v1340_v46  ;;  %1250 = vmatprep.subr.bf16.mxu0 %v1353_v49 }
  0x2f   :  { %1271 = vmatprep.subr.bf16.mxu1 %v1353_v49 }
  0x31   :  { %1251 = vmatpush3.bf16.msra.mxu0 %v1353_v49 }
  0x32   :  { %1275 = vmatpush3.bf16.msra.mxu1 %v1353_v49 }
  0x33   :  { %628 = vmatmul.mubr.bf16.gmra.mrb[8].mxu0 %v1325_v44 }
  0x34   :  { %725 = vmatmul.mubr.bf16.gmra.mrb[8].mxu1 %v1326_v45  ;;  %635 = vmatprep.mubr.bf16.mxu0 %v1328_v47 }
  0x35   :  { %732 = vmatprep.mubr.bf16.mxu1 %v1330_v48 }
  0x3b   :  { %636 = vmatmul.mubr.bf16.gmra.mrb[12].mxu0 %v1332_v50 }
  0x3c   :  { %733 = vmatmul.mubr.bf16.gmra.mrb[12].mxu1 %v1333_v51  ;;  %643 = vmatprep.mubr.bf16.mxu0 %v1334_v52 }
  0x3d   :  { %740 = vmatprep.mubr.bf16.mxu1 %v1336_v53 }
  0x43   :  { %644 = vmatmul.mubr.bf16.gmra.mrb[16].mxu0 %v1338_v54 }
  0x44   :  { %741 = vmatmul.mubr.bf16.gmra.mrb[16].mxu1 %v1339_v55  ;;  %651 = vmatprep.mubr.bf16.mxu0 %v1341_v56 }
  0x45   :  { %748 = vmatprep.mubr.bf16.mxu1 %v1343_v57 }
  0x4b   :  { %652 = vmatmul.mubr.bf16.gmra.mrb[20].mxu0 %v1345_v58 }
  0x4c   :  { %749 = vmatmul.mubr.bf16.gmra.mrb[20].mxu1 %v1346_v59  ;;  %659 = vmatprep.mubr.bf16.mxu0 %v1347_v60 }
  0x4d   :  { %756 = vmatprep.mubr.bf16.mxu1 %v1349_v61 }
  0x53   :  { %660 = vmatmul.mubr.bf16.gmra.mrb[24].mxu0 %v1351_v62 }
  0x54   :  { %757 = vmatmul.mubr.bf16.gmra.mrb[24].mxu1 %v1352_v63  ;;  %667 = vmatprep.mubr.bf16.mxu0 %v1354_v0 }
  0x55   :  { %764 = vmatprep.mubr.bf16.mxu1 %v1356_v1 }
  0x5b   :  { %668 = vmatmul.mubr.bf16.gmra.mrb[28].mxu0 %v1358_v2 }
  0x5c   :  { %765 = vmatmul.mubr.bf16.gmra.mrb[28].mxu1 %v1359_v3  ;;  %1252 = vmatprep.mubr.msk.bf16.mxu0 %vm554_vm0, %v1360_v4 }
  0x5d   :  { %1260 = vmatprep.mubr.msk.bf16.mxu1 %vm554_vm0, %v1361_v5 }
  0x63   :  { %1253 = vmatmul.mubr.msk.bf16.vlgmr.msra.gmra.mrb[32].mxu0 %vm554_vm0, %v1362_v6 }
  0x64   :  { %1261 = vmatmul.mubr.msk.bf16.vlgmr.msra.gmra.mrb[32].mxu1 %vm554_vm0, %v1363_v7  ;;  %1256 = vmatprep.mubr.msk.bf16.mxu0 %vm554_vm0, %v1364_v8 }
  0x65   :  { %1264 = vmatprep.mubr.msk.bf16.mxu1 %vm554_vm0, %v1365_v9 }
  0x6b   :  { %1257 = vmatmul.mubr.msk.bf16.gmra.mrb[36].mxu0 %vm554_vm0, %v1366_v10 }
  0x6c   :  { %1265 = vmatmul.mubr.msk.bf16.gmra.mrb[36].mxu1 %vm554_vm0, %v1367_v11 }
  0xf6   :  { %v1120_v12 = vpop.f32.mrb[0].mxu0 }
  0xf7   :  { %v1184_v13 = vpop.f32.mrb[0].mxu1  ;;  %v1121_v14 = vpop.f32.mrb[1].mxu0 }
  0xf8   :  { %v1122_v15 = vadd.f32 %v1121_v14, %v1120_v12  ;;  %v1185_v16 = vpop.f32.mrb[1].mxu1  ;;  %v1123_v17 = vpop.f32.mrb[2].mxu0 }
  0xf9   :  { %v1186_v18 = vadd.f32 %v1185_v16, %v1184_v13  ;;  %v1187_v19 = vpop.f32.mrb[2].mxu1  ;;  %v1124_v20 = vpop.f32.mrb[3].mxu0 }
  0xfa   :  { %v1125_v21 = vadd.f32 %v1124_v20, %v1123_v17  ;;  %v1188_v22 = vpop.f32.mrb[3].mxu1 }
  0xfb   :  { %v1189_v23 = vadd.f32 %v1188_v22, %v1187_v19  ;;  %v1631_v24 = vadd.f32 %v1186_v18, %v1122_v15 }
  0xfd   :  { %v1633_v25 = vadd.f32 %v1189_v23, %v1125_v21 }
  0xfe   :  { %v1126_v26 = vpop.f32.mrb[4].mxu0 }
  0xff   :  { %v1190_v27 = vpop.f32.mrb[4].mxu1  ;;  %v1127_v28 = vpop.f32.mrb[5].mxu0 }
 0x100   :  { %v1128_v29 = vadd.f32 %v1127_v28, %v1126_v26  ;;  %v1191_v30 = vpop.f32.mrb[5].mxu1  ;;  %v1129_v31 = vpop.f32.mrb[6].mxu0 }
 0x101   :  { %v1192_v32 = vadd.f32 %v1191_v30, %v1190_v27  ;;  %v1193_v33 = vpop.f32.mrb[6].mxu1  ;;  %v1130_v34 = vpop.f32.mrb[7].mxu0 }
 0x102   :  { %v1131_v35 = vadd.f32 %v1130_v34, %v1129_v31  ;;  %v1194_v36 = vpop.f32.mrb[7].mxu1 }
 0x103   :  { %v1195_v37 = vadd.f32 %v1194_v36, %v1193_v33  ;;  %v1635_v38 = vadd.f32 %v1192_v32, %v1128_v29 }
 0x105   :  { %v1637_v39 = vadd.f32 %v1195_v37, %v1131_v35 }
 0x106   :  { %v1132_v40 = vpop.f32.mrb[8].mxu0 }
 0x107   :  { %v1196_v41 = vpop.f32.mrb[8].mxu1  ;;  %v1133_v42 = vpop.f32.mrb[9].mxu0 }
 0x108   :  { %v1134_v43 = vadd.f32 %v1133_v42, %v1132_v40  ;;  %v1197_v44 = vpop.f32.mrb[9].mxu1  ;;  %v1135_v45 = vpop.f32.mrb[10].mxu0 }
 0x109   :  { %v1198_v46 = vadd.f32 %v1197_v44, %v1196_v41  ;;  %v1199_v47 = vpop.f32.mrb[10].mxu1  ;;  %v1136_v48 = vpop.f32.mrb[11].mxu0 }
 0x10a   :  { %v1137_v49 = vadd.f32 %v1136_v48, %v1135_v45  ;;  %v1200_v50 = vpop.f32.mrb[11].mxu1 }
 0x10b   :  { %v1201_v51 = vadd.f32 %v1200_v50, %v1199_v47  ;;  %v1639_v52 = vadd.f32 %v1198_v46, %v1134_v43 }
 0x10d   :  { %v1641_v53 = vadd.f32 %v1201_v51, %v1137_v49 }
 0x10e   :  { %v1138_v54 = vpop.f32.mrb[12].mxu0 }
 0x10f   :  { %v1202_v55 = vpop.f32.mrb[12].mxu1  ;;  %v1139_v56 = vpop.f32.mrb[13].mxu0 }
 0x110   :  { %v1140_v57 = vadd.f32 %v1139_v56, %v1138_v54  ;;  %v1203_v58 = vpop.f32.mrb[13].mxu1  ;;  %v1141_v59 = vpop.f32.mrb[14].mxu0 }
 0x111   :  { %v1204_v60 = vadd.f32 %v1203_v58, %v1202_v55  ;;  %v1205_v61 = vpop.f32.mrb[14].mxu1  ;;  %v1142_v62 = vpop.f32.mrb[15].mxu0 }
 0x112   :  { %v1143_v63 = vadd.f32 %v1142_v62, %v1141_v59  ;;  %v1206_v0 = vpop.f32.mrb[15].mxu1 }
 0x113   :  { %v1207_v1 = vadd.f32 %v1206_v0, %v1205_v61  ;;  %v1643_v2 = vadd.f32 %v1204_v60, %v1140_v57 }
 0x115   :  { %v1645_v3 = vadd.f32 %v1207_v1, %v1143_v63 }
 0x116   :  { %v1144_v4 = vpop.f32.mrb[16].mxu0 }
 0x117   :  { %v1208_v5 = vpop.f32.mrb[16].mxu1  ;;  %v1145_v6 = vpop.f32.mrb[17].mxu0 }
 0x118   :  { %v1146_v7 = vadd.f32 %v1145_v6, %v1144_v4  ;;  %v1209_v8 = vpop.f32.mrb[17].mxu1  ;;  %v1147_v9 = vpop.f32.mrb[18].mxu0 }
 0x119   :  { %v1210_v10 = vadd.f32 %v1209_v8, %v1208_v5  ;;  %v1211_v11 = vpop.f32.mrb[18].mxu1  ;;  %v1148_v12 = vpop.f32.mrb[19].mxu0 }
 0x11a   :  { %v1149_v13 = vadd.f32 %v1148_v12, %v1147_v9  ;;  %v1212_v14 = vpop.f32.mrb[19].mxu1 }
 0x11b   :  { %v1213_v15 = vadd.f32 %v1212_v14, %v1211_v11  ;;  %v743_v16 = vadd.f32 %v1210_v10, %v1146_v7 }
 0x11d   :  { %v746_v17 = vadd.f32 %v1213_v15, %v1149_v13 }
 0x11e   :  { %v1150_v18 = vpop.f32.mrb[20].mxu0 }
 0x11f   :  { %v1214_v19 = vpop.f32.mrb[20].mxu1  ;;  %v1151_v20 = vpop.f32.mrb[21].mxu0 }
 0x120   :  { %v1152_v21 = vadd.f32 %v1151_v20, %v1150_v18  ;;  %v1215_v22 = vpop.f32.mrb[21].mxu1  ;;  %v1153_v23 = vpop.f32.mrb[22].mxu0 }
 0x121   :  { %v1216_v26 = vadd.f32 %v1215_v22, %v1214_v19  ;;  %v1217_v27 = vpop.f32.mrb[22].mxu1  ;;  %v1154_v28 = vpop.f32.mrb[23].mxu0 }
 0x122   :  { %v1155_v29 = vadd.f32 %v1154_v28, %v1153_v23  ;;  %v1218_v30 = vpop.f32.mrb[23].mxu1 }
 0x123   :  { %v1219_v31 = vadd.f32 %v1218_v30, %v1217_v27  ;;  %v751_v32 = vadd.f32 %v1216_v26, %v1152_v21 }
 0x125   :  { %v754_v33 = vadd.f32 %v1219_v31, %v1155_v29 }
 0x126   :  { %v1156_v34 = vpop.f32.mrb[24].mxu0 }
 0x127   :  { %v1220_v35 = vpop.f32.mrb[24].mxu1  ;;  %v1157_v36 = vpop.f32.mrb[25].mxu0 }
 0x128   :  { %v1158_v37 = vadd.f32 %v1157_v36, %v1156_v34  ;;  %v1221_v40 = vpop.f32.mrb[25].mxu1  ;;  %v1159_v41 = vpop.f32.mrb[26].mxu0 }
 0x129   :  { %v1222_v42 = vadd.f32 %v1221_v40, %v1220_v35  ;;  %v1223_v43 = vpop.f32.mrb[26].mxu1  ;;  %v1160_v44 = vpop.f32.mrb[27].mxu0 }
 0x12a   :  { %v1161_v45 = vadd.f32 %v1160_v44, %v1159_v41  ;;  %v1224_v46 = vpop.f32.mrb[27].mxu1 }
 0x12b   :  { %v1225_v47 = vadd.f32 %v1224_v46, %v1223_v43  ;;  %v759_v48 = vadd.f32 %v1222_v42, %v1158_v37 }
 0x12d   :  { %v762_v49 = vadd.f32 %v1225_v47, %v1161_v45 }
 0x12e   :  { %v1162_v50 = vpop.f32.mrb[28].mxu0 }
 0x12f   :  { %v1226_v51 = vpop.f32.mrb[28].mxu1  ;;  %v1163_v54 = vpop.f32.mrb[29].mxu0 }
 0x130   :  { %v1164_v55 = vadd.f32 %v1163_v54, %v1162_v50  ;;  %v1227_v56 = vpop.f32.mrb[29].mxu1  ;;  %v1165_v57 = vpop.f32.mrb[30].mxu0 }
 0x131   :  { %v1228_v58 = vadd.f32 %v1227_v56, %v1226_v51  ;;  %v1229_v59 = vpop.f32.mrb[30].mxu1  ;;  %v1166_v60 = vpop.f32.mrb[31].mxu0 }
 0x132   :  { %v1167_v61 = vadd.f32 %v1166_v60, %v1165_v57  ;;  %v1230_v62 = vpop.f32.mrb[31].mxu1 }
 0x133   :  { %v1231_v63 = vadd.f32 %v1230_v62, %v1229_v59  ;;  %v767_v0 = vadd.f32 %v1228_v58, %v1164_v55 }
 0x135   :  { %v770_v1 = vadd.f32 %v1231_v63, %v1167_v61 }
 0x136   :  { %v1254_v4 = vpop.f32.mrb[32].mxu0 }
 0x137   :  { %v1648_v5 = vadd.f32 %v1254_v4, %v1635_v38  ;;  %v1262_v6 = vpop.f32.mrb[32].mxu1  ;;  %v807_v7 = vpop.f32.mrb[33].mxu0 }
 0x138   :  { %v1650_v8 = vadd.f32 %v1262_v6, %v751_v32  ;;  %v1653_v9 = vadd.f32 %v807_v7, %v1631_v24  ;;  %v839_v10 = vpop.f32.mrb[33].mxu1  ;;  %v1255_v11 = vpop.f32.mrb[34].mxu0 }
 0x139   :  { %v1655_v12 = vadd.f32 %v839_v10, %v743_v16  ;;  %v1658_v13 = vadd.f32 %v1255_v11, %v1637_v39  ;;  %v1263_v14 = vpop.f32.mrb[34].mxu1  ;;  %v810_v15 = vpop.f32.mrb[35].mxu0  ;;  %v894_v21 = vmul.f32 %v1648_v5, %v1648_v5 }
 0x13a   :  { %v1660_v18 = vadd.f32 %v1263_v14, %v754_v33  ;;  %v1663_v38 = vadd.f32 %v810_v15, %v1633_v25  ;;  %v842_v19 = vpop.f32.mrb[35].mxu1  ;;  %v892_v24 = vmul.f32 %v1653_v9, %v1653_v9  ;;  %v902_v61 = vmul.f32 %v1650_v8, %v1650_v8 }
 0x13b   :  { %v1665_v20 = vadd.f32 %v842_v19, %v746_v17  ;;  %v895_v17 = vmul.f32 %v1658_v13, %v1658_v13 }
 0x13c   :  { %v870_v16 = vadd.f32 %v1663_v38, %v1653_v9  ;;  %v893_v39 = vmul.f32 %v1663_v38, %v1663_v38 }
 0x13d   :  { %v901_v58 = vmul.f32 %v1665_v20, %v1665_v20 }
 0x13e   :  { %v871_v22 = vadd.f32 %v870_v16, %v1648_v5  ;;  %v908_v23 = vadd.f32 %v893_v39, %v892_v24  ;;  %v1258_v25 = vpop.f32.mrb[36].mxu0 }
 0x13f   :  { %v1679_v26 = vadd.f32 %v1258_v25, %v1643_v2  ;;  %v1266_v27 = vpop.f32.mrb[36].mxu1  ;;  %v823_v28 = vpop.f32.mrb[37].mxu0 }
 0x140   :  { %v909_v29 = vadd.f32 %v908_v23, %v894_v21  ;;  %v1681_v30 = vadd.f32 %v1266_v27, %v767_v0  ;;  %v1684_v31 = vadd.f32 %v823_v28, %v1639_v52  ;;  %v872_v32 = vadd.f32 %v871_v22, %v1658_v13  ;;  %v855_v33 = vpop.f32.mrb[37].mxu1  ;;  %v1259_v34 = vpop.f32.mrb[38].mxu0 }
 0x141   :  { %v1687_v35 = vadd.f32 %v855_v33, %v759_v48  ;;  %v1690_v36 = vadd.f32 %v1259_v34, %v1645_v3  ;;  %v1267_v37 = vpop.f32.mrb[38].mxu1  ;;  %v826_v2 = vpop.f32.mrb[39].mxu0  ;;  %v898_v48 = vmul.f32 %v1679_v26, %v1679_v26  ;;  %v903_v0 = vmul.f32 %v1660_v18, %v1660_v18 }
 0x142   :  { %v873_v40 = vadd.f32 %v872_v32, %v1684_v31  ;;  %v896_v41 = vmul.f32 %v1684_v31, %v1684_v31  ;;  %v910_v42 = vadd.f32 %v909_v29, %v895_v17  ;;  %v858_v43 = vpop.f32.mrb[39].mxu1  ;;  %v1695_v52 = vadd.f32 %v1267_v37, %v770_v1 }
 0x143   :  { %v1698_v44 = vadd.f32 %v826_v2, %v1641_v53  ;;  %v1700_v46 = vadd.f32 %v858_v43, %v762_v49  ;;  %v899_v54 = vmul.f32 %v1690_v36, %v1690_v36  ;;  %v900_v49 = vmul.f32 %v1655_v12, %v1655_v12 }
 0x144   :  { %v911_v45 = vadd.f32 %v910_v42, %v896_v41  ;;  %v904_v6 = vmul.f32 %v1687_v35, %v1687_v35  ;;  %v906_v19 = vmul.f32 %v1681_v30, %v1681_v30  ;;  %v907_v39 = vmul.f32 %v1695_v52, %v1695_v52 }
 0x145   :  { %v874_v3 = vadd.f32 %v873_v40, %v1698_v44  ;;  %v897_v47 = vmul.f32 %v1698_v44, %v1698_v44  ;;  %v905_v14 = vmul.f32 %v1700_v46, %v1700_v46 }
 0x147   :  { %v875_v50 = vadd.f32 %v874_v3, %v1679_v26  ;;  %v912_v51 = vadd.f32 %v911_v45, %v897_v47 }
 0x149   :  { %v876_v53 = vadd.f32 %v875_v50, %v1690_v36  ;;  %v913_v55 = vadd.f32 %v912_v51, %v898_v48  ;;  %v941_v50 = vlaneseq }
 0x14b   :  { %v877_v56 = vadd.f32 %v876_v53, %v1655_v12  ;;  %v914_v57 = vadd.f32 %v913_v55, %v899_v54  ;;  %v942_v51 = vshrl.u32 %v941_v50, 7  ;;  %v933_v54 = vld [vmem:[%s1807_s2] sm:$0x1] }
 0x14d   :  { %v915_v59 = vadd.f32 %v914_v57, %v900_v49  ;;  %v878_v60 = vadd.f32 %v877_v56, %v1665_v20  ;;  %v943_v53 = vsub.s32 0, %v942_v51  ;;  %v937_v56 = vld [vmem:[%s1808_s3] sm:$0x1] }
 0x14f   :  { %v879_v62 = vadd.f32 %v878_v60, %v1650_v8  ;;  %v916_v63 = vadd.f32 %v915_v59, %v901_v58 }
 0x151   :  { %v880_v1 = vadd.f32 %v879_v62, %v1660_v18  ;;  %v917_v4 = vadd.f32 %v916_v63, %v902_v61 }
 0x153   :  { %v881_v7 = vadd.f32 %v880_v1, %v1687_v35  ;;  %v918_v10 = vadd.f32 %v917_v4, %v903_v0 }
 0x155   :  { %v882_v11 = vadd.f32 %v881_v7, %v1700_v46  ;;  %v919_v15 = vadd.f32 %v918_v10, %v904_v6 }
 0x157   :  { %v883_v24 = vadd.f32 %v882_v11, %v1681_v30  ;;  %v920_v16 = vadd.f32 %v919_v15, %v905_v14 }
 0x159   :  { %v884_v21 = vadd.f32 %v883_v24, %v1695_v52  ;;  %v921_v22 = vadd.f32 %v920_v16, %v906_v19 }
 0x15b   :  { %v885_v23 = vrot.slane %v884_v21, 4  ;;  %v922_v25 = vadd.f32 %v921_v22, %v907_v39 }
 0x15d   :  { %v886_v17 = vadd.f32 %v885_v23, %v884_v21  ;;  %v923_v27 = vrot.slane %v922_v25, 4 }
 0x15f   :  { %v887_v28 = vrot.slane %v886_v17, 2  ;;  %v924_v29 = vadd.f32 %v923_v27, %v922_v25 }
 0x161   :  { %v888_v32 = vadd.f32 %v887_v28, %v886_v17  ;;  %v925_v33 = vrot.slane %v924_v29, 2 }
 0x163   :  { %v889_v34 = vrot.slane %v888_v32, 1  ;;  %v926_v37 = vadd.f32 %v925_v33, %v924_v29 }
 0x165   :  { %v890_v2 = vadd.f32 %v889_v34, %v888_v32  ;;  %v927_v40 = vrot.slane %v926_v37, 1 }
 0x167   :  { %v891_v41 = vmul.f32 0.0078125, %v890_v2  ;;  %v928_v42 = vadd.f32 %v927_v40, %v926_v37 }
 0x169   :  { %v929_v43 = vmul.f32 0.0078125, %v928_v42  ;;  %v930_v45 = vmul.f32 %v891_v41, %v891_v41 }
 0x16b   :  { %v931_v3 = vsub.f32 %v929_v43, %v930_v45 }
 0x16d   :  { %v932_v47 = vmax.f32 %v931_v3, 0.0 }
 0x16f   :  { %v934_v48 = vadd.f32 1e-05, %v932_v47 }
 0x171   :  { %1368 = vrsqrt.f32 %v934_v48 }
 0x17b   :  { %v1369_v55 = vpop.eup %1368 }
 0x17c   :  { %v936_v49 = vmul.f32 %v1369_v55, %v933_v54 }
 0x17e   :  { %v938_v57 = vmul.f32 %v936_v49, %v891_v41  ;;  %v944_v58 = vrot.slane %v936_v49, %v943_v53 }
 0x180   :  { %v939_v59 = vsub.f32 %v937_v56, %v938_v57  ;;  %v946_v60 = vmul.f32 %v944_v58, %v1653_v9  ;;  %v947_v61 = vmul.f32 %v944_v58, %v1663_v38  ;;  %v950_v62 = vmul.f32 %v944_v58, %v1684_v31 }
 0x181   :  { %v951_v63 = vmul.f32 %v944_v58, %v1698_v44  ;;  %v952_v0 = vmul.f32 %v944_v58, %v1679_v26  ;;  %v953_v1 = vmul.f32 %v944_v58, %v1690_v36  ;;  %v954_v4 = vmul.f32 %v944_v58, %v1655_v12 }
 0x182   :  { %v955_v6 = vmul.f32 %v944_v58, %v1665_v20  ;;  %v956_v7 = vmul.f32 %v944_v58, %v1650_v8  ;;  %v957_v10 = vmul.f32 %v944_v58, %v1660_v18  ;;  %v958_v9 = vmul.f32 %v944_v58, %v1687_v35 }
 0x183   :  { %v959_v38 = vmul.f32 %v944_v58, %v1700_v46  ;;  %v960_v31 = vmul.f32 %v944_v58, %v1681_v30  ;;  %v948_v44 = vmul.f32 %v944_v58, %v1648_v5  ;;  %v949_v26 = vmul.f32 %v944_v58, %v1658_v13 }
 0x184   :  { %v961_v36 = vmul.f32 %v944_v58, %v1695_v52  ;;  %v966_v11 = vrot.slane %v939_v59, %v943_v53 }
 0x186   :  { %v968_v12 = vadd.f32 %v966_v11, %v946_v60  ;;  %v969_v14 = vadd.f32 %v966_v11, %v947_v61  ;;  %v970_v20 = vadd.f32 %v966_v11, %v948_v44  ;;  %v971_v15 = vadd.f32 %v966_v11, %v949_v26 }
 0x187   :  { %v972_v8 = vadd.f32 %v966_v11, %v950_v62  ;;  %v973_v19 = vadd.f32 %v966_v11, %v951_v63  ;;  %v974_v18 = vadd.f32 %v966_v11, %v952_v0  ;;  %v975_v24 = vadd.f32 %v966_v11, %v953_v1 }
 0x188   :  { %v976_v35 = vadd.f32 %v966_v11, %v954_v4  ;;  %v977_v16 = vadd.f32 %v966_v11, %v955_v6  ;;  %v978_v46 = vadd.f32 %v966_v11, %v956_v7  ;;  %v979_v39 = vadd.f32 %v966_v11, %v957_v10 }
 0x189   :  { %v980_v30 = vadd.f32 %v966_v11, %v958_v9  ;;  %v981_v21 = vadd.f32 %v966_v11, %v959_v38  ;;  %v982_v5 = vadd.f32 %v966_v11, %v960_v31  ;;  %v983_v22 = vadd.f32 %v966_v11, %v961_v36 }
 0x18a   :  { %v984_v13 = vmax.f32 %v968_v12, 0.0  ;;  %v985_v23 = vmax.f32 %v969_v14, 0.0  ;;  %v986_v52 = vmax.f32 %v970_v20, 0.0  ;;  %v987_v25 = vmax.f32 %v971_v15, 0.0 }
 0x18b   :  { %v988_v17 = vmax.f32 %v972_v8, 0.0  ;;  %v989_v27 = vmax.f32 %v973_v19, 0.0  ;;  %v990_v28 = vmax.f32 %v974_v18, 0.0  ;;  %v991_v29 = vmax.f32 %v975_v24, 0.0 }
 0x18c   :  { %v992_v32 = vmax.f32 %v976_v35, 0.0  ;;  %v993_v33 = vmax.f32 %v977_v16, 0.0  ;;  %v994_v34 = vmax.f32 %v978_v46, 0.0  ;;  %v995_v37 = vmax.f32 %v979_v39, 0.0  ;;  %1000 = vst [vmem:[%s1809_s4] sm:$0xff] %v984_v13  ;;  %1001 = vst [vmem:[%s1809_s4 + $0x8] sm:$0xff] %v985_v23 }
 0x18d   :  { %1002 = vst [vmem:[%s1809_s4 + $0x10] sm:$0xff] %v986_v52  ;;  %1003 = vst [vmem:[%s1809_s4 + $0x18] sm:$0xff] %v987_v25  ;;  %v996_v2 = vmax.f32 %v980_v30, 0.0  ;;  %v997_v40 = vmax.f32 %v981_v21, 0.0  ;;  %v998_v41 = vmax.f32 %v982_v5, 0.0  ;;  %v999_v42 = vmax.f32 %v983_v22, 0.0 }
 0x18e   :  { %1004 = vst [vmem:[%s1809_s4 + $0x20] sm:$0xff] %v988_v17  ;;  %1005 = vst [vmem:[%s1809_s4 + $0x28] sm:$0xff] %v989_v27 }
 0x18f   :  { %1006 = vst [vmem:[%s1809_s4 + $0x30] sm:$0xff] %v990_v28  ;;  %1007 = vst [vmem:[%s1809_s4 + $0x38] sm:$0xff] %v991_v29 }
 0x190   :  { %1008 = vst [vmem:[%s1809_s4 + $0x40] sm:$0xff] %v992_v32  ;;  %1009 = vst [vmem:[%s1809_s4 + $0x48] sm:$0xff] %v993_v33 }
 0x191   :  { %1010 = vst [vmem:[%s1809_s4 + $0x50] sm:$0xff] %v994_v34  ;;  %1011 = vst [vmem:[%s1809_s4 + $0x58] sm:$0xff] %v995_v37 }
 0x192   :  { %1012 = vst [vmem:[%s1809_s4 + $0x60] sm:$0xff] %v996_v2  ;;  %1013 = vst [vmem:[%s1809_s4 + $0x68] sm:$0xff] %v997_v40 }
 0x193   :  { %1014 = vst [vmem:[%s1809_s4 + $0x70] sm:$0xff] %v998_v41  ;;  %1015 = vst [vmem:[%s1809_s4 + $0x78] sm:$0xff] %v999_v42 }

// kernel: resnet_forward.13
= control target key start
LH: loop header
LB: loop body
LE: loop exit
PB: predicated region body
PF: predicated region fallthrough
CT: control target
= control target key end

     0   :  { %vm266_vm0 = vcmask 392192   ;;  %s6577_s1 = inlined_call_operand.vmem [shape: bf16[48,128], index: 1, kind: input, shape index: {}]   ;;  %s6578_s0 = inlined_call_operand.vmem [shape: bf16[512,48], index: 0, kind: input, shape index: {}]   ;;  %s6579_s2 = inlined_call_operand.vmem [shape: f32[1,128], index: 2, kind: input, shape index: {}]   ;;  %s6580_s3 = inlined_call_operand.vmem [shape: f32[1,128], index: 3, kind: input, shape index: {}]   ;;  %s6581_s4 = inlined_call_operand.vmem [shape: f32[648,128], index: 4, kind: output, shape index: {}]  }
   0x1   :  { %v2703_v0 = vld [vmem:[%s6577_s1] sm:$0xff]   ;;  %v2704_v1 = vld [vmem:[%s6577_s1 + $0x8] sm:$0xff]   ;;  %v2705_v3 = vld [vmem:[%s6577_s1 + $0x10] sm:$0xff]  }
   0x2   :  { %2626 = vmatprep.subr.bf16.mxu0 %v2703_v0  ;;  %2696 = vmatprep.subr.bf16.mxu1 %v2703_v0  ;;  %v2706_v2 = vld [vmem:[%s6578_s0] sm:$0xff]   ;;  %v2707_v4 = vld [vmem:[%s6578_s0 + $0x8] sm:$0xff]   ;;  %v2708_v5 = vld [vmem:[%s6578_s0 + $0x10] sm:$0xff]  }
   0x3   :  { %2627 = vmatpush3.bf16.msra.mxu0 %v2703_v0  ;;  %2699 = vmatpush3.bf16.msra.mxu1 %v2703_v0  ;;  %v2709_v6 = vld [vmem:[%s6578_s0 + $0x18] sm:$0xff]   ;;  %v2710_v7 = vld [vmem:[%s6578_s0 + $0x20] sm:$0xff]   ;;  %v2723_v9 = vld [vmem:[%s6578_s0 + $0x88] sm:$0xff]  }
   0x4   :  { %2628 = vmatprep.subr.bf16.mxu0 %v2704_v1  ;;  %2697 = vmatprep.subr.bf16.mxu1 %v2704_v1  ;;  %v2722_v8 = vld [vmem:[%s6578_s0 + $0x80] sm:$0xff]   ;;  %v2724_v10 = vld [vmem:[%s6578_s0 + $0x90] sm:$0xff]   ;;  %v2711_v11 = vld [vmem:[%s6578_s0 + $0x28] sm:$0xff]  }
   0x5   :  { %2632 = vmatprep.mubr.msk.bf16.mxu0 %vm266_vm0, %v2706_v2  ;;  %2664 = vmatprep.mubr.msk.bf16.mxu1 %vm266_vm0, %v2722_v8  ;;  %v2712_v12 = vld [vmem:[%s6578_s0 + $0x30] sm:$0xff]   ;;  %v2725_v13 = vld [vmem:[%s6578_s0 + $0x98] sm:$0xff]   ;;  %v2726_v14 = vld [vmem:[%s6578_s0 + $0xa0] sm:$0xff]  }
   0x6   :  { %v2713_v15 = vld [vmem:[%s6578_s0 + $0x38] sm:$0xff]   ;;  %v2727_v16 = vld [vmem:[%s6578_s0 + $0xa8] sm:$0xff]   ;;  %v2714_v17 = vld [vmem:[%s6578_s0 + $0x40] sm:$0xff]  }
   0x7   :  { %2629 = vmatpush3.bf16.msra.mxu0 %v2704_v1  ;;  %2700 = vmatpush3.bf16.msra.mxu1 %v2704_v1  ;;  %v2728_v18 = vld [vmem:[%s6578_s0 + $0xb0] sm:$0xff]   ;;  %v2715_v19 = vld [vmem:[%s6578_s0 + $0x48] sm:$0xff]   ;;  %v2729_v20 = vld [vmem:[%s6578_s0 + $0xb8] sm:$0xff]  }
   0x8   :  { %2630 = vmatprep.subr.bf16.mxu0 %v2705_v3  ;;  %2698 = vmatprep.subr.bf16.mxu1 %v2705_v3  ;;  %v2716_v21 = vld [vmem:[%s6578_s0 + $0x50] sm:$0xff]   ;;  %v2730_v22 = vld [vmem:[%s6578_s0 + $0xc0] sm:$0xff]   ;;  %v2717_v23 = vld [vmem:[%s6578_s0 + $0x58] sm:$0xff]  }
   0x9   :  { %v2731_v24 = vld [vmem:[%s6578_s0 + $0xc8] sm:$0xff]   ;;  %v2718_v25 = vld [vmem:[%s6578_s0 + $0x60] sm:$0xff]   ;;  %v2732_v26 = vld [vmem:[%s6578_s0 + $0xd0] sm:$0xff]  }
   0xa   :  { %v2719_v27 = vld [vmem:[%s6578_s0 + $0x68] sm:$0xff]   ;;  %v2733_v28 = vld [vmem:[%s6578_s0 + $0xd8] sm:$0xff]   ;;  %v2720_v29 = vld [vmem:[%s6578_s0 + $0x70] sm:$0xff]  }
   0xb   :  { %2631 = vmatpush3.bf16.msra.mxu0 %v2705_v3  ;;  %2701 = vmatpush3.bf16.msra.mxu1 %v2705_v3  ;;  %v2734_v30 = vld [vmem:[%s6578_s0 + $0xe0] sm:$0xff]   ;;  %v2721_v31 = vld [vmem:[%s6578_s0 + $0x78] sm:$0xff]   ;;  %v2735_v32 = vld [vmem:[%s6578_s0 + $0xe8] sm:$0xff]  }
   0xc   :  { %v2736_v33 = vld [vmem:[%s6578_s0 + $0xf0] sm:$0xff]   ;;  %v2737_v34 = vld [vmem:[%s6578_s0 + $0xf8] sm:$0xff]  }
   0xe   :  { %2633 = vmatmul.mubr.msk.bf16.vlgmr.msra.gmra.mrb[0].mxu0 %vm266_vm0, %v2707_v4  ;;  %2665 = vmatmul.mubr.msk.bf16.vlgmr.msra.gmra.mrb[0].mxu1 %vm266_vm0, %v2723_v9 }
   0xf   :  { %2636 = vmatprep.mubr.msk.bf16.mxu0 %vm266_vm0, %v2708_v5  ;;  %2668 = vmatprep.mubr.msk.bf16.mxu1 %vm266_vm0, %v2724_v10 }
  0x16   :  { %2637 = vmatmul.mubr.msk.bf16.gmra.mrb[4].mxu0 %vm266_vm0, %v2709_v6  ;;  %2669 = vmatmul.mubr.msk.bf16.gmra.mrb[4].mxu1 %vm266_vm0, %v2725_v13 }
  0x17   :  { %2640 = vmatprep.mubr.msk.bf16.mxu0 %vm266_vm0, %v2710_v7  ;;  %2672 = vmatprep.mubr.msk.bf16.mxu1 %vm266_vm0, %v2726_v14 }
  0x1e   :  { %2641 = vmatmul.mubr.msk.bf16.gmra.mrb[8].mxu0 %vm266_vm0, %v2711_v11  ;;  %2673 = vmatmul.mubr.msk.bf16.gmra.mrb[8].mxu1 %vm266_vm0, %v2727_v16 }
  0x1f   :  { %2644 = vmatprep.mubr.msk.bf16.mxu0 %vm266_vm0, %v2712_v12  ;;  %2676 = vmatprep.mubr.msk.bf16.mxu1 %vm266_vm0, %v2728_v18 }
  0x26   :  { %2645 = vmatmul.mubr.msk.bf16.gmra.mrb[12].mxu0 %vm266_vm0, %v2713_v15  ;;  %2677 = vmatmul.mubr.msk.bf16.gmra.mrb[12].mxu1 %vm266_vm0, %v2729_v20 }
  0x27   :  { %2648 = vmatprep.mubr.msk.bf16.mxu0 %vm266_vm0, %v2714_v17  ;;  %2680 = vmatprep.mubr.msk.bf16.mxu1 %vm266_vm0, %v2730_v22 }
  0x2e   :  { %2649 = vmatmul.mubr.msk.bf16.gmra.mrb[16].mxu0 %vm266_vm0, %v2715_v19  ;;  %2681 = vmatmul.mubr.msk.bf16.gmra.mrb[16].mxu1 %vm266_vm0, %v2731_v24 }
  0x2f   :  { %2652 = vmatprep.mubr.msk.bf16.mxu0 %vm266_vm0, %v2716_v21  ;;  %2684 = vmatprep.mubr.msk.bf16.mxu1 %vm266_vm0, %v2732_v26 }
  0x36   :  { %2653 = vmatmul.mubr.msk.bf16.gmra.mrb[20].mxu0 %vm266_vm0, %v2717_v23  ;;  %2685 = vmatmul.mubr.msk.bf16.gmra.mrb[20].mxu1 %vm266_vm0, %v2733_v28 }
  0x37   :  { %2656 = vmatprep.mubr.msk.bf16.mxu0 %vm266_vm0, %v2718_v25  ;;  %2688 = vmatprep.mubr.msk.bf16.mxu1 %vm266_vm0, %v2734_v30 }
  0x3e   :  { %2657 = vmatmul.mubr.msk.bf16.gmra.mrb[24].mxu0 %vm266_vm0, %v2719_v27  ;;  %2689 = vmatmul.mubr.msk.bf16.gmra.mrb[24].mxu1 %vm266_vm0, %v2735_v32 }
  0x3f   :  { %2660 = vmatprep.mubr.msk.bf16.mxu0 %vm266_vm0, %v2720_v29  ;;  %2692 = vmatprep.mubr.msk.bf16.mxu1 %vm266_vm0, %v2736_v33 }
  0x46   :  { %2661 = vmatmul.mubr.msk.bf16.gmra.mrb[28].mxu0 %vm266_vm0, %v2721_v31  ;;  %2693 = vmatmul.mubr.msk.bf16.gmra.mrb[28].mxu1 %vm266_vm0, %v2737_v34 }
  0xe1   :  { %v2905_v35 = vpop.f32.mrb[0].mxu0  ;;  %v2927_v49 = vpop.f32.mrb[0].mxu1 }
  0xe2   :  { %v2907_v36 = vpop.f32.mrb[1].mxu0  ;;  %v724_v42 = vmul.f32 %v2905_v35, %v2905_v35  ;;  %v2931_v51 = vpop.f32.mrb[1].mxu1 }
  0xe3   :  { %v2909_v37 = vpop.f32.mrb[2].mxu0  ;;  %v722_v39 = vmul.f32 %v2907_v36, %v2907_v36  ;;  %6943 = vst [vmem:[#allocation3_spill] sm:$0xff] %v2931_v51  ;;  %v2938_v56 = vpop.f32.mrb[2].mxu1 }
  0xe4   :  { %v2911_v38 = vpop.f32.mrb[3].mxu0  ;;  %v725_v45 = vmul.f32 %v2909_v37, %v2909_v37  ;;  %v2942_v58 = vpop.f32.mrb[3].mxu1 }
  0xe5   :  { %v652_v40 = vadd.f32 %v2911_v38, %v2907_v36  ;;  %v723_v41 = vmul.f32 %v2911_v38, %v2911_v38  ;;  %6944 = vst [vmem:[#allocation4_spill] sm:$0xff] %v2942_v58 }
  0xe7   :  { %v653_v43 = vadd.f32 %v2905_v35, %v652_v40  ;;  %v786_v44 = vadd.f32 %v723_v41, %v722_v39 }
  0xe9   :  { %v787_v46 = vadd.f32 %v786_v44, %v724_v42  ;;  %v2924_v47 = vpop.f32.mrb[4].mxu0  ;;  %v654_v48 = vadd.f32 %v2909_v37, %v653_v43  ;;  %v2955_v5 = vpop.f32.mrb[4].mxu1 }
  0xea   :  { %v2929_v50 = vpop.f32.mrb[5].mxu0  ;;  %v728_v62 = vmul.f32 %v2924_v47, %v2924_v47  ;;  %v2959_v7 = vpop.f32.mrb[5].mxu1 }
  0xeb   :  { %v655_v52 = vadd.f32 %v654_v48, %v2929_v50  ;;  %v726_v53 = vmul.f32 %v2929_v50, %v2929_v50  ;;  %v788_v54 = vadd.f32 %v787_v46, %v725_v45  ;;  %v2936_v55 = vpop.f32.mrb[6].mxu0  ;;  %v2966_v12 = vpop.f32.mrb[6].mxu1 }
  0xec   :  { %v2940_v57 = vpop.f32.mrb[7].mxu0  ;;  %v729_v1 = vmul.f32 %v2936_v55, %v2936_v55  ;;  %v2970_v14 = vpop.f32.mrb[7].mxu1 }
  0xed   :  { %v789_v59 = vadd.f32 %v788_v54, %v726_v53  ;;  %v656_v60 = vadd.f32 %v655_v52, %v2940_v57  ;;  %v727_v61 = vmul.f32 %v2940_v57, %v2940_v57 }
  0xef   :  { %v657_v63 = vadd.f32 %v2924_v47, %v656_v60  ;;  %v790_v0 = vadd.f32 %v789_v59, %v727_v61 }
  0xf1   :  { %v791_v2 = vadd.f32 %v790_v0, %v728_v62  ;;  %v2952_v3 = vpop.f32.mrb[8].mxu0  ;;  %v658_v4 = vadd.f32 %v2936_v55, %v657_v63  ;;  %v2983_v25 = vpop.f32.mrb[8].mxu1 }
  0xf2   :  { %v2957_v6 = vpop.f32.mrb[9].mxu0  ;;  %v732_v18 = vmul.f32 %v2952_v3, %v2952_v3  ;;  %v2987_v27 = vpop.f32.mrb[9].mxu1 }
  0xf3   :  { %v659_v8 = vadd.f32 %v658_v4, %v2957_v6  ;;  %v730_v9 = vmul.f32 %v2957_v6, %v2957_v6  ;;  %v792_v10 = vadd.f32 %v791_v2, %v729_v1  ;;  %v2964_v11 = vpop.f32.mrb[10].mxu0  ;;  %v2994_v32 = vpop.f32.mrb[10].mxu1 }
  0xf4   :  { %v2968_v13 = vpop.f32.mrb[11].mxu0  ;;  %v733_v21 = vmul.f32 %v2964_v11, %v2964_v11  ;;  %v2998_v34 = vpop.f32.mrb[11].mxu1 }
  0xf5   :  { %v793_v15 = vadd.f32 %v792_v10, %v730_v9  ;;  %v660_v16 = vadd.f32 %v659_v8, %v2968_v13  ;;  %v731_v17 = vmul.f32 %v2968_v13, %v2968_v13 }
  0xf7   :  { %v661_v19 = vadd.f32 %v2952_v3, %v660_v16  ;;  %v794_v20 = vadd.f32 %v793_v15, %v731_v17 }
  0xf9   :  { %v795_v22 = vadd.f32 %v794_v20, %v732_v18  ;;  %v2980_v23 = vpop.f32.mrb[12].mxu0  ;;  %v662_v24 = vadd.f32 %v2964_v11, %v661_v19  ;;  %v3011_v53 = vpop.f32.mrb[12].mxu1 }
  0xfa   :  { %v2985_v26 = vpop.f32.mrb[13].mxu0  ;;  %v736_v42 = vmul.f32 %v2980_v23, %v2980_v23  ;;  %v3015_v59 = vpop.f32.mrb[13].mxu1 }
  0xfb   :  { %v663_v28 = vadd.f32 %v662_v24, %v2985_v26  ;;  %v734_v29 = vmul.f32 %v2985_v26, %v2985_v26  ;;  %v796_v30 = vadd.f32 %v795_v22, %v733_v21  ;;  %v2992_v31 = vpop.f32.mrb[14].mxu0  ;;  %v3022_v0 = vpop.f32.mrb[14].mxu1 }
  0xfc   :  { %v2996_v33 = vpop.f32.mrb[15].mxu0  ;;  %v737_v45 = vmul.f32 %v2992_v31, %v2992_v31  ;;  %v3026_v2 = vpop.f32.mrb[15].mxu1 }
  0xfd   :  { %v797_v39 = vadd.f32 %v796_v30, %v734_v29  ;;  %v664_v40 = vadd.f32 %v663_v28, %v2996_v33  ;;  %v735_v41 = vmul.f32 %v2996_v33, %v2996_v33 }
  0xff   :  { %v665_v43 = vadd.f32 %v2980_v23, %v664_v40  ;;  %v798_v44 = vadd.f32 %v797_v39, %v735_v41 }
 0x101   :  { %v799_v46 = vadd.f32 %v798_v44, %v736_v42  ;;  %v3008_v48 = vpop.f32.mrb[16].mxu0  ;;  %v666_v52 = vadd.f32 %v2992_v31, %v665_v43  ;;  %v3039_v21 = vpop.f32.mrb[16].mxu1 }
 0x102   :  { %v3013_v54 = vpop.f32.mrb[17].mxu0  ;;  %v740_v10 = vmul.f32 %v3008_v48, %v3008_v48  ;;  %v3043_v24 = vpop.f32.mrb[17].mxu1 }
 0x103   :  { %v667_v60 = vadd.f32 %v666_v52, %v3013_v54  ;;  %v738_v61 = vmul.f32 %v3013_v54, %v3013_v54  ;;  %v800_v62 = vadd.f32 %v799_v46, %v737_v45  ;;  %v3020_v63 = vpop.f32.mrb[18].mxu0  ;;  %v3050_v40 = vpop.f32.mrb[18].mxu1 }
 0x104   :  { %6945 = vst [vmem:[#allocation5_spill] sm:$0xff] %v3020_v63  ;;  %v3024_v1 = vpop.f32.mrb[19].mxu0  ;;  %v741_v17 = vmul.f32 %v3020_v63, %v3020_v63  ;;  %v3054_v42 = vpop.f32.mrb[19].mxu1 }
 0x105   :  { %v801_v4 = vadd.f32 %v800_v62, %v738_v61  ;;  %v668_v8 = vadd.f32 %v667_v60, %v3024_v1  ;;  %v739_v9 = vmul.f32 %v3024_v1, %v3024_v1 }
 0x107   :  { %v669_v15 = vadd.f32 %v3008_v48, %v668_v8  ;;  %v802_v16 = vadd.f32 %v801_v4, %v739_v9 }
 0x109   :  { %v803_v18 = vadd.f32 %v802_v16, %v740_v10  ;;  %v3036_v19 = vpop.f32.mrb[20].mxu0  ;;  %v670_v20 = vadd.f32 %v3020_v63, %v669_v15  ;;  %v3067_v9 = vpop.f32.mrb[20].mxu1 }
 0x10a   :  { %6946 = vst [vmem:[#allocation6_spill] sm:$0xff] %v3036_v19  ;;  %v3041_v22 = vpop.f32.mrb[21].mxu0  ;;  %v744_v46 = vmul.f32 %v3036_v19, %v3036_v19  ;;  %6951 = vst [vmem:[#allocation11_spill] sm:$0xff] %v3067_v9  ;;  %v3071_v15 = vpop.f32.mrb[21].mxu1 }
 0x10b   :  { %6947 = vst [vmem:[#allocation7_spill] sm:$0xff] %v3041_v22  ;;  %v671_v28 = vadd.f32 %v670_v20, %v3041_v22  ;;  %v742_v29 = vmul.f32 %v3041_v22, %v3041_v22  ;;  %v804_v30 = vadd.f32 %v803_v18, %v741_v17  ;;  %v3048_v39 = vpop.f32.mrb[22].mxu0 }
 0x10c   :  { %6948 = vst [vmem:[#allocation8_spill] sm:$0xff] %v3048_v39  ;;  %v3052_v41 = vpop.f32.mrb[23].mxu0  ;;  %v745_v61 = vmul.f32 %v3048_v39, %v3048_v39 }
 0x10d   :  { %6949 = vst [vmem:[#allocation9_spill] sm:$0xff] %v3052_v41  ;;  %v805_v43 = vadd.f32 %v804_v30, %v742_v29  ;;  %v672_v44 = vadd.f32 %v671_v28, %v3052_v41  ;;  %v743_v45 = vmul.f32 %v3052_v41, %v3052_v41  ;;  %v3078_v28 = vpop.f32.mrb[22].mxu1 }
 0x10e   :  { %6954 = vst [vmem:[#allocation14_spill] sm:$0xff] %v3078_v28  ;;  %v3082_v30 = vpop.f32.mrb[23].mxu1 }
 0x10f   :  { %v673_v52 = vadd.f32 %v3036_v19, %v672_v44  ;;  %v806_v60 = vadd.f32 %v805_v43, %v743_v45 }
 0x111   :  { %v807_v62 = vadd.f32 %v806_v60, %v744_v46  ;;  %v3064_v4 = vpop.f32.mrb[24].mxu0  ;;  %v674_v8 = vadd.f32 %v3048_v39, %v673_v52 }
 0x112   :  { %6950 = vst [vmem:[#allocation10_spill] sm:$0xff] %v3064_v4  ;;  %v3069_v10 = vpop.f32.mrb[25].mxu0  ;;  %v748_v46 = vmul.f32 %v3064_v4, %v3064_v4 }
 0x113   :  { %6952 = vst [vmem:[#allocation12_spill] sm:$0xff] %v3069_v10  ;;  %v675_v16 = vadd.f32 %v674_v8, %v3069_v10  ;;  %v746_v17 = vmul.f32 %v3069_v10, %v3069_v10  ;;  %v808_v18 = vadd.f32 %v807_v62, %v745_v61  ;;  %v3076_v20 = vpop.f32.mrb[26].mxu0 }
 0x114   :  { %6953 = vst [vmem:[#allocation13_spill] sm:$0xff] %v3076_v20  ;;  %v3080_v29 = vpop.f32.mrb[27].mxu0  ;;  %v749_v61 = vmul.f32 %v3076_v20, %v3076_v20 }
 0x115   :  { %6955 = vst [vmem:[#allocation15_spill] sm:$0xff] %v3080_v29  ;;  %v809_v43 = vadd.f32 %v808_v18, %v746_v17  ;;  %v676_v44 = vadd.f32 %v675_v16, %v3080_v29  ;;  %v747_v45 = vmul.f32 %v3080_v29, %v3080_v29  ;;  %v3095_v17 = vpop.f32.mrb[24].mxu1 }
 0x116   :  { %6957 = vst [vmem:[#allocation17_spill] sm:$0xff] %v3095_v17  ;;  %v3099_v18 = vpop.f32.mrb[25].mxu1 }
 0x117   :  { %v677_v52 = vadd.f32 %v3064_v4, %v676_v44  ;;  %v810_v60 = vadd.f32 %v809_v43, %v747_v45  ;;  %6959 = vst [vmem:[#allocation19_spill] sm:$0xff] %v3099_v18  ;;  %v3106_v4 = vpop.f32.mrb[26].mxu1 }
 0x118   :  { %6961 = vst [vmem:[#allocation21_spill] sm:$0xff] %v3106_v4 }
 0x119   :  { %v811_v62 = vadd.f32 %v810_v60, %v748_v46  ;;  %v3092_v8 = vpop.f32.mrb[28].mxu0  ;;  %v678_v10 = vadd.f32 %v3076_v20, %v677_v52  ;;  %v3110_v60 = vpop.f32.mrb[27].mxu1 }
 0x11a   :  { %6956 = vst [vmem:[#allocation16_spill] sm:$0xff] %v3092_v8  ;;  %v3097_v16 = vpop.f32.mrb[29].mxu0  ;;  %6963 = vst [vmem:[#allocation23_spill] sm:$0xff] %v3110_v60 }
 0x11b   :  { %6958 = vst [vmem:[#allocation18_spill] sm:$0xff] %v3097_v16  ;;  %v679_v29 = vadd.f32 %v678_v10, %v3097_v16  ;;  %v750_v44 = vmul.f32 %v3097_v16, %v3097_v16  ;;  %v812_v43 = vadd.f32 %v811_v62, %v749_v61  ;;  %v3104_v45 = vpop.f32.mrb[30].mxu0  ;;  %v752_v10 = vmul.f32 %v3092_v8, %v3092_v8 }
 0x11c   :  { %6960 = vst [vmem:[#allocation20_spill] sm:$0xff] %v3104_v45  ;;  %v3108_v46 = vpop.f32.mrb[31].mxu0  ;;  %v753_v62 = vmul.f32 %v3104_v45, %v3104_v45 }
 0x11d   :  { %6962 = vst [vmem:[#allocation22_spill] sm:$0xff] %v3108_v46  ;;  %v813_v52 = vadd.f32 %v812_v43, %v750_v44  ;;  %v680_v20 = vadd.f32 %v679_v29, %v3108_v46  ;;  %v751_v39 = vmul.f32 %v3108_v46, %v3108_v46  ;;  %v754_v44 = vmul.f32 %v2931_v51, %v2931_v51  ;;  %v3123_v43 = vpop.f32.mrb[28].mxu1 }
 0x11e   :  { %6964 = vst [vmem:[#allocation24_spill] sm:$0xff] %v3123_v43  ;;  %v3125_v29 = vpop.f32.mrb[29].mxu1 }
 0x11f   :  { %v681_v16 = vadd.f32 %v3092_v8, %v680_v20  ;;  %v814_v61 = vadd.f32 %v813_v52, %v751_v39  ;;  %6965 = vst [vmem:[#allocation25_spill] sm:$0xff] %v3125_v29  ;;  %v3128_v63 = vpop.f32.mrb[30].mxu1  ;;  %v759_v8 = vmul.f32 %v2970_v14, %v2970_v14 }
 0x120   :  { %v3130_v20 = vpop.f32.mrb[31].mxu1 }
 0x121   :  { %v815_v19 = vadd.f32 %v814_v61, %v752_v10  ;;  %v682_v41 = vadd.f32 %v3104_v45, %v681_v16  ;;  %6966 = vst [vmem:[#allocation26_spill] sm:$0xff] %v3130_v20  ;;  %v755_v16 = vmul.f32 %v2942_v58, %v2942_v58  ;;  %v756_v10 = vmul.f32 %v2927_v49, %v2927_v49 }
 0x123   :  { %v683_v46 = vadd.f32 %v682_v41, %v2931_v51  ;;  %v816_v22 = vadd.f32 %v815_v19, %v753_v62  ;;  %v757_v41 = vmul.f32 %v2938_v56, %v2938_v56 }
 0x125   :  { %v817_v39 = vadd.f32 %v816_v22, %v754_v44  ;;  %v684_v52 = vadd.f32 %v683_v46, %v2942_v58  ;;  %v758_v22 = vmul.f32 %v2959_v7, %v2959_v7 }
 0x127   :  { %v685_v61 = vadd.f32 %v2927_v49, %v684_v52  ;;  %v818_v45 = vadd.f32 %v817_v39, %v755_v16  ;;  %v760_v39 = vmul.f32 %v2955_v5, %v2955_v5  ;;  %v3152_v16 = vmul.f32 %v2966_v12, %v2966_v12 }
 0x129   :  { %v819_v19 = vadd.f32 %v818_v45, %v756_v10  ;;  %v686_v62 = vadd.f32 %v2938_v56, %v685_v61 }
 0x12b   :  { %v687_v46 = vadd.f32 %v686_v62, %v2959_v7  ;;  %v820_v44 = vadd.f32 %v819_v19, %v757_v41  ;;  %v3161_v41 = vmul.f32 %v2987_v27, %v2987_v27  ;;  %v2742_v19 = vmov 0.0  }
 0x12c   :  { %1070 = vst [vmem:[#allocation2] sm:$0xff] %v2742_v19  ;;  %1071 = vst [vmem:[#allocation2 + $0x8] sm:$0xff] %v2742_v19 }
 0x12d   :  { %v821_v51 = vadd.f32 %v820_v44, %v758_v22  ;;  %v688_v58 = vadd.f32 %v687_v46, %v2970_v14  ;;  %1072 = vst [vmem:[#allocation2 + $0x10] sm:$0xff] %v2742_v19  ;;  %1073 = vst [vmem:[#allocation2 + $0x18] sm:$0xff] %v2742_v19  ;;  %v763_v22 = vmul.f32 %v2998_v34, %v2998_v34 }
 0x12e   :  { %1074 = vst [vmem:[#allocation2 + $0x20] sm:$0xff] %v2742_v19  ;;  %1075 = vst [vmem:[#allocation2 + $0x28] sm:$0xff] %v2742_v19  ;;  %v764_v46 = vmul.f32 %v2983_v25, %v2983_v25 }
 0x12f   :  { %v689_v52 = vadd.f32 %v2955_v5, %v688_v58  ;;  %v822_v45 = vadd.f32 %v821_v51, %v759_v8  ;;  %1076 = vst [vmem:[#allocation2 + $0x30] sm:$0xff] %v2742_v19  ;;  %1077 = vst [vmem:[#allocation2 + $0x38] sm:$0xff] %v2742_v19 }
 0x130   :  { %1078 = vst [vmem:[#allocation2 + $0x40] sm:$0xff] %v2742_v19  ;;  %1079 = vst [vmem:[#allocation2 + $0x48] sm:$0xff] %v2742_v19 }
 0x131   :  { %v3154_v10 = vadd.f32 %v822_v45, %v760_v39  ;;  %v3157_v61 = vadd.f32 %v2966_v12, %v689_v52  ;;  %1080 = vst [vmem:[#allocation2 + $0x50] sm:$0xff] %v2742_v19  ;;  %1081 = vst [vmem:[#allocation2 + $0x58] sm:$0xff] %v2742_v19  ;;  %v765_v52 = vmul.f32 %v2994_v32, %v2994_v32 }
 0x132   :  { %1082 = vst [vmem:[#allocation2 + $0x60] sm:$0xff] %v2742_v19  ;;  %1083 = vst [vmem:[#allocation2 + $0x68] sm:$0xff] %v2742_v19 }
 0x133   :  { %1084 = vst [vmem:[#allocation2 + $0x70] sm:$0xff] %v2742_v19  ;;  %1085 = vst [vmem:[#allocation2 + $0x78] sm:$0xff] %v2742_v19  ;;  %v691_v51 = vadd.f32 %v3157_v61, %v2987_v27  ;;  %v824_v58 = vadd.f32 %v3154_v10, %v3152_v16  ;;  %v766_v16 = vmul.f32 %v3015_v59, %v3015_v59 }
 0x134   :  { %1086 = vst [vmem:[#allocation2 + $0x80] sm:$0xff] %v2742_v19  ;;  %1087 = vst [vmem:[#allocation2 + $0x88] sm:$0xff] %v2742_v19 }
 0x135   :  { %1088 = vst [vmem:[#allocation2 + $0x90] sm:$0xff] %v2742_v19  ;;  %1089 = vst [vmem:[#allocation2 + $0x98] sm:$0xff] %v2742_v19  ;;  %v825_v8 = vadd.f32 %v824_v58, %v3161_v41  ;;  %v692_v62 = vadd.f32 %v691_v51, %v2998_v34  ;;  %v767_v58 = vmul.f32 %v3026_v2, %v3026_v2 }
 0x136   :  { %1090 = vst [vmem:[#allocation2 + $0xa0] sm:$0xff] %v2742_v19  ;;  %1091 = vst [vmem:[#allocation2 + $0xa8] sm:$0xff] %v2742_v19 }
 0x137   :  { %1092 = vst [vmem:[#allocation2 + $0xb0] sm:$0xff] %v2742_v19  ;;  %1093 = vst [vmem:[#allocation2 + $0xb8] sm:$0xff] %v2742_v19  ;;  %v693_v44 = vadd.f32 %v2983_v25, %v692_v62  ;;  %v826_v39 = vadd.f32 %v825_v8, %v763_v22  ;;  %v768_v8 = vmul.f32 %v3011_v53, %v3011_v53 }
 0x138   :  { %1094 = vst [vmem:[#allocation2 + $0xc0] sm:$0xff] %v2742_v19  ;;  %1095 = vst [vmem:[#allocation2 + $0xc8] sm:$0xff] %v2742_v19 }
 0x139   :  { %1096 = vst [vmem:[#allocation2 + $0xd0] sm:$0xff] %v2742_v19  ;;  %1097 = vst [vmem:[#allocation2 + $0xd8] sm:$0xff] %v2742_v19  ;;  %v827_v45 = vadd.f32 %v826_v39, %v764_v46  ;;  %v694_v61 = vadd.f32 %v2994_v32, %v693_v44  ;;  %v769_v46 = vmul.f32 %v3022_v0, %v3022_v0 }
 0x13a   :  { %1098 = vst [vmem:[#allocation2 + $0xe0] sm:$0xff] %v2742_v19  ;;  %1099 = vst [vmem:[#allocation2 + $0xe8] sm:$0xff] %v2742_v19 }
 0x13b   :  { %1100 = vst [vmem:[#allocation2 + $0xf0] sm:$0xff] %v2742_v19  ;;  %1101 = vst [vmem:[#allocation2 + $0xf8] sm:$0xff] %v2742_v19  ;;  %v695_v10 = vadd.f32 %v694_v61, %v3015_v59  ;;  %v828_v41 = vadd.f32 %v827_v45, %v765_v52  ;;  %v770_v52 = vmul.f32 %v3043_v24, %v3043_v24 }
 0x13c   :  { %1102 = vst [vmem:[#allocation2 + $0x100] sm:$0xff] %v2742_v19  ;;  %1103 = vst [vmem:[#allocation2 + $0x108] sm:$0xff] %v2742_v19 }
 0x13d   :  { %1104 = vst [vmem:[#allocation2 + $0x110] sm:$0xff] %v2742_v19  ;;  %1105 = vst [vmem:[#allocation2 + $0x118] sm:$0xff] %v2742_v19  ;;  %v696_v51 = vadd.f32 %v695_v10, %v3026_v2 }
 0x13e   :  { %1106 = vst [vmem:[#allocation2 + $0x120] sm:$0xff] %v2742_v19  ;;  %1107 = vst [vmem:[#allocation2 + $0x128] sm:$0xff] %v2742_v19 }
 0x13f   :  { %1108 = vst [vmem:[#allocation2 + $0x130] sm:$0xff] %v2742_v19  ;;  %1109 = vst [vmem:[#allocation2 + $0x138] sm:$0xff] %v2742_v19  ;;  %v697_v62 = vadd.f32 %v3011_v53, %v696_v51 }
 0x140   :  { %1110 = vst [vmem:[#allocation2 + $0x140] sm:$0xff] %v2742_v19  ;;  %1111 = vst [vmem:[#allocation2 + $0x148] sm:$0xff] %v2742_v19 }
 0x141   :  { %1112 = vst [vmem:[#allocation2 + $0x150] sm:$0xff] %v2742_v19  ;;  %1113 = vst [vmem:[#allocation2 + $0x158] sm:$0xff] %v2742_v19  ;;  %v698_v39 = vadd.f32 %v3022_v0, %v697_v62 }
 0x142   :  { %1114 = vst [vmem:[#allocation2 + $0x160] sm:$0xff] %v2742_v19  ;;  %1115 = vst [vmem:[#allocation2 + $0x168] sm:$0xff] %v2742_v19 }
 0x143   :  { %1116 = vst [vmem:[#allocation2 + $0x170] sm:$0xff] %v2742_v19  ;;  %1117 = vst [vmem:[#allocation2 + $0x178] sm:$0xff] %v2742_v19  ;;  %v699_v45 = vadd.f32 %v698_v39, %v3043_v24 }
 0x144   :  { %1118 = vst [vmem:[#allocation2 + $0x180] sm:$0xff] %v2742_v19  ;;  %1119 = vst [vmem:[#allocation2 + $0x188] sm:$0xff] %v2742_v19 }
 0x145   :  { %1120 = vst [vmem:[#allocation2 + $0x190] sm:$0xff] %v2742_v19  ;;  %1121 = vst [vmem:[#allocation2 + $0x198] sm:$0xff] %v2742_v19  ;;  %v700_v10 = vadd.f32 %v699_v45, %v3054_v42 }
 0x146   :  { %1122 = vst [vmem:[#allocation2 + $0x1a0] sm:$0xff] %v2742_v19  ;;  %1123 = vst [vmem:[#allocation2 + $0x1a8] sm:$0xff] %v2742_v19 }
 0x147   :  { %1124 = vst [vmem:[#allocation2 + $0x1b0] sm:$0xff] %v2742_v19  ;;  %1125 = vst [vmem:[#allocation2 + $0x1b8] sm:$0xff] %v2742_v19  ;;  %v701_v51 = vadd.f32 %v3039_v21, %v700_v10 }
 0x148   :  { %1126 = vst [vmem:[#allocation2 + $0x1c0] sm:$0xff] %v2742_v19  ;;  %1127 = vst [vmem:[#allocation2 + $0x1c8] sm:$0xff] %v2742_v19 }
 0x149   :  { %1128 = vst [vmem:[#allocation2 + $0x1d0] sm:$0xff] %v2742_v19  ;;  %1129 = vst [vmem:[#allocation2 + $0x1d8] sm:$0xff] %v2742_v19 }
 0x14a   :  { %1130 = vst [vmem:[#allocation2 + $0x1e0] sm:$0xff] %v2742_v19  ;;  %1131 = vst [vmem:[#allocation2 + $0x1e8] sm:$0xff] %v2742_v19 }
 0x14b   :  { %1132 = vst [vmem:[#allocation2 + $0x1f0] sm:$0xff] %v2742_v19  ;;  %1133 = vst [vmem:[#allocation2 + $0x1f8] sm:$0xff] %v2742_v19 }
 0x14c   :  { %1134 = vst [vmem:[#allocation2 + $0x200] sm:$0xff] %v2742_v19  ;;  %1135 = vst [vmem:[#allocation2 + $0x208] sm:$0xff] %v2742_v19 }
 0x14d   :  { %1136 = vst [vmem:[#allocation2 + $0x210] sm:$0xff] %v2742_v19  ;;  %1137 = vst [vmem:[#allocation2 + $0x218] sm:$0xff] %v2742_v19 }
 0x14e   :  { %1138 = vst [vmem:[#allocation2 + $0x220] sm:$0xff] %v2742_v19  ;;  %1139 = vst [vmem:[#allocation2 + $0x228] sm:$0xff] %v2742_v19 }
 0x14f   :  { %1140 = vst [vmem:[#allocation2 + $0x230] sm:$0xff] %v2742_v19  ;;  %1141 = vst [vmem:[#allocation2 + $0x238] sm:$0xff] %v2742_v19 }
 0x150   :  { %1142 = vst [vmem:[#allocation2 + $0x240] sm:$0xff] %v2742_v19  ;;  %1143 = vst [vmem:[#allocation2 + $0x248] sm:$0xff] %v2742_v19 }
 0x151   :  { %1144 = vst [vmem:[#allocation2 + $0x250] sm:$0xff] %v2742_v19  ;;  %1145 = vst [vmem:[#allocation2 + $0x258] sm:$0xff] %v2742_v19 }
 0x152   :  { %1146 = vst [vmem:[#allocation2 + $0x260] sm:$0xff] %v2742_v19  ;;  %1147 = vst [vmem:[#allocation2 + $0x268] sm:$0xff] %v2742_v19 }
 0x153   :  { %1148 = vst [vmem:[#allocation2 + $0x270] sm:$0xff] %v2742_v19  ;;  %1149 = vst [vmem:[#allocation2 + $0x278] sm:$0xff] %v2742_v19 }
 0x154   :  { %1150 = vst [vmem:[#allocation2 + $0x280] sm:$0xff] %v2742_v19  ;;  %1151 = vst [vmem:[#allocation2 + $0x288] sm:$0xff] %v2742_v19 }
 0x155   :  { %1152 = vst [vmem:[#allocation2 + $0x290] sm:$0xff] %v2742_v19  ;;  %1153 = vst [vmem:[#allocation2 + $0x298] sm:$0xff] %v2742_v19 }
 0x156   :  { %1154 = vst [vmem:[#allocation2 + $0x2a0] sm:$0xff] %v2742_v19  ;;  %1155 = vst [vmem:[#allocation2 + $0x2a8] sm:$0xff] %v2742_v19  ;;  %v829_v19 = vadd.f32 %v828_v41, %v766_v16  ;;  %v771_v41 = vmul.f32 %v3054_v42, %v3054_v42 }
 0x158   :  { %v830_v22 = vadd.f32 %v829_v19, %v767_v58  ;;  %v772_v19 = vmul.f32 %v3039_v21, %v3039_v21 }
 0x15a   :  { %v831_v44 = vadd.f32 %v830_v22, %v768_v8  ;;  %v773_v8 = vmul.f32 %v3050_v40, %v3050_v40  ;;  %v702_v22 = vadd.f32 %v3050_v40, %v701_v51 }
 0x15c   :  { %v832_v61 = vadd.f32 %v831_v44, %v769_v46  ;;  %v774_v46 = vmul.f32 %v3071_v15, %v3071_v15  ;;  %v703_v44 = vadd.f32 %v702_v22, %v3071_v15 }
 0x15e   :  { %v833_v16 = vadd.f32 %v832_v61, %v770_v52  ;;  %v704_v45 = vadd.f32 %v703_v44, %v3082_v30  ;;  %v775_v61 = vmul.f32 %v3082_v30, %v3082_v30 }
 0x160   :  { %v834_v58 = vadd.f32 %v833_v16, %v771_v41  ;;  %v776_v16 = vmul.f32 %v3067_v9, %v3067_v9  ;;  %v705_v10 = vadd.f32 %v3067_v9, %v704_v45 }
 0x162   :  { %v835_v62 = vadd.f32 %v834_v58, %v772_v19  ;;  %v777_v19 = vmul.f32 %v3078_v28, %v3078_v28  ;;  %v706_v58 = vadd.f32 %v3078_v28, %v705_v10 }
 0x164   :  { %v836_v39 = vadd.f32 %v835_v62, %v773_v8  ;;  %v778_v8 = vmul.f32 %v3099_v18, %v3099_v18  ;;  %v707_v62 = vadd.f32 %v706_v58, %v3099_v18 }
 0x166   :  { %v837_v52 = vadd.f32 %v836_v39, %v774_v46  ;;  %v708_v44 = vadd.f32 %v707_v62, %v3110_v60  ;;  %v779_v39 = vmul.f32 %v3110_v60, %v3110_v60 }
 0x168   :  { %v838_v41 = vadd.f32 %v837_v52, %v775_v61  ;;  %v780_v52 = vmul.f32 %v3095_v17, %v3095_v17  ;;  %v709_v45 = vadd.f32 %v3095_v17, %v708_v44 }
 0x16a   :  { %v839_v51 = vadd.f32 %v838_v41, %v776_v16  ;;  %v781_v16 = vmul.f32 %v3106_v4, %v3106_v4  ;;  %v710_v41 = vadd.f32 %v3106_v4, %v709_v45 }
 0x16c   :  { %v840_v22 = vadd.f32 %v839_v51, %v777_v19  ;;  %v782_v19 = vmul.f32 %v3125_v29, %v3125_v29  ;;  %v711_v51 = vadd.f32 %v710_v41, %v3125_v29 }
 0x16e   :  { %v841_v46 = vadd.f32 %v840_v22, %v778_v8  ;;  %v712_v62 = vadd.f32 %v711_v51, %v3130_v20  ;;  %v783_v22 = vmul.f32 %v3130_v20, %v3130_v20 }
 0x170   :  { %v842_v61 = vadd.f32 %v841_v46, %v779_v39  ;;  %v784_v46 = vmul.f32 %v3123_v43, %v3123_v43  ;;  %v713_v44 = vadd.f32 %v3123_v43, %v712_v62 }
 0x172   :  { %v843_v10 = vadd.f32 %v842_v61, %v780_v52  ;;  %v785_v52 = vmul.f32 %v3128_v63, %v3128_v63  ;;  %v714_v45 = vadd.f32 %v3128_v63, %v713_v44 }
 0x174   :  { %v844_v58 = vadd.f32 %v843_v10, %v781_v16  ;;  %v715_v41 = vrot.slane %v714_v45, 4 }
 0x176   :  { %v845_v8 = vadd.f32 %v844_v58, %v782_v19  ;;  %v716_v10 = vadd.f32 %v715_v41, %v714_v45 }
 0x178   :  { %v846_v39 = vadd.f32 %v845_v8, %v783_v22  ;;  %v717_v51 = vrot.slane %v716_v10, 2 }
 0x17a   :  { %v847_v61 = vadd.f32 %v846_v39, %v784_v46  ;;  %v718_v29 = vadd.f32 %v717_v51, %v716_v10  ;;  %v867_v46 = vlaneseq  ;;  %v6968_v10 = vld [vmem:[#allocation7_spill] sm:$0xff]  ;;  %v6970_v51 = vld [vmem:[#allocation6_spill] sm:$0xff] }
 0x17c   :  { %v848_v16 = vadd.f32 %v847_v61, %v785_v52  ;;  %v719_v4 = vrot.slane %v718_v29, 1  ;;  %v3323_v39 = vshrl.u32 %v867_v46, 7  ;;  %v859_v52 = vld [vmem:[%s6579_s2] sm:$0x1]  ;;  %v6974_v46 = vld [vmem:[#allocation10_spill] sm:$0xff] }
 0x17e   :  { %v849_v19 = vrot.slane %v848_v16, 4  ;;  %v720_v60 = vadd.f32 %v719_v4, %v718_v29  ;;  %v6606_v45 = vsub.s32 0, %v3323_v39 }
 0x180   :  { %v850_v58 = vadd.f32 %v849_v19, %v848_v16  ;;  %v721_v62 = vmul.f32 0.001953125, %v720_v60  ;;  %v6967_v16 = vld [vmem:[#allocation5_spill] sm:$0xff] }
 0x181   :  { %v6969_v19 = vld [vmem:[#allocation9_spill] sm:$0xff] }
 0x182   :  { %v851_v20 = vrot.slane %v850_v58, 2  ;;  %v856_v43 = vmul.f32 %v721_v62, %v721_v62 }
 0x184   :  { %v852_v17 = vadd.f32 %v851_v20, %v850_v58  ;;  %v6971_v58 = vld [vmem:[#allocation8_spill] sm:$0xff] }
 0x186   :  { %v853_v18 = vrot.slane %v852_v17, 1 }
 0x188   :  { %v854_v8 = vadd.f32 %v853_v18, %v852_v17  ;;  %v3332_v17 = vld [vmem:[%s6580_s3] sm:$0x1] }
 0x18a   :  { %v855_v22 = vmul.f32 0.001953125, %v854_v8 }
 0x18c   :  { %v857_v28 = vsub.f32 %v855_v22, %v856_v43  ;;  %v6973_v22 = vld [vmem:[#allocation15_spill] sm:$0xff] }
 0x18e   :  { %v858_v9 = vmax.f32 %v857_v28, 0.0  ;;  %v6980_v28 = vld [vmem:[#allocation3_spill] sm:$0xff] }
 0x190   :  { %v860_v44 = vadd.f32 1e-05, %v858_v9 }
 0x192   :  { %2738 = vrsqrt.f32 %v860_v44 }
 0x19c   :  { %v2739_v20 = vpop.eup %2738 }
 0x19d   :  { %v862_v4 = vmul.f32 %v2739_v20, %v859_v52  ;;  %v6975_v20 = vld [vmem:[#allocation13_spill] sm:$0xff] }
 0x19f   :  { %v3334_v18 = vmul.f32 %v862_v4, %v721_v62  ;;  %v3338_v9 = vrot.slane %v862_v4, %v6606_v45  ;;  %v6972_v62 = vld [vmem:[#allocation12_spill] sm:$0xff] }
 0x1a0   :  { %v6981_v45 = vld [vmem:[#allocation4_spill] sm:$0xff] }
 0x1a1   :  { %v3344_v60 = vmul.f32 %v3338_v9, %v2907_v36  ;;  %v3348_v43 = vmul.f32 %v3338_v9, %v2911_v38  ;;  %v3352_v29 = vmul.f32 %v2905_v35, %v3338_v9  ;;  %v3356_v61 = vmul.f32 %v2909_v37, %v3338_v9 }
 0x1a2   :  { %v3360_v41 = vmul.f32 %v3338_v9, %v2929_v50  ;;  %v3364_v36 = vmul.f32 %v3338_v9, %v2940_v57  ;;  %v3368_v38 = vmul.f32 %v2924_v47, %v3338_v9  ;;  %v3372_v35 = vmul.f32 %v2936_v55, %v3338_v9 }
 0x1a3   :  { %v3376_v37 = vmul.f32 %v3338_v9, %v2957_v6  ;;  %v3380_v50 = vmul.f32 %v3338_v9, %v2968_v13  ;;  %v3384_v57 = vmul.f32 %v2952_v3, %v3338_v9  ;;  %v3388_v47 = vmul.f32 %v2964_v11, %v3338_v9 }
 0x1a4   :  { %v3392_v55 = vmul.f32 %v3338_v9, %v2985_v26  ;;  %v3396_v6 = vmul.f32 %v3338_v9, %v2996_v33  ;;  %v3400_v13 = vmul.f32 %v2980_v23, %v3338_v9  ;;  %v3404_v3 = vmul.f32 %v2992_v31, %v3338_v9 }
 0x1a5   :  { %v3408_v11 = vmul.f32 %v3338_v9, %v3013_v54  ;;  %v3412_v26 = vmul.f32 %v3338_v9, %v3024_v1  ;;  %v3416_v33 = vmul.f32 %v3008_v48, %v3338_v9  ;;  %v3420_v23 = vmul.f32 %v6967_v16, %v3338_v9  ;;  %v6976_v16 = vld [vmem:[#allocation18_spill] sm:$0xff] }
 0x1a6   :  { %v3424_v31 = vmul.f32 %v3338_v9, %v6968_v10  ;;  %v3428_v54 = vmul.f32 %v3338_v9, %v6969_v19  ;;  %v3432_v1 = vmul.f32 %v6970_v51, %v3338_v9  ;;  %v3436_v48 = vmul.f32 %v6971_v58, %v3338_v9  ;;  %v6977_v19 = vld [vmem:[#allocation22_spill] sm:$0xff]  ;;  %v6978_v58 = vld [vmem:[#allocation16_spill] sm:$0xff] }
 0x1a7   :  { %v3440_v8 = vmul.f32 %v3338_v9, %v6972_v62  ;;  %v3444_v44 = vmul.f32 %v3338_v9, %v6973_v22  ;;  %v3448_v52 = vmul.f32 %v6974_v46, %v3338_v9  ;;  %v3452_v4 = vmul.f32 %v6975_v20, %v3338_v9  ;;  %v6979_v22 = vld [vmem:[#allocation20_spill] sm:$0xff] }
 0x1a8   :  { %v3456_v10 = vmul.f32 %v3338_v9, %v6976_v16  ;;  %v3460_v51 = vmul.f32 %v3338_v9, %v6977_v19  ;;  %v3464_v62 = vmul.f32 %v6978_v58, %v3338_v9  ;;  %v3468_v46 = vmul.f32 %v6979_v22, %v3338_v9 }
 0x1a9   :  { %v3472_v20 = vmul.f32 %v3338_v9, %v6980_v28  ;;  %v3476_v16 = vmul.f32 %v3338_v9, %v6981_v45  ;;  %v3480_v19 = vmul.f32 %v2927_v49, %v3338_v9  ;;  %v3484_v58 = vmul.f32 %v2938_v56, %v3338_v9 }
 0x1aa   :  { %v3488_v22 = vmul.f32 %v3338_v9, %v2959_v7  ;;  %v3492_v28 = vmul.f32 %v3338_v9, %v2970_v14  ;;  %v3496_v45 = vmul.f32 %v2955_v5, %v3338_v9  ;;  %v3500_v49 = vmul.f32 %v2966_v12, %v3338_v9 }
 0x1ab   :  { %v3504_v56 = vmul.f32 %v3338_v9, %v2987_v27  ;;  %v3508_v7 = vmul.f32 %v3338_v9, %v2998_v34  ;;  %v3512_v14 = vmul.f32 %v2983_v25, %v3338_v9  ;;  %v3516_v5 = vmul.f32 %v2994_v32, %v3338_v9 }
 0x1ac   :  { %v3520_v12 = vmul.f32 %v3338_v9, %v3015_v59  ;;  %v3524_v27 = vmul.f32 %v3338_v9, %v3026_v2  ;;  %v3528_v34 = vmul.f32 %v3011_v53, %v3338_v9  ;;  %v3532_v25 = vmul.f32 %v3022_v0, %v3338_v9 }
 0x1ad   :  { %v3536_v32 = vmul.f32 %v3338_v9, %v3043_v24  ;;  %v3540_v59 = vmul.f32 %v3338_v9, %v3054_v42  ;;  %v3544_v2 = vmul.f32 %v3039_v21, %v3338_v9  ;;  %v3548_v53 = vmul.f32 %v3050_v40, %v3338_v9 }
 0x1ae   :  { %v3552_v0 = vmul.f32 %v3338_v9, %v3071_v15  ;;  %v3556_v24 = vmul.f32 %v3338_v9, %v3082_v30 }
 0x1af   :  { %6982 = vst [vmem:[#allocation5_spill] sm:$0xff] %v3536_v32  ;;  %6983 = vst [vmem:[#allocation7_spill] sm:$0xff] %v3540_v59  ;;  %v6988_v32 = vld [vmem:[#allocation11_spill] sm:$0xff]  ;;  %v6990_v59 = vld [vmem:[#allocation14_spill] sm:$0xff] }
 0x1b0   :  { %6984 = vst [vmem:[#allocation9_spill] sm:$0xff] %v3544_v2  ;;  %6985 = vst [vmem:[#allocation6_spill] sm:$0xff] %v3548_v53  ;;  %v3560_v42 = vmul.f32 %v6988_v32, %v3338_v9  ;;  %v3564_v21 = vmul.f32 %v6990_v59, %v3338_v9  ;;  %v6992_v2 = vld [vmem:[#allocation19_spill] sm:$0xff] }
 0x1b1   :  { %6986 = vst [vmem:[#allocation8_spill] sm:$0xff] %v3552_v0  ;;  %6987 = vst [vmem:[#allocation12_spill] sm:$0xff] %v3556_v24  ;;  %v3568_v40 = vmul.f32 %v3338_v9, %v6992_v2  ;;  %v6994_v53 = vld [vmem:[#allocation23_spill] sm:$0xff]  ;;  %v6995_v0 = vld [vmem:[#allocation17_spill] sm:$0xff] }
 0x1b2   :  { %6989 = vst [vmem:[#allocation15_spill] sm:$0xff] %v3560_v42  ;;  %6991 = vst [vmem:[#allocation10_spill] sm:$0xff] %v3564_v21  ;;  %v3572_v15 = vmul.f32 %v3338_v9, %v6994_v53  ;;  %v3576_v30 = vmul.f32 %v6995_v0, %v3338_v9  ;;  %v6997_v24 = vld [vmem:[#allocation21_spill] sm:$0xff]  ;;  %v7000_v21 = vld [vmem:[#allocation26_spill] sm:$0xff]  ;;  %v3596_v0 = vmul.f32 %v3128_v63, %v3338_v9 }
 0x1b3   :  { %6993 = vst [vmem:[#allocation13_spill] sm:$0xff] %v3568_v40  ;;  %v3580_v32 = vmul.f32 %v6997_v24, %v3338_v9  ;;  %v6999_v42 = vld [vmem:[#allocation25_spill] sm:$0xff]  ;;  %v3588_v2 = vmul.f32 %v3338_v9, %v7000_v21  ;;  %v7001_v40 = vld [vmem:[#allocation24_spill] sm:$0xff]  ;;  %v7003_v24 = vsub.f32 %v3332_v17, %v3334_v18 }
 0x1b4   :  { %6996 = vst [vmem:[#allocation18_spill] sm:$0xff] %v3576_v30  ;;  %v3584_v59 = vmul.f32 %v3338_v9, %v6999_v42  ;;  %v3592_v53 = vmul.f32 %v7001_v40, %v3338_v9  ;;  %v7002_v30 = vsub.s32 0, %v3323_v39 }
 0x1b5   :  { %6998 = vst [vmem:[#allocation22_spill] sm:$0xff] %v3580_v32 }
 0x1b6   :  { %v3603_v32 = vrot.slane %v7003_v24, %v7002_v30 }
 0x1b7   :  { %v7011_v30 = vld [vmem:[#allocation6_spill] sm:$0xff] }
 0x1b8   :  { %v3607_v42 = vadd.f32 %v3603_v32, %v3344_v60  ;;  %v3611_v21 = vadd.f32 %v3603_v32, %v3348_v43  ;;  %v3615_v40 = vadd.f32 %v3603_v32, %v3352_v29  ;;  %v3619_v63 = vadd.f32 %v3603_v32, %v3356_v61  ;;  %v7012_v24 = vld [vmem:[#allocation8_spill] sm:$0xff] }
 0x1b9   :  { %v3623_v39 = vadd.f32 %v3603_v32, %v3360_v41  ;;  %v3627_v17 = vadd.f32 %v3603_v32, %v3364_v36  ;;  %v3631_v18 = vadd.f32 %v3603_v32, %v3368_v38  ;;  %v3635_v9 = vadd.f32 %v3603_v32, %v3372_v35 }
 0x1ba   :  { %v3639_v60 = vadd.f32 %v3603_v32, %v3376_v37  ;;  %v3643_v43 = vadd.f32 %v3603_v32, %v3380_v50  ;;  %v3647_v29 = vadd.f32 %v3603_v32, %v3384_v57  ;;  %v3651_v61 = vadd.f32 %v3603_v32, %v3388_v47 }
 0x1bb   :  { %v3655_v41 = vadd.f32 %v3603_v32, %v3392_v55  ;;  %v3659_v36 = vadd.f32 %v3603_v32, %v3396_v6  ;;  %v3663_v38 = vadd.f32 %v3603_v32, %v3400_v13  ;;  %v3667_v35 = vadd.f32 %v3603_v32, %v3404_v3 }
 0x1bc   :  { %v3671_v37 = vadd.f32 %v3603_v32, %v3408_v11  ;;  %v3675_v50 = vadd.f32 %v3603_v32, %v3412_v26  ;;  %v3679_v57 = vadd.f32 %v3603_v32, %v3416_v33  ;;  %v3683_v47 = vadd.f32 %v3603_v32, %v3420_v23 }
 0x1bd   :  { %v3687_v55 = vadd.f32 %v3603_v32, %v3424_v31  ;;  %v3691_v6 = vadd.f32 %v3603_v32, %v3428_v54  ;;  %v3695_v13 = vadd.f32 %v3603_v32, %v3432_v1  ;;  %v3699_v3 = vadd.f32 %v3603_v32, %v3436_v48 }
 0x1be   :  { %v3703_v11 = vadd.f32 %v3603_v32, %v3440_v8  ;;  %v3707_v26 = vadd.f32 %v3603_v32, %v3444_v44  ;;  %v3711_v33 = vadd.f32 %v3603_v32, %v3448_v52  ;;  %v3715_v23 = vadd.f32 %v3603_v32, %v3452_v4 }
 0x1bf   :  { %v3719_v31 = vadd.f32 %v3603_v32, %v3456_v10  ;;  %v3723_v54 = vadd.f32 %v3603_v32, %v3460_v51  ;;  %v3727_v1 = vadd.f32 %v3603_v32, %v3464_v62  ;;  %v3731_v48 = vadd.f32 %v3603_v32, %v3468_v46 }
 0x1c0   :  { %v3735_v8 = vadd.f32 %v3603_v32, %v3472_v20  ;;  %v3739_v44 = vadd.f32 %v3603_v32, %v3476_v16  ;;  %v3743_v52 = vadd.f32 %v3603_v32, %v3480_v19  ;;  %v3747_v4 = vadd.f32 %v3603_v32, %v3484_v58 }
 0x1c1   :  { %v3751_v10 = vadd.f32 %v3603_v32, %v3488_v22  ;;  %v3755_v51 = vadd.f32 %v3603_v32, %v3492_v28  ;;  %v3759_v62 = vadd.f32 %v3603_v32, %v3496_v45  ;;  %v3763_v46 = vadd.f32 %v3603_v32, %v3500_v49 }
 0x1c2   :  { %v3767_v20 = vadd.f32 %v3603_v32, %v3504_v56  ;;  %v3771_v16 = vadd.f32 %v3603_v32, %v3508_v7  ;;  %v3775_v19 = vadd.f32 %v3603_v32, %v3512_v14  ;;  %v3779_v58 = vadd.f32 %v3603_v32, %v3516_v5  ;;  %v7005_v56 = vld [vmem:[#allocation5_spill] sm:$0xff]  ;;  %v7007_v14 = vld [vmem:[#allocation7_spill] sm:$0xff] }
 0x1c3   :  { %v3783_v22 = vadd.f32 %v3603_v32, %v3520_v12  ;;  %v3787_v28 = vadd.f32 %v3603_v32, %v3524_v27  ;;  %v3791_v45 = vadd.f32 %v3603_v32, %v3528_v34  ;;  %v3795_v49 = vadd.f32 %v3603_v32, %v3532_v25  ;;  %v7009_v12 = vld [vmem:[#allocation9_spill] sm:$0xff] }
 0x1c4   :  { %v3799_v7 = vadd.f32 %v3603_v32, %v7005_v56  ;;  %v3803_v5 = vadd.f32 %v3603_v32, %v7007_v14  ;;  %v3807_v27 = vadd.f32 %v3603_v32, %v7009_v12  ;;  %v3811_v34 = vadd.f32 %v3603_v32, %v7011_v30 }
 0x1c5   :  { %7004 = vst [vmem:[#allocation16_spill] sm:$0xff] %v3795_v49  ;;  %v3815_v25 = vadd.f32 %v3603_v32, %v7012_v24  ;;  %v7014_v49 = vld [vmem:[#allocation12_spill] sm:$0xff]  ;;  %v3835_v24 = vadd.f32 %v3603_v32, %v3572_v15  ;;  %v3855_v15 = vadd.f32 %v3603_v32, %v3592_v53  ;;  %v1013_v53 = vmax.f32 %v3635_v9, 0.0 }
 0x1c6   :  { %7006 = vst [vmem:[#allocation20_spill] sm:$0xff] %v3799_v7  ;;  %7008 = vst [vmem:[#allocation3_spill] sm:$0xff] %v3803_v5  ;;  %v3819_v56 = vadd.f32 %v3603_v32, %v7014_v49  ;;  %v7016_v7 = vld [vmem:[#allocation15_spill] sm:$0xff]  ;;  %v7017_v5 = vld [vmem:[#allocation10_spill] sm:$0xff] }
 0x1c7   :  { %7010 = vst [vmem:[#allocation4_spill] sm:$0xff] %v3807_v27  ;;  %7013 = vst [vmem:[#allocation11_spill] sm:$0xff] %v3815_v25  ;;  %v3823_v14 = vadd.f32 %v3603_v32, %v7016_v7  ;;  %v3827_v12 = vadd.f32 %v3603_v32, %v7017_v5  ;;  %v7018_v27 = vld [vmem:[#allocation13_spill] sm:$0xff]  ;;  %v7019_v25 = vld [vmem:[#allocation18_spill] sm:$0xff]  ;;  %v3847_v5 = vadd.f32 %v3603_v32, %v3584_v59  ;;  %v1009_v59 = vmax.f32 %v3619_v63, 0.0 }
 0x1c8   :  { %7015 = vst [vmem:[#allocation14_spill] sm:$0xff] %v3819_v56  ;;  %v3831_v30 = vadd.f32 %v3603_v32, %v7018_v27  ;;  %v3839_v49 = vadd.f32 %v3603_v32, %v7019_v25  ;;  %v7021_v56 = vld [vmem:[#allocation22_spill] sm:$0xff]  ;;  %v3851_v27 = vadd.f32 %v3603_v32, %v3588_v2  ;;  %7025 = vst [vmem:[#allocation25_spill] sm:$0xff] %v3855_v15  ;;  %v1011_v2 = vmax.f32 %v3627_v17, 0.0 }
 0x1c9   :  { %v3843_v7 = vadd.f32 %v3603_v32, %v7021_v56  ;;  %7023 = vst [vmem:[#allocation17_spill] sm:$0xff] %v3847_v5  ;;  %v3859_v25 = vadd.f32 %v3603_v32, %v3596_v0  ;;  %v1007_v56 = vmax.f32 %v3611_v21, 0.0  ;;  %v1010_v5 = vmax.f32 %v3623_v39, 0.0  ;;  %1159 = vst [vmem:[#allocation2 + $0x2d] sm:$0xff] %v1009_v59 }
 0x1ca   :  { %7020 = vst [vmem:[#allocation19_spill] sm:$0xff] %v3839_v49  ;;  %7024 = vst [vmem:[#allocation21_spill] sm:$0xff] %v3851_v27  ;;  %v1006_v49 = vmax.f32 %v3607_v42, 0.0  ;;  %v1012_v27 = vmax.f32 %v3631_v18, 0.0  ;;  %v1014_v15 = vmax.f32 %v3639_v60, 0.0  ;;  %v1015_v32 = vmax.f32 %v3643_v43, 0.0 }
 0x1cb   :  { %7022 = vst [vmem:[#allocation23_spill] sm:$0xff] %v3843_v7  ;;  %v1008_v7 = vmax.f32 %v3615_v40, 0.0  ;;  %v1016_v0 = vmax.f32 %v3647_v29, 0.0  ;;  %v1017_v42 = vmax.f32 %v3651_v61, 0.0  ;;  %1157 = vst [vmem:[#allocation2 + $0x1b] sm:$0xff] %v1007_v56  ;;  %v1018_v21 = vmax.f32 %v3655_v41, 0.0 }
 0x1cc   :  { %1156 = vst [vmem:[#allocation2 + $0x13] sm:$0xff] %v1006_v49  ;;  %v1019_v40 = vmax.f32 %v3659_v36, 0.0  ;;  %v1020_v63 = vmax.f32 %v3663_v38, 0.0  ;;  %v6622_v39 = vmax.f32 %v3667_v35, 0.0  ;;  %1160 = vst [vmem:[#allocation2 + $0x37] sm:$0xff] %v1010_v5  ;;  %v1022_v17 = vmax.f32 %v3671_v37, 0.0 }
 0x1cd   :  { %1158 = vst [vmem:[#allocation2 + $0x25] sm:$0xff] %v1008_v7  ;;  %1161 = vst [vmem:[#allocation2 + $0x3f] sm:$0xff] %v1011_v2  ;;  %v1023_v60 = vmax.f32 %v3675_v50, 0.0  ;;  %v1024_v43 = vmax.f32 %v3679_v57, 0.0  ;;  %v1025_v29 = vmax.f32 %v3683_v47, 0.0  ;;  %v1026_v61 = vmax.f32 %v3687_v55, 0.0 }
 0x1ce   :  { %1162 = vst [vmem:[#allocation2 + $0x49] sm:$0xff] %v1012_v27  ;;  %1163 = vst [vmem:[#allocation2 + $0x51] sm:$0xff] %v1013_v53  ;;  %v1027_v41 = vmax.f32 %v3691_v6, 0.0  ;;  %v6621_v36 = vmax.f32 %v3695_v13, 0.0  ;;  %v6620_v49 = vmax.f32 %v3699_v3, 0.0  ;;  %v1030_v37 = vmax.f32 %v3703_v11, 0.0 }
 0x1cf   :  { %1164 = vst [vmem:[#allocation2 + $0x5b] sm:$0xff] %v1014_v15  ;;  %1165 = vst [vmem:[#allocation2 + $0x63] sm:$0xff] %v1015_v32  ;;  %v1031_v50 = vmax.f32 %v3707_v26, 0.0  ;;  %v1032_v57 = vmax.f32 %v3711_v33, 0.0  ;;  %v1033_v47 = vmax.f32 %v3715_v23, 0.0  ;;  %v1034_v55 = vmax.f32 %v3719_v31, 0.0 }
 0x1d0   :  { %1166 = vst [vmem:[#allocation2 + $0x6d] sm:$0xff] %v1016_v0  ;;  %1167 = vst [vmem:[#allocation2 + $0x75] sm:$0xff] %v1017_v42  ;;  %v1035_v6 = vmax.f32 %v3723_v54, 0.0  ;;  %v6619_v7 = vmax.f32 %v3727_v1, 0.0  ;;  %v6618_v5 = vmax.f32 %v3731_v48, 0.0  ;;  %v1038_v11 = vmax.f32 %v3735_v8, 0.0 }
 0x1d1   :  { %1168 = vst [vmem:[#allocation2 + $0x7f] sm:$0xff] %v1018_v21  ;;  %1169 = vst [vmem:[#allocation2 + $0x87] sm:$0xff] %v1019_v40  ;;  %v1039_v26 = vmax.f32 %v3739_v44, 0.0  ;;  %v6617_v33 = vmax.f32 %v3743_v52, 0.0  ;;  %v6616_v23 = vmax.f32 %v3747_v4, 0.0  ;;  %v1042_v31 = vmax.f32 %v3751_v10, 0.0 }
 0x1d2   :  { %1170 = vst [vmem:[#allocation2 + $0x91] sm:$0xff] %v1020_v63  ;;  %1171 = vst [vmem:[#allocation2 + $0x99] sm:$0xff] %v6622_v39  ;;  %v1043_v54 = vmax.f32 %v3755_v51, 0.0  ;;  %v1044_v15 = vmax.f32 %v3759_v62, 0.0  ;;  %v1045_v56 = vmax.f32 %v3763_v46, 0.0  ;;  %v1046_v8 = vmax.f32 %v3767_v20, 0.0 }
 0x1d3   :  { %1172 = vst [vmem:[#allocation2 + $0xa3] sm:$0xff] %v1022_v17  ;;  %1173 = vst [vmem:[#allocation2 + $0xab] sm:$0xff] %v1023_v60  ;;  %v1047_v44 = vmax.f32 %v3771_v16, 0.0  ;;  %v6615_v10 = vmax.f32 %v3775_v19, 0.0  ;;  %v6614_v51 = vmax.f32 %v3779_v58, 0.0  ;;  %v1050_v62 = vmax.f32 %v3783_v22, 0.0 }
 0x1d4   :  { %1174 = vst [vmem:[#allocation2 + $0xb5] sm:$0xff] %v1024_v43  ;;  %1175 = vst [vmem:[#allocation2 + $0xbd] sm:$0xff] %v1025_v29  ;;  %v1051_v46 = vmax.f32 %v3787_v28, 0.0  ;;  %v1052_v20 = vmax.f32 %v3791_v45, 0.0  ;;  %v7026_v59 = vld [vmem:[#allocation16_spill] sm:$0xff]  ;;  %v7028_v0 = vld [vmem:[#allocation3_spill] sm:$0xff] }
 0x1d5   :  { %1176 = vst [vmem:[#allocation2 + $0xc7] sm:$0xff] %v1026_v61  ;;  %1177 = vst [vmem:[#allocation2 + $0xcf] sm:$0xff] %v1027_v41  ;;  %v1053_v16 = vmax.f32 %v7026_v59, 0.0  ;;  %v7027_v2 = vld [vmem:[#allocation20_spill] sm:$0xff]  ;;  %v1055_v42 = vmax.f32 %v7028_v0, 0.0  ;;  %v6612_v17 = vmax.f32 %v3811_v34, 0.0 }
 0x1d6   :  { %1178 = vst [vmem:[#allocation2 + $0xd9] sm:$0xff] %v6621_v36  ;;  %1179 = vst [vmem:[#allocation2 + $0xe1] sm:$0xff] %v6620_v49  ;;  %v1054_v32 = vmax.f32 %v7027_v2, 0.0  ;;  %v7029_v21 = vld [vmem:[#allocation4_spill] sm:$0xff]  ;;  %v7030_v22 = vld [vmem:[#allocation11_spill] sm:$0xff]  ;;  %v1060_v43 = vmax.f32 %v3823_v14, 0.0 }
 0x1d7   :  { %1180 = vst [vmem:[#allocation2 + $0xeb] sm:$0xff] %v1030_v37  ;;  %1181 = vst [vmem:[#allocation2 + $0xf3] sm:$0xff] %v1031_v50  ;;  %v6613_v40 = vmax.f32 %v7029_v21, 0.0  ;;  %v1058_v28 = vmax.f32 %v7030_v22, 0.0  ;;  %v7031_v45 = vld [vmem:[#allocation14_spill] sm:$0xff]  ;;  %v1061_v29 = vmax.f32 %v3827_v12, 0.0 }
 0x1d8   :  { %1182 = vst [vmem:[#allocation2 + $0xfd] sm:$0xff] %v1032_v57  ;;  %1183 = vst [vmem:[#allocation2 + $0x105] sm:$0xff] %v1033_v47  ;;  %v1059_v60 = vmax.f32 %v7031_v45, 0.0  ;;  %v1062_v61 = vmax.f32 %v3831_v30, 0.0  ;;  %v1063_v41 = vmax.f32 %v3835_v24, 0.0  ;;  %v7032_v37 = vld [vmem:[#allocation19_spill] sm:$0xff] }
 0x1d9   :  { %1184 = vst [vmem:[#allocation2 + $0x10f] sm:$0xff] %v1034_v55  ;;  %1185 = vst [vmem:[#allocation2 + $0x117] sm:$0xff] %v1035_v6  ;;  %v6611_v50 = vmax.f32 %v7032_v37, 0.0  ;;  %v7033_v57 = vld [vmem:[#allocation23_spill] sm:$0xff]  ;;  %v7034_v14 = vld [vmem:[#allocation17_spill] sm:$0xff]  ;;  %v1069_v24 = vmax.f32 %v3859_v25, 0.0 }
 0x1da   :  { %1186 = vst [vmem:[#allocation2 + $0x121] sm:$0xff] %v6619_v7  ;;  %1187 = vst [vmem:[#allocation2 + $0x129] sm:$0xff] %v6618_v5  ;;  %v6610_v47 = vmax.f32 %v7033_v57, 0.0  ;;  %v1066_v12 = vmax.f32 %v7034_v14, 0.0  ;;  %v7035_v55 = vld [vmem:[#allocation21_spill] sm:$0xff]  ;;  %v1626_v14 = vld [vmem:[#allocation2 + $0x292] sm:$0xff] }
 0x1db   :  { %1188 = vst [vmem:[#allocation2 + $0x157] sm:$0xff] %v1038_v11  ;;  %1189 = vst [vmem:[#allocation2 + $0x15f] sm:$0xff] %v1039_v26  ;;  %v1067_v6 = vmax.f32 %v7035_v55, 0.0  ;;  %v7036_v11 = vld [vmem:[#allocation25_spill] sm:$0xff]  ;;  %v3977_v36 = vld [vmem:[#allocation2 + $0x10] sm:$0xff] }
 0x1dc   :  { %1190 = vst [vmem:[#allocation2 + $0x169] sm:$0xff] %v6617_v33  ;;  %1191 = vst [vmem:[#allocation2 + $0x171] sm:$0xff] %v6616_v23  ;;  %v1068_v30 = vmax.f32 %v7036_v11, 0.0  ;;  %v1340_v26 = vld [vmem:[#allocation2 + $0x139] sm:$0xff]  ;;  %v3964_v2 = vld [vmem:[#allocation2 + $0x282] sm:$0xff] }
 0x1dd   :  { %1192 = vst [vmem:[#allocation2 + $0x17b] sm:$0xff] %v1042_v31  ;;  %1193 = vst [vmem:[#allocation2 + $0x183] sm:$0xff] %v1043_v54  ;;  %v1339_v31 = vld [vmem:[#allocation2 + $0x131] sm:$0xff]  ;;  %v1421_v54 = vmax.f32 %v1340_v26, 0.0  ;;  %v1380_v25 = vld [vmem:[#allocation2 + $0x279] sm:$0xff] }
 0x1de   :  { %1194 = vst [vmem:[#allocation2 + $0x18d] sm:$0xff] %v1044_v15  ;;  %1195 = vst [vmem:[#allocation2 + $0x195] sm:$0xff] %v1045_v56  ;;  %v1381_v15 = vld [vmem:[#allocation2 + $0x281] sm:$0xff]  ;;  %v1230_v26 = vld [vmem:[#allocation2 + $0x50] sm:$0xff] }
 0x1df   :  { %1196 = vst [vmem:[#allocation2 + $0x19f] sm:$0xff] %v1046_v8  ;;  %1197 = vst [vmem:[#allocation2 + $0x1a7] sm:$0xff] %v1047_v44  ;;  %v3957_v8 = vld [vmem:[#allocation2 + $0x13a] sm:$0xff]  ;;  %v1503_v11 = vld [vmem:[#allocation2 + $0x142] sm:$0xff] }
 0x1e0   :  { %1198 = vst [vmem:[#allocation2 + $0x1b1] sm:$0xff] %v6615_v10  ;;  %1199 = vst [vmem:[#allocation2 + $0x1b9] sm:$0xff] %v6614_v51  ;;  %v1583_v59 = vmax.f32 %v1421_v54, %v3957_v8  ;;  %v1301_v0 = vld [vmem:[#allocation2 + $0x1] sm:$0xff]  ;;  %v4025_v38 = vld [vmem:[#allocation2 + $0x58] sm:$0xff] }
 0x1e1   :  { %1200 = vst [vmem:[#allocation2 + $0x1c3] sm:$0xff] %v1050_v62  ;;  %1201 = vst [vmem:[#allocation2 + $0x1cb] sm:$0xff] %v1051_v46  ;;  %v1258_v56 = vld [vmem:[#allocation2 + $0x130] sm:$0xff]  ;;  %v1461_v62 = vmax.f32 %v1380_v25, 0.0  ;;  %v1462_v46 = vmax.f32 %v1381_v15, 0.0  ;;  %v1341_v22 = vld [vmem:[#allocation2 + $0x141] sm:$0xff] }
 0x1e2   :  { %1202 = vst [vmem:[#allocation2 + $0x1d5] sm:$0xff] %v1052_v20  ;;  %1203 = vst [vmem:[#allocation2 + $0x1dd] sm:$0xff] %v1053_v16  ;;  %v1420_v44 = vmax.f32 %v1258_v56, %v1339_v31  ;;  %v3959_v20 = vld [vmem:[#allocation2 + $0x132] sm:$0xff]  ;;  %v3962_v16 = vld [vmem:[#allocation2 + $0x27a] sm:$0xff]  ;;  %v1422_v54 = vmax.f32 %v1341_v22, 0.0 }
 0x1e3   :  { %1204 = vst [vmem:[#allocation2 + $0x1e7] sm:$0xff] %v1054_v32  ;;  %1205 = vst [vmem:[#allocation2 + $0x1ef] sm:$0xff] %v1055_v42  ;;  %v1504_v32 = vld [vmem:[#allocation2 + $0x14a] sm:$0xff]  ;;  %v4023_v39 = vld [vmem:[#allocation2 + $0x40] sm:$0xff] }
 0x1e4   :  { %1206 = vst [vmem:[#allocation2 + $0x1f9] sm:$0xff] %v6613_v40  ;;  %1207 = vst [vmem:[#allocation2 + $0x201] sm:$0xff] %v6612_v17  ;;  %v1302_v42 = vld [vmem:[#allocation2 + $0x9] sm:$0xff]  ;;  %v1582_v45 = vmax.f32 %v1420_v44, %v3959_v20  ;;  %v1788_v44 = vld [vmem:[#allocation2 + $0x293] sm:$0xff] }
 0x1e5   :  { %1208 = vst [vmem:[#allocation2 + $0x20b] sm:$0xff] %v1058_v28  ;;  %1209 = vst [vmem:[#allocation2 + $0x213] sm:$0xff] %v1059_v60  ;;  %v1342_v28 = vld [vmem:[#allocation2 + $0x149] sm:$0xff]  ;;  %v1623_v60 = vmax.f32 %v1461_v62, %v3962_v16  ;;  %v1383_v55 = vmax.f32 %v1302_v42, 0.0  ;;  %v1239_v62 = vld [vmem:[#allocation2 + $0x98] sm:$0xff] }
 0x1e6   :  { %1210 = vst [vmem:[#allocation2 + $0x21d] sm:$0xff] %v1060_v43  ;;  %1211 = vst [vmem:[#allocation2 + $0x225] sm:$0xff] %v1061_v29  ;;  %v1624_v43 = vmax.f32 %v1462_v46, %v3964_v2  ;;  %v1463_v29 = vld [vmem:[#allocation2 + $0x2] sm:$0xff]  ;;  %v1238_v31 = vld [vmem:[#allocation2 + $0x90] sm:$0xff]  ;;  %v1423_v25 = vmax.f32 %v1342_v28, 0.0 }
 0x1e7   :  { %1212 = vst [vmem:[#allocation2 + $0x22f] sm:$0xff] %v1062_v61  ;;  %1213 = vst [vmem:[#allocation2 + $0x237] sm:$0xff] %v1063_v41  ;;  %v1666_v61 = vmax.f32 %v1583_v59, %v1504_v32  ;;  %v1625_v41 = vld [vmem:[#allocation2 + $0x28a] sm:$0xff]  ;;  %v1248_v46 = vld [vmem:[#allocation2 + $0xe0] sm:$0xff]  ;;  %v4005_v9 = vmax.f32 %v1238_v31, %v1020_v63  ;;  %v7054_v31 = vmax.f32 %v3667_v35, 0.0  ;;  %v7071_v35 = vmax.f32 %v3747_v4, 0.0 }
 0x1e8   :  { %1214 = vst [vmem:[#allocation2 + $0x241] sm:$0xff] %v6611_v50  ;;  %1215 = vst [vmem:[#allocation2 + $0x249] sm:$0xff] %v6610_v47  ;;  %v1746_v15 = vld [vmem:[#allocation2 + $0x143] sm:$0xff]  ;;  %v1787_v56 = vld [vmem:[#allocation2 + $0x28b] sm:$0xff]  ;;  %v1665_v50 = vmax.f32 %v1582_v45, %v1503_v11  ;;  %v1706_v59 = vmax.f32 %v1623_v60, %v1625_v41  ;;  %v1707_v17 = vmax.f32 %v1624_v43, %v1626_v14  ;;  %v7081_v4 = vmax.f32 %v3779_v58, 0.0 }
 0x1e9   :  { %1216 = vst [vmem:[#allocation2 + $0x253] sm:$0xff] %v1066_v12  ;;  %1217 = vst [vmem:[#allocation2 + $0x25b] sm:$0xff] %v1067_v6  ;;  %v1382_v12 = vmax.f32 %v1301_v0, 0.0  ;;  %v1464_v6 = vld [vmem:[#allocation2 + $0xa] sm:$0xff]  ;;  %v1247_v47 = vld [vmem:[#allocation2 + $0xd8] sm:$0xff]  ;;  %v3985_v60 = vmax.f32 %v1230_v26, %v1013_v53  ;;  %v3989_v14 = vmax.f32 %v1422_v54, %v1503_v11 }
 0x1ea   :  { %1218 = vst [vmem:[#allocation2 + $0x265] sm:$0xff] %v1068_v30  ;;  %1219 = vst [vmem:[#allocation2 + $0x26d] sm:$0xff] %v1069_v24  ;;  %v1747_v30 = vld [vmem:[#allocation2 + $0x14b] sm:$0xff]  ;;  %v1256_v0 = vld [vmem:[#allocation2 + $0x120] sm:$0xff]  ;;  %v3975_v49 = vmax.f32 %v1383_v55, %v1464_v6  ;;  %v4017_v26 = vmax.f32 %v1706_v59, %v1787_v56  ;;  %v4019_v54 = vmax.f32 %v1707_v17, %v1788_v44 }
 0x1eb   :  { %7037 = vst [vmem:[#allocation26_spill] sm:$0xff] %v3957_v8  ;;  %7038 = vst [vmem:[#allocation24_spill] sm:$0xff] %v3959_v20  ;;  %v1229_v24 = vld [vmem:[#allocation2 + $0x48] sm:$0xff]  ;;  %v1266_v10 = vld [vmem:[#allocation2 + $0x170] sm:$0xff]  ;;  %v3971_v23 = vmax.f32 %v1666_v61, %v1747_v30  ;;  %v3973_v7 = vmax.f32 %v1382_v12, %v1463_v29  ;;  %v3991_v29 = vmax.f32 %v1423_v25, %v1504_v32 }
 0x1ec   :  { %7039 = vst [vmem:[#allocation5_spill] sm:$0xff] %v3962_v16  ;;  %7040 = vst [vmem:[#allocation7_spill] sm:$0xff] %v3964_v2  ;;  %v3969_v40 = vld [vmem:[#allocation2 + $0x14c] sm:$0xff]  ;;  %v1275_v22 = vld [vmem:[#allocation2 + $0x1b8] sm:$0xff]  ;;  %v3981_v45 = vmax.f32 %v1229_v24, %v1012_v27  ;;  %v4015_v24 = vmax.f32 %v1665_v50, %v1746_v15  ;;  %v4031_v2 = vmax.f32 %v1239_v62, %v7054_v31  ;;  %v7056_v16 = vmax.f32 %v3695_v13, 0.0 }
 0x1ed   :  { %7041 = vst [vmem:[#allocation9_spill] sm:$0xff] %v3969_v40  ;;  %v1257_v42 = vld [vmem:[#allocation2 + $0x128] sm:$0xff]  ;;  %7042 = vst [vmem:[#allocation6_spill] sm:$0xff] %v3971_v23  ;;  %v1274_v33 = vld [vmem:[#allocation2 + $0x1b0] sm:$0xff]  ;;  %v7058_v15 = vmax.f32 %v3699_v3, 0.0  ;;  %v7067_v31 = vmax.f32 %v3731_v48, 0.0  ;;  %v4073_v40 = vmax.f32 %v1266_v10, %v7071_v35  ;;  %v4095_v10 = vmax.f32 %v1275_v22, %v7081_v4 }
 0x1ee   :  { %v1265_v51 = vld [vmem:[#allocation2 + $0x168] sm:$0xff]  ;;  %v1283_v28 = vld [vmem:[#allocation2 + $0x1f8] sm:$0xff]  ;;  %v1284_v5 = vld [vmem:[#allocation2 + $0x200] sm:$0xff]  ;;  %7043 = vst [vmem:[#allocation8_spill] sm:$0xff] %v3981_v45  ;;  %v4035_v50 = vmax.f32 %v1247_v47, %v7056_v16  ;;  %v7065_v16 = vmax.f32 %v3727_v1, 0.0 }
 0x1ef   :  { %7044 = vst [vmem:[#allocation12_spill] sm:$0xff] %v3985_v60  ;;  %v1292_v43 = vld [vmem:[#allocation2 + $0x240] sm:$0xff]  ;;  %v1293_v61 = vld [vmem:[#allocation2 + $0x248] sm:$0xff]  ;;  %v3987_v41 = vld [vmem:[#allocation2 + $0x11] sm:$0xff]  ;;  %v4039_v17 = vmax.f32 %v1248_v46, %v7058_v15  ;;  %v4065_v15 = vmax.f32 %v1257_v42, %v7067_v31 }
 0x1f0   :  { %7045 = vst [vmem:[#allocation15_spill] sm:$0xff] %v3989_v14  ;;  %7046 = vst [vmem:[#allocation10_spill] sm:$0xff] %v3991_v29  ;;  %v3993_v12 = vld [vmem:[#allocation2 + $0x144] sm:$0xff]  ;;  %v3995_v55 = vld [vmem:[#allocation2 + $0x18] sm:$0xff]  ;;  %v4061_v46 = vmax.f32 %v1256_v0, %v7065_v16  ;;  %v7085_v16 = vmax.f32 %v3811_v34, 0.0  ;;  %v7095_v34 = vmax.f32 %v7033_v57, 0.0 }
 0x1f1   :  { %7047 = vst [vmem:[#allocation13_spill] sm:$0xff] %v3993_v12  ;;  %v3997_v6 = vld [vmem:[#allocation2 + $0x20] sm:$0xff]  ;;  %v3999_v18 = vld [vmem:[#allocation2 + $0x28] sm:$0xff]  ;;  %v4001_v27 = vld [vmem:[#allocation2 + $0x30] sm:$0xff] }
 0x1f2   :  { %7048 = vst [vmem:[#allocation18_spill] sm:$0xff] %v4005_v9  ;;  %v4007_v53 = vld [vmem:[#allocation2 + $0x19] sm:$0xff]  ;;  %v4009_v11 = vld [vmem:[#allocation2 + $0x21] sm:$0xff]  ;;  %v4011_v32 = vld [vmem:[#allocation2 + $0x29] sm:$0xff]  ;;  %v4103_v31 = vmax.f32 %v1284_v5, %v7085_v16  ;;  %v4125_v5 = vmax.f32 %v1293_v61, %v7095_v34 }
 0x1f3   :  { %v4013_v30 = vld [vmem:[#allocation2 + $0x31] sm:$0xff]  ;;  %7049 = vst [vmem:[#allocation22_spill] sm:$0xff] %v4015_v24  ;;  %7050 = vst [vmem:[#allocation16_spill] sm:$0xff] %v4017_v26  ;;  %v4027_v63 = vld [vmem:[#allocation2 + $0x60] sm:$0xff]  ;;  %v7069_v26 = vmax.f32 %v3743_v52, 0.0  ;;  %v7079_v52 = vmax.f32 %v3775_v19, 0.0 }
 0x1f4   :  { %7051 = vst [vmem:[#allocation20_spill] sm:$0xff] %v4019_v54  ;;  %v4021_v25 = vld [vmem:[#allocation2 + $0x38] sm:$0xff]  ;;  %7052 = vst [vmem:[#allocation3_spill] sm:$0xff] %v4025_v38  ;;  %v4043_v44 = vld [vmem:[#allocation2 + $0x41] sm:$0xff] }
 0x1f5   :  { %7053 = vst [vmem:[#allocation4_spill] sm:$0xff] %v4027_v63  ;;  %7055 = vst [vmem:[#allocation11_spill] sm:$0xff] %v4031_v2  ;;  %v4041_v56 = vld [vmem:[#allocation2 + $0x39] sm:$0xff]  ;;  %v4047_v54 = vld [vmem:[#allocation2 + $0x61] sm:$0xff]  ;;  %v4069_v8 = vmax.f32 %v1265_v51, %v7069_v26  ;;  %v4091_v51 = vmax.f32 %v1274_v33, %v7079_v52  ;;  %v7083_v26 = vmax.f32 %v7029_v21, 0.0  ;;  %v7093_v21 = vmax.f32 %v7032_v37, 0.0 }
 0x1f6   :  { %7057 = vst [vmem:[#allocation14_spill] sm:$0xff] %v4035_v50  ;;  %7059 = vst [vmem:[#allocation19_spill] sm:$0xff] %v4039_v17  ;;  %v4045_v59 = vld [vmem:[#allocation2 + $0x59] sm:$0xff]  ;;  %v4051_v62 = vld [vmem:[#allocation2 + $0x68] sm:$0xff] }
 0x1f7   :  { %7060 = vst [vmem:[#allocation23_spill] sm:$0xff] %v4045_v59  ;;  %7061 = vst [vmem:[#allocation17_spill] sm:$0xff] %v4047_v54  ;;  %v4053_v13 = vld [vmem:[#allocation2 + $0x70] sm:$0xff]  ;;  %v4055_v47 = vld [vmem:[#allocation2 + $0x78] sm:$0xff]  ;;  %v4099_v35 = vmax.f32 %v1283_v28, %v7083_v26  ;;  %v4121_v28 = vmax.f32 %v1292_v43, %v7093_v21 }
 0x1f8   :  { %7062 = vst [vmem:[#allocation21_spill] sm:$0xff] %v4053_v13  ;;  %7063 = vst [vmem:[#allocation25_spill] sm:$0xff] %v4055_v47  ;;  %v4057_v3 = vld [vmem:[#allocation2 + $0x80] sm:$0xff]  ;;  %v4075_v23 = vld [vmem:[#allocation2 + $0x69] sm:$0xff] }
 0x1f9   :  { %7064 = vst [vmem:[#allocation27_spill] sm:$0xff] %v4057_v3  ;;  %7066 = vst [vmem:[#allocation28_spill] sm:$0xff] %v4061_v46  ;;  %v4077_v20 = vld [vmem:[#allocation2 + $0x71] sm:$0xff]  ;;  %v4079_v29 = vld [vmem:[#allocation2 + $0x79] sm:$0xff] }
 0x1fa   :  { %7068 = vst [vmem:[#allocation29_spill] sm:$0xff] %v4065_v15  ;;  %7070 = vst [vmem:[#allocation30_spill] sm:$0xff] %v4069_v8  ;;  %v4081_v1 = vld [vmem:[#allocation2 + $0x88] sm:$0xff]  ;;  %v4083_v0 = vld [vmem:[#allocation2 + $0xa0] sm:$0xff] }
 0x1fb   :  { %7072 = vst [vmem:[#allocation31_spill] sm:$0xff] %v4073_v40  ;;  %7073 = vst [vmem:[#allocation32_spill] sm:$0xff] %v4075_v23  ;;  %v4085_v48 = vld [vmem:[#allocation2 + $0xa8] sm:$0xff]  ;;  %v4087_v42 = vld [vmem:[#allocation2 + $0xb0] sm:$0xff] }
 0x1fc   :  { %7074 = vst [vmem:[#allocation33_spill] sm:$0xff] %v4077_v20  ;;  %7075 = vst [vmem:[#allocation34_spill] sm:$0xff] %v4079_v29  ;;  %v4105_v40 = vld [vmem:[#allocation2 + $0x81] sm:$0xff]  ;;  %v4107_v8 = vld [vmem:[#allocation2 + $0x89] sm:$0xff] }
 0x1fd   :  { %7076 = vst [vmem:[#allocation35_spill] sm:$0xff] %v4083_v0  ;;  %7077 = vst [vmem:[#allocation36_spill] sm:$0xff] %v4085_v48  ;;  %v4109_v14 = vld [vmem:[#allocation2 + $0xa1] sm:$0xff]  ;;  %v4111_v19 = vld [vmem:[#allocation2 + $0xb8] sm:$0xff] }
 0x1fe   :  { %7078 = vst [vmem:[#allocation37_spill] sm:$0xff] %v4087_v42  ;;  %7080 = vst [vmem:[#allocation38_spill] sm:$0xff] %v4091_v51  ;;  %v4113_v33 = vld [vmem:[#allocation2 + $0xc0] sm:$0xff]  ;;  %v4115_v58 = vld [vmem:[#allocation2 + $0xc8] sm:$0xff] }
 0x1ff   :  { %7082 = vst [vmem:[#allocation39_spill] sm:$0xff] %v4095_v10  ;;  %7084 = vst [vmem:[#allocation40_spill] sm:$0xff] %v4099_v35  ;;  %v4117_v22 = vld [vmem:[#allocation2 + $0xd0] sm:$0xff]  ;;  %v4133_v16 = vld [vmem:[#allocation2 + $0xb9] sm:$0xff] }
 0x200   :  { %7086 = vst [vmem:[#allocation41_spill] sm:$0xff] %v4103_v31  ;;  %7087 = vst [vmem:[#allocation42_spill] sm:$0xff] %v4105_v40  ;;  %v4129_v4 = vld [vmem:[#allocation2 + $0xa9] sm:$0xff]  ;;  %v4131_v26 = vld [vmem:[#allocation2 + $0xb1] sm:$0xff] }
 0x201   :  { %7088 = vst [vmem:[#allocation43_spill] sm:$0xff] %v4107_v8  ;;  %7089 = vst [vmem:[#allocation44_spill] sm:$0xff] %v4109_v14  ;;  %v4137_v35 = vld [vmem:[#allocation2 + $0xe8] sm:$0xff]  ;;  %v4139_v37 = vld [vmem:[#allocation2 + $0xf0] sm:$0xff] }
 0x202   :  { %7090 = vst [vmem:[#allocation45_spill] sm:$0xff] %v4113_v33  ;;  %7091 = vst [vmem:[#allocation46_spill] sm:$0xff] %v4115_v58  ;;  %v4141_v43 = vld [vmem:[#allocation2 + $0xf8] sm:$0xff]  ;;  %v4143_v57 = vld [vmem:[#allocation2 + $0x100] sm:$0xff] }
 0x203   :  { %7092 = vst [vmem:[#allocation47_spill] sm:$0xff] %v4117_v22  ;;  %7094 = vst [vmem:[#allocation48_spill] sm:$0xff] %v4121_v28  ;;  %v4153_v52 = vld [vmem:[#allocation2 + $0xc1] sm:$0xff]  ;;  %v4155_v12 = vld [vmem:[#allocation2 + $0xc9] sm:$0xff] }
 0x204   :  { %7096 = vst [vmem:[#allocation49_spill] sm:$0xff] %v4125_v5  ;;  %7097 = vst [vmem:[#allocation50_spill] sm:$0xff] %v4129_v4  ;;  %v4157_v24 = vld [vmem:[#allocation2 + $0xd1] sm:$0xff]  ;;  %v4159_v5 = vld [vmem:[#allocation2 + $0x108] sm:$0xff] }
 0x205   :  { %7098 = vst [vmem:[#allocation51_spill] sm:$0xff] %v4131_v26  ;;  %7099 = vst [vmem:[#allocation52_spill] sm:$0xff] %v4133_v16  ;;  %v4161_v28 = vld [vmem:[#allocation2 + $0x110] sm:$0xff]  ;;  %v4163_v61 = vld [vmem:[#allocation2 + $0x118] sm:$0xff] }
 0x206   :  { %7100 = vst [vmem:[#allocation53_spill] sm:$0xff] %v4139_v37  ;;  %7101 = vst [vmem:[#allocation54_spill] sm:$0xff] %v4141_v43  ;;  %v4165_v10 = vld [vmem:[#allocation2 + $0x150] sm:$0xff]  ;;  %v4179_v17 = vld [vmem:[#allocation2 + $0xf9] sm:$0xff] }
 0x207   :  { %7102 = vst [vmem:[#allocation55_spill] sm:$0xff] %v4143_v57  ;;  %7103 = vst [vmem:[#allocation56_spill] sm:$0xff] %v4153_v52  ;;  %v4175_v15 = vld [vmem:[#allocation2 + $0xe9] sm:$0xff]  ;;  %v4177_v46 = vld [vmem:[#allocation2 + $0xf1] sm:$0xff] }
 0x208   :  { %7104 = vst [vmem:[#allocation57_spill] sm:$0xff] %v4155_v12  ;;  %7105 = vst [vmem:[#allocation58_spill] sm:$0xff] %v4157_v24  ;;  %v4181_v50 = vld [vmem:[#allocation2 + $0x158] sm:$0xff]  ;;  %v4183_v2 = vld [vmem:[#allocation2 + $0x160] sm:$0xff] }
 0x209   :  { %7106 = vst [vmem:[#allocation59_spill] sm:$0xff] %v4161_v28  ;;  %7107 = vst [vmem:[#allocation60_spill] sm:$0xff] %v4163_v61  ;;  %v4185_v34 = vld [vmem:[#allocation2 + $0x178] sm:$0xff]  ;;  %v4187_v9 = vld [vmem:[#allocation2 + $0x180] sm:$0xff] }
 0x20a   :  { %7108 = vst [vmem:[#allocation61_spill] sm:$0xff] %v4165_v10  ;;  %7109 = vst [vmem:[#allocation62_spill] sm:$0xff] %v4175_v15  ;;  %v4197_v63 = vld [vmem:[#allocation2 + $0x101] sm:$0xff]  ;;  %v4199_v59 = vld [vmem:[#allocation2 + $0x109] sm:$0xff] }
 0x20b   :  { %7110 = vst [vmem:[#allocation63_spill] sm:$0xff] %v4177_v46  ;;  %7111 = vst [vmem:[#allocation64_spill] sm:$0xff] %v4179_v17  ;;  %v4201_v38 = vld [vmem:[#allocation2 + $0x111] sm:$0xff]  ;;  %v4203_v60 = vld [vmem:[#allocation2 + $0x188] sm:$0xff] }
 0x20c   :  { %7112 = vst [vmem:[#allocation65_spill] sm:$0xff] %v4185_v34  ;;  %7113 = vst [vmem:[#allocation66_spill] sm:$0xff] %v4187_v9  ;;  %v4205_v45 = vld [vmem:[#allocation2 + $0x190] sm:$0xff]  ;;  %v4207_v21 = vld [vmem:[#allocation2 + $0x198] sm:$0xff] }
 0x20d   :  { %7114 = vst [vmem:[#allocation67_spill] sm:$0xff] %v4197_v63  ;;  %7115 = vst [vmem:[#allocation68_spill] sm:$0xff] %v4199_v59  ;;  %v4209_v23 = vld [vmem:[#allocation2 + $0x1a0] sm:$0xff]  ;;  %v4221_v29 = vld [vmem:[#allocation2 + $0x151] sm:$0xff] }
 0x20e   :  { %7116 = vst [vmem:[#allocation69_spill] sm:$0xff] %v4201_v38  ;;  %7117 = vst [vmem:[#allocation70_spill] sm:$0xff] %v4209_v23  ;;  %v4219_v3 = vld [vmem:[#allocation2 + $0x119] sm:$0xff]  ;;  %v4225_v20 = vld [vmem:[#allocation2 + $0x1a8] sm:$0xff] }
 0x20f   :  { %7118 = vst [vmem:[#allocation71_spill] sm:$0xff] %v4219_v3  ;;  %7119 = vst [vmem:[#allocation72_spill] sm:$0xff] %v4221_v29  ;;  %v4223_v47 = vld [vmem:[#allocation2 + $0x159] sm:$0xff]  ;;  %v4229_v31 = vld [vmem:[#allocation2 + $0x1c8] sm:$0xff] }
 0x210   :  { %7120 = vst [vmem:[#allocation73_spill] sm:$0xff] %v4223_v47  ;;  %v4227_v13 = vld [vmem:[#allocation2 + $0x1c0] sm:$0xff]  ;;  %v4231_v8 = vld [vmem:[#allocation2 + $0x1d0] sm:$0xff]  ;;  %v4247_v14 = vld [vmem:[#allocation2 + $0x1d8] sm:$0xff] }
 0x211   :  { %7121 = vst [vmem:[#allocation74_spill] sm:$0xff] %v4231_v8  ;;  %v4241_v42 = vld [vmem:[#allocation2 + $0x161] sm:$0xff]  ;;  %v4243_v4 = vld [vmem:[#allocation2 + $0x179] sm:$0xff]  ;;  %v4253_v16 = vld [vmem:[#allocation2 + $0x1f0] sm:$0xff]  ;;  %v7143_v8 = vmax.f32 %v3995_v55, %v4007_v53  ;;  %v7151_v53 = vmax.f32 %v4001_v27, %v4013_v30  ;;  %v7157_v27 = vmax.f32 %v4023_v39, %v4043_v44 }
 0x212   :  { %7122 = vst [vmem:[#allocation75_spill] sm:$0xff] %v4241_v42  ;;  %7123 = vst [vmem:[#allocation76_spill] sm:$0xff] %v4243_v4  ;;  %v4245_v48 = vld [vmem:[#allocation2 + $0x181] sm:$0xff]  ;;  %v4263_v22 = vld [vmem:[#allocation2 + $0x189] sm:$0xff] }
 0x213   :  { %7124 = vst [vmem:[#allocation77_spill] sm:$0xff] %v4245_v48  ;;  %v4249_v0 = vld [vmem:[#allocation2 + $0x1e0] sm:$0xff]  ;;  %v4251_v51 = vld [vmem:[#allocation2 + $0x1e8] sm:$0xff]  ;;  %7125 = vst [vmem:[#allocation78_spill] sm:$0xff] %v4253_v16 }
 0x214   :  { %v4265_v12 = vld [vmem:[#allocation2 + $0x191] sm:$0xff]  ;;  %v4267_v58 = vld [vmem:[#allocation2 + $0x199] sm:$0xff]  ;;  %v4269_v52 = vld [vmem:[#allocation2 + $0x208] sm:$0xff] }
 0x215   :  { %7126 = vst [vmem:[#allocation79_spill] sm:$0xff] %v4267_v58  ;;  %v4271_v33 = vld [vmem:[#allocation2 + $0x210] sm:$0xff]  ;;  %v4273_v54 = vld [vmem:[#allocation2 + $0x218] sm:$0xff]  ;;  %v4275_v15 = vld [vmem:[#allocation2 + $0x220] sm:$0xff] }
 0x216   :  { %7127 = vst [vmem:[#allocation80_spill] sm:$0xff] %v4275_v15  ;;  %v4285_v57 = vld [vmem:[#allocation2 + $0x1a1] sm:$0xff]  ;;  %v4287_v17 = vld [vmem:[#allocation2 + $0x1a9] sm:$0xff]  ;;  %v4295_v40 = vld [vmem:[#allocation2 + $0x238] sm:$0xff] }
 0x217   :  { %7128 = vst [vmem:[#allocation81_spill] sm:$0xff] %v4285_v57  ;;  %v4289_v43 = vld [vmem:[#allocation2 + $0x1c1] sm:$0xff]  ;;  %v4293_v37 = vld [vmem:[#allocation2 + $0x230] sm:$0xff]  ;;  %7129 = vst [vmem:[#allocation82_spill] sm:$0xff] %v4295_v40 }
 0x218   :  { %v4291_v46 = vld [vmem:[#allocation2 + $0x228] sm:$0xff]  ;;  %v4297_v59 = vld [vmem:[#allocation2 + $0x250] sm:$0xff]  ;;  %v4311_v61 = vld [vmem:[#allocation2 + $0x1d9] sm:$0xff] }
 0x219   :  { %v4307_v10 = vld [vmem:[#allocation2 + $0x1c9] sm:$0xff]  ;;  %v4309_v3 = vld [vmem:[#allocation2 + $0x1d1] sm:$0xff]  ;;  %v4315_v28 = vld [vmem:[#allocation2 + $0x260] sm:$0xff] }
 0x21a   :  { %7130 = vst [vmem:[#allocation83_spill] sm:$0xff] %v4307_v10  ;;  %7131 = vst [vmem:[#allocation84_spill] sm:$0xff] %v4309_v3  ;;  %v4313_v38 = vld [vmem:[#allocation2 + $0x258] sm:$0xff]  ;;  %v4317_v26 = vld [vmem:[#allocation2 + $0x268] sm:$0xff] }
 0x21b   :  { %7132 = vst [vmem:[#allocation85_spill] sm:$0xff] %v4317_v26  ;;  %v4319_v47 = vld [vmem:[#allocation2 + $0x270] sm:$0xff]  ;;  %v4329_v9 = vld [vmem:[#allocation2 + $0x1e1] sm:$0xff]  ;;  %v4347_v57 = vld [vmem:[#allocation2 + $0x219] sm:$0xff] }
 0x21c   :  { %7133 = vst [vmem:[#allocation86_spill] sm:$0xff] %v4319_v47  ;;  %v4331_v4 = vld [vmem:[#allocation2 + $0x1e9] sm:$0xff]  ;;  %v4333_v34 = vld [vmem:[#allocation2 + $0x1f1] sm:$0xff]  ;;  %v4357_v10 = vld [vmem:[#allocation2 + $0x221] sm:$0xff] }
 0x21d   :  { %7134 = vst [vmem:[#allocation87_spill] sm:$0xff] %v4331_v4  ;;  %7135 = vst [vmem:[#allocation88_spill] sm:$0xff] %v4333_v34  ;;  %v4343_v58 = vld [vmem:[#allocation2 + $0x209] sm:$0xff]  ;;  %v4345_v48 = vld [vmem:[#allocation2 + $0x211] sm:$0xff] }
 0x21e   :  { %7136 = vst [vmem:[#allocation89_spill] sm:$0xff] %v4345_v48  ;;  %7137 = vst [vmem:[#allocation90_spill] sm:$0xff] %v4357_v10  ;;  %v4359_v63 = vld [vmem:[#allocation2 + $0x229] sm:$0xff]  ;;  %v4361_v3 = vld [vmem:[#allocation2 + $0x231] sm:$0xff]  ;;  %v7142_v10 = vmax.f32 %v3977_v36, %v3987_v41  ;;  %v7147_v36 = vmax.f32 %v3997_v6, %v4009_v11 }
 0x21f   :  { %7138 = vst [vmem:[#allocation91_spill] sm:$0xff] %v4361_v3  ;;  %v4371_v4 = vld [vmem:[#allocation2 + $0x239] sm:$0xff]  ;;  %v4373_v29 = vld [vmem:[#allocation2 + $0x251] sm:$0xff]  ;;  %v4383_v48 = vld [vmem:[#allocation2 + $0x261] sm:$0xff] }
 0x220   :  { %7139 = vst [vmem:[#allocation92_spill] sm:$0xff] %v4371_v4  ;;  %v4375_v34 = vld [vmem:[#allocation2 + $0x259] sm:$0xff]  ;;  %v4385_v42 = vld [vmem:[#allocation2 + $0x269] sm:$0xff]  ;;  %v4387_v24 = vld [vmem:[#allocation2 + $0x271] sm:$0xff] }
 0x221   :  { %7140 = vst [vmem:[#allocation93_spill] sm:$0xff] %v4385_v42  ;;  %7141 = vst [vmem:[#allocation94_spill] sm:$0xff] %v4387_v24  ;;  %v4399_v4 = vld [vmem:[#allocation2 + $0x12] sm:$0xff]  ;;  %v4401_v40 = vld [vmem:[#allocation2 + $0x1a] sm:$0xff]  ;;  %v7153_v24 = vmax.f32 %v4021_v25, %v4041_v56 }
 0x222   :  { %v4403_v3 = vld [vmem:[#allocation2 + $0x22] sm:$0xff]  ;;  %v4409_v15 = vmax.f32 %v7142_v10, %v4399_v4  ;;  %v4417_v23 = vmax.f32 %v7143_v8, %v4401_v40  ;;  %v4421_v47 = vld [vmem:[#allocation2 + $0x2a] sm:$0xff]  ;;  %v4423_v42 = vld [vmem:[#allocation2 + $0x32] sm:$0xff]  ;;  %v7149_v8 = vmax.f32 %v3999_v18, %v4011_v32 }
 0x223   :  { %7144 = vst [vmem:[#allocation95_spill] sm:$0xff] %v4421_v47  ;;  %7145 = vst [vmem:[#allocation96_spill] sm:$0xff] %v4423_v42  ;;  %v4425_v26 = vld [vmem:[#allocation2 + $0x3a] sm:$0xff]  ;;  %v4431_v41 = vmax.f32 %v7147_v36, %v4403_v3  ;;  %v4443_v10 = vmax.f32 %v7151_v53, %v4423_v42  ;;  %v4451_v6 = vld [vmem:[#allocation2 + $0x42] sm:$0xff] }
 0x224   :  { %7146 = vst [vmem:[#allocation97_spill] sm:$0xff] %v4425_v26  ;;  %v4437_v55 = vmax.f32 %v7149_v8, %v4421_v47  ;;  %v4449_v16 = vmax.f32 %v7153_v24, %v4425_v26  ;;  %7155 = vst [vmem:[#allocation102_spill] sm:$0xff] %v4451_v6  ;;  %v4453_v11 = vld [vmem:[#allocation2 + $0x4a] sm:$0xff]  ;;  %v4463_v30 = vmax.f32 %v7157_v27, %v4451_v6  ;;  %v7159_v25 = vld [vmem:[#allocation8_spill] sm:$0xff] }
 0x225   :  { %7148 = vst [vmem:[#allocation98_spill] sm:$0xff] %v4431_v41  ;;  %7152 = vst [vmem:[#allocation100_spill] sm:$0xff] %v4443_v10  ;;  %v1553_v24 = vmax.f32 %v7159_v25, %v4453_v11  ;;  %v4475_v32 = vld [vmem:[#allocation2 + $0x52] sm:$0xff]  ;;  %v1474_v39 = vld [vmem:[#allocation2 + $0x5a] sm:$0xff] }
 0x226   :  { %7150 = vst [vmem:[#allocation99_spill] sm:$0xff] %v4437_v55  ;;  %7154 = vst [vmem:[#allocation101_spill] sm:$0xff] %v4449_v16  ;;  %v1475_v44 = vld [vmem:[#allocation2 + $0x62] sm:$0xff]  ;;  %v7161_v27 = vld [vmem:[#allocation12_spill] sm:$0xff] }
 0x227   :  { %7156 = vst [vmem:[#allocation103_spill] sm:$0xff] %v4453_v11  ;;  %7158 = vst [vmem:[#allocation104_spill] sm:$0xff] %v4463_v30  ;;  %v1554_v18 = vmax.f32 %v7161_v27, %v4475_v32  ;;  %v7162_v56 = vld [vmem:[#allocation3_spill] sm:$0xff]  ;;  %v4486_v26 = vmax.f32 %v1553_v24, %v1474_v39  ;;  %v4492_v11 = vld [vmem:[#allocation2 + $0x7a] sm:$0xff] }
 0x228   :  { %7160 = vst [vmem:[#allocation8_spill] sm:$0xff] %v4475_v32  ;;  %v7163_v42 = vld [vmem:[#allocation23_spill] sm:$0xff]  ;;  %7169 = vst [vmem:[#allocation106_spill] sm:$0xff] %v4492_v11  ;;  %v7170_v16 = vld [vmem:[#allocation4_spill] sm:$0xff] }
 0x229   :  { %v7164_v41 = vmax.f32 %v7162_v56, %v7163_v42  ;;  %7166 = vst [vmem:[#allocation3_spill] sm:$0xff] %v4486_v26  ;;  %v4488_v8 = vld [vmem:[#allocation2 + $0x6a] sm:$0xff]  ;;  %v4490_v53 = vld [vmem:[#allocation2 + $0x72] sm:$0xff]  ;;  %v7171_v6 = vld [vmem:[#allocation17_spill] sm:$0xff] }
 0x22a   :  { %7167 = vst [vmem:[#allocation23_spill] sm:$0xff] %v4488_v8  ;;  %7168 = vst [vmem:[#allocation105_spill] sm:$0xff] %v4490_v53  ;;  %v7172_v10 = vmax.f32 %v7170_v16, %v7171_v6  ;;  %v7174_v25 = vld [vmem:[#allocation32_spill] sm:$0xff]  ;;  %v7178_v24 = vld [vmem:[#allocation33_spill] sm:$0xff]  ;;  %v4521_v6 = vmax.f32 %v1554_v18, %v1475_v44 }
 0x22b   :  { %v4484_v36 = vmax.f32 %v7164_v41, %v1474_v39  ;;  %v7175_v32 = vmax.f32 %v4051_v62, %v7174_v25  ;;  %v7177_v41 = vld [vmem:[#allocation21_spill] sm:$0xff]  ;;  %v7182_v30 = vld [vmem:[#allocation34_spill] sm:$0xff] }
 0x22c   :  { %v4497_v27 = vmax.f32 %v7172_v10, %v1475_v44  ;;  %v7179_v56 = vmax.f32 %v7177_v41, %v7178_v24  ;;  %v7181_v26 = vld [vmem:[#allocation25_spill] sm:$0xff]  ;;  %v4519_v10 = vld [vmem:[#allocation2 + $0x8a] sm:$0xff]  ;;  %7187 = vst [vmem:[#allocation34_spill] sm:$0xff] %v4521_v6 }
 0x22d   :  { %7165 = vst [vmem:[#allocation12_spill] sm:$0xff] %v4484_v36  ;;  %v4503_v42 = vmax.f32 %v7175_v32, %v4488_v8  ;;  %v7183_v55 = vmax.f32 %v7181_v26, %v7182_v30  ;;  %v4517_v16 = vld [vmem:[#allocation2 + $0x82] sm:$0xff]  ;;  %7186 = vst [vmem:[#allocation25_spill] sm:$0xff] %v4519_v10  ;;  %v7188_v32 = vld [vmem:[#allocation27_spill] sm:$0xff] }
 0x22e   :  { %7173 = vst [vmem:[#allocation4_spill] sm:$0xff] %v4497_v27  ;;  %v4509_v39 = vmax.f32 %v7179_v56, %v4490_v53  ;;  %7185 = vst [vmem:[#allocation33_spill] sm:$0xff] %v4517_v16  ;;  %v7189_v25 = vld [vmem:[#allocation42_spill] sm:$0xff]  ;;  %v7192_v26 = vld [vmem:[#allocation43_spill] sm:$0xff] }
 0x22f   :  { %7176 = vst [vmem:[#allocation17_spill] sm:$0xff] %v4503_v42  ;;  %v4515_v47 = vmax.f32 %v7183_v55, %v4492_v11  ;;  %v7190_v41 = vmax.f32 %v7188_v32, %v7189_v25  ;;  %v7193_v55 = vmax.f32 %v4081_v1, %v7192_v26  ;;  %v4545_v25 = vld [vmem:[#allocation2 + $0x92] sm:$0xff]  ;;  %v1483_v62 = vld [vmem:[#allocation2 + $0xa2] sm:$0xff]  ;;  %v4559_v32 = vld [vmem:[#allocation2 + $0xba] sm:$0xff] }
 0x230   :  { %7180 = vst [vmem:[#allocation32_spill] sm:$0xff] %v4509_v39  ;;  %7195 = vst [vmem:[#allocation43_spill] sm:$0xff] %v4545_v25  ;;  %v7197_v1 = vld [vmem:[#allocation18_spill] sm:$0xff]  ;;  %v7198_v56 = vld [vmem:[#allocation11_spill] sm:$0xff] }
 0x231   :  { %7184 = vst [vmem:[#allocation21_spill] sm:$0xff] %v4515_v47  ;;  %v4529_v24 = vmax.f32 %v7190_v41, %v4517_v16  ;;  %v4535_v30 = vmax.f32 %v7193_v55, %v4519_v10  ;;  %v4547_v41 = vld [vmem:[#allocation2 + $0x9a] sm:$0xff]  ;;  %v1562_v26 = vmax.f32 %v7197_v1, %v4545_v25  ;;  %v1484_v16 = vld [vmem:[#allocation2 + $0xaa] sm:$0xff]  ;;  %v4557_v39 = vld [vmem:[#allocation2 + $0xb2] sm:$0xff] }
 0x232   :  { %7196 = vst [vmem:[#allocation107_spill] sm:$0xff] %v4547_v41  ;;  %v1563_v18 = vmax.f32 %v7198_v56, %v4547_v41  ;;  %7199 = vst [vmem:[#allocation18_spill] sm:$0xff] %v4557_v39  ;;  %v7201_v10 = vld [vmem:[#allocation35_spill] sm:$0xff]  ;;  %v7202_v47 = vld [vmem:[#allocation44_spill] sm:$0xff] }
 0x233   :  { %7191 = vst [vmem:[#allocation27_spill] sm:$0xff] %v4529_v24  ;;  %7194 = vst [vmem:[#allocation42_spill] sm:$0xff] %v4535_v30  ;;  %v7203_v11 = vmax.f32 %v7201_v10, %v7202_v47  ;;  %v7205_v1 = vld [vmem:[#allocation36_spill] sm:$0xff]  ;;  %v7206_v53 = vld [vmem:[#allocation50_spill] sm:$0xff]  ;;  %v4587_v10 = vmax.f32 %v1562_v26, %v1483_v62 }
 0x234   :  { %7200 = vst [vmem:[#allocation11_spill] sm:$0xff] %v4559_v32  ;;  %v7207_v27 = vmax.f32 %v7205_v1, %v7206_v53  ;;  %v7209_v56 = vld [vmem:[#allocation37_spill] sm:$0xff]  ;;  %v7210_v25 = vld [vmem:[#allocation51_spill] sm:$0xff]  ;;  %v7213_v41 = vld [vmem:[#allocation52_spill] sm:$0xff]  ;;  %v4589_v53 = vmax.f32 %v1563_v18, %v1484_v16 }
 0x235   :  { %v4564_v42 = vmax.f32 %v7203_v11, %v1483_v62  ;;  %v7211_v24 = vmax.f32 %v7209_v56, %v7210_v25  ;;  %v7214_v30 = vmax.f32 %v4111_v19, %v7213_v41  ;;  %v4583_v47 = vld [vmem:[#allocation2 + $0xc2] sm:$0xff]  ;;  %v4585_v11 = vld [vmem:[#allocation2 + $0xca] sm:$0xff]  ;;  %v7220_v1 = vld [vmem:[#allocation56_spill] sm:$0xff] }
 0x236   :  { %v4569_v55 = vmax.f32 %v7207_v27, %v1484_v16  ;;  %7216 = vst [vmem:[#allocation37_spill] sm:$0xff] %v4583_v47  ;;  %7217 = vst [vmem:[#allocation51_spill] sm:$0xff] %v4585_v11  ;;  %v7219_v27 = vld [vmem:[#allocation45_spill] sm:$0xff]  ;;  %v7223_v56 = vld [vmem:[#allocation46_spill] sm:$0xff] }
 0x237   :  { %7204 = vst [vmem:[#allocation35_spill] sm:$0xff] %v4564_v42  ;;  %v4575_v44 = vmax.f32 %v7211_v24, %v4557_v39  ;;  %v4581_v8 = vmax.f32 %v7214_v30, %v4559_v32  ;;  %7218 = vst [vmem:[#allocation52_spill] sm:$0xff] %v4589_v53  ;;  %v7221_v25 = vmax.f32 %v7219_v27, %v7220_v1  ;;  %v7224_v36 = vld [vmem:[#allocation57_spill] sm:$0xff]  ;;  %v4611_v26 = vld [vmem:[#allocation2 + $0xd2] sm:$0xff] }
 0x238   :  { %7208 = vst [vmem:[#allocation44_spill] sm:$0xff] %v4569_v55  ;;  %v7225_v19 = vmax.f32 %v7223_v56, %v7224_v36  ;;  %7227 = vst [vmem:[#allocation46_spill] sm:$0xff] %v4611_v26  ;;  %v4613_v27 = vld [vmem:[#allocation2 + $0xda] sm:$0xff]  ;;  %v4615_v1 = vld [vmem:[#allocation2 + $0xe2] sm:$0xff] }
 0x239   :  { %7212 = vst [vmem:[#allocation36_spill] sm:$0xff] %v4575_v44  ;;  %7215 = vst [vmem:[#allocation50_spill] sm:$0xff] %v4581_v8  ;;  %v4595_v24 = vmax.f32 %v7221_v25, %v4583_v47  ;;  %v7229_v36 = vld [vmem:[#allocation47_spill] sm:$0xff]  ;;  %v7230_v25 = vld [vmem:[#allocation58_spill] sm:$0xff] }
 0x23a   :  { %v4601_v30 = vmax.f32 %v7225_v19, %v4585_v11  ;;  %7228 = vst [vmem:[#allocation57_spill] sm:$0xff] %v4613_v27  ;;  %v7231_v56 = vmax.f32 %v7229_v36, %v7230_v25  ;;  %v7232_v16 = vld [vmem:[#allocation14_spill] sm:$0xff]  ;;  %v1493_v8 = vld [vmem:[#allocation2 + $0xf2] sm:$0xff]  ;;  %v4629_v47 = vld [vmem:[#allocation2 + $0xfa] sm:$0xff] }
 0x23b   :  { %7222 = vst [vmem:[#allocation45_spill] sm:$0xff] %v4595_v24  ;;  %v1571_v41 = vmax.f32 %v7232_v16, %v4613_v27  ;;  %v1492_v11 = vld [vmem:[#allocation2 + $0xea] sm:$0xff]  ;;  %7233 = vst [vmem:[#allocation47_spill] sm:$0xff] %v4629_v47  ;;  %v7238_v55 = vld [vmem:[#allocation53_spill] sm:$0xff] }
 0x23c   :  { %7226 = vst [vmem:[#allocation56_spill] sm:$0xff] %v4601_v30  ;;  %v4621_v19 = vmax.f32 %v7231_v56, %v4611_v26  ;;  %v7234_v44 = vld [vmem:[#allocation19_spill] sm:$0xff]  ;;  %v7235_v36 = vld [vmem:[#allocation62_spill] sm:$0xff]  ;;  %v7243_v18 = vld [vmem:[#allocation64_spill] sm:$0xff] }
 0x23d   :  { %v1572_v32 = vmax.f32 %v7234_v44, %v4615_v1  ;;  %v7236_v25 = vmax.f32 %v4137_v35, %v7235_v36  ;;  %v7239_v62 = vld [vmem:[#allocation63_spill] sm:$0xff]  ;;  %v7242_v16 = vld [vmem:[#allocation54_spill] sm:$0xff]  ;;  %v4655_v44 = vmax.f32 %v1571_v41, %v1492_v11  ;;  %v7264_v41 = vld [vmem:[#allocation60_spill] sm:$0xff] }
 0x23e   :  { %v7240_v26 = vmax.f32 %v7238_v55, %v7239_v62  ;;  %v7244_v27 = vmax.f32 %v7242_v16, %v7243_v18  ;;  %v4649_v39 = vld [vmem:[#allocation2 + $0x102] sm:$0xff]  ;;  %v4651_v42 = vld [vmem:[#allocation2 + $0x10a] sm:$0xff]  ;;  %v7253_v18 = vld [vmem:[#allocation68_spill] sm:$0xff] }
 0x23f   :  { %v4636_v56 = vmax.f32 %v7236_v25, %v1492_v11  ;;  %7246 = vst [vmem:[#allocation62_spill] sm:$0xff] %v4649_v39  ;;  %7247 = vst [vmem:[#allocation53_spill] sm:$0xff] %v4651_v42  ;;  %v7249_v36 = vld [vmem:[#allocation55_spill] sm:$0xff]  ;;  %v4671_v53 = vmax.f32 %v1572_v32, %v1493_v8  ;;  %v7270_v11 = vld [vmem:[#allocation61_spill] sm:$0xff] }
 0x240   :  { %v4641_v24 = vmax.f32 %v7240_v26, %v1493_v8  ;;  %v4647_v30 = vmax.f32 %v7244_v27, %v4629_v47  ;;  %7248 = vst [vmem:[#allocation63_spill] sm:$0xff] %v4655_v44  ;;  %v7250_v55 = vld [vmem:[#allocation67_spill] sm:$0xff]  ;;  %v7254_v27 = vmax.f32 %v4159_v5, %v7253_v18  ;;  %v4683_v5 = vld [vmem:[#allocation2 + $0x15a] sm:$0xff] }
 0x241   :  { %7237 = vst [vmem:[#allocation58_spill] sm:$0xff] %v4636_v56  ;;  %v7251_v62 = vmax.f32 %v7249_v36, %v7250_v55  ;;  %v4669_v16 = vld [vmem:[#allocation2 + $0x152] sm:$0xff]  ;;  %7257 = vst [vmem:[#allocation67_spill] sm:$0xff] %v4671_v53 }
 0x242   :  { %7241 = vst [vmem:[#allocation14_spill] sm:$0xff] %v4641_v24  ;;  %7245 = vst [vmem:[#allocation19_spill] sm:$0xff] %v4647_v30  ;;  %v4667_v25 = vmax.f32 %v7254_v27, %v4651_v42  ;;  %v4679_v55 = vld [vmem:[#allocation2 + $0x112] sm:$0xff]  ;;  %v7262_v27 = vld [vmem:[#allocation69_spill] sm:$0xff] }
 0x243   :  { %v4661_v26 = vmax.f32 %v7251_v62, %v4649_v39  ;;  %7256 = vst [vmem:[#allocation55_spill] sm:$0xff] %v4669_v16  ;;  %7258 = vst [vmem:[#allocation68_spill] sm:$0xff] %v4679_v55  ;;  %v4681_v62 = vld [vmem:[#allocation2 + $0x11a] sm:$0xff]  ;;  %v7261_v18 = vld [vmem:[#allocation59_spill] sm:$0xff] }
 0x244   :  { %7255 = vst [vmem:[#allocation64_spill] sm:$0xff] %v4667_v25  ;;  %7259 = vst [vmem:[#allocation108_spill] sm:$0xff] %v4681_v62  ;;  %v7263_v8 = vmax.f32 %v7261_v18, %v7262_v27  ;;  %v7265_v35 = vld [vmem:[#allocation71_spill] sm:$0xff]  ;;  %v4701_v30 = vld [vmem:[#allocation2 + $0x122] sm:$0xff] }
 0x245   :  { %7252 = vst [vmem:[#allocation54_spill] sm:$0xff] %v4661_v26  ;;  %7260 = vst [vmem:[#allocation109_spill] sm:$0xff] %v4683_v5  ;;  %v7266_v39 = vmax.f32 %v7264_v41, %v7265_v35  ;;  %v4703_v24 = vld [vmem:[#allocation2 + $0x12a] sm:$0xff]  ;;  %v7268_v18 = vld [vmem:[#allocation28_spill] sm:$0xff] }
 0x246   :  { %v4689_v32 = vmax.f32 %v7263_v8, %v4679_v55  ;;  %7267 = vst [vmem:[#allocation59_spill] sm:$0xff] %v4703_v24  ;;  %v1580_v27 = vmax.f32 %v7268_v18, %v4701_v30  ;;  %v7269_v8 = vld [vmem:[#allocation29_spill] sm:$0xff]  ;;  %v7271_v55 = vld [vmem:[#allocation72_spill] sm:$0xff]  ;;  %v7281_v41 = vld [vmem:[#allocation26_spill] sm:$0xff] }
 0x247   :  { %v4697_v36 = vmax.f32 %v7266_v39, %v4681_v62  ;;  %v1581_v47 = vmax.f32 %v7269_v8, %v4703_v24  ;;  %v7272_v26 = vmax.f32 %v7270_v11, %v7271_v55  ;;  %v7275_v18 = vld [vmem:[#allocation73_spill] sm:$0xff]  ;;  %v7279_v55 = vld [vmem:[#allocation24_spill] sm:$0xff]  ;;  %v7283_v62 = vld [vmem:[#allocation75_spill] sm:$0xff] }
 0x248   :  { %v7276_v25 = vmax.f32 %v4181_v50, %v7275_v18  ;;  %v4732_v53 = vmax.f32 %v1580_v27, %v7279_v55  ;;  %v7284_v42 = vmax.f32 %v4183_v2, %v7283_v62  ;;  %v4747_v18 = vld [vmem:[#allocation2 + $0x172] sm:$0xff]  ;;  %v1510_v11 = vld [vmem:[#allocation2 + $0x17a] sm:$0xff]  ;;  %v7287_v27 = vld [vmem:[#allocation30_spill] sm:$0xff] }
 0x249   :  { %v4713_v35 = vmax.f32 %v7272_v26, %v4669_v16  ;;  %v4729_v26 = vld [vmem:[#allocation2 + $0x162] sm:$0xff]  ;;  %v4735_v16 = vmax.f32 %v1581_v47, %v7281_v41  ;;  %7286 = vst [vmem:[#allocation61_spill] sm:$0xff] %v4747_v18  ;;  %v7288_v41 = vld [vmem:[#allocation31_spill] sm:$0xff] }
 0x24a   :  { %v4725_v8 = vmax.f32 %v7276_v25, %v4683_v5  ;;  %7278 = vst [vmem:[#allocation60_spill] sm:$0xff] %v4729_v26  ;;  %7280 = vst [vmem:[#allocation71_spill] sm:$0xff] %v4732_v53  ;;  %v4741_v39 = vmax.f32 %v7284_v42, %v4729_v26  ;;  %v4745_v25 = vld [vmem:[#allocation2 + $0x16a] sm:$0xff]  ;;  %v1590_v5 = vmax.f32 %v7288_v41, %v4747_v18  ;;  %v7289_v2 = vld [vmem:[#allocation65_spill] sm:$0xff] }
 0x24b   :  { %7273 = vst [vmem:[#allocation69_spill] sm:$0xff] %v4713_v35  ;;  %7282 = vst [vmem:[#allocation28_spill] sm:$0xff] %v4735_v16  ;;  %v1589_v55 = vmax.f32 %v7287_v27, %v4745_v25  ;;  %v7290_v42 = vld [vmem:[#allocation76_spill] sm:$0xff]  ;;  %v1511_v50 = vld [vmem:[#allocation2 + $0x182] sm:$0xff]  ;;  %v7296_v41 = vmax.f32 %v4203_v60, %v4263_v22 }
 0x24c   :  { %7285 = vst [vmem:[#allocation29_spill] sm:$0xff] %v4745_v25  ;;  %v7291_v62 = vmax.f32 %v7289_v2, %v7290_v42  ;;  %v4760_v26 = vld [vmem:[#allocation2 + $0x18a] sm:$0xff]  ;;  %v4762_v35 = vld [vmem:[#allocation2 + $0x192] sm:$0xff]  ;;  %v7294_v53 = vld [vmem:[#allocation77_spill] sm:$0xff]  ;;  %v7298_v42 = vmax.f32 %v4205_v45, %v4265_v12  ;;  %v4787_v18 = vmax.f32 %v1590_v5, %v1511_v50 }
 0x24d   :  { %7292 = vst [vmem:[#allocation72_spill] sm:$0xff] %v4762_v35  ;;  %v7293_v27 = vld [vmem:[#allocation66_spill] sm:$0xff]  ;;  %v4775_v2 = vmax.f32 %v7296_v41, %v4760_v26  ;;  %v4783_v25 = vld [vmem:[#allocation2 + $0x19a] sm:$0xff]  ;;  %v4785_v16 = vmax.f32 %v1589_v55, %v1510_v11  ;;  %v7301_v60 = vld [vmem:[#allocation79_spill] sm:$0xff] }
 0x24e   :  { %v4758_v56 = vmax.f32 %v7291_v62, %v1510_v11  ;;  %v7295_v24 = vmax.f32 %v7293_v27, %v7294_v53  ;;  %v4781_v62 = vmax.f32 %v7298_v42, %v4762_v35  ;;  %7300 = vst [vmem:[#allocation26_spill] sm:$0xff] %v4783_v25  ;;  %v7302_v22 = vmax.f32 %v4207_v21, %v7301_v60  ;;  %v4797_v27 = vld [vmem:[#allocation2 + $0x1a2] sm:$0xff]  ;;  %v4811_v21 = vld [vmem:[#allocation2 + $0x1aa] sm:$0xff]  ;;  %v4813_v42 = vld [vmem:[#allocation2 + $0x1b2] sm:$0xff] }
 0x24f   :  { %7297 = vst [vmem:[#allocation73_spill] sm:$0xff] %v4775_v2  ;;  %7304 = vst [vmem:[#allocation30_spill] sm:$0xff] %v4797_v27  ;;  %v7305_v5 = vld [vmem:[#allocation70_spill] sm:$0xff]  ;;  %v7306_v11 = vld [vmem:[#allocation81_spill] sm:$0xff] }
 0x250   :  { %v4769_v47 = vmax.f32 %v7295_v24, %v1511_v50  ;;  %7299 = vst [vmem:[#allocation24_spill] sm:$0xff] %v4781_v62  ;;  %v4795_v24 = vmax.f32 %v7302_v22, %v4783_v25  ;;  %v7307_v50 = vmax.f32 %v7305_v5, %v7306_v11  ;;  %7308 = vst [vmem:[#allocation31_spill] sm:$0xff] %v4811_v21  ;;  %v4815_v60 = vld [vmem:[#allocation2 + $0x1ba] sm:$0xff]  ;;  %v7311_v11 = vld [vmem:[#allocation38_spill] sm:$0xff] }
 0x251   :  { %7309 = vst [vmem:[#allocation65_spill] sm:$0xff] %v4813_v42  ;;  %v7310_v22 = vmax.f32 %v4225_v20, %v4287_v17  ;;  %v7312_v41 = vld [vmem:[#allocation39_spill] sm:$0xff]  ;;  %v1519_v53 = vld [vmem:[#allocation2 + $0x1c2] sm:$0xff]  ;;  %v7313_v20 = vmax.f32 %v4227_v13, %v4289_v43  ;;  %v4849_v35 = vld [vmem:[#allocation2 + $0x1da] sm:$0xff] }
 0x252   :  { %7303 = vst [vmem:[#allocation75_spill] sm:$0xff] %v4795_v24  ;;  %v4807_v55 = vmax.f32 %v7307_v50, %v4797_v27  ;;  %v1598_v50 = vmax.f32 %v7311_v11, %v4813_v42  ;;  %v1599_v45 = vmax.f32 %v7312_v41, %v4815_v60  ;;  %v1520_v27 = vld [vmem:[#allocation2 + $0x1ca] sm:$0xff]  ;;  %v4829_v62 = vld [vmem:[#allocation2 + $0x1d2] sm:$0xff]  ;;  %v4899_v25 = vld [vmem:[#allocation2 + $0x202] sm:$0xff] }
 0x253   :  { %v4821_v12 = vmax.f32 %v7310_v22, %v4811_v21  ;;  %v4836_v17 = vmax.f32 %v7313_v20, %v1519_v53  ;;  %v7314_v22 = vld [vmem:[#allocation83_spill] sm:$0xff]  ;;  %v7316_v11 = vld [vmem:[#allocation74_spill] sm:$0xff]  ;;  %v7317_v41 = vld [vmem:[#allocation84_spill] sm:$0xff]  ;;  %7332 = vst [vmem:[#allocation81_spill] sm:$0xff] %v4899_v25 }
 0x254   :  { %v7315_v5 = vmax.f32 %v4229_v31, %v7314_v22  ;;  %v7318_v24 = vmax.f32 %v7316_v11, %v7317_v41  ;;  %v4853_v42 = vmax.f32 %v1598_v50, %v1519_v53  ;;  %v4855_v13 = vmax.f32 %v1599_v45, %v1520_v27  ;;  %v4881_v50 = vld [vmem:[#allocation2 + $0x1fa] sm:$0xff]  ;;  %v7326_v22 = vld [vmem:[#allocation87_spill] sm:$0xff] }
 0x255   :  { %v7320_v31 = vmax.f32 %v4247_v14, %v4311_v61  ;;  %v7323_v53 = vmax.f32 %v4249_v0, %v4329_v9  ;;  %v4877_v14 = vld [vmem:[#allocation2 + $0x1ea] sm:$0xff]  ;;  %v4879_v61 = vld [vmem:[#allocation2 + $0x1f2] sm:$0xff]  ;;  %v7327_v11 = vmax.f32 %v4251_v51, %v7326_v22  ;;  %v7333_v22 = vld [vmem:[#allocation41_spill] sm:$0xff]  ;;  %v7334_v9 = vmax.f32 %v4269_v52, %v4343_v58 }
 0x256   :  { %v4841_v21 = vmax.f32 %v7315_v5, %v1520_v27  ;;  %v4847_v2 = vmax.f32 %v7318_v24, %v4829_v62  ;;  %v4863_v5 = vld [vmem:[#allocation2 + $0x1e2] sm:$0xff]  ;;  %7324 = vst [vmem:[#allocation79_spill] sm:$0xff] %v4877_v14  ;;  %7325 = vst [vmem:[#allocation70_spill] sm:$0xff] %v4879_v61  ;;  %v7331_v20 = vld [vmem:[#allocation40_spill] sm:$0xff]  ;;  %v7341_v58 = vmax.f32 %v4273_v54, %v4347_v57 }
 0x257   :  { %v4861_v43 = vmax.f32 %v7320_v31, %v4849_v35  ;;  %7322 = vst [vmem:[#allocation77_spill] sm:$0xff] %v4863_v5  ;;  %v4873_v27 = vmax.f32 %v7323_v53, %v4863_v5  ;;  %v4887_v41 = vmax.f32 %v7327_v11, %v4877_v14  ;;  %v7328_v0 = vld [vmem:[#allocation78_spill] sm:$0xff]  ;;  %v7329_v31 = vld [vmem:[#allocation88_spill] sm:$0xff]  ;;  %v1607_v24 = vmax.f32 %v7331_v20, %v4881_v50 }
 0x258   :  { %7319 = vst [vmem:[#allocation76_spill] sm:$0xff] %v4847_v2  ;;  %v7330_v53 = vmax.f32 %v7328_v0, %v7329_v31  ;;  %v1528_v5 = vld [vmem:[#allocation2 + $0x20a] sm:$0xff]  ;;  %v1529_v2 = vld [vmem:[#allocation2 + $0x212] sm:$0xff]  ;;  %v1608_v11 = vmax.f32 %v7333_v22, %v4899_v25  ;;  %v7336_v0 = vld [vmem:[#allocation89_spill] sm:$0xff] }
 0x259   :  { %7321 = vst [vmem:[#allocation66_spill] sm:$0xff] %v4861_v43  ;;  %v4908_v14 = vmax.f32 %v7334_v9, %v1528_v5  ;;  %v7337_v31 = vmax.f32 %v4271_v33, %v7336_v0  ;;  %v4915_v20 = vld [vmem:[#allocation2 + $0x21a] sm:$0xff]  ;;  %v4929_v9 = vld [vmem:[#allocation2 + $0x222] sm:$0xff]  ;;  %v4931_v33 = vld [vmem:[#allocation2 + $0x22a] sm:$0xff] }
 0x25a   :  { %v4895_v45 = vmax.f32 %v7330_v53, %v4879_v61  ;;  %7339 = vst [vmem:[#allocation83_spill] sm:$0xff] %v4915_v20  ;;  %v4921_v61 = vmax.f32 %v1607_v24, %v1528_v5  ;;  %v4927_v52 = vmax.f32 %v7341_v58, %v4915_v20  ;;  %7343 = vst [vmem:[#allocation87_spill] sm:$0xff] %v4929_v9  ;;  %v7347_v51 = vld [vmem:[#allocation90_spill] sm:$0xff]  ;;  %v4945_v57 = vld [vmem:[#allocation2 + $0x232] sm:$0xff] }
 0x25b   :  { %7335 = vst [vmem:[#allocation38_spill] sm:$0xff] %v4908_v14  ;;  %v4913_v53 = vmax.f32 %v7337_v31, %v1529_v2  ;;  %7344 = vst [vmem:[#allocation78_spill] sm:$0xff] %v4931_v33  ;;  %v4933_v22 = vmax.f32 %v1608_v11, %v1529_v2  ;;  %v7346_v31 = vld [vmem:[#allocation80_spill] sm:$0xff]  ;;  %v4949_v43 = vld [vmem:[#allocation2 + $0x242] sm:$0xff]  ;;  %v7351_v2 = vmax.f32 %v4291_v46, %v4359_v63 }
 0x25c   :  { %7340 = vst [vmem:[#allocation74_spill] sm:$0xff] %v4921_v61  ;;  %7342 = vst [vmem:[#allocation84_spill] sm:$0xff] %v4927_v52  ;;  %v7348_v5 = vmax.f32 %v7346_v31, %v7347_v51  ;;  %v4947_v58 = vld [vmem:[#allocation2 + $0x23a] sm:$0xff]  ;;  %v7352_v31 = vld [vmem:[#allocation91_spill] sm:$0xff] }
 0x25d   :  { %7338 = vst [vmem:[#allocation39_spill] sm:$0xff] %v4913_v53  ;;  %7345 = vst [vmem:[#allocation88_spill] sm:$0xff] %v4933_v22  ;;  %v4955_v11 = vmax.f32 %v7351_v2, %v4931_v33  ;;  %v7354_v0 = vld [vmem:[#allocation82_spill] sm:$0xff]  ;;  %v1537_v63 = vld [vmem:[#allocation2 + $0x252] sm:$0xff] }
 0x25e   :  { %v4941_v24 = vmax.f32 %v7348_v5, %v4929_v9  ;;  %7350 = vst [vmem:[#allocation41_spill] sm:$0xff] %v4945_v57  ;;  %v7353_v5 = vmax.f32 %v4293_v37, %v7352_v31  ;;  %v7355_v9 = vld [vmem:[#allocation92_spill] sm:$0xff]  ;;  %v4971_v14 = vld [vmem:[#allocation2 + $0x24a] sm:$0xff]  ;;  %v7360_v37 = vld [vmem:[#allocation49_spill] sm:$0xff] }
 0x25f   :  { %v7356_v53 = vmax.f32 %v7354_v0, %v7355_v9  ;;  %7358 = vst [vmem:[#allocation80_spill] sm:$0xff] %v4971_v14  ;;  %v1538_v46 = vld [vmem:[#allocation2 + $0x25a] sm:$0xff]  ;;  %v1617_v31 = vmax.f32 %v7360_v37, %v4971_v14  ;;  %v4981_v52 = vld [vmem:[#allocation2 + $0x26a] sm:$0xff]  ;;  %v4983_v9 = vld [vmem:[#allocation2 + $0x272] sm:$0xff] }
 0x260   :  { %7349 = vst [vmem:[#allocation40_spill] sm:$0xff] %v4941_v24  ;;  %v4963_v54 = vmax.f32 %v7353_v5, %v4945_v57  ;;  %v7359_v51 = vld [vmem:[#allocation48_spill] sm:$0xff]  ;;  %v4979_v5 = vld [vmem:[#allocation2 + $0x262] sm:$0xff]  ;;  %7361 = vst [vmem:[#allocation90_spill] sm:$0xff] %v4981_v52  ;;  %v7364_v57 = vmax.f32 %v4313_v38, %v4375_v34 }
 0x261   :  { %v4969_v20 = vmax.f32 %v7356_v53, %v4947_v58  ;;  %v1616_v33 = vmax.f32 %v7359_v51, %v4949_v43  ;;  %7362 = vst [vmem:[#allocation91_spill] sm:$0xff] %v4983_v9  ;;  %v7363_v53 = vmax.f32 %v4297_v59, %v4373_v29  ;;  %v1708_v22 = vld [vmem:[#allocation2 + $0x13] sm:$0xff]  ;;  %v1709_v61 = vld [vmem:[#allocation2 + $0x1b] sm:$0xff]  ;;  %v1710_v25 = vld [vmem:[#allocation2 + $0x23] sm:$0xff]  ;;  %v5003_v59 = vmax.f32 %v1617_v31, %v1538_v46 }
 0x262   :  { %v4999_v24 = vmax.f32 %v7364_v57, %v1538_v46  ;;  %v7370_v37 = vld [vmem:[#allocation85_spill] sm:$0xff]  ;;  %v1711_v34 = vld [vmem:[#allocation2 + $0x2b] sm:$0xff]  ;;  %v1712_v57 = vld [vmem:[#allocation2 + $0x33] sm:$0xff] }
 0x263   :  { %7357 = vst [vmem:[#allocation89_spill] sm:$0xff] %v4969_v20  ;;  %v4988_v0 = vmax.f32 %v7363_v53, %v1537_v63  ;;  %v5001_v29 = vmax.f32 %v1616_v33, %v1537_v63  ;;  %7367 = vst [vmem:[#allocation48_spill] sm:$0xff] %v5003_v59  ;;  %v7368_v53 = vmax.f32 %v4315_v28, %v4383_v48  ;;  %v7371_v2 = vld [vmem:[#allocation93_spill] sm:$0xff]  ;;  %v7374_v33 = vld [vmem:[#allocation86_spill] sm:$0xff] }
 0x264   :  { %7365 = vst [vmem:[#allocation82_spill] sm:$0xff] %v4999_v24  ;;  %v7372_v14 = vmax.f32 %v7370_v37, %v7371_v2  ;;  %v1713_v20 = vld [vmem:[#allocation2 + $0x3b] sm:$0xff]  ;;  %v7375_v63 = vld [vmem:[#allocation94_spill] sm:$0xff]  ;;  %v7378_v2 = vmax.f32 %v3973_v7, %v4399_v4  ;;  %v1716_v59 = vld [vmem:[#allocation2 + $0x53] sm:$0xff]  ;;  %v7382_v48 = vmax.f32 %v3975_v49, %v4401_v40  ;;  %v7384_v7 = vmax.f32 %v4409_v15, %v4403_v3 }
 0x265   :  { %7366 = vst [vmem:[#allocation92_spill] sm:$0xff] %v5001_v29  ;;  %v5009_v51 = vmax.f32 %v7368_v53, %v4979_v5  ;;  %v7376_v46 = vmax.f32 %v7374_v33, %v7375_v63  ;;  %v1714_v37 = vld [vmem:[#allocation2 + $0x43] sm:$0xff]  ;;  %v1715_v53 = vld [vmem:[#allocation2 + $0x4b] sm:$0xff]  ;;  %v5032_v29 = vld [vmem:[#allocation2 + $0x5b] sm:$0xff] }
 0x266   :  { %v5015_v38 = vmax.f32 %v7372_v14, %v4981_v52  ;;  %v5030_v14 = vmax.f32 %v7378_v2, %v1708_v22  ;;  %7380 = vst [vmem:[#allocation94_spill] sm:$0xff] %v5032_v29  ;;  %v5041_v28 = vmax.f32 %v7382_v48, %v1709_v61  ;;  %v5046_v4 = vmax.f32 %v7384_v7, %v1710_v25  ;;  %v5048_v22 = vld [vmem:[#allocation2 + $0x63] sm:$0xff]  ;;  %v1719_v2 = vld [vmem:[#allocation2 + $0x6b] sm:$0xff]  ;;  %v1721_v52 = vld [vmem:[#allocation2 + $0x7b] sm:$0xff] }
 0x267   :  { %7369 = vst [vmem:[#allocation49_spill] sm:$0xff] %v5009_v51  ;;  %v5021_v31 = vmax.f32 %v7376_v46, %v4983_v9  ;;  %7386 = vst [vmem:[#allocation112_spill] sm:$0xff] %v5048_v22  ;;  %v7388_v46 = vld [vmem:[#allocation95_spill] sm:$0xff]  ;;  %v7391_v49 = vld [vmem:[#allocation98_spill] sm:$0xff] }
 0x268   :  { %7373 = vst [vmem:[#allocation85_spill] sm:$0xff] %v5015_v38  ;;  %7379 = vst [vmem:[#allocation86_spill] sm:$0xff] %v5030_v14  ;;  %v1720_v14 = vld [vmem:[#allocation2 + $0x73] sm:$0xff]  ;;  %v7389_v63 = vmax.f32 %v4417_v23, %v7388_v46  ;;  %v7396_v15 = vld [vmem:[#allocation97_spill] sm:$0xff] }
 0x269   :  { %7377 = vst [vmem:[#allocation93_spill] sm:$0xff] %v5021_v31  ;;  %7383 = vst [vmem:[#allocation110_spill] sm:$0xff] %v5041_v28  ;;  %v7392_v40 = vld [vmem:[#allocation96_spill] sm:$0xff]  ;;  %v7395_v3 = vld [vmem:[#allocation99_spill] sm:$0xff] }
 0x26a   :  { %7385 = vst [vmem:[#allocation111_spill] sm:$0xff] %v5046_v4  ;;  %v5055_v38 = vmax.f32 %v7389_v63, %v1711_v34  ;;  %v7393_v61 = vmax.f32 %v7391_v49, %v7392_v40  ;;  %v7397_v25 = vmax.f32 %v7395_v3, %v7396_v15  ;;  %v1722_v4 = vld [vmem:[#allocation2 + $0x83] sm:$0xff]  ;;  %v1723_v28 = vld [vmem:[#allocation2 + $0x8b] sm:$0xff]  ;;  %v1724_v9 = vld [vmem:[#allocation2 + $0x93] sm:$0xff] }
 0x26b   :  { %v1725_v51 = vld [vmem:[#allocation2 + $0x9b] sm:$0xff]  ;;  %v7400_v24 = vld [vmem:[#allocation102_spill] sm:$0xff]  ;;  %v7404_v63 = vld [vmem:[#allocation103_spill] sm:$0xff] }
 0x26c   :  { %7390 = vst [vmem:[#allocation95_spill] sm:$0xff] %v5055_v38  ;;  %v5060_v48 = vmax.f32 %v7393_v61, %v1712_v57  ;;  %v5065_v7 = vmax.f32 %v7397_v25, %v1713_v20  ;;  %v7399_v33 = vld [vmem:[#allocation100_spill] sm:$0xff]  ;;  %v7403_v34 = vld [vmem:[#allocation101_spill] sm:$0xff]  ;;  %v7423_v15 = vld [vmem:[#allocation106_spill] sm:$0xff] }
 0x26d   :  { %v7401_v31 = vmax.f32 %v7399_v33, %v7400_v24  ;;  %v7405_v46 = vmax.f32 %v7403_v34, %v7404_v63  ;;  %v7407_v57 = vld [vmem:[#allocation104_spill] sm:$0xff]  ;;  %v5084_v25 = vld [vmem:[#allocation2 + $0xa3] sm:$0xff] }
 0x26e   :  { %7394 = vst [vmem:[#allocation98_spill] sm:$0xff] %v5060_v48  ;;  %7398 = vst [vmem:[#allocation96_spill] sm:$0xff] %v5065_v7  ;;  %v7408_v40 = vld [vmem:[#allocation8_spill] sm:$0xff]  ;;  %v5086_v7 = vld [vmem:[#allocation2 + $0xab] sm:$0xff] }
 0x26f   :  { %v5070_v23 = vmax.f32 %v7401_v31, %v1714_v37  ;;  %v5075_v49 = vmax.f32 %v7405_v46, %v1715_v53  ;;  %v7409_v61 = vmax.f32 %v7407_v57, %v7408_v40  ;;  %7412 = vst [vmem:[#allocation102_spill] sm:$0xff] %v5084_v25  ;;  %7413 = vst [vmem:[#allocation101_spill] sm:$0xff] %v5086_v7  ;;  %v1728_v24 = vld [vmem:[#allocation2 + $0xb3] sm:$0xff]  ;;  %v1729_v31 = vld [vmem:[#allocation2 + $0xbb] sm:$0xff] }
 0x270   :  { %v7414_v33 = vld [vmem:[#allocation12_spill] sm:$0xff]  ;;  %v7415_v53 = vld [vmem:[#allocation23_spill] sm:$0xff]  ;;  %v7427_v22 = vld [vmem:[#allocation33_spill] sm:$0xff] }
 0x271   :  { %7402 = vst [vmem:[#allocation99_spill] sm:$0xff] %v5070_v23  ;;  %7406 = vst [vmem:[#allocation97_spill] sm:$0xff] %v5075_v49  ;;  %v5080_v3 = vmax.f32 %v7409_v61, %v1716_v59  ;;  %v7416_v34 = vmax.f32 %v7414_v33, %v7415_v53  ;;  %v7418_v46 = vld [vmem:[#allocation4_spill] sm:$0xff]  ;;  %v7419_v59 = vld [vmem:[#allocation105_spill] sm:$0xff] }
 0x272   :  { %v7420_v57 = vmax.f32 %v7418_v46, %v7419_v59  ;;  %v7422_v61 = vld [vmem:[#allocation17_spill] sm:$0xff]  ;;  %v1731_v49 = vld [vmem:[#allocation2 + $0xcb] sm:$0xff]  ;;  %v1732_v23 = vld [vmem:[#allocation2 + $0xd3] sm:$0xff] }
 0x273   :  { %7410 = vst [vmem:[#allocation100_spill] sm:$0xff] %v5080_v3  ;;  %v5093_v63 = vmax.f32 %v7416_v34, %v1719_v2  ;;  %v7424_v29 = vmax.f32 %v7422_v61, %v7423_v15  ;;  %v1730_v3 = vld [vmem:[#allocation2 + $0xc3] sm:$0xff]  ;;  %v1733_v48 = vld [vmem:[#allocation2 + $0xdb] sm:$0xff]  ;;  %v7435_v59 = vld [vmem:[#allocation43_spill] sm:$0xff] }
 0x274   :  { %v5098_v40 = vmax.f32 %v7420_v57, %v1720_v14  ;;  %v7426_v37 = vld [vmem:[#allocation32_spill] sm:$0xff]  ;;  %v7430_v2 = vld [vmem:[#allocation21_spill] sm:$0xff]  ;;  %v7434_v14 = vld [vmem:[#allocation27_spill] sm:$0xff] }
 0x275   :  { %7417 = vst [vmem:[#allocation103_spill] sm:$0xff] %v5093_v63  ;;  %v5103_v20 = vmax.f32 %v7424_v29, %v1721_v52  ;;  %v7428_v6 = vmax.f32 %v7426_v37, %v7427_v22  ;;  %v7431_v53 = vld [vmem:[#allocation25_spill] sm:$0xff]  ;;  %v7436_v57 = vmax.f32 %v7434_v14, %v7435_v59  ;;  %v7438_v52 = vld [vmem:[#allocation42_spill] sm:$0xff]  ;;  %v7439_v29 = vld [vmem:[#allocation107_spill] sm:$0xff] }
 0x276   :  { %7421 = vst [vmem:[#allocation104_spill] sm:$0xff] %v5098_v40  ;;  %v7432_v34 = vmax.f32 %v7430_v2, %v7431_v53  ;;  %v7440_v61 = vmax.f32 %v7438_v52, %v7439_v29  ;;  %v1734_v40 = vld [vmem:[#allocation2 + $0xe3] sm:$0xff]  ;;  %v5125_v63 = vld [vmem:[#allocation2 + $0xeb] sm:$0xff]  ;;  %v5129_v22 = vld [vmem:[#allocation2 + $0x133] sm:$0xff] }
 0x277   :  { %7425 = vst [vmem:[#allocation8_spill] sm:$0xff] %v5103_v20  ;;  %v5108_v33 = vmax.f32 %v7428_v6, %v1722_v4  ;;  %v5118_v15 = vmax.f32 %v7436_v57, %v1724_v9  ;;  %7442 = vst [vmem:[#allocation17_spill] sm:$0xff] %v5125_v63  ;;  %v5127_v6 = vld [vmem:[#allocation2 + $0xf3] sm:$0xff]  ;;  %v1737_v4 = vld [vmem:[#allocation2 + $0xfb] sm:$0xff] }
 0x278   :  { %v5113_v46 = vmax.f32 %v7432_v34, %v1723_v28  ;;  %v5123_v20 = vmax.f32 %v7440_v61, %v1725_v51  ;;  %7443 = vst [vmem:[#allocation106_spill] sm:$0xff] %v5127_v6  ;;  %7444 = vst [vmem:[#allocation32_spill] sm:$0xff] %v5129_v22  ;;  %v5131_v28 = vld [vmem:[#allocation2 + $0x13b] sm:$0xff]  ;;  %v7447_v53 = vld [vmem:[#allocation35_spill] sm:$0xff] }
 0x279   :  { %7429 = vst [vmem:[#allocation12_spill] sm:$0xff] %v5108_v33  ;;  %7437 = vst [vmem:[#allocation4_spill] sm:$0xff] %v5118_v15  ;;  %v7448_v34 = vld [vmem:[#allocation18_spill] sm:$0xff]  ;;  %v7451_v59 = vld [vmem:[#allocation44_spill] sm:$0xff] }
 0x27a   :  { %7433 = vst [vmem:[#allocation23_spill] sm:$0xff] %v5113_v46  ;;  %7441 = vst [vmem:[#allocation105_spill] sm:$0xff] %v5123_v20  ;;  %v7449_v51 = vmax.f32 %v7447_v53, %v7448_v34  ;;  %v7452_v57 = vld [vmem:[#allocation11_spill] sm:$0xff]  ;;  %v1738_v61 = vld [vmem:[#allocation2 + $0x103] sm:$0xff] }
 0x27b   :  { %7445 = vst [vmem:[#allocation33_spill] sm:$0xff] %v5131_v28  ;;  %v7453_v52 = vmax.f32 %v7451_v59, %v7452_v57  ;;  %v1739_v20 = vld [vmem:[#allocation2 + $0x10b] sm:$0xff]  ;;  %v1740_v15 = vld [vmem:[#allocation2 + $0x113] sm:$0xff]  ;;  %v7456_v33 = vld [vmem:[#allocation37_spill] sm:$0xff] }
 0x27c   :  { %v5140_v14 = vmax.f32 %v7449_v51, %v1728_v24  ;;  %v7455_v46 = vld [vmem:[#allocation36_spill] sm:$0xff]  ;;  %v7458_v25 = vld [vmem:[#allocation50_spill] sm:$0xff]  ;;  %v7459_v2 = vld [vmem:[#allocation51_spill] sm:$0xff] }
 0x27d   :  { %v5145_v29 = vmax.f32 %v7453_v52, %v1729_v31  ;;  %v7457_v38 = vmax.f32 %v7455_v46, %v7456_v33  ;;  %v7460_v7 = vmax.f32 %v7458_v25, %v7459_v2  ;;  %v7461_v24 = vld [vmem:[#allocation45_spill] sm:$0xff]  ;;  %v7462_v53 = vld [vmem:[#allocation46_spill] sm:$0xff]  ;;  %v7464_v31 = vld [vmem:[#allocation56_spill] sm:$0xff] }
 0x27e   :  { %7450 = vst [vmem:[#allocation21_spill] sm:$0xff] %v5140_v14  ;;  %v7463_v34 = vmax.f32 %v7461_v24, %v7462_v53  ;;  %v7465_v59 = vld [vmem:[#allocation57_spill] sm:$0xff]  ;;  %v1743_v33 = vld [vmem:[#allocation2 + $0x12b] sm:$0xff]  ;;  %v7481_v6 = vld [vmem:[#allocation68_spill] sm:$0xff] }
 0x27f   :  { %7454 = vst [vmem:[#allocation25_spill] sm:$0xff] %v5145_v29  ;;  %v5150_v37 = vmax.f32 %v7457_v38, %v1730_v3  ;;  %v5155_v9 = vmax.f32 %v7460_v7, %v1731_v49  ;;  %v7466_v57 = vmax.f32 %v7464_v31, %v7465_v59  ;;  %v1741_v29 = vld [vmem:[#allocation2 + $0x11b] sm:$0xff]  ;;  %v1742_v14 = vld [vmem:[#allocation2 + $0x123] sm:$0xff]  ;;  %v7467_v38 = vmax.f32 %v4621_v19, %v4615_v1  ;;  %v7471_v46 = vld [vmem:[#allocation47_spill] sm:$0xff] }
 0x280   :  { %v5160_v51 = vmax.f32 %v7463_v34, %v1732_v23  ;;  %v7470_v25 = vld [vmem:[#allocation58_spill] sm:$0xff]  ;;  %v1749_v53 = vld [vmem:[#allocation2 + $0x15b] sm:$0xff]  ;;  %v1752_v44 = vld [vmem:[#allocation2 + $0x173] sm:$0xff] }
 0x281   :  { %v5165_v52 = vmax.f32 %v7466_v57, %v1733_v48  ;;  %v5170_v3 = vmax.f32 %v7467_v38, %v1734_v40  ;;  %v7472_v2 = vmax.f32 %v7470_v25, %v7471_v46  ;;  %v1748_v48 = vld [vmem:[#allocation2 + $0x153] sm:$0xff]  ;;  %v1750_v34 = vld [vmem:[#allocation2 + $0x163] sm:$0xff]  ;;  %v1751_v31 = vld [vmem:[#allocation2 + $0x16b] sm:$0xff] }
 0x282   :  { %v7474_v59 = vld [vmem:[#allocation14_spill] sm:$0xff]  ;;  %v7477_v40 = vld [vmem:[#allocation19_spill] sm:$0xff]  ;;  %v7478_v38 = vld [vmem:[#allocation53_spill] sm:$0xff] }
 0x283   :  { %7468 = vst [vmem:[#allocation27_spill] sm:$0xff] %v5170_v3  ;;  %v5179_v24 = vmax.f32 %v7472_v2, %v1737_v4  ;;  %v7475_v57 = vld [vmem:[#allocation62_spill] sm:$0xff]  ;;  %v7479_v7 = vmax.f32 %v7477_v40, %v7478_v38  ;;  %v7483_v4 = vld [vmem:[#allocation64_spill] sm:$0xff] }
 0x284   :  { %v7476_v1 = vmax.f32 %v7474_v59, %v7475_v57  ;;  %v7480_v23 = vld [vmem:[#allocation54_spill] sm:$0xff]  ;;  %v7484_v46 = vld [vmem:[#allocation108_spill] sm:$0xff] }
 0x285   :  { %7473 = vst [vmem:[#allocation43_spill] sm:$0xff] %v5179_v24  ;;  %v5189_v63 = vmax.f32 %v7479_v7, %v1739_v20  ;;  %v7482_v49 = vmax.f32 %v7480_v23, %v7481_v6  ;;  %v7485_v2 = vmax.f32 %v7483_v4, %v7484_v46  ;;  %v5201_v3 = vld [vmem:[#allocation2 + $0x17b] sm:$0xff]  ;;  %v1755_v59 = vld [vmem:[#allocation2 + $0x18b] sm:$0xff]  ;;  %v7488_v20 = vmax.f32 %v4689_v32, %v4701_v30  ;;  %v1756_v40 = vld [vmem:[#allocation2 + $0x193] sm:$0xff] }
 0x286   :  { %v5184_v19 = vmax.f32 %v7476_v1, %v1738_v61  ;;  %v5203_v61 = vld [vmem:[#allocation2 + $0x183] sm:$0xff]  ;;  %v7489_v6 = vld [vmem:[#allocation59_spill] sm:$0xff]  ;;  %v1757_v38 = vld [vmem:[#allocation2 + $0x19b] sm:$0xff] }
 0x287   :  { %v5194_v25 = vmax.f32 %v7482_v49, %v1740_v15  ;;  %v5199_v24 = vmax.f32 %v7485_v2, %v1741_v29  ;;  %7487 = vst [vmem:[#allocation107_spill] sm:$0xff] %v5203_v61  ;;  %v5208_v7 = vmax.f32 %v7488_v20, %v1742_v14  ;;  %v7490_v15 = vmax.f32 %v4697_v36, %v7489_v6  ;;  %v1758_v4 = vld [vmem:[#allocation2 + $0x1a3] sm:$0xff]  ;;  %v1759_v46 = vld [vmem:[#allocation2 + $0x1ab] sm:$0xff]  ;;  %v1760_v23 = vld [vmem:[#allocation2 + $0x1b3] sm:$0xff] }
 0x288   :  { %v7494_v2 = vld [vmem:[#allocation15_spill] sm:$0xff]  ;;  %v7497_v14 = vld [vmem:[#allocation10_spill] sm:$0xff]  ;;  %v7498_v20 = vld [vmem:[#allocation109_spill] sm:$0xff] }
 0x289   :  { %7486 = vst [vmem:[#allocation42_spill] sm:$0xff] %v5199_v24  ;;  %v5213_v49 = vmax.f32 %v7490_v15, %v1743_v33  ;;  %v7495_v24 = vld [vmem:[#allocation55_spill] sm:$0xff]  ;;  %v7499_v36 = vmax.f32 %v7497_v14, %v7498_v20  ;;  %v7500_v6 = vld [vmem:[#allocation69_spill] sm:$0xff]  ;;  %v7501_v15 = vld [vmem:[#allocation60_spill] sm:$0xff] }
 0x28a   :  { %v7496_v30 = vmax.f32 %v7494_v2, %v7495_v24  ;;  %v7502_v29 = vmax.f32 %v7500_v6, %v7501_v15  ;;  %v7503_v1 = vld [vmem:[#allocation29_spill] sm:$0xff]  ;;  %v7509_v14 = vld [vmem:[#allocation72_spill] sm:$0xff]  ;;  %v1767_v61 = vld [vmem:[#allocation2 + $0x1eb] sm:$0xff] }
 0x28b   :  { %7491 = vst [vmem:[#allocation35_spill] sm:$0xff] %v5213_v49  ;;  %v5227_v33 = vmax.f32 %v7499_v36, %v1749_v53  ;;  %v7504_v28 = vmax.f32 %v4725_v8, %v7503_v1  ;;  %v1761_v49 = vld [vmem:[#allocation2 + $0x1bb] sm:$0xff]  ;;  %v5239_v24 = vld [vmem:[#allocation2 + $0x1c3] sm:$0xff]  ;;  %v7507_v8 = vmax.f32 %v4758_v56, %v4760_v26  ;;  %v7517_v26 = vld [vmem:[#allocation75_spill] sm:$0xff] }
 0x28c   :  { %v5222_v32 = vmax.f32 %v7496_v30, %v1748_v48  ;;  %v5232_v22 = vmax.f32 %v7502_v29, %v1750_v34  ;;  %v7505_v48 = vld [vmem:[#allocation61_spill] sm:$0xff]  ;;  %v1764_v29 = vld [vmem:[#allocation2 + $0x1d3] sm:$0xff]  ;;  %v7512_v36 = vld [vmem:[#allocation26_spill] sm:$0xff] }
 0x28d   :  { %v5237_v57 = vmax.f32 %v7504_v28, %v1751_v31  ;;  %v7506_v2 = vmax.f32 %v4741_v39, %v7505_v48  ;;  %v5253_v28 = vmax.f32 %v7507_v8, %v1755_v59  ;;  %v5255_v31 = vld [vmem:[#allocation2 + $0x1cb] sm:$0xff]  ;;  %v1765_v1 = vld [vmem:[#allocation2 + $0x1db] sm:$0xff]  ;;  %v7510_v39 = vmax.f32 %v4769_v47, %v7509_v14  ;;  %v1768_v47 = vld [vmem:[#allocation2 + $0x1f3] sm:$0xff] }
 0x28e   :  { %v7511_v20 = vld [vmem:[#allocation73_spill] sm:$0xff]  ;;  %v7514_v48 = vld [vmem:[#allocation24_spill] sm:$0xff]  ;;  %v7518_v59 = vld [vmem:[#allocation31_spill] sm:$0xff] }
 0x28f   :  { %v5244_v30 = vmax.f32 %v7506_v2, %v1752_v44  ;;  %7508 = vst [vmem:[#allocation18_spill] sm:$0xff] %v5253_v28  ;;  %v5260_v44 = vmax.f32 %v7510_v39, %v1756_v40  ;;  %v7513_v6 = vmax.f32 %v7511_v20, %v7512_v36  ;;  %v7515_v2 = vld [vmem:[#allocation30_spill] sm:$0xff]  ;;  %v7519_v8 = vmax.f32 %v7517_v26, %v7518_v59  ;;  %v7520_v40 = vld [vmem:[#allocation65_spill] sm:$0xff] }
 0x290   :  { %v7516_v34 = vmax.f32 %v7514_v48, %v7515_v2  ;;  %v1766_v28 = vld [vmem:[#allocation2 + $0x1e3] sm:$0xff]  ;;  %v7521_v14 = vmax.f32 %v4807_v55, %v7520_v40  ;;  %v7524_v55 = vmax.f32 %v4836_v17, %v4829_v62  ;;  %v1773_v62 = vld [vmem:[#allocation2 + $0x21b] sm:$0xff] }
 0x291   :  { %v5265_v15 = vmax.f32 %v7513_v6, %v1757_v38  ;;  %v5275_v53 = vmax.f32 %v7519_v8, %v1759_v46  ;;  %v7522_v38 = vmax.f32 %v4821_v12, %v4815_v60  ;;  %v1770_v36 = vld [vmem:[#allocation2 + $0x203] sm:$0xff]  ;;  %v5291_v6 = vld [vmem:[#allocation2 + $0x20b] sm:$0xff]  ;;  %v7525_v12 = vmax.f32 %v4841_v21, %v4849_v35  ;;  %v1777_v46 = vld [vmem:[#allocation2 + $0x23b] sm:$0xff] }
 0x292   :  { %v5270_v56 = vmax.f32 %v7516_v34, %v1758_v4  ;;  %v5280_v39 = vmax.f32 %v7521_v14, %v1760_v23  ;;  %v1769_v34 = vld [vmem:[#allocation2 + $0x1fb] sm:$0xff]  ;;  %7523 = vst [vmem:[#allocation44_spill] sm:$0xff] %v5291_v6  ;;  %v5296_v23 = vmax.f32 %v7524_v55, %v1764_v29  ;;  %v7529_v59 = vld [vmem:[#allocation66_spill] sm:$0xff]  ;;  %v7530_v8 = vld [vmem:[#allocation79_spill] sm:$0xff] }
 0x293   :  { %v5285_v20 = vmax.f32 %v7522_v38, %v1761_v49  ;;  %v5301_v60 = vmax.f32 %v7525_v12, %v1765_v1  ;;  %v7526_v49 = vld [vmem:[#allocation76_spill] sm:$0xff]  ;;  %v7527_v48 = vld [vmem:[#allocation77_spill] sm:$0xff]  ;;  %v7531_v40 = vmax.f32 %v7529_v59, %v7530_v8  ;;  %v7533_v35 = vld [vmem:[#allocation70_spill] sm:$0xff] }
 0x294   :  { %v7528_v2 = vmax.f32 %v7526_v49, %v7527_v48  ;;  %v5313_v38 = vld [vmem:[#allocation2 + $0x213] sm:$0xff]  ;;  %v1774_v17 = vld [vmem:[#allocation2 + $0x223] sm:$0xff]  ;;  %v1785_v29 = vld [vmem:[#allocation2 + $0x27b] sm:$0xff]  ;;  %v7534_v21 = vmax.f32 %v4873_v27, %v7533_v35 }
 0x295   :  { %v5311_v14 = vmax.f32 %v7531_v40, %v1767_v61  ;;  %7532 = vst [vmem:[#allocation11_spill] sm:$0xff] %v5313_v38  ;;  %v1786_v55 = vld [vmem:[#allocation2 + $0x283] sm:$0xff]  ;;  %v1775_v8 = vld [vmem:[#allocation2 + $0x22b] sm:$0xff]  ;;  %v1776_v40 = vld [vmem:[#allocation2 + $0x233] sm:$0xff] }
 0x296   :  { %v5306_v26 = vmax.f32 %v7528_v2, %v1766_v28  ;;  %v5318_v1 = vmax.f32 %v7534_v21, %v1768_v47  ;;  %v7535_v28 = vmax.f32 %v4887_v41, %v4881_v50  ;;  %v7536_v49 = vld [vmem:[#allocation81_spill] sm:$0xff]  ;;  %v7541_v35 = vld [vmem:[#allocation38_spill] sm:$0xff]  ;;  %v7542_v21 = vld [vmem:[#allocation83_spill] sm:$0xff] }
 0x297   :  { %v7537_v61 = vmax.f32 %v4895_v45, %v7536_v49  ;;  %v7543_v4 = vmax.f32 %v7541_v35, %v7542_v21  ;;  %v7544_v41 = vld [vmem:[#allocation39_spill] sm:$0xff]  ;;  %v7548_v49 = vld [vmem:[#allocation78_spill] sm:$0xff]  ;;  %v7551_v47 = vld [vmem:[#allocation40_spill] sm:$0xff] }
 0x298   :  { %v5323_v12 = vmax.f32 %v7535_v28, %v1769_v34  ;;  %v7545_v34 = vld [vmem:[#allocation87_spill] sm:$0xff]  ;;  %v1778_v6 = vld [vmem:[#allocation2 + $0x243] sm:$0xff] }
 0x299   :  { %v5328_v48 = vmax.f32 %v7537_v61, %v1770_v36  ;;  %v5337_v50 = vmax.f32 %v7543_v4, %v1773_v62  ;;  %v7546_v28 = vmax.f32 %v7544_v41, %v7545_v34  ;;  %v7547_v36 = vld [vmem:[#allocation84_spill] sm:$0xff]  ;;  %v1779_v2 = vld [vmem:[#allocation2 + $0x24b] sm:$0xff]  ;;  %v7552_v38 = vld [vmem:[#allocation41_spill] sm:$0xff]  ;;  %v7554_v4 = vmax.f32 %v4955_v11, %v4947_v58 }
 0x29a   :  { %v7549_v61 = vmax.f32 %v7547_v36, %v7548_v49  ;;  %v7553_v27 = vmax.f32 %v7551_v47, %v7552_v38  ;;  %v7558_v41 = vld [vmem:[#allocation80_spill] sm:$0xff]  ;;  %v1782_v38 = vld [vmem:[#allocation2 + $0x263] sm:$0xff] }
 0x29b   :  { %7538 = vst [vmem:[#allocation36_spill] sm:$0xff] %v5328_v48  ;;  %v5342_v45 = vmax.f32 %v7546_v28, %v1774_v17  ;;  %v5349_v48 = vld [vmem:[#allocation2 + $0x253] sm:$0xff]  ;;  %v5359_v62 = vmax.f32 %v7554_v4, %v1777_v46  ;;  %v7555_v17 = vmax.f32 %v4963_v54, %v4949_v43  ;;  %v5371_v36 = vld [vmem:[#allocation2 + $0x25b] sm:$0xff]  ;;  %v7564_v43 = vmax.f32 %v4988_v0, %v4979_v5  ;;  %v7567_v49 = vld [vmem:[#allocation90_spill] sm:$0xff] }
 0x29c   :  { %v5347_v59 = vmax.f32 %v7549_v61, %v1775_v8  ;;  %7550 = vst [vmem:[#allocation37_spill] sm:$0xff] %v5349_v48  ;;  %v5354_v35 = vmax.f32 %v7553_v27, %v1776_v40  ;;  %v7557_v8 = vld [vmem:[#allocation89_spill] sm:$0xff]  ;;  %7561 = vst [vmem:[#allocation45_spill] sm:$0xff] %v5371_v36  ;;  %v1783_v40 = vld [vmem:[#allocation2 + $0x26b] sm:$0xff] }
 0x29d   :  { %v5364_v21 = vmax.f32 %v7555_v17, %v1778_v6  ;;  %v7559_v34 = vmax.f32 %v7557_v8, %v7558_v41  ;;  %v1784_v46 = vld [vmem:[#allocation2 + $0x273] sm:$0xff]  ;;  %v5380_v54 = vmax.f32 %v7564_v43, %v1782_v38  ;;  %v7566_v6 = vld [vmem:[#allocation82_spill] sm:$0xff]  ;;  %v1871_v17 = vld [vmem:[#allocation2 + $0x1c] sm:$0xff] }
 0x29e   :  { %v1870_v4 = vld [vmem:[#allocation2 + $0x14] sm:$0xff]  ;;  %v7570_v8 = vld [vmem:[#allocation49_spill] sm:$0xff] }
 0x29f   :  { %7556 = vst [vmem:[#allocation50_spill] sm:$0xff] %v5364_v21  ;;  %v5369_v28 = vmax.f32 %v7559_v34, %v1779_v2  ;;  %7565 = vst [vmem:[#allocation46_spill] sm:$0xff] %v5380_v54  ;;  %v7568_v2 = vmax.f32 %v7566_v6, %v7567_v49  ;;  %v7571_v41 = vld [vmem:[#allocation91_spill] sm:$0xff]  ;;  %v7574_v48 = vld [vmem:[#allocation85_spill] sm:$0xff] }
 0x2a0   :  { %v7572_v34 = vmax.f32 %v7570_v8, %v7571_v41  ;;  %v7575_v11 = vld [vmem:[#allocation5_spill] sm:$0xff]  ;;  %v7579_v0 = vld [vmem:[#allocation7_spill] sm:$0xff]  ;;  %v7582_v6 = vld [vmem:[#allocation86_spill] sm:$0xff] }
 0x2a1   :  { %7560 = vst [vmem:[#allocation51_spill] sm:$0xff] %v5369_v28  ;;  %v5385_v61 = vmax.f32 %v7568_v2, %v1783_v40  ;;  %v7576_v36 = vmax.f32 %v7574_v48, %v7575_v11  ;;  %v7578_v5 = vld [vmem:[#allocation93_spill] sm:$0xff]  ;;  %v1951_v40 = vmax.f32 %v7582_v6, %v1870_v4  ;;  %v1873_v2 = vld [vmem:[#allocation2 + $0x2c] sm:$0xff] }
 0x2a2   :  { %v5390_v47 = vmax.f32 %v7572_v34, %v1784_v46  ;;  %v7580_v38 = vmax.f32 %v7578_v5, %v7579_v0  ;;  %v1872_v49 = vld [vmem:[#allocation2 + $0x24] sm:$0xff]  ;;  %v7584_v8 = vld [vmem:[#allocation111_spill] sm:$0xff] }
 0x2a3   :  { %7569 = vst [vmem:[#allocation56_spill] sm:$0xff] %v5385_v61  ;;  %v5395_v58 = vmax.f32 %v7576_v36, %v1785_v29  ;;  %v1874_v61 = vld [vmem:[#allocation2 + $0x34] sm:$0xff]  ;;  %v7583_v54 = vld [vmem:[#allocation110_spill] sm:$0xff]  ;;  %v1953_v46 = vmax.f32 %v7584_v8, %v1872_v49  ;;  %v1875_v29 = vld [vmem:[#allocation2 + $0x3c] sm:$0xff] }
 0x2a4   :  { %7573 = vst [vmem:[#allocation57_spill] sm:$0xff] %v5390_v47  ;;  %v5400_v43 = vmax.f32 %v7580_v38, %v1786_v55  ;;  %v1952_v27 = vmax.f32 %v7583_v54, %v1871_v17  ;;  %v7585_v41 = vld [vmem:[#allocation95_spill] sm:$0xff]  ;;  %v7586_v47 = vld [vmem:[#allocation98_spill] sm:$0xff]  ;;  %v7588_v55 = vld [vmem:[#allocation96_spill] sm:$0xff] }
 0x2a5   :  { %7577 = vst [vmem:[#allocation58_spill] sm:$0xff] %v5395_v58  ;;  %v1954_v34 = vmax.f32 %v7585_v41, %v1873_v2  ;;  %v1955_v48 = vmax.f32 %v7586_v47, %v1874_v61  ;;  %v1876_v36 = vld [vmem:[#allocation2 + $0x44] sm:$0xff]  ;;  %v1877_v11 = vld [vmem:[#allocation2 + $0x4c] sm:$0xff]  ;;  %v5407_v58 = vmax.f32 %v1951_v40, %v1872_v49  ;;  %v1956_v5 = vmax.f32 %v7588_v55, %v1875_v29  ;;  %v1878_v47 = vld [vmem:[#allocation2 + $0x54] sm:$0xff] }
 0x2a6   :  { %7581 = vst [vmem:[#allocation47_spill] sm:$0xff] %v5400_v43  ;;  %v7589_v0 = vld [vmem:[#allocation99_spill] sm:$0xff]  ;;  %v7590_v38 = vld [vmem:[#allocation97_spill] sm:$0xff]  ;;  %v5412_v43 = vmax.f32 %v1952_v27, %v1873_v2  ;;  %v5414_v54 = vmax.f32 %v1953_v46, %v1874_v61  ;;  %v7596_v40 = vld [vmem:[#allocation100_spill] sm:$0xff] }
 0x2a7   :  { %7587 = vst [vmem:[#allocation14_spill] sm:$0xff] %v5407_v58  ;;  %v1957_v4 = vmax.f32 %v7589_v0, %v1876_v36  ;;  %v1958_v6 = vmax.f32 %v7590_v38, %v1877_v11  ;;  %v5416_v17 = vmax.f32 %v1954_v34, %v1875_v29  ;;  %v5418_v8 = vmax.f32 %v1955_v48, %v1876_v36  ;;  %v1879_v41 = vld [vmem:[#allocation2 + $0x5c] sm:$0xff]  ;;  %v7598_v55 = vld [vmem:[#allocation3_spill] sm:$0xff]  ;;  %v7599_v0 = vld [vmem:[#allocation94_spill] sm:$0xff] }
 0x2a8   :  { %7591 = vst [vmem:[#allocation62_spill] sm:$0xff] %v5412_v43  ;;  %7592 = vst [vmem:[#allocation19_spill] sm:$0xff] %v5414_v54  ;;  %v5420_v28 = vmax.f32 %v1956_v5, %v1877_v11  ;;  %v1959_v49 = vmax.f32 %v7596_v40, %v1878_v47  ;;  %v7600_v21 = vmax.f32 %v7598_v55, %v7599_v0  ;;  %v1880_v27 = vld [vmem:[#allocation2 + $0x64] sm:$0xff]  ;;  %v5430_v61 = vld [vmem:[#allocation2 + $0x6c] sm:$0xff] }
 0x2a9   :  { %7593 = vst [vmem:[#allocation53_spill] sm:$0xff] %v5416_v17  ;;  %7594 = vst [vmem:[#allocation54_spill] sm:$0xff] %v5418_v8  ;;  %v5423_v58 = vmax.f32 %v1957_v4, %v1878_v47  ;;  %v5432_v2 = vld [vmem:[#allocation2 + $0x74] sm:$0xff]  ;;  %v5434_v46 = vmax.f32 %v1958_v6, %v1879_v41  ;;  %v7604_v34 = vld [vmem:[#allocation34_spill] sm:$0xff] }
 0x2aa   :  { %7595 = vst [vmem:[#allocation68_spill] sm:$0xff] %v5420_v28  ;;  %v5428_v38 = vmax.f32 %v7600_v21, %v1879_v41  ;;  %7602 = vst [vmem:[#allocation59_spill] sm:$0xff] %v5430_v61  ;;  %v7605_v48 = vld [vmem:[#allocation112_spill] sm:$0xff]  ;;  %v7607_v11 = vld [vmem:[#allocation103_spill] sm:$0xff]  ;;  %v5445_v55 = vmax.f32 %v1959_v49, %v1880_v27 }
 0x2ab   :  { %7597 = vst [vmem:[#allocation64_spill] sm:$0xff] %v5423_v58  ;;  %7603 = vst [vmem:[#allocation15_spill] sm:$0xff] %v5434_v46  ;;  %v7606_v29 = vmax.f32 %v7604_v34, %v7605_v48  ;;  %v1962_v5 = vmax.f32 %v7607_v11, %v5430_v61  ;;  %v7608_v4 = vld [vmem:[#allocation104_spill] sm:$0xff]  ;;  %v1884_v40 = vld [vmem:[#allocation2 + $0x84] sm:$0xff] }
 0x2ac   :  { %7601 = vst [vmem:[#allocation108_spill] sm:$0xff] %v5428_v38  ;;  %v1963_v47 = vmax.f32 %v7608_v4, %v5432_v2  ;;  %v1883_v21 = vld [vmem:[#allocation2 + $0x7c] sm:$0xff]  ;;  %7609 = vst [vmem:[#allocation55_spill] sm:$0xff] %v5445_v55  ;;  %v1885_v34 = vld [vmem:[#allocation2 + $0x8c] sm:$0xff] }
 0x2ad   :  { %v5439_v36 = vmax.f32 %v7606_v29, %v1880_v27  ;;  %v7610_v6 = vld [vmem:[#allocation8_spill] sm:$0xff]  ;;  %v5453_v29 = vmax.f32 %v1962_v5, %v1883_v21  ;;  %v7613_v4 = vld [vmem:[#allocation23_spill] sm:$0xff]  ;;  %v1888_v38 = vld [vmem:[#allocation2 + $0xa4] sm:$0xff] }
 0x2ae   :  { %v1964_v41 = vmax.f32 %v7610_v6, %v1883_v21  ;;  %v7611_v46 = vld [vmem:[#allocation12_spill] sm:$0xff]  ;;  %v5455_v11 = vmax.f32 %v1963_v47, %v1884_v40  ;;  %v1966_v28 = vmax.f32 %v7613_v4, %v1885_v34  ;;  %v7617_v6 = vld [vmem:[#allocation105_spill] sm:$0xff]  ;;  %v1889_v17 = vld [vmem:[#allocation2 + $0xac] sm:$0xff] }
 0x2af   :  { %v1965_v58 = vmax.f32 %v7611_v46, %v1884_v40  ;;  %v1886_v8 = vld [vmem:[#allocation2 + $0x94] sm:$0xff]  ;;  %v1887_v49 = vld [vmem:[#allocation2 + $0x9c] sm:$0xff]  ;;  %v7620_v47 = vld [vmem:[#allocation102_spill] sm:$0xff] }
 0x2b0   :  { %7612 = vst [vmem:[#allocation10_spill] sm:$0xff] %v5455_v11  ;;  %v5458_v27 = vmax.f32 %v1964_v41, %v1885_v34  ;;  %v7615_v55 = vld [vmem:[#allocation4_spill] sm:$0xff]  ;;  %v1968_v46 = vmax.f32 %v7617_v6, %v1887_v49  ;;  %v5466_v5 = vmax.f32 %v1966_v28, %v1887_v49  ;;  %v7621_v21 = vmax.f32 %v4587_v10, %v7620_v47  ;;  %v7623_v41 = vld [vmem:[#allocation101_spill] sm:$0xff] }
 0x2b1   :  { %v1967_v0 = vmax.f32 %v7615_v55, %v1886_v8  ;;  %v5461_v61 = vmax.f32 %v1965_v58, %v1886_v8  ;;  %v5464_v54 = vld [vmem:[#allocation2 + $0xb4] sm:$0xff]  ;;  %v7625_v58 = vld [vmem:[#allocation21_spill] sm:$0xff] }
 0x2b2   :  { %7614 = vst [vmem:[#allocation109_spill] sm:$0xff] %v5458_v27  ;;  %7618 = vst [vmem:[#allocation60_spill] sm:$0xff] %v5464_v54  ;;  %v5471_v40 = vmax.f32 %v7621_v21, %v1888_v38  ;;  %v7622_v4 = vld [vmem:[#allocation52_spill] sm:$0xff]  ;;  %v1971_v8 = vmax.f32 %v7625_v58, %v5464_v54  ;;  %v1892_v6 = vld [vmem:[#allocation2 + $0xc4] sm:$0xff]  ;;  %v5484_v28 = vmax.f32 %v1968_v46, %v1889_v17 }
 0x2b3   :  { %7616 = vst [vmem:[#allocation69_spill] sm:$0xff] %v5461_v61  ;;  %7619 = vst [vmem:[#allocation29_spill] sm:$0xff] %v5466_v5  ;;  %v7624_v34 = vmax.f32 %v7622_v4, %v7623_v41  ;;  %v5480_v55 = vld [vmem:[#allocation2 + $0xbc] sm:$0xff]  ;;  %v5482_v61 = vmax.f32 %v1967_v0, %v1888_v38  ;;  %v1973_v47 = vmax.f32 %v5150_v37, %v1892_v6  ;;  %v1893_v21 = vld [vmem:[#allocation2 + $0xcc] sm:$0xff] }
 0x2b4   :  { %7626 = vst [vmem:[#allocation61_spill] sm:$0xff] %v5480_v55  ;;  %7628 = vst [vmem:[#allocation73_spill] sm:$0xff] %v5484_v28  ;;  %v7629_v49 = vld [vmem:[#allocation25_spill] sm:$0xff]  ;;  %v1974_v58 = vmax.f32 %v5155_v9, %v1893_v21  ;;  %v1894_v38 = vld [vmem:[#allocation2 + $0xd4] sm:$0xff] }
 0x2b5   :  { %v5476_v48 = vmax.f32 %v7624_v34, %v1889_v17  ;;  %7627 = vst [vmem:[#allocation72_spill] sm:$0xff] %v5482_v61  ;;  %v1972_v10 = vmax.f32 %v7629_v49, %v5480_v55  ;;  %v5493_v34 = vmax.f32 %v1971_v8, %v1892_v6  ;;  %v1895_v0 = vld [vmem:[#allocation2 + $0xdc] sm:$0xff]  ;;  %v1975_v46 = vmax.f32 %v5160_v51, %v1894_v38  ;;  %v1896_v28 = vld [vmem:[#allocation2 + $0xe4] sm:$0xff]  ;;  %v1897_v61 = vld [vmem:[#allocation2 + $0xec] sm:$0xff] }
 0x2b6   :  { %v5499_v49 = vmax.f32 %v1973_v47, %v1894_v38  ;;  %v1976_v37 = vmax.f32 %v5165_v52, %v1895_v0  ;;  %v1898_v4 = vld [vmem:[#allocation2 + $0xf4] sm:$0xff]  ;;  %v5502_v54 = vmax.f32 %v1974_v58, %v1895_v0  ;;  %v5515_v47 = vld [vmem:[#allocation2 + $0xfc] sm:$0xff]  ;;  %v5517_v52 = vld [vmem:[#allocation2 + $0x104] sm:$0xff] }
 0x2b7   :  { %7630 = vst [vmem:[#allocation26_spill] sm:$0xff] %v5493_v34  ;;  %v5496_v17 = vmax.f32 %v1972_v10, %v1893_v21  ;;  %v7634_v41 = vld [vmem:[#allocation27_spill] sm:$0xff]  ;;  %v7636_v34 = vld [vmem:[#allocation17_spill] sm:$0xff]  ;;  %v7640_v21 = vld [vmem:[#allocation106_spill] sm:$0xff]  ;;  %v5519_v38 = vmax.f32 %v1975_v46, %v1896_v28 }
 0x2b8   :  { %7632 = vst [vmem:[#allocation30_spill] sm:$0xff] %v5499_v49  ;;  %7633 = vst [vmem:[#allocation75_spill] sm:$0xff] %v5502_v54  ;;  %v1977_v8 = vmax.f32 %v7634_v41, %v1896_v28  ;;  %v7635_v6 = vld [vmem:[#allocation63_spill] sm:$0xff]  ;;  %v5521_v58 = vmax.f32 %v1976_v37, %v1897_v61  ;;  %v1903_v46 = vld [vmem:[#allocation2 + $0x11c] sm:$0xff] }
 0x2b9   :  { %7631 = vst [vmem:[#allocation24_spill] sm:$0xff] %v5496_v17  ;;  %v7637_v9 = vmax.f32 %v7635_v6, %v7636_v34  ;;  %v7639_v10 = vld [vmem:[#allocation67_spill] sm:$0xff]  ;;  %7643 = vst [vmem:[#allocation76_spill] sm:$0xff] %v5515_v47  ;;  %v1981_v34 = vmax.f32 %v5184_v19, %v5517_v52  ;;  %v1907_v37 = vld [vmem:[#allocation2 + $0x13c] sm:$0xff] }
 0x2ba   :  { %v7641_v17 = vmax.f32 %v7639_v10, %v7640_v21  ;;  %7644 = vst [vmem:[#allocation77_spill] sm:$0xff] %v5517_v52  ;;  %7645 = vst [vmem:[#allocation66_spill] sm:$0xff] %v5519_v38  ;;  %v7647_v41 = vld [vmem:[#allocation43_spill] sm:$0xff]  ;;  %v5527_v54 = vmax.f32 %v1977_v8, %v1898_v4  ;;  %v1904_v8 = vld [vmem:[#allocation2 + $0x124] sm:$0xff] }
 0x2bb   :  { %v5508_v55 = vmax.f32 %v7637_v9, %v1897_v61  ;;  %7646 = vst [vmem:[#allocation79_spill] sm:$0xff] %v5521_v58  ;;  %v1980_v0 = vmax.f32 %v7647_v41, %v5515_v47  ;;  %v1901_v6 = vld [vmem:[#allocation2 + $0x10c] sm:$0xff]  ;;  %v1906_v9 = vld [vmem:[#allocation2 + $0x134] sm:$0xff] }
 0x2bc   :  { %v5513_v51 = vmax.f32 %v7641_v17, %v1898_v4  ;;  %7648 = vst [vmem:[#allocation70_spill] sm:$0xff] %v5527_v54  ;;  %v1982_v28 = vmax.f32 %v5189_v63, %v1901_v6  ;;  %v1902_v61 = vld [vmem:[#allocation2 + $0x114] sm:$0xff]  ;;  %v7650_v58 = vld [vmem:[#allocation42_spill] sm:$0xff]  ;;  %v1985_v17 = vmax.f32 %v5208_v7, %v1904_v8 }
 0x2bd   :  { %7638 = vst [vmem:[#allocation31_spill] sm:$0xff] %v5508_v55  ;;  %v5534_v21 = vmax.f32 %v1980_v0, %v1901_v6  ;;  %v1983_v41 = vmax.f32 %v5194_v25, %v1902_v61  ;;  %v5537_v19 = vmax.f32 %v1981_v34, %v1902_v61  ;;  %v1984_v4 = vmax.f32 %v7650_v58, %v1903_v46  ;;  %v1905_v54 = vld [vmem:[#allocation2 + $0x12c] sm:$0xff]  ;;  %v1910_v0 = vld [vmem:[#allocation2 + $0x154] sm:$0xff]  ;;  %v1911_v6 = vld [vmem:[#allocation2 + $0x15c] sm:$0xff] }
 0x2be   :  { %7642 = vst [vmem:[#allocation65_spill] sm:$0xff] %v5513_v51  ;;  %v5540_v38 = vmax.f32 %v1982_v28, %v1903_v46  ;;  %v7652_v10 = vld [vmem:[#allocation35_spill] sm:$0xff]  ;;  %v7654_v51 = vld [vmem:[#allocation32_spill] sm:$0xff]  ;;  %v7658_v61 = vld [vmem:[#allocation33_spill] sm:$0xff]  ;;  %v1991_v7 = vmax.f32 %v5222_v32, %v1910_v0  ;;  %v5559_v46 = vmax.f32 %v1985_v17, %v1906_v9  ;;  %v7670_v32 = vmax.f32 %v4785_v16, %v5201_v3 }
 0x2bf   :  { %7649 = vst [vmem:[#allocation81_spill] sm:$0xff] %v5537_v19  ;;  %v1986_v52 = vmax.f32 %v7652_v10, %v1905_v54  ;;  %v7653_v63 = vld [vmem:[#allocation71_spill] sm:$0xff]  ;;  %v5549_v25 = vmax.f32 %v1983_v41, %v1904_v8  ;;  %v5551_v34 = vmax.f32 %v1984_v4, %v1905_v54  ;;  %v7657_v58 = vld [vmem:[#allocation28_spill] sm:$0xff]  ;;  %v7661_v41 = vld [vmem:[#allocation22_spill] sm:$0xff] }
 0x2c0   :  { %7651 = vst [vmem:[#allocation38_spill] sm:$0xff] %v5540_v38  ;;  %v7655_v47 = vmax.f32 %v7653_v63, %v7654_v51  ;;  %v7659_v19 = vmax.f32 %v7657_v58, %v7658_v61  ;;  %v5563_v51 = vld [vmem:[#allocation2 + $0x144] sm:$0xff]  ;;  %v5572_v58 = vld [vmem:[#allocation2 + $0x14c] sm:$0xff]  ;;  %v7763_v43 = vld [vmem:[#allocation108_spill] sm:$0xff] }
 0x2c1   :  { %7656 = vst [vmem:[#allocation83_spill] sm:$0xff] %v5549_v25  ;;  %v5561_v10 = vmax.f32 %v1986_v52, %v1907_v37  ;;  %7660 = vst [vmem:[#allocation39_spill] sm:$0xff] %v5563_v51  ;;  %v7662_v8 = vld [vmem:[#allocation13_spill] sm:$0xff]  ;;  %v7665_v52 = vld [vmem:[#allocation6_spill] sm:$0xff] }
 0x2c2   :  { %v5547_v55 = vmax.f32 %v7655_v47, %v1906_v9  ;;  %v5556_v28 = vmax.f32 %v7659_v19, %v1907_v37  ;;  %v7663_v54 = vmax.f32 %v7661_v41, %v7662_v8  ;;  %v1912_v63 = vld [vmem:[#allocation2 + $0x164] sm:$0xff]  ;;  %v1992_v9 = vmax.f32 %v5227_v33, %v1911_v6  ;;  %v1913_v47 = vld [vmem:[#allocation2 + $0x16c] sm:$0xff]  ;;  %v1914_v51 = vld [vmem:[#allocation2 + $0x174] sm:$0xff] }
 0x2c3   :  { %v7666_v17 = vld [vmem:[#allocation9_spill] sm:$0xff]  ;;  %v1993_v61 = vmax.f32 %v5232_v22, %v1912_v63  ;;  %v1994_v8 = vmax.f32 %v5237_v57, %v1913_v47  ;;  %v7675_v57 = vld [vmem:[#allocation18_spill] sm:$0xff]  ;;  %v5861_v5 = vld [vmem:[#allocation2 + $0x115] sm:$0xff] }
 0x2c4   :  { %v5570_v4 = vmax.f32 %v7663_v54, %v1910_v0  ;;  %v7667_v37 = vmax.f32 %v7665_v52, %v7666_v17  ;;  %v1915_v41 = vld [vmem:[#allocation2 + $0x17c] sm:$0xff]  ;;  %v5583_v0 = vmax.f32 %v1991_v7, %v1912_v63  ;;  %v1995_v54 = vmax.f32 %v5244_v30, %v1914_v51  ;;  %v5592_v52 = vld [vmem:[#allocation2 + $0x18c] sm:$0xff] }
 0x2c5   :  { %v5590_v33 = vmax.f32 %v7670_v32, %v1915_v41  ;;  %7672 = vst [vmem:[#allocation41_spill] sm:$0xff] %v5592_v52  ;;  %v5596_v22 = vmax.f32 %v1993_v61, %v1914_v51  ;;  %v7673_v17 = vld [vmem:[#allocation107_spill] sm:$0xff]  ;;  %v1998_v30 = vmax.f32 %v7675_v57, %v5592_v52  ;;  %v5607_v16 = vmax.f32 %v1994_v8, %v1915_v41  ;;  %v1919_v32 = vld [vmem:[#allocation2 + $0x19c] sm:$0xff]  ;;  %v1924_v52 = vld [vmem:[#allocation2 + $0x1c4] sm:$0xff] }
 0x2c6   :  { %7664 = vst [vmem:[#allocation87_spill] sm:$0xff] %v5570_v4  ;;  %v5580_v19 = vmax.f32 %v7667_v37, %v1911_v6  ;;  %7669 = vst [vmem:[#allocation78_spill] sm:$0xff] %v5583_v0  ;;  %v1916_v4 = vld [vmem:[#allocation2 + $0x184] sm:$0xff]  ;;  %v5594_v6 = vmax.f32 %v1992_v9, %v1913_v47  ;;  %v7674_v7 = vmax.f32 %v4787_v18, %v7673_v17  ;;  %v5605_v37 = vld [vmem:[#allocation2 + $0x194] sm:$0xff] }
 0x2c7   :  { %7671 = vst [vmem:[#allocation40_spill] sm:$0xff] %v5590_v33  ;;  %v5609_v3 = vmax.f32 %v1995_v54, %v1916_v4  ;;  %v1999_v51 = vmax.f32 %v5260_v44, %v5605_v37  ;;  %v1920_v9 = vld [vmem:[#allocation2 + $0x1a4] sm:$0xff]  ;;  %v2000_v61 = vmax.f32 %v5265_v15, %v1919_v32  ;;  %v5618_v17 = vmax.f32 %v1998_v30, %v1919_v32  ;;  %v1921_v8 = vld [vmem:[#allocation2 + $0x1ac] sm:$0xff]  ;;  %v1923_v54 = vld [vmem:[#allocation2 + $0x1bc] sm:$0xff] }
 0x2c8   :  { %7668 = vst [vmem:[#allocation84_spill] sm:$0xff] %v5580_v19  ;;  %v5601_v63 = vmax.f32 %v7674_v7, %v1916_v4  ;;  %v2001_v41 = vmax.f32 %v5270_v56, %v1920_v9  ;;  %v1922_v4 = vld [vmem:[#allocation2 + $0x1b4] sm:$0xff]  ;;  %v2002_v57 = vmax.f32 %v5275_v53, %v1921_v8  ;;  %v2004_v47 = vmax.f32 %v5285_v20, %v1923_v54  ;;  %v1925_v33 = vld [vmem:[#allocation2 + $0x1cc] sm:$0xff] }
 0x2c9   :  { %7676 = vst [vmem:[#allocation89_spill] sm:$0xff] %v5609_v3  ;;  %7677 = vst [vmem:[#allocation80_spill] sm:$0xff] %v5618_v17  ;;  %v5621_v7 = vmax.f32 %v1999_v51, %v1920_v9  ;;  %v2003_v44 = vmax.f32 %v5280_v39, %v1922_v4  ;;  %v5626_v18 = vmax.f32 %v2000_v61, %v1921_v8  ;;  %v5640_v53 = vld [vmem:[#allocation2 + $0x1d4] sm:$0xff]  ;;  %v1929_v8 = vld [vmem:[#allocation2 + $0x1ec] sm:$0xff] }
 0x2ca   :  { %v5628_v15 = vmax.f32 %v2001_v41, %v1922_v4  ;;  %v7681_v56 = vmax.f32 %v4853_v42, %v5239_v24  ;;  %v7682_v51 = vmax.f32 %v4855_v13, %v5255_v31  ;;  %7684 = vst [vmem:[#allocation85_spill] sm:$0xff] %v5640_v53  ;;  %v5642_v39 = vmax.f32 %v2002_v57, %v1923_v54  ;;  %v5650_v41 = vld [vmem:[#allocation2 + $0x1dc] sm:$0xff]  ;;  %v1928_v42 = vld [vmem:[#allocation2 + $0x1e4] sm:$0xff] }
 0x2cb   :  { %7678 = vst [vmem:[#allocation82_spill] sm:$0xff] %v5621_v7  ;;  %7679 = vst [vmem:[#allocation90_spill] sm:$0xff] %v5626_v18  ;;  %v5644_v20 = vmax.f32 %v2003_v44, %v1924_v52  ;;  %v5646_v9 = vmax.f32 %v2004_v47, %v1925_v33  ;;  %v2007_v61 = vmax.f32 %v5296_v23, %v5640_v53  ;;  %v1931_v47 = vld [vmem:[#allocation2 + $0x1fc] sm:$0xff]  ;;  %v1932_v44 = vld [vmem:[#allocation2 + $0x204] sm:$0xff] }
 0x2cc   :  { %7680 = vst [vmem:[#allocation49_spill] sm:$0xff] %v5628_v15  ;;  %v5633_v30 = vmax.f32 %v7681_v56, %v1924_v52  ;;  %v5638_v32 = vmax.f32 %v7682_v51, %v1925_v33  ;;  %7685 = vst [vmem:[#allocation5_spill] sm:$0xff] %v5642_v39  ;;  %v2008_v13 = vmax.f32 %v5301_v60, %v5650_v41  ;;  %v1930_v33 = vld [vmem:[#allocation2 + $0x1f4] sm:$0xff]  ;;  %v1933_v56 = vld [vmem:[#allocation2 + $0x20c] sm:$0xff] }
 0x2cd   :  { %7686 = vst [vmem:[#allocation93_spill] sm:$0xff] %v5644_v20  ;;  %7687 = vst [vmem:[#allocation7_spill] sm:$0xff] %v5646_v9  ;;  %v2009_v52 = vmax.f32 %v5306_v26, %v1928_v42  ;;  %v5659_v4 = vmax.f32 %v2007_v61, %v1928_v42  ;;  %v2010_v23 = vmax.f32 %v5311_v14, %v1929_v8  ;;  %v7692_v31 = vld [vmem:[#allocation36_spill] sm:$0xff]  ;;  %v7693_v26 = vld [vmem:[#allocation74_spill] sm:$0xff] }
 0x2ce   :  { %7683 = vst [vmem:[#allocation91_spill] sm:$0xff] %v5638_v32  ;;  %7688 = vst [vmem:[#allocation86_spill] sm:$0xff] %v5650_v41  ;;  %v2011_v54 = vmax.f32 %v5318_v1, %v1930_v33  ;;  %v2012_v57 = vmax.f32 %v5323_v12, %v1931_v47  ;;  %v5664_v51 = vmax.f32 %v2008_v13, %v1929_v8  ;;  %v7694_v41 = vld [vmem:[#allocation44_spill] sm:$0xff]  ;;  %v5899_v11 = vld [vmem:[#allocation2 + $0x165] sm:$0xff] }
 0x2cf   :  { %7689 = vst [vmem:[#allocation110_spill] sm:$0xff] %v5659_v4  ;;  %v5666_v60 = vmax.f32 %v2009_v52, %v1930_v33  ;;  %v2013_v24 = vmax.f32 %v7692_v31, %v1932_v44  ;;  %v7695_v32 = vmax.f32 %v7693_v26, %v7694_v41  ;;  %v1934_v61 = vld [vmem:[#allocation2 + $0x214] sm:$0xff]  ;;  %v5674_v42 = vmax.f32 %v2010_v23, %v1931_v47  ;;  %v5685_v52 = vld [vmem:[#allocation2 + $0x21c] sm:$0xff]  ;;  %v5687_v31 = vld [vmem:[#allocation2 + $0x224] sm:$0xff] }
 0x2d0   :  { %7690 = vst [vmem:[#allocation111_spill] sm:$0xff] %v5664_v51  ;;  %v5676_v14 = vmax.f32 %v2011_v54, %v1932_v44  ;;  %v5678_v1 = vmax.f32 %v2012_v57, %v1933_v56  ;;  %v7700_v12 = vld [vmem:[#allocation88_spill] sm:$0xff]  ;;  %v7701_v4 = vld [vmem:[#allocation11_spill] sm:$0xff]  ;;  %7704 = vst [vmem:[#allocation3_spill] sm:$0xff] %v5685_v52  ;;  %v2017_v47 = vmax.f32 %v5342_v45, %v5687_v31 }
 0x2d1   :  { %7691 = vst [vmem:[#allocation95_spill] sm:$0xff] %v5666_v60  ;;  %v5672_v53 = vmax.f32 %v7695_v32, %v1933_v56  ;;  %7697 = vst [vmem:[#allocation96_spill] sm:$0xff] %v5674_v42  ;;  %v7702_v13 = vmax.f32 %v7700_v12, %v7701_v4  ;;  %v5689_v33 = vmax.f32 %v2013_v24, %v1934_v61  ;;  %v1937_v23 = vld [vmem:[#allocation2 + $0x22c] sm:$0xff]  ;;  %v1938_v54 = vld [vmem:[#allocation2 + $0x234] sm:$0xff] }
 0x2d2   :  { %7698 = vst [vmem:[#allocation99_spill] sm:$0xff] %v5676_v14  ;;  %7699 = vst [vmem:[#allocation97_spill] sm:$0xff] %v5678_v1  ;;  %v2016_v32 = vmax.f32 %v5337_v50, %v5685_v52  ;;  %v1939_v4 = vld [vmem:[#allocation2 + $0x23c] sm:$0xff]  ;;  %v2018_v44 = vmax.f32 %v5347_v59, %v1937_v23  ;;  %v2019_v24 = vmax.f32 %v5354_v35, %v1938_v54  ;;  %v1940_v26 = vld [vmem:[#allocation2 + $0x244] sm:$0xff] }
 0x2d3   :  { %7696 = vst [vmem:[#allocation98_spill] sm:$0xff] %v5672_v53  ;;  %v5683_v8 = vmax.f32 %v7702_v13, %v1934_v61  ;;  %7705 = vst [vmem:[#allocation94_spill] sm:$0xff] %v5687_v31  ;;  %v2020_v56 = vmax.f32 %v5359_v62, %v1939_v4  ;;  %v1941_v50 = vld [vmem:[#allocation2 + $0x24c] sm:$0xff]  ;;  %v1942_v61 = vld [vmem:[#allocation2 + $0x254] sm:$0xff]  ;;  %v5704_v13 = vmax.f32 %v2017_v47, %v1938_v54 }
 0x2d4   :  { %7706 = vst [vmem:[#allocation34_spill] sm:$0xff] %v5689_v33  ;;  %v5702_v12 = vmax.f32 %v2016_v32, %v1937_v23  ;;  %v7709_v45 = vld [vmem:[#allocation50_spill] sm:$0xff]  ;;  %v7710_v52 = vld [vmem:[#allocation51_spill] sm:$0xff]  ;;  %v1943_v33 = vld [vmem:[#allocation2 + $0x25c] sm:$0xff]  ;;  %v5710_v59 = vmax.f32 %v2018_v44, %v1939_v4  ;;  %v5712_v35 = vmax.f32 %v2019_v24, %v1940_v26 }
 0x2d5   :  { %7703 = vst [vmem:[#allocation100_spill] sm:$0xff] %v5683_v8  ;;  %7708 = vst [vmem:[#allocation103_spill] sm:$0xff] %v5704_v13  ;;  %v2021_v41 = vmax.f32 %v7709_v45, %v1940_v26  ;;  %v2022_v53 = vmax.f32 %v7710_v52, %v1941_v50  ;;  %v5708_v1 = vld [vmem:[#allocation2 + $0x264] sm:$0xff]  ;;  %v1947_v57 = vld [vmem:[#allocation2 + $0x27c] sm:$0xff]  ;;  %v5714_v62 = vmax.f32 %v2020_v56, %v1941_v50 }
 0x2d6   :  { %7707 = vst [vmem:[#allocation112_spill] sm:$0xff] %v5702_v12  ;;  %7711 = vst [vmem:[#allocation104_spill] sm:$0xff] %v5708_v1  ;;  %v7715_v31 = vld [vmem:[#allocation92_spill] sm:$0xff]  ;;  %v7716_v8 = vld [vmem:[#allocation37_spill] sm:$0xff] }
 0x2d7   :  { %7712 = vst [vmem:[#allocation8_spill] sm:$0xff] %v5710_v59  ;;  %7713 = vst [vmem:[#allocation12_spill] sm:$0xff] %v5712_v35  ;;  %v7717_v32 = vmax.f32 %v7715_v31, %v7716_v8  ;;  %v1948_v47 = vld [vmem:[#allocation2 + $0x284] sm:$0xff]  ;;  %v1949_v54 = vld [vmem:[#allocation2 + $0x28c] sm:$0xff]  ;;  %v5721_v13 = vmax.f32 %v2021_v41, %v1942_v61  ;;  %v5728_v4 = vmax.f32 %v2022_v53, %v1943_v33 }
 0x2d8   :  { %7714 = vst [vmem:[#allocation23_spill] sm:$0xff] %v5714_v62  ;;  %v1950_v45 = vld [vmem:[#allocation2 + $0x294] sm:$0xff]  ;;  %v7721_v12 = vld [vmem:[#allocation45_spill] sm:$0xff]  ;;  %v5730_v44 = vld [vmem:[#allocation2 + $0x26c] sm:$0xff] }
 0x2d9   :  { %v5719_v23 = vmax.f32 %v7717_v32, %v1942_v61  ;;  %7719 = vst [vmem:[#allocation105_spill] sm:$0xff] %v5721_v13  ;;  %v7720_v52 = vld [vmem:[#allocation48_spill] sm:$0xff]  ;;  %7724 = vst [vmem:[#allocation52_spill] sm:$0xff] %v5728_v4  ;;  %v7726_v56 = vld [vmem:[#allocation46_spill] sm:$0xff] }
 0x2da   :  { %v7722_v14 = vmax.f32 %v7720_v52, %v7721_v12  ;;  %7725 = vst [vmem:[#allocation101_spill] sm:$0xff] %v5730_v44  ;;  %v1946_v24 = vld [vmem:[#allocation2 + $0x274] sm:$0xff]  ;;  %v2025_v8 = vmax.f32 %v7726_v56, %v5708_v1  ;;  %v7728_v50 = vld [vmem:[#allocation57_spill] sm:$0xff]  ;;  %v7729_v32 = vld [vmem:[#allocation58_spill] sm:$0xff] }
 0x2db   :  { %7718 = vst [vmem:[#allocation4_spill] sm:$0xff] %v5719_v23  ;;  %v7727_v26 = vld [vmem:[#allocation56_spill] sm:$0xff]  ;;  %v2027_v61 = vmax.f32 %v7728_v50, %v1946_v24  ;;  %v2028_v12 = vmax.f32 %v7729_v32, %v1947_v57  ;;  %v2033_v52 = vld [vmem:[#allocation2 + $0x2a4] sm:$0xff]  ;;  %v7731_v4 = vld [vmem:[#allocation47_spill] sm:$0xff] }
 0x2dc   :  { %v5726_v42 = vmax.f32 %v7722_v14, %v1943_v33  ;;  %v2026_v41 = vmax.f32 %v7727_v26, %v5730_v44  ;;  %v2032_v14 = vld [vmem:[#allocation2 + $0x29c] sm:$0xff]  ;;  %v5740_v53 = vld [vmem:[#allocation2 + $0x25] sm:$0xff]  ;;  %v2029_v13 = vmax.f32 %v7731_v4, %v1948_v47  ;;  %v5747_v1 = vld [vmem:[#allocation2 + $0x2d] sm:$0xff]  ;;  %v5755_v23 = vmax.f32 %v2025_v8, %v1946_v24  ;;  %7799 = vst [vmem:[#allocation47_spill] sm:$0xff] %v5899_v11 }
 0x2dd   :  { %7730 = vst [vmem:[#allocation21_spill] sm:$0xff] %v5740_v53  ;;  %v7732_v56 = vld [vmem:[#allocation16_spill] sm:$0xff]  ;;  %7734 = vst [vmem:[#allocation25_spill] sm:$0xff] %v5747_v1  ;;  %v5753_v32 = vld [vmem:[#allocation2 + $0x45] sm:$0xff]  ;;  %v5759_v60 = vmax.f32 %v2027_v61, %v1948_v47  ;;  %v5761_v33 = vmax.f32 %v2028_v12, %v1949_v54 }
 0x2de   :  { %7723 = vst [vmem:[#allocation102_spill] sm:$0xff] %v5726_v42  ;;  %v2030_v62 = vmax.f32 %v7732_v56, %v1949_v54  ;;  %v7733_v35 = vld [vmem:[#allocation20_spill] sm:$0xff]  ;;  %7737 = vst [vmem:[#allocation17_spill] sm:$0xff] %v5753_v32  ;;  %v5757_v59 = vmax.f32 %v2026_v41, %v1947_v57  ;;  %v5763_v4 = vld [vmem:[#allocation2 + $0x4d] sm:$0xff]  ;;  %v5771_v42 = vmax.f32 %v2029_v13, %v1950_v45 }
 0x2df   :  { %v2031_v31 = vmax.f32 %v7733_v35, %v1950_v45  ;;  %v5749_v26 = vld [vmem:[#allocation2 + $0x35] sm:$0xff]  ;;  %v5751_v50 = vld [vmem:[#allocation2 + $0x3d] sm:$0xff]  ;;  %7738 = vst [vmem:[#allocation67_spill] sm:$0xff] %v5755_v23  ;;  %7740 = vst [vmem:[#allocation43_spill] sm:$0xff] %v5759_v60  ;;  %v7766_v13 = vmax.f32 %v5439_v36, %v5432_v2 }
 0x2e0   :  { %7735 = vst [vmem:[#allocation27_spill] sm:$0xff] %v5749_v26  ;;  %7736 = vst [vmem:[#allocation63_spill] sm:$0xff] %v5751_v50  ;;  %v5765_v56 = vld [vmem:[#allocation2 + $0x55] sm:$0xff]  ;;  %v5767_v35 = vld [vmem:[#allocation2 + $0x5d] sm:$0xff]  ;;  %v5773_v51 = vmax.f32 %v2030_v62, %v2032_v14 }
 0x2e1   :  { %7739 = vst [vmem:[#allocation106_spill] sm:$0xff] %v5757_v59  ;;  %7741 = vst [vmem:[#allocation42_spill] sm:$0xff] %v5761_v33  ;;  %v5769_v44 = vld [vmem:[#allocation2 + $0x65] sm:$0xff]  ;;  %v5775_v24 = vmax.f32 %v2031_v31, %v2033_v52  ;;  %v2124_v8 = vld [vmem:[#allocation2 + $0x6d] sm:$0xff] }
 0x2e2   :  { %7742 = vst [vmem:[#allocation35_spill] sm:$0xff] %v5767_v35  ;;  %7743 = vst [vmem:[#allocation71_spill] sm:$0xff] %v5769_v44  ;;  %v2125_v54 = vld [vmem:[#allocation2 + $0x75] sm:$0xff]  ;;  %v5779_v41 = vld [vmem:[#allocation2 + $0x7d] sm:$0xff] }
 0x2e3   :  { %7744 = vst [vmem:[#allocation32_spill] sm:$0xff] %v5771_v42  ;;  %7745 = vst [vmem:[#allocation28_spill] sm:$0xff] %v5773_v51  ;;  %v5781_v61 = vld [vmem:[#allocation2 + $0x85] sm:$0xff]  ;;  %v5791_v52 = vld [vmem:[#allocation2 + $0x8d] sm:$0xff]  ;;  %v5819_v12 = vmax.f32 %v7766_v13, %v2125_v54 }
 0x2e4   :  { %7746 = vst [vmem:[#allocation33_spill] sm:$0xff] %v5775_v24  ;;  %7748 = vst [vmem:[#allocation22_spill] sm:$0xff] %v5779_v41  ;;  %v5793_v47 = vld [vmem:[#allocation2 + $0x95] sm:$0xff]  ;;  %v5795_v53 = vld [vmem:[#allocation2 + $0x9d] sm:$0xff] }
 0x2e5   :  { %7749 = vst [vmem:[#allocation13_spill] sm:$0xff] %v5781_v61  ;;  %7753 = vst [vmem:[#allocation6_spill] sm:$0xff] %v5791_v52  ;;  %v5797_v57 = vld [vmem:[#allocation2 + $0xa5] sm:$0xff]  ;;  %v7757_v24 = vld [vmem:[#allocation68_spill] sm:$0xff] }
 0x2e6   :  { %7754 = vst [vmem:[#allocation9_spill] sm:$0xff] %v5793_v47  ;;  %7755 = vst [vmem:[#allocation107_spill] sm:$0xff] %v5795_v53  ;;  %v7758_v1 = vld [vmem:[#allocation64_spill] sm:$0xff]  ;;  %v7759_v26 = vld [vmem:[#allocation15_spill] sm:$0xff] }
 0x2e7   :  { %7756 = vst [vmem:[#allocation18_spill] sm:$0xff] %v5797_v57  ;;  %v5807_v32 = vld [vmem:[#allocation2 + $0xad] sm:$0xff]  ;;  %v2133_v31 = vld [vmem:[#allocation2 + $0xb5] sm:$0xff]  ;;  %v2134_v62 = vld [vmem:[#allocation2 + $0xbd] sm:$0xff] }
 0x2e8   :  { %7761 = vst [vmem:[#allocation36_spill] sm:$0xff] %v5807_v32  ;;  %v5809_v33 = vld [vmem:[#allocation2 + $0xc5] sm:$0xff]  ;;  %v7764_v51 = vld [vmem:[#allocation59_spill] sm:$0xff]  ;;  %v5829_v35 = vld [vmem:[#allocation2 + $0xdd] sm:$0xff] }
 0x2e9   :  { %7762 = vst [vmem:[#allocation74_spill] sm:$0xff] %v5809_v33  ;;  %v7765_v42 = vmax.f32 %v7763_v43, %v7764_v51  ;;  %v5825_v44 = vld [vmem:[#allocation2 + $0xcd] sm:$0xff]  ;;  %v5827_v50 = vld [vmem:[#allocation2 + $0xd5] sm:$0xff]  ;;  %7769 = vst [vmem:[#allocation11_spill] sm:$0xff] %v5829_v35 }
 0x2ea   :  { %7767 = vst [vmem:[#allocation44_spill] sm:$0xff] %v5825_v44  ;;  %7768 = vst [vmem:[#allocation88_spill] sm:$0xff] %v5827_v50  ;;  %v5831_v43 = vld [vmem:[#allocation2 + $0xe5] sm:$0xff]  ;;  %v5841_v13 = vld [vmem:[#allocation2 + $0xed] sm:$0xff] }
 0x2eb   :  { %v5814_v60 = vmax.f32 %v7765_v42, %v2124_v8  ;;  %7770 = vst [vmem:[#allocation50_spill] sm:$0xff] %v5831_v43  ;;  %v7771_v2 = vld [vmem:[#allocation69_spill] sm:$0xff]  ;;  %v5843_v14 = vld [vmem:[#allocation2 + $0xf5] sm:$0xff]  ;;  %v5859_v8 = vld [vmem:[#allocation2 + $0x10d] sm:$0xff] }
 0x2ec   :  { %7773 = vst [vmem:[#allocation51_spill] sm:$0xff] %v5843_v14  ;;  %v2142_v45 = vld [vmem:[#allocation2 + $0xfd] sm:$0xff]  ;;  %v2143_v61 = vld [vmem:[#allocation2 + $0x105] sm:$0xff]  ;;  %v5867_v32 = vld [vmem:[#allocation2 + $0x135] sm:$0xff] }
 0x2ed   :  { %v7775_v51 = vld [vmem:[#allocation60_spill] sm:$0xff]  ;;  %v7778_v36 = vld [vmem:[#allocation61_spill] sm:$0xff]  ;;  %7784 = vst [vmem:[#allocation46_spill] sm:$0xff] %v5867_v32  ;;  %v2152_v54 = vld [vmem:[#allocation2 + $0x14d] sm:$0xff] }
 0x2ee   :  { %v7776_v52 = vmax.f32 %v5471_v40, %v7775_v51  ;;  %v7779_v42 = vmax.f32 %v5476_v48, %v7778_v36  ;;  %v5863_v47 = vld [vmem:[#allocation2 + $0x11d] sm:$0xff]  ;;  %v5865_v41 = vld [vmem:[#allocation2 + $0x125] sm:$0xff]  ;;  %v7791_v40 = vld [vmem:[#allocation31_spill] sm:$0xff] }
 0x2ef   :  { %7782 = vst [vmem:[#allocation48_spill] sm:$0xff] %v5863_v47  ;;  %7783 = vst [vmem:[#allocation45_spill] sm:$0xff] %v5865_v41  ;;  %v5879_v57 = vld [vmem:[#allocation2 + $0x13d] sm:$0xff]  ;;  %v2151_v33 = vld [vmem:[#allocation2 + $0x145] sm:$0xff] }
 0x2f0   :  { %v5850_v27 = vmax.f32 %v7776_v52, %v2133_v31  ;;  %v5855_v53 = vmax.f32 %v7779_v42, %v2134_v62  ;;  %v5877_v42 = vld [vmem:[#allocation2 + $0x12d] sm:$0xff]  ;;  %v7792_v48 = vld [vmem:[#allocation76_spill] sm:$0xff]  ;;  %v7794_v52 = vld [vmem:[#allocation65_spill] sm:$0xff] }
 0x2f1   :  { %7788 = vst [vmem:[#allocation56_spill] sm:$0xff] %v5877_v42  ;;  %v7790_v31 = vld [vmem:[#allocation70_spill] sm:$0xff]  ;;  %v7793_v50 = vmax.f32 %v7791_v40, %v7792_v48  ;;  %v7795_v35 = vld [vmem:[#allocation77_spill] sm:$0xff]  ;;  %v5895_v51 = vld [vmem:[#allocation2 + $0x155] sm:$0xff] }
 0x2f2   :  { %7777 = vst [vmem:[#allocation92_spill] sm:$0xff] %v5850_v27  ;;  %7780 = vst [vmem:[#allocation37_spill] sm:$0xff] %v5855_v53  ;;  %v7789_v53 = vld [vmem:[#allocation79_spill] sm:$0xff]  ;;  %v7796_v36 = vmax.f32 %v7794_v52, %v7795_v35  ;;  %v5897_v62 = vld [vmem:[#allocation2 + $0x15d] sm:$0xff]  ;;  %v7808_v52 = vmax.f32 %v5556_v28, %v5572_v58  ;;  %v7819_v58 = vmax.f32 %v5601_v63, %v5605_v37 }
 0x2f3   :  { %v5888_v49 = vmax.f32 %v7793_v50, %v2142_v45  ;;  %7797 = vst [vmem:[#allocation57_spill] sm:$0xff] %v5895_v51  ;;  %7798 = vst [vmem:[#allocation58_spill] sm:$0xff] %v5897_v62  ;;  %v7800_v44 = vld [vmem:[#allocation81_spill] sm:$0xff]  ;;  %v5911_v45 = vld [vmem:[#allocation2 + $0x175] sm:$0xff] }
 0x2f4   :  { %v5893_v43 = vmax.f32 %v7796_v36, %v2143_v61  ;;  %v5909_v61 = vld [vmem:[#allocation2 + $0x16d] sm:$0xff]  ;;  %v5913_v40 = vld [vmem:[#allocation2 + $0x17d] sm:$0xff]  ;;  %v5915_v48 = vld [vmem:[#allocation2 + $0x185] sm:$0xff]  ;;  %v5935_v42 = vmax.f32 %v7808_v52, %v2152_v54 }
 0x2f5   :  { %7801 = vst [vmem:[#allocation16_spill] sm:$0xff] %v5913_v40  ;;  %7802 = vst [vmem:[#allocation20_spill] sm:$0xff] %v5915_v48  ;;  %v7803_v14 = vld [vmem:[#allocation39_spill] sm:$0xff]  ;;  %v5928_v47 = vld [vmem:[#allocation2 + $0x19d] sm:$0xff] }
 0x2f6   :  { %v7804_v35 = vmax.f32 %v5547_v55, %v7803_v14  ;;  %v2160_v41 = vld [vmem:[#allocation2 + $0x18d] sm:$0xff]  ;;  %v2161_v25 = vld [vmem:[#allocation2 + $0x195] sm:$0xff]  ;;  %7806 = vst [vmem:[#allocation64_spill] sm:$0xff] %v5928_v47  ;;  %v5930_v38 = vld [vmem:[#allocation2 + $0x1a5] sm:$0xff] }
 0x2f7   :  { %7807 = vst [vmem:[#allocation15_spill] sm:$0xff] %v5930_v38  ;;  %v7809_v36 = vld [vmem:[#allocation87_spill] sm:$0xff]  ;;  %v2170_v32 = vld [vmem:[#allocation2 + $0x1dd] sm:$0xff]  ;;  %v5961_v11 = vld [vmem:[#allocation2 + $0x1e5] sm:$0xff]  ;;  %v5971_v28 = vmax.f32 %v7819_v58, %v2161_v25 }
 0x2f8   :  { %v5926_v27 = vmax.f32 %v7804_v35, %v2151_v33  ;;  %v5943_v33 = vld [vmem:[#allocation2 + $0x1ad] sm:$0xff]  ;;  %v5945_v14 = vld [vmem:[#allocation2 + $0x1b5] sm:$0xff]  ;;  %v5947_v35 = vld [vmem:[#allocation2 + $0x1bd] sm:$0xff]  ;;  %7815 = vst [vmem:[#allocation79_spill] sm:$0xff] %v5961_v11 }
 0x2f9   :  { %7810 = vst [vmem:[#allocation108_spill] sm:$0xff] %v5943_v33  ;;  %7811 = vst [vmem:[#allocation59_spill] sm:$0xff] %v5945_v14  ;;  %v5959_v55 = vld [vmem:[#allocation2 + $0x1cd] sm:$0xff]  ;;  %v2169_v50 = vld [vmem:[#allocation2 + $0x1d5] sm:$0xff] }
 0x2fa   :  { %7805 = vst [vmem:[#allocation68_spill] sm:$0xff] %v5926_v27  ;;  %7812 = vst [vmem:[#allocation69_spill] sm:$0xff] %v5947_v35  ;;  %v5949_v27 = vld [vmem:[#allocation2 + $0x1c5] sm:$0xff]  ;;  %v7816_v0 = vld [vmem:[#allocation40_spill] sm:$0xff] }
 0x2fb   :  { %7813 = vst [vmem:[#allocation60_spill] sm:$0xff] %v5949_v27  ;;  %7814 = vst [vmem:[#allocation61_spill] sm:$0xff] %v5959_v55  ;;  %v7817_v62 = vld [vmem:[#allocation41_spill] sm:$0xff]  ;;  %v5977_v48 = vld [vmem:[#allocation2 + $0x1ed] sm:$0xff] }
 0x2fc   :  { %v7818_v19 = vmax.f32 %v7816_v0, %v7817_v62  ;;  %7820 = vst [vmem:[#allocation70_spill] sm:$0xff] %v5971_v28  ;;  %7821 = vst [vmem:[#allocation31_spill] sm:$0xff] %v5977_v48  ;;  %v5979_v3 = vld [vmem:[#allocation2 + $0x1f5] sm:$0xff]  ;;  %v5981_v40 = vld [vmem:[#allocation2 + $0x1fd] sm:$0xff] }
 0x2fd   :  { %7822 = vst [vmem:[#allocation76_spill] sm:$0xff] %v5979_v3  ;;  %7823 = vst [vmem:[#allocation65_spill] sm:$0xff] %v5981_v40  ;;  %v5983_v0 = vld [vmem:[#allocation2 + $0x205] sm:$0xff]  ;;  %v5995_v62 = vld [vmem:[#allocation2 + $0x215] sm:$0xff] }
 0x2fe   :  { %v5966_v51 = vmax.f32 %v7818_v19, %v2160_v41  ;;  %7824 = vst [vmem:[#allocation77_spill] sm:$0xff] %v5983_v0  ;;  %v5993_v41 = vld [vmem:[#allocation2 + $0x20d] sm:$0xff]  ;;  %7826 = vst [vmem:[#allocation39_spill] sm:$0xff] %v5995_v62  ;;  %v2178_v58 = vld [vmem:[#allocation2 + $0x21d] sm:$0xff] }
 0x2ff   :  { %7825 = vst [vmem:[#allocation81_spill] sm:$0xff] %v5993_v41  ;;  %v2179_v52 = vld [vmem:[#allocation2 + $0x225] sm:$0xff]  ;;  %v7830_v25 = vld [vmem:[#allocation91_spill] sm:$0xff]  ;;  %v6015_v15 = vld [vmem:[#allocation2 + $0x23d] sm:$0xff] }
 0x300   :  { %v7827_v19 = vld [vmem:[#allocation85_spill] sm:$0xff]  ;;  %v7831_v14 = vld [vmem:[#allocation86_spill] sm:$0xff]  ;;  %v6013_v39 = vld [vmem:[#allocation2 + $0x235] sm:$0xff]  ;;  %7837 = vst [vmem:[#allocation91_spill] sm:$0xff] %v6015_v15 }
 0x301   :  { %v7828_v33 = vmax.f32 %v5633_v30, %v7827_v19  ;;  %v7832_v63 = vmax.f32 %v7830_v25, %v7831_v14  ;;  %v6011_v20 = vld [vmem:[#allocation2 + $0x22d] sm:$0xff]  ;;  %7836 = vst [vmem:[#allocation85_spill] sm:$0xff] %v6013_v39  ;;  %v6017_v54 = vld [vmem:[#allocation2 + $0x245] sm:$0xff]  ;;  %v6029_v11 = vld [vmem:[#allocation2 + $0x255] sm:$0xff] }
 0x302   :  { %7835 = vst [vmem:[#allocation41_spill] sm:$0xff] %v6011_v20  ;;  %7838 = vst [vmem:[#allocation86_spill] sm:$0xff] %v6017_v54  ;;  %v6027_v27 = vld [vmem:[#allocation2 + $0x24d] sm:$0xff]  ;;  %v6031_v37 = vld [vmem:[#allocation2 + $0x25d] sm:$0xff] }
 0x303   :  { %v6002_v18 = vmax.f32 %v7828_v33, %v2169_v50  ;;  %v6007_v35 = vmax.f32 %v7832_v63, %v2170_v32  ;;  %7843 = vst [vmem:[#allocation113_spill] sm:$0xff] %v6027_v27  ;;  %7844 = vst [vmem:[#allocation114_spill] sm:$0xff] %v6029_v11  ;;  %v7849_v33 = vld [vmem:[#allocation98_spill] sm:$0xff]  ;;  %v7850_v14 = vld [vmem:[#allocation3_spill] sm:$0xff] }
 0x304   :  { %7845 = vst [vmem:[#allocation115_spill] sm:$0xff] %v6031_v37  ;;  %v7851_v40 = vmax.f32 %v7849_v33, %v7850_v14  ;;  %v7853_v63 = vld [vmem:[#allocation100_spill] sm:$0xff]  ;;  %v7854_v0 = vld [vmem:[#allocation94_spill] sm:$0xff]  ;;  %v7875_v41 = vld [vmem:[#allocation101_spill] sm:$0xff] }
 0x305   :  { %7829 = vst [vmem:[#allocation87_spill] sm:$0xff] %v6002_v18  ;;  %7833 = vst [vmem:[#allocation40_spill] sm:$0xff] %v6007_v35  ;;  %v2187_v35 = vld [vmem:[#allocation2 + $0x265] sm:$0xff]  ;;  %v6033_v18 = vld [vmem:[#allocation2 + $0x275] sm:$0xff]  ;;  %v7855_v25 = vmax.f32 %v7853_v63, %v7854_v0 }
 0x306   :  { %7846 = vst [vmem:[#allocation116_spill] sm:$0xff] %v6033_v18  ;;  %v6042_v32 = vmax.f32 %v7851_v40, %v2178_v58  ;;  %v2188_v55 = vld [vmem:[#allocation2 + $0x26d] sm:$0xff]  ;;  %v6049_v9 = vld [vmem:[#allocation2 + $0x27d] sm:$0xff]  ;;  %v6051_v38 = vld [vmem:[#allocation2 + $0x285] sm:$0xff] }
 0x307   :  { %v6047_v30 = vmax.f32 %v7855_v25, %v2179_v52  ;;  %7857 = vst [vmem:[#allocation100_spill] sm:$0xff] %v6049_v9  ;;  %7858 = vst [vmem:[#allocation94_spill] sm:$0xff] %v6051_v38  ;;  %v6053_v7 = vld [vmem:[#allocation2 + $0x28d] sm:$0xff]  ;;  %v6063_v14 = vld [vmem:[#allocation2 + $0x295] sm:$0xff] }
 0x308   :  { %7852 = vst [vmem:[#allocation98_spill] sm:$0xff] %v6042_v32  ;;  %7859 = vst [vmem:[#allocation117_spill] sm:$0xff] %v6053_v7  ;;  %v6065_v25 = vld [vmem:[#allocation2 + $0x29d] sm:$0xff]  ;;  %v6067_v63 = vld [vmem:[#allocation2 + $0x2a5] sm:$0xff] }
 0x309   :  { %7856 = vst [vmem:[#allocation3_spill] sm:$0xff] %v6047_v30  ;;  %7864 = vst [vmem:[#allocation118_spill] sm:$0xff] %v6063_v14  ;;  %v7870_v62 = vld [vmem:[#allocation4_spill] sm:$0xff]  ;;  %v2277_v52 = vld [vmem:[#allocation2 + $0x26] sm:$0xff] }
 0x30a   :  { %7865 = vst [vmem:[#allocation119_spill] sm:$0xff] %v6065_v25  ;;  %7866 = vst [vmem:[#allocation120_spill] sm:$0xff] %v6067_v63  ;;  %v7871_v58 = vld [vmem:[#allocation104_spill] sm:$0xff]  ;;  %v2278_v54 = vld [vmem:[#allocation2 + $0x2e] sm:$0xff] }
 0x30b   :  { %v7872_v15 = vmax.f32 %v7870_v62, %v7871_v58  ;;  %v2279_v0 = vld [vmem:[#allocation2 + $0x36] sm:$0xff]  ;;  %v2280_v48 = vld [vmem:[#allocation2 + $0x3e] sm:$0xff]  ;;  %v7874_v19 = vld [vmem:[#allocation102_spill] sm:$0xff] }
 0x30c   :  { %v7876_v50 = vmax.f32 %v7874_v19, %v7875_v41  ;;  %v2283_v58 = vld [vmem:[#allocation2 + $0x56] sm:$0xff]  ;;  %v2285_v39 = vld [vmem:[#allocation2 + $0x66] sm:$0xff]  ;;  %v2286_v9 = vld [vmem:[#allocation2 + $0x6e] sm:$0xff] }
 0x30d   :  { %v6078_v40 = vmax.f32 %v7872_v15, %v2187_v35  ;;  %v2281_v15 = vld [vmem:[#allocation2 + $0x46] sm:$0xff]  ;;  %v2282_v35 = vld [vmem:[#allocation2 + $0x4e] sm:$0xff]  ;;  %v2287_v59 = vld [vmem:[#allocation2 + $0x76] sm:$0xff] }
 0x30e   :  { %v6083_v47 = vmax.f32 %v7876_v50, %v2188_v55  ;;  %v2288_v62 = vld [vmem:[#allocation2 + $0x7e] sm:$0xff]  ;;  %v7883_v38 = vld [vmem:[#allocation14_spill] sm:$0xff]  ;;  %v7889_v37 = vld [vmem:[#allocation19_spill] sm:$0xff] }
 0x30f   :  { %7873 = vst [vmem:[#allocation4_spill] sm:$0xff] %v6078_v40  ;;  %v2284_v40 = vld [vmem:[#allocation2 + $0x5e] sm:$0xff]  ;;  %v7886_v11 = vld [vmem:[#allocation62_spill] sm:$0xff]  ;;  %v7890_v55 = vld [vmem:[#allocation27_spill] sm:$0xff] }
 0x310   :  { %7877 = vst [vmem:[#allocation104_spill] sm:$0xff] %v6083_v47  ;;  %v7884_v32 = vld [vmem:[#allocation21_spill] sm:$0xff]  ;;  %v7891_v14 = vmax.f32 %v7889_v37, %v7890_v55  ;;  %v7893_v25 = vld [vmem:[#allocation63_spill] sm:$0xff]  ;;  %v7895_v17 = vld [vmem:[#allocation54_spill] sm:$0xff] }
 0x311   :  { %v7885_v23 = vmax.f32 %v7883_v38, %v7884_v32  ;;  %v7887_v3 = vld [vmem:[#allocation25_spill] sm:$0xff]  ;;  %v2290_v20 = vld [vmem:[#allocation2 + $0x8e] sm:$0xff]  ;;  %v2291_v27 = vld [vmem:[#allocation2 + $0x96] sm:$0xff] }
 0x312   :  { %v7888_v33 = vmax.f32 %v7886_v11, %v7887_v3  ;;  %v2360_v41 = vmax.f32 %v7891_v14, %v2279_v0  ;;  %v7892_v19 = vld [vmem:[#allocation53_spill] sm:$0xff]  ;;  %v7898_v11 = vmax.f32 %v7757_v24, %v5763_v4  ;;  %v7900_v32 = vld [vmem:[#allocation35_spill] sm:$0xff]  ;;  %v2368_v4 = vmax.f32 %v5819_v12, %v2287_v59  ;;  %v7905_v24 = vld [vmem:[#allocation22_spill] sm:$0xff] }
 0x313   :  { %v2358_v47 = vmax.f32 %v7885_v23, %v2277_v52  ;;  %v7894_v50 = vmax.f32 %v7892_v19, %v7893_v25  ;;  %v2289_v63 = vld [vmem:[#allocation2 + $0x86] sm:$0xff]  ;;  %v2292_v30 = vld [vmem:[#allocation2 + $0x9e] sm:$0xff]  ;;  %v2294_v52 = vld [vmem:[#allocation2 + $0xae] sm:$0xff] }
 0x314   :  { %v2359_v7 = vmax.f32 %v7888_v33, %v2278_v54  ;;  %v7896_v28 = vld [vmem:[#allocation17_spill] sm:$0xff]  ;;  %v2363_v3 = vmax.f32 %v7898_v11, %v2282_v35  ;;  %v7899_v54 = vmax.f32 %v7758_v1, %v5765_v56  ;;  %v7901_v33 = vmax.f32 %v7759_v26, %v7900_v32  ;;  %v2295_v14 = vld [vmem:[#allocation2 + $0xb6] sm:$0xff]  ;;  %2441 = vst [vmem:[%s6581_s4 + $0x10] sm:$0xff] %v2360_v41  ;;  %v7911_v12 = vld [vmem:[#allocation6_spill] sm:$0xff] }
 0x315   :  { %v2361_v18 = vmax.f32 %v7894_v50, %v2280_v48  ;;  %v7897_v38 = vmax.f32 %v7895_v17, %v7896_v28  ;;  %v2293_v0 = vld [vmem:[#allocation2 + $0xa6] sm:$0xff]  ;;  %v2296_v25 = vld [vmem:[#allocation2 + $0xbe] sm:$0xff]  ;;  %v7902_v55 = vld [vmem:[#allocation55_spill] sm:$0xff]  ;;  %v7906_v1 = vmax.f32 %v5453_v29, %v7905_v24  ;;  %2439 = vst [vmem:[%s6581_s4] sm:$0xff] %v2358_v47 }
 0x316   :  { %v2364_v37 = vmax.f32 %v7899_v54, %v2283_v58  ;;  %v2365_v48 = vmax.f32 %v7901_v33, %v2284_v40  ;;  %v7903_v50 = vld [vmem:[#allocation71_spill] sm:$0xff]  ;;  %v2297_v35 = vld [vmem:[#allocation2 + $0xc6] sm:$0xff]  ;;  %v2300_v40 = vld [vmem:[#allocation2 + $0xde] sm:$0xff]  ;;  %2440 = vst [vmem:[%s6581_s4 + $0x8] sm:$0xff] %v2359_v7 }
 0x317   :  { %v2362_v23 = vmax.f32 %v7897_v38, %v2281_v15  ;;  %v7904_v17 = vmax.f32 %v7902_v55, %v7903_v50  ;;  %v2367_v15 = vmax.f32 %v5814_v60, %v2286_v9  ;;  %v2369_v56 = vmax.f32 %v7906_v1, %v2288_v62  ;;  %v2298_v58 = vld [vmem:[#allocation2 + $0xce] sm:$0xff]  ;;  %v2299_v26 = vld [vmem:[#allocation2 + $0xd6] sm:$0xff]  ;;  %2442 = vst [vmem:[%s6581_s4 + $0x18] sm:$0xff] %v2361_v18  ;;  %v7910_v59 = vld [vmem:[#allocation109_spill] sm:$0xff] }
 0x318   :  { %v7907_v29 = vld [vmem:[#allocation10_spill] sm:$0xff]  ;;  %v7912_v62 = vmax.f32 %v7910_v59, %v7911_v12  ;;  %v7913_v19 = vld [vmem:[#allocation9_spill] sm:$0xff]  ;;  %v7916_v54 = vld [vmem:[#allocation107_spill] sm:$0xff]  ;;  %2444 = vst [vmem:[%s6581_s4 + $0x28] sm:$0xff] %v2363_v3 }
 0x319   :  { %v2366_v28 = vmax.f32 %v7904_v17, %v2285_v39  ;;  %v7908_v39 = vld [vmem:[#allocation13_spill] sm:$0xff]  ;;  %v7914_v38 = vmax.f32 %v7771_v2, %v7913_v19  ;;  %v2302_v55 = vld [vmem:[#allocation2 + $0xee] sm:$0xff]  ;;  %v2303_v50 = vld [vmem:[#allocation2 + $0xf6] sm:$0xff]  ;;  %2443 = vst [vmem:[%s6581_s4 + $0x20] sm:$0xff] %v2362_v23 }
 0x31a   :  { %v7909_v9 = vmax.f32 %v7907_v29, %v7908_v39  ;;  %v2371_v47 = vmax.f32 %v7912_v62, %v2290_v20  ;;  %v7915_v11 = vld [vmem:[#allocation29_spill] sm:$0xff]  ;;  %2445 = vst [vmem:[%s6581_s4 + $0x30] sm:$0xff] %v2364_v37  ;;  %2446 = vst [vmem:[%s6581_s4 + $0x38] sm:$0xff] %v2365_v48  ;;  %v7919_v20 = vld [vmem:[#allocation18_spill] sm:$0xff] }
 0x31b   :  { %v2372_v7 = vmax.f32 %v7914_v38, %v2291_v27  ;;  %v7917_v32 = vmax.f32 %v7915_v11, %v7916_v54  ;;  %v2301_v33 = vld [vmem:[#allocation2 + $0xe6] sm:$0xff]  ;;  %v6155_v18 = vld [vmem:[#allocation2 + $0xfe] sm:$0xff]  ;;  %v2306_v59 = vld [vmem:[#allocation2 + $0x10e] sm:$0xff]  ;;  %2447 = vst [vmem:[%s6581_s4 + $0x40] sm:$0xff] %v2366_v28 }
 0x31c   :  { %v2370_v60 = vmax.f32 %v7909_v9, %v2289_v63  ;;  %v7918_v27 = vld [vmem:[#allocation72_spill] sm:$0xff]  ;;  %v7921_v63 = vld [vmem:[#allocation73_spill] sm:$0xff]  ;;  %2448 = vst [vmem:[%s6581_s4 + $0x48] sm:$0xff] %v2367_v15  ;;  %2449 = vst [vmem:[%s6581_s4 + $0x50] sm:$0xff] %v2368_v4 }
 0x31d   :  { %v2373_v41 = vmax.f32 %v7917_v32, %v2292_v30  ;;  %v7920_v2 = vmax.f32 %v7918_v27, %v7919_v20  ;;  %v7922_v17 = vld [vmem:[#allocation36_spill] sm:$0xff]  ;;  %v7925_v39 = vld [vmem:[#allocation37_spill] sm:$0xff]  ;;  %2450 = vst [vmem:[%s6581_s4 + $0x58] sm:$0xff] %v2369_v56  ;;  %v7926_v48 = vld [vmem:[#allocation26_spill] sm:$0xff] }
 0x31e   :  { %v7923_v24 = vmax.f32 %v7921_v63, %v7922_v17  ;;  %v7924_v1 = vld [vmem:[#allocation92_spill] sm:$0xff]  ;;  %v2377_v3 = vmax.f32 %v7925_v39, %v2296_v25  ;;  %v6177_v9 = vld [vmem:[#allocation2 + $0x106] sm:$0xff]  ;;  %v7935_v32 = vld [vmem:[#allocation75_spill] sm:$0xff]  ;;  %2451 = vst [vmem:[%s6581_s4 + $0x60] sm:$0xff] %v2370_v60 }
 0x31f   :  { %v2374_v30 = vmax.f32 %v7920_v2, %v2293_v0  ;;  %v2376_v29 = vmax.f32 %v7924_v1, %v2295_v14  ;;  %v2307_v37 = vld [vmem:[#allocation2 + $0x116] sm:$0xff]  ;;  %v2308_v12 = vld [vmem:[#allocation2 + $0x11e] sm:$0xff]  ;;  %v7927_v0 = vld [vmem:[#allocation74_spill] sm:$0xff]  ;;  %2452 = vst [vmem:[%s6581_s4 + $0x68] sm:$0xff] %v2371_v47  ;;  %v7941_v1 = vmax.f32 %v7789_v53, %v5841_v13  ;;  %v7944_v53 = vmax.f32 %v5534_v21, %v5859_v8 }
 0x320   :  { %v2375_v23 = vmax.f32 %v7923_v24, %v2294_v52  ;;  %v7928_v52 = vmax.f32 %v7926_v48, %v7927_v0  ;;  %v7929_v25 = vld [vmem:[#allocation24_spill] sm:$0xff]  ;;  %v7932_v38 = vld [vmem:[#allocation30_spill] sm:$0xff]  ;;  %v7936_v27 = vld [vmem:[#allocation11_spill] sm:$0xff]  ;;  %2453 = vst [vmem:[%s6581_s4 + $0x70] sm:$0xff] %v2372_v7  ;;  %v2385_v0 = vmax.f32 %v5888_v49, %v6155_v18  ;;  %v2386_v49 = vmax.f32 %v5893_v43, %v6177_v9 }
 0x321   :  { %v7930_v62 = vld [vmem:[#allocation44_spill] sm:$0xff]  ;;  %v7937_v20 = vmax.f32 %v7935_v32, %v7936_v27  ;;  %v2309_v2 = vld [vmem:[#allocation2 + $0x126] sm:$0xff]  ;;  %v2310_v63 = vld [vmem:[#allocation2 + $0x12e] sm:$0xff]  ;;  %2454 = vst [vmem:[%s6581_s4 + $0x78] sm:$0xff] %v2373_v41  ;;  %v2383_v60 = vmax.f32 %v7941_v1, %v2302_v55  ;;  %v2387_v13 = vmax.f32 %v7944_v53, %v2306_v59  ;;  %v7967_v1 = vmax.f32 %v5596_v22, %v5911_v45 }
 0x322   :  { %v2378_v14 = vmax.f32 %v7928_v52, %v2297_v35  ;;  %v7931_v19 = vmax.f32 %v7929_v25, %v7930_v62  ;;  %v7933_v11 = vld [vmem:[#allocation88_spill] sm:$0xff]  ;;  %v6203_v24 = vld [vmem:[#allocation2 + $0x146] sm:$0xff]  ;;  %v7942_v39 = vld [vmem:[#allocation51_spill] sm:$0xff]  ;;  %2455 = vst [vmem:[%s6581_s4 + $0x80] sm:$0xff] %v2374_v30 }
 0x323   :  { %v7934_v54 = vmax.f32 %v7932_v38, %v7933_v11  ;;  %v2381_v4 = vmax.f32 %v7937_v20, %v2300_v40  ;;  %v2311_v17 = vld [vmem:[#allocation2 + $0x136] sm:$0xff]  ;;  %v2312_v56 = vld [vmem:[#allocation2 + $0x13e] sm:$0xff]  ;;  %v7938_v35 = vld [vmem:[#allocation66_spill] sm:$0xff]  ;;  %v7943_v48 = vmax.f32 %v7790_v31, %v7942_v39  ;;  %2456 = vst [vmem:[%s6581_s4 + $0x88] sm:$0xff] %v2375_v23  ;;  %v7945_v31 = vmax.f32 %v7800_v44, %v5861_v5 }
 0x324   :  { %v2379_v28 = vmax.f32 %v7931_v19, %v2298_v58  ;;  %v7939_v58 = vld [vmem:[#allocation50_spill] sm:$0xff]  ;;  %v2315_v52 = vld [vmem:[#allocation2 + $0x156] sm:$0xff]  ;;  %v2316_v25 = vld [vmem:[#allocation2 + $0x15e] sm:$0xff]  ;;  %2457 = vst [vmem:[%s6581_s4 + $0x90] sm:$0xff] %v2376_v29 }
 0x325   :  { %v2380_v15 = vmax.f32 %v7934_v54, %v2299_v26  ;;  %v7940_v26 = vmax.f32 %v7938_v35, %v7939_v58  ;;  %v2384_v47 = vmax.f32 %v7943_v48, %v2303_v50  ;;  %v6228_v7 = vld [vmem:[#allocation2 + $0x14e] sm:$0xff]  ;;  %2458 = vst [vmem:[%s6581_s4 + $0x98] sm:$0xff] %v2377_v3  ;;  %v2388_v41 = vmax.f32 %v7945_v31, %v2307_v37  ;;  %v7947_v55 = vld [vmem:[#allocation48_spill] sm:$0xff]  ;;  %v2317_v30 = vld [vmem:[#allocation2 + $0x166] sm:$0xff] }
 0x326   :  { %v2318_v23 = vld [vmem:[#allocation2 + $0x16e] sm:$0xff]  ;;  %v2319_v29 = vld [vmem:[#allocation2 + $0x176] sm:$0xff]  ;;  %v2320_v62 = vld [vmem:[#allocation2 + $0x17e] sm:$0xff]  ;;  %2459 = vst [vmem:[%s6581_s4 + $0xa0] sm:$0xff] %v2378_v14  ;;  %v7956_v14 = vmax.f32 %v5561_v10, %v5879_v57  ;;  %v2395_v10 = vmax.f32 %v5935_v42, %v6228_v7 }
 0x327   :  { %v2382_v40 = vmax.f32 %v7940_v26, %v2301_v33  ;;  %v7946_v33 = vld [vmem:[#allocation38_spill] sm:$0xff]  ;;  %2460 = vst [vmem:[%s6581_s4 + $0xa8] sm:$0xff] %v2379_v28  ;;  %2461 = vst [vmem:[%s6581_s4 + $0xb0] sm:$0xff] %v2380_v15  ;;  %v7949_v5 = vld [vmem:[#allocation83_spill] sm:$0xff]  ;;  %v7966_v26 = vmax.f32 %v5594_v6, %v5909_v61 }
 0x328   :  { %v7948_v50 = vmax.f32 %v7946_v33, %v7947_v55  ;;  %2462 = vst [vmem:[%s6581_s4 + $0xb8] sm:$0xff] %v2381_v4  ;;  %v7950_v21 = vld [vmem:[#allocation45_spill] sm:$0xff]  ;;  %v7952_v8 = vld [vmem:[#allocation56_spill] sm:$0xff]  ;;  %v7954_v59 = vld [vmem:[#allocation46_spill] sm:$0xff]  ;;  %v2393_v19 = vmax.f32 %v7956_v14, %v2312_v56 }
 0x329   :  { %v7951_v44 = vmax.f32 %v7949_v5, %v7950_v21  ;;  %v7953_v3 = vmax.f32 %v5551_v34, %v7952_v8  ;;  %v7955_v37 = vmax.f32 %v5559_v46, %v7954_v59  ;;  %v2321_v28 = vld [vmem:[#allocation2 + $0x186] sm:$0xff]  ;;  %v6277_v38 = vld [vmem:[#allocation2 + $0x18e] sm:$0xff]  ;;  %v6279_v11 = vld [vmem:[#allocation2 + $0x196] sm:$0xff]  ;;  %2463 = vst [vmem:[%s6581_s4 + $0xc0] sm:$0xff] %v2382_v40  ;;  %v2399_v40 = vmax.f32 %v7966_v26, %v2318_v23 }
 0x32a   :  { %v2389_v18 = vmax.f32 %v7948_v50, %v2308_v12  ;;  %v2324_v54 = vld [vmem:[#allocation2 + $0x19e] sm:$0xff]  ;;  %2464 = vst [vmem:[%s6581_s4 + $0xc8] sm:$0xff] %v2383_v60  ;;  %2465 = vst [vmem:[%s6581_s4 + $0xd0] sm:$0xff] %v2384_v47  ;;  %v7961_v20 = vld [vmem:[#allocation58_spill] sm:$0xff]  ;;  %v2400_v60 = vmax.f32 %v7967_v1, %v2319_v29  ;;  %v2403_v45 = vmax.f32 %v5966_v51, %v6277_v38 }
 0x32b   :  { %v2390_v43 = vmax.f32 %v7951_v44, %v2309_v2  ;;  %v2391_v9 = vmax.f32 %v7953_v3, %v2310_v63  ;;  %v2392_v12 = vmax.f32 %v7955_v37, %v2311_v17  ;;  %2466 = vst [vmem:[%s6581_s4 + $0xd8] sm:$0xff] %v2385_v0  ;;  %v7957_v34 = vld [vmem:[#allocation68_spill] sm:$0xff]  ;;  %v7958_v57 = vld [vmem:[#allocation57_spill] sm:$0xff]  ;;  %v2326_v17 = vld [vmem:[#allocation2 + $0x1ae] sm:$0xff] }
 0x32c   :  { %v2394_v46 = vmax.f32 %v7957_v34, %v6203_v24  ;;  %v7959_v15 = vmax.f32 %v7809_v36, %v7958_v57  ;;  %v7960_v27 = vld [vmem:[#allocation84_spill] sm:$0xff]  ;;  %v2325_v63 = vld [vmem:[#allocation2 + $0x1a6] sm:$0xff]  ;;  %2467 = vst [vmem:[%s6581_s4 + $0xe0] sm:$0xff] %v2386_v49  ;;  %2468 = vst [vmem:[%s6581_s4 + $0xe8] sm:$0xff] %v2387_v13 }
 0x32d   :  { %v7962_v4 = vmax.f32 %v7960_v27, %v7961_v20  ;;  %v2327_v56 = vld [vmem:[#allocation2 + $0x1b6] sm:$0xff]  ;;  %v2328_v35 = vld [vmem:[#allocation2 + $0x1be] sm:$0xff]  ;;  %2469 = vst [vmem:[%s6581_s4 + $0xf0] sm:$0xff] %v2388_v41  ;;  %2470 = vst [vmem:[%s6581_s4 + $0xf8] sm:$0xff] %v2389_v18 }
 0x32e   :  { %v2396_v32 = vmax.f32 %v7959_v15, %v2315_v52  ;;  %v7963_v42 = vld [vmem:[#allocation78_spill] sm:$0xff]  ;;  %v7964_v36 = vld [vmem:[#allocation47_spill] sm:$0xff]  ;;  %v7968_v39 = vld [vmem:[#allocation16_spill] sm:$0xff]  ;;  %2471 = vst [vmem:[%s6581_s4 + $0x100] sm:$0xff] %v2390_v43 }
 0x32f   :  { %v2397_v2 = vmax.f32 %v7962_v4, %v2316_v25  ;;  %v7965_v24 = vmax.f32 %v7963_v42, %v7964_v36  ;;  %v7969_v48 = vmax.f32 %v5607_v16, %v7968_v39  ;;  %v2329_v0 = vld [vmem:[#allocation2 + $0x1c6] sm:$0xff]  ;;  %v2330_v7 = vld [vmem:[#allocation2 + $0x1ce] sm:$0xff]  ;;  %v6327_v52 = vld [vmem:[#allocation2 + $0x1d6] sm:$0xff]  ;;  %2472 = vst [vmem:[%s6581_s4 + $0x108] sm:$0xff] %v2391_v9 }
 0x330   :  { %v6329_v25 = vld [vmem:[#allocation2 + $0x1de] sm:$0xff]  ;;  %2473 = vst [vmem:[%s6581_s4 + $0x110] sm:$0xff] %v2392_v12  ;;  %2474 = vst [vmem:[%s6581_s4 + $0x118] sm:$0xff] %v2393_v19  ;;  %v7973_v49 = vld [vmem:[#allocation70_spill] sm:$0xff] }
 0x331   :  { %v2398_v58 = vmax.f32 %v7965_v24, %v2317_v30  ;;  %v2401_v47 = vmax.f32 %v7969_v48, %v2320_v62  ;;  %v7970_v6 = vld [vmem:[#allocation89_spill] sm:$0xff]  ;;  %v7971_v22 = vld [vmem:[#allocation20_spill] sm:$0xff]  ;;  %v2404_v53 = vmax.f32 %v7973_v49, %v6279_v11  ;;  %v2334_v50 = vld [vmem:[#allocation2 + $0x1ee] sm:$0xff]  ;;  %2475 = vst [vmem:[%s6581_s4 + $0x120] sm:$0xff] %v2394_v46 }
 0x332   :  { %v7972_v16 = vmax.f32 %v7970_v6, %v7971_v22  ;;  %v7974_v13 = vld [vmem:[#allocation80_spill] sm:$0xff]  ;;  %v2333_v55 = vld [vmem:[#allocation2 + $0x1e6] sm:$0xff]  ;;  %2476 = vst [vmem:[%s6581_s4 + $0x128] sm:$0xff] %v2395_v10  ;;  %2477 = vst [vmem:[%s6581_s4 + $0x130] sm:$0xff] %v2396_v32 }
 0x333   :  { %v7975_v31 = vld [vmem:[#allocation64_spill] sm:$0xff]  ;;  %2478 = vst [vmem:[%s6581_s4 + $0x138] sm:$0xff] %v2397_v2  ;;  %v7977_v51 = vld [vmem:[#allocation82_spill] sm:$0xff]  ;;  %v7978_v23 = vld [vmem:[#allocation15_spill] sm:$0xff] }
 0x334   :  { %v2402_v61 = vmax.f32 %v7972_v16, %v2321_v28  ;;  %v7976_v41 = vmax.f32 %v7974_v13, %v7975_v31  ;;  %v2335_v18 = vld [vmem:[#allocation2 + $0x1f6] sm:$0xff]  ;;  %v2336_v30 = vld [vmem:[#allocation2 + $0x1fe] sm:$0xff]  ;;  %v7979_v29 = vmax.f32 %v7977_v51, %v7978_v23  ;;  %v7980_v5 = vld [vmem:[#allocation90_spill] sm:$0xff]  ;;  %2479 = vst [vmem:[%s6581_s4 + $0x140] sm:$0xff] %v2398_v58 }
 0x335   :  { %v7981_v21 = vld [vmem:[#allocation108_spill] sm:$0xff]  ;;  %v7983_v8 = vld [vmem:[#allocation49_spill] sm:$0xff]  ;;  %v7984_v3 = vld [vmem:[#allocation59_spill] sm:$0xff]  ;;  %2480 = vst [vmem:[%s6581_s4 + $0x148] sm:$0xff] %v2399_v40 }
 0x336   :  { %v2405_v33 = vmax.f32 %v7976_v41, %v2324_v54  ;;  %v2406_v62 = vmax.f32 %v7979_v29, %v2325_v63  ;;  %v7982_v44 = vmax.f32 %v7980_v5, %v7981_v21  ;;  %v7985_v9 = vmax.f32 %v7983_v8, %v7984_v3  ;;  %v7986_v37 = vld [vmem:[#allocation5_spill] sm:$0xff]  ;;  %v2338_v38 = vld [vmem:[#allocation2 + $0x20e] sm:$0xff]  ;;  %v2339_v11 = vld [vmem:[#allocation2 + $0x216] sm:$0xff]  ;;  %2481 = vst [vmem:[%s6581_s4 + $0x150] sm:$0xff] %v2400_v60 }
 0x337   :  { %v7987_v12 = vld [vmem:[#allocation69_spill] sm:$0xff]  ;;  %2482 = vst [vmem:[%s6581_s4 + $0x158] sm:$0xff] %v2401_v47  ;;  %v7990_v46 = vld [vmem:[#allocation60_spill] sm:$0xff]  ;;  %v7992_v15 = vld [vmem:[#allocation7_spill] sm:$0xff] }
 0x338   :  { %v2407_v43 = vmax.f32 %v7982_v44, %v2326_v17  ;;  %v2408_v59 = vmax.f32 %v7985_v9, %v2327_v56  ;;  %v7988_v14 = vmax.f32 %v7986_v37, %v7987_v12  ;;  %v2337_v28 = vld [vmem:[#allocation2 + $0x206] sm:$0xff]  ;;  %v2340_v54 = vld [vmem:[#allocation2 + $0x21e] sm:$0xff]  ;;  %v7995_v4 = vld [vmem:[#allocation87_spill] sm:$0xff]  ;;  %2483 = vst [vmem:[%s6581_s4 + $0x160] sm:$0xff] %v2402_v61 }
 0x339   :  { %v7989_v34 = vld [vmem:[#allocation93_spill] sm:$0xff]  ;;  %v2412_v2 = vmax.f32 %v7995_v4, %v6327_v52  ;;  %v7996_v63 = vld [vmem:[#allocation40_spill] sm:$0xff]  ;;  %2484 = vst [vmem:[%s6581_s4 + $0x168] sm:$0xff] %v2403_v45  ;;  %2485 = vst [vmem:[%s6581_s4 + $0x170] sm:$0xff] %v2404_v53 }
 0x33a   :  { %v2409_v19 = vmax.f32 %v7988_v14, %v2328_v35  ;;  %v7991_v10 = vmax.f32 %v7989_v34, %v7990_v46  ;;  %v7993_v32 = vld [vmem:[#allocation61_spill] sm:$0xff]  ;;  %v2413_v17 = vmax.f32 %v7996_v63, %v6329_v25  ;;  %v2342_v35 = vld [vmem:[#allocation2 + $0x22e] sm:$0xff]  ;;  %v2343_v42 = vld [vmem:[#allocation2 + $0x236] sm:$0xff]  ;;  %2486 = vst [vmem:[%s6581_s4 + $0x178] sm:$0xff] %v2405_v33 }
 0x33b   :  { %v7994_v27 = vmax.f32 %v7992_v15, %v7993_v32  ;;  %v2341_v56 = vld [vmem:[#allocation2 + $0x226] sm:$0xff]  ;;  %v2344_v36 = vld [vmem:[#allocation2 + $0x23e] sm:$0xff]  ;;  %v7998_v58 = vld [vmem:[#allocation79_spill] sm:$0xff]  ;;  %2487 = vst [vmem:[%s6581_s4 + $0x180] sm:$0xff] %v2406_v62 }
 0x33c   :  { %v2410_v57 = vmax.f32 %v7991_v10, %v2329_v0  ;;  %v7997_v24 = vld [vmem:[#allocation110_spill] sm:$0xff]  ;;  %v8000_v1 = vld [vmem:[#allocation111_spill] sm:$0xff]  ;;  %v8004_v0 = vld [vmem:[#allocation76_spill] sm:$0xff]  ;;  %2488 = vst [vmem:[%s6581_s4 + $0x188] sm:$0xff] %v2407_v43 }
 0x33d   :  { %v2411_v20 = vmax.f32 %v7994_v27, %v2330_v7  ;;  %v7999_v26 = vmax.f32 %v7997_v24, %v7998_v58  ;;  %v8001_v60 = vld [vmem:[#allocation31_spill] sm:$0xff]  ;;  %v8006_v25 = vld [vmem:[#allocation96_spill] sm:$0xff]  ;;  %v8007_v6 = vld [vmem:[#allocation65_spill] sm:$0xff]  ;;  %2489 = vst [vmem:[%s6581_s4 + $0x190] sm:$0xff] %v2408_v59 }
 0x33e   :  { %v8002_v39 = vmax.f32 %v8000_v1, %v8001_v60  ;;  %v8003_v47 = vld [vmem:[#allocation95_spill] sm:$0xff]  ;;  %v8008_v22 = vmax.f32 %v8006_v25, %v8007_v6  ;;  %v2345_v61 = vld [vmem:[#allocation2 + $0x246] sm:$0xff]  ;;  %v2348_v53 = vld [vmem:[#allocation2 + $0x25e] sm:$0xff]  ;;  %2490 = vst [vmem:[%s6581_s4 + $0x198] sm:$0xff] %v2409_v19 }
 0x33f   :  { %v2414_v40 = vmax.f32 %v7999_v26, %v2333_v55  ;;  %v8005_v7 = vmax.f32 %v8003_v47, %v8004_v0  ;;  %v2346_v45 = vld [vmem:[#allocation2 + $0x24e] sm:$0xff]  ;;  %v2347_v49 = vld [vmem:[#allocation2 + $0x256] sm:$0xff]  ;;  %v8010_v31 = vld [vmem:[#allocation77_spill] sm:$0xff]  ;;  %2491 = vst [vmem:[%s6581_s4 + $0x1a0] sm:$0xff] %v2410_v57 }
 0x340   :  { %v2415_v48 = vmax.f32 %v8002_v39, %v2334_v50  ;;  %v2417_v16 = vmax.f32 %v8008_v22, %v2336_v30  ;;  %v8009_v13 = vld [vmem:[#allocation99_spill] sm:$0xff]  ;;  %v8012_v55 = vld [vmem:[#allocation97_spill] sm:$0xff]  ;;  %v8015_v51 = vld [vmem:[#allocation34_spill] sm:$0xff]  ;;  %2492 = vst [vmem:[%s6581_s4 + $0x1a8] sm:$0xff] %v2411_v20 }
 0x341   :  { %v2416_v52 = vmax.f32 %v8005_v7, %v2335_v18  ;;  %v8011_v41 = vmax.f32 %v8009_v13, %v8010_v31  ;;  %v8013_v50 = vld [vmem:[#allocation81_spill] sm:$0xff]  ;;  %v8016_v23 = vld [vmem:[#allocation39_spill] sm:$0xff]  ;;  %v8018_v5 = vld [vmem:[#allocation98_spill] sm:$0xff]  ;;  %2493 = vst [vmem:[%s6581_s4 + $0x1b0] sm:$0xff] %v2412_v2 }
 0x342   :  { %v8014_v18 = vmax.f32 %v8012_v55, %v8013_v50  ;;  %v8017_v29 = vmax.f32 %v8015_v51, %v8016_v23  ;;  %v2421_v21 = vmax.f32 %v8018_v5, %v2340_v54  ;;  %v2351_v44 = vld [vmem:[#allocation2 + $0x276] sm:$0xff]  ;;  %v2352_v43 = vld [vmem:[#allocation2 + $0x27e] sm:$0xff]  ;;  %v2353_v8 = vld [vmem:[#allocation2 + $0x286] sm:$0xff]  ;;  %2494 = vst [vmem:[%s6581_s4 + $0x1b8] sm:$0xff] %v2413_v17 }
 0x343   :  { %v2418_v33 = vmax.f32 %v8011_v41, %v2337_v28  ;;  %v8019_v3 = vld [vmem:[#allocation3_spill] sm:$0xff]  ;;  %v8020_v59 = vld [vmem:[#allocation112_spill] sm:$0xff]  ;;  %v8021_v37 = vld [vmem:[#allocation41_spill] sm:$0xff]  ;;  %2495 = vst [vmem:[%s6581_s4 + $0x1c0] sm:$0xff] %v2414_v40 }
 0x344   :  { %v2419_v30 = vmax.f32 %v8014_v18, %v2338_v38  ;;  %v2420_v62 = vmax.f32 %v8017_v29, %v2339_v11  ;;  %v2422_v9 = vmax.f32 %v8019_v3, %v2341_v56  ;;  %v8022_v12 = vmax.f32 %v8020_v59, %v8021_v37  ;;  %v8023_v19 = vld [vmem:[#allocation103_spill] sm:$0xff]  ;;  %v8024_v28 = vld [vmem:[#allocation85_spill] sm:$0xff]  ;;  %v8026_v54 = vld [vmem:[#allocation8_spill] sm:$0xff]  ;;  %2496 = vst [vmem:[%s6581_s4 + $0x1c8] sm:$0xff] %v2415_v48 }
 0x345   :  { %v8025_v38 = vmax.f32 %v8023_v19, %v8024_v28  ;;  %v8027_v34 = vld [vmem:[#allocation91_spill] sm:$0xff]  ;;  %v2356_v32 = vld [vmem:[#allocation2 + $0x29e] sm:$0xff]  ;;  %2497 = vst [vmem:[%s6581_s4 + $0x1d0] sm:$0xff] %v2416_v52  ;;  %2498 = vst [vmem:[%s6581_s4 + $0x1d8] sm:$0xff] %v2417_v16 }
 0x346   :  { %v2423_v14 = vmax.f32 %v8022_v12, %v2342_v35  ;;  %v8028_v46 = vmax.f32 %v8026_v54, %v8027_v34  ;;  %v2354_v57 = vld [vmem:[#allocation2 + $0x28e] sm:$0xff]  ;;  %v2355_v15 = vld [vmem:[#allocation2 + $0x296] sm:$0xff]  ;;  %v8033_v17 = vld [vmem:[#allocation113_spill] sm:$0xff]  ;;  %2499 = vst [vmem:[%s6581_s4 + $0x1e0] sm:$0xff] %v2418_v33 }
 0x347   :  { %v2424_v11 = vmax.f32 %v8025_v38, %v2343_v42  ;;  %v8029_v27 = vld [vmem:[#allocation12_spill] sm:$0xff]  ;;  %v8030_v20 = vld [vmem:[#allocation86_spill] sm:$0xff]  ;;  %v8032_v63 = vld [vmem:[#allocation23_spill] sm:$0xff]  ;;  %2500 = vst [vmem:[%s6581_s4 + $0x1e8] sm:$0xff] %v2419_v30 }
 0x348   :  { %v2425_v10 = vmax.f32 %v8028_v46, %v2344_v36  ;;  %v8031_v4 = vmax.f32 %v8029_v27, %v8030_v20  ;;  %v8034_v56 = vmax.f32 %v8032_v63, %v8033_v17  ;;  %v8035_v42 = vld [vmem:[#allocation105_spill] sm:$0xff]  ;;  %v8036_v36 = vld [vmem:[#allocation114_spill] sm:$0xff]  ;;  %v8038_v26 = vld [vmem:[#allocation52_spill] sm:$0xff]  ;;  %2501 = vst [vmem:[%s6581_s4 + $0x1f0] sm:$0xff] %v2420_v62 }
 0x349   :  { %v8037_v24 = vmax.f32 %v8035_v42, %v8036_v36  ;;  %v8039_v40 = vld [vmem:[#allocation115_spill] sm:$0xff]  ;;  %v2349_v39 = vld [vmem:[#allocation2 + $0x266] sm:$0xff]  ;;  %2502 = vst [vmem:[%s6581_s4 + $0x1f8] sm:$0xff] %v2421_v21  ;;  %v8041_v0 = vld [vmem:[#allocation4_spill] sm:$0xff] }
 0x34a   :  { %v2426_v2 = vmax.f32 %v8031_v4, %v2345_v61  ;;  %v2427_v35 = vmax.f32 %v8034_v56, %v2346_v45  ;;  %v8040_v1 = vmax.f32 %v8038_v26, %v8039_v40  ;;  %v2350_v48 = vld [vmem:[#allocation2 + $0x26e] sm:$0xff]  ;;  %v2357_v47 = vld [vmem:[#allocation2 + $0x2a6] sm:$0xff]  ;;  %v2430_v7 = vmax.f32 %v8041_v0, %v2349_v39  ;;  %v8042_v52 = vld [vmem:[#allocation104_spill] sm:$0xff]  ;;  %2503 = vst [vmem:[%s6581_s4 + $0x200] sm:$0xff] %v2422_v9 }
 0x34b   :  { %v2428_v58 = vmax.f32 %v8037_v24, %v2347_v49  ;;  %v2431_v25 = vmax.f32 %v8042_v52, %v2350_v48  ;;  %v8043_v6 = vld [vmem:[#allocation67_spill] sm:$0xff]  ;;  %v8044_v22 = vld [vmem:[#allocation116_spill] sm:$0xff]  ;;  %v8046_v45 = vld [vmem:[#allocation106_spill] sm:$0xff]  ;;  %2504 = vst [vmem:[%s6581_s4 + $0x208] sm:$0xff] %v2423_v14 }
 0x34c   :  { %v2429_v60 = vmax.f32 %v8040_v1, %v2348_v53  ;;  %v8045_v16 = vmax.f32 %v8043_v6, %v8044_v22  ;;  %v8047_v49 = vld [vmem:[#allocation100_spill] sm:$0xff]  ;;  %2505 = vst [vmem:[%s6581_s4 + $0x210] sm:$0xff] %v2424_v11  ;;  %2506 = vst [vmem:[%s6581_s4 + $0x218] sm:$0xff] %v2425_v10  ;;  %v8049_v31 = vld [vmem:[#allocation43_spill] sm:$0xff] }
 0x34d   :  { %v8048_v53 = vmax.f32 %v8046_v45, %v8047_v49  ;;  %v8050_v41 = vld [vmem:[#allocation94_spill] sm:$0xff]  ;;  %v8053_v18 = vld [vmem:[#allocation117_spill] sm:$0xff]  ;;  %v8055_v23 = vld [vmem:[#allocation32_spill] sm:$0xff]  ;;  %2507 = vst [vmem:[%s6581_s4 + $0x220] sm:$0xff] %v2426_v2 }
 0x34e   :  { %v2432_v61 = vmax.f32 %v8045_v16, %v2351_v44  ;;  %v8051_v33 = vmax.f32 %v8049_v31, %v8050_v41  ;;  %v8052_v50 = vld [vmem:[#allocation42_spill] sm:$0xff]  ;;  %v8058_v21 = vld [vmem:[#allocation28_spill] sm:$0xff]  ;;  %v8059_v44 = vld [vmem:[#allocation119_spill] sm:$0xff]  ;;  %2508 = vst [vmem:[%s6581_s4 + $0x228] sm:$0xff] %v2427_v35 }
 0x34f   :  { %v2433_v13 = vmax.f32 %v8048_v53, %v2352_v43  ;;  %v8054_v30 = vmax.f32 %v8052_v50, %v8053_v18  ;;  %v8056_v29 = vld [vmem:[#allocation118_spill] sm:$0xff]  ;;  %v8060_v43 = vmax.f32 %v8058_v21, %v8059_v44  ;;  %2509 = vst [vmem:[%s6581_s4 + $0x230] sm:$0xff] %v2428_v58  ;;  %2510 = vst [vmem:[%s6581_s4 + $0x238] sm:$0xff] %v2429_v60  ;;  %v8062_v9 = vld [vmem:[#allocation120_spill] sm:$0xff] }
 0x350   :  { %v2434_v55 = vmax.f32 %v8051_v33, %v2353_v8  ;;  %v8057_v62 = vmax.f32 %v8055_v23, %v8056_v29  ;;  %v8061_v8 = vld [vmem:[#allocation33_spill] sm:$0xff]  ;;  %2511 = vst [vmem:[%s6581_s4 + $0x240] sm:$0xff] %v2430_v7  ;;  %2512 = vst [vmem:[%s6581_s4 + $0x248] sm:$0xff] %v2431_v25 }
 0x351   :  { %v2435_v51 = vmax.f32 %v8054_v30, %v2354_v57  ;;  %v2437_v3 = vmax.f32 %v8060_v43, %v2356_v32  ;;  %v8063_v59 = vmax.f32 %v8061_v8, %v8062_v9  ;;  %2513 = vst [vmem:[%s6581_s4 + $0x250] sm:$0xff] %v2432_v61  ;;  %2514 = vst [vmem:[%s6581_s4 + $0x258] sm:$0xff] %v2433_v13 }
 0x352   :  { %v2436_v5 = vmax.f32 %v8057_v62, %v2355_v15  ;;  %2515 = vst [vmem:[%s6581_s4 + $0x260] sm:$0xff] %v2434_v55 }
 0x353   :  { %v2438_v37 = vmax.f32 %v8063_v59, %v2357_v47  ;;  %2516 = vst [vmem:[%s6581_s4 + $0x268] sm:$0xff] %v2435_v51  ;;  %2518 = vst [vmem:[%s6581_s4 + $0x278] sm:$0xff] %v2437_v3 }
 0x354   :  { %2517 = vst [vmem:[%s6581_s4 + $0x270] sm:$0xff] %v2436_v5 }
 0x355   :  { %2519 = vst [vmem:[%s6581_s4 + $0x280] sm:$0xff] %v2438_v37 }

// kernel: resnet_forward.18
= control target key start
LH: loop header
LB: loop body
LE: loop exit
PB: predicated region body
PF: predicated region fallthrough
CT: control target
= control target key end

     0   :  { %vm368_vm0 = vcmask 523264   ;;  %s943_s1 = inlined_call_operand.vmem [shape: bf16[576,128], index: 1, kind: input, shape index: {}]   ;;  %s944_s0 = inlined_call_operand.vmem [shape: bf16[32,576], index: 0, kind: input, shape index: {}]   ;;  %s945_s2 = inlined_call_operand.vmem [shape: f32[1,128], index: 2, kind: input, shape index: {}]   ;;  %s946_s3 = inlined_call_operand.vmem [shape: f32[1,128], index: 3, kind: input, shape index: {}]   ;;  %s947_s4 = inlined_call_operand.vmem [shape: f32[32,128], index: 4, kind: output, shape index: {}]  }
   0x1   :  { %v710_v0 = vld [vmem:[%s943_s1 + $0x40] sm:$0xff]   ;;  %v714_v4 = vld [vmem:[%s943_s1 + $0x48] sm:$0xff]   ;;  %v718_v8 = vld [vmem:[%s943_s1 + $0x50] sm:$0xff]  }
   0x2   :  { %v711_v1 = vld [vmem:[%s943_s1 + $0xc0] sm:$0xff]   ;;  %636 = vmatprep.subr.bf16.mxu0 %v710_v0  ;;  %v715_v5 = vld [vmem:[%s943_s1 + $0xc8] sm:$0xff]   ;;  %v719_v9 = vld [vmem:[%s943_s1 + $0xd0] sm:$0xff]  }
   0x3   :  { %v712_v2 = vld [vmem:[%s943_s1] sm:$0xff]   ;;  %664 = vmatprep.subr.bf16.mxu1 %v711_v1  ;;  %v716_v6 = vld [vmem:[%s943_s1 + $0x8] sm:$0xff]   ;;  %v720_v10 = vld [vmem:[%s943_s1 + $0x10] sm:$0xff]  }
   0x4   :  { %v713_v3 = vld [vmem:[%s943_s1 + $0x80] sm:$0xff]   ;;  %637 = vmatpush3.bf16.msra.mxu0 %v712_v2  ;;  %v717_v7 = vld [vmem:[%s943_s1 + $0x88] sm:$0xff]   ;;  %v721_v11 = vld [vmem:[%s943_s1 + $0x90] sm:$0xff]  }
   0x5   :  { %665 = vmatpush3.bf16.msra.mxu1 %v713_v3  ;;  %638 = vmatprep.subr.bf16.mxu0 %v714_v4  ;;  %v722_v12 = vld [vmem:[%s943_s1 + $0x58] sm:$0xff]   ;;  %v726_v16 = vld [vmem:[%s943_s1 + $0x60] sm:$0xff]   ;;  %v730_v20 = vld [vmem:[%s943_s1 + $0x68] sm:$0xff]  }
   0x6   :  { %666 = vmatprep.subr.bf16.mxu1 %v715_v5  ;;  %v723_v13 = vld [vmem:[%s943_s1 + $0xd8] sm:$0xff]   ;;  %v727_v17 = vld [vmem:[%s943_s1 + $0xe0] sm:$0xff]   ;;  %v731_v21 = vld [vmem:[%s943_s1 + $0xe8] sm:$0xff]  }
   0x7   :  { %v724_v14 = vld [vmem:[%s943_s1 + $0x18] sm:$0xff]   ;;  %v728_v18 = vld [vmem:[%s943_s1 + $0x20] sm:$0xff]   ;;  %v732_v22 = vld [vmem:[%s943_s1 + $0x28] sm:$0xff]  }
   0x8   :  { %639 = vmatpush3.bf16.msra.mxu0 %v716_v6  ;;  %v725_v15 = vld [vmem:[%s943_s1 + $0x98] sm:$0xff]   ;;  %v729_v19 = vld [vmem:[%s943_s1 + $0xa0] sm:$0xff]   ;;  %v733_v23 = vld [vmem:[%s943_s1 + $0xa8] sm:$0xff]  }
   0x9   :  { %667 = vmatpush3.bf16.msra.mxu1 %v717_v7  ;;  %640 = vmatprep.subr.bf16.mxu0 %v718_v8  ;;  %v734_v24 = vld [vmem:[%s943_s1 + $0x70] sm:$0xff]   ;;  %v738_v28 = vld [vmem:[%s943_s1 + $0x78] sm:$0xff]   ;;  %v747_v35 = vld [vmem:[%s944_s0 + $0xc] ss:$20 sps:$4 sm:$0xff]  }
   0xa   :  { %668 = vmatprep.subr.bf16.mxu1 %v719_v9  ;;  %v735_v25 = vld [vmem:[%s943_s1 + $0xf0] sm:$0xff]   ;;  %v739_v29 = vld [vmem:[%s943_s1 + $0xf8] sm:$0xff]   ;;  %v748_v36 = vld [vmem:[%s943_s1 + $0x100] sm:$0xff]   ;;  %456 = vmatprep.mubr.bf16.mxu1 %v747_v35 }
   0xb   :  { %v736_v26 = vld [vmem:[%s943_s1 + $0x30] sm:$0xff]   ;;  %v740_v30 = vld [vmem:[%s943_s1 + $0x38] sm:$0xff]   ;;  %v749_v37 = vld [vmem:[%s943_s1 + $0x108] sm:$0xff]  }
   0xc   :  { %641 = vmatpush3.bf16.msra.mxu0 %v720_v10  ;;  %v737_v27 = vld [vmem:[%s943_s1 + $0xb0] sm:$0xff]   ;;  %v741_v31 = vld [vmem:[%s943_s1 + $0xb8] sm:$0xff]   ;;  %v750_v38 = vld [vmem:[%s944_s0 + $0x2c] ss:$20 sps:$4 sm:$0xff]  }
   0xd   :  { %669 = vmatpush3.bf16.msra.mxu1 %v721_v11  ;;  %642 = vmatprep.subr.bf16.mxu0 %v722_v12  ;;  %v742_v32 = vld [vmem:[%s944_s0] ss:$20 sps:$4 sm:$0xff]   ;;  %v744_v33 = vld [vmem:[%s944_s0 + $0x4] ss:$20 sps:$4 sm:$0xff]   ;;  %v745_v34 = vld [vmem:[%s944_s0 + $0x8] ss:$20 sps:$4 sm:$0xff]  }
   0xe   :  { %670 = vmatprep.subr.bf16.mxu1 %v723_v13  ;;  %407 = vmatprep.mubr.bf16.mxu0 %v744_v33  ;;  %v752_v39 = vld [vmem:[%s944_s0 + $0x34] ss:$20 sps:$4 sm:$0xff]   ;;  %v755_v42 = vld [vmem:[%s944_s0 + $0x30] ss:$20 sps:$4 sm:$0xff]   ;;  %v757_v44 = vld [vmem:[%s943_s1 + $0x118] sm:$0xff]  }
   0xf   :  { %v754_v40 = vld [vmem:[%s944_s0 + $0x28] ss:$20 sps:$4 sm:$0xff]   ;;  %v756_v41 = vld [vmem:[%s943_s1 + $0x110] sm:$0xff]   ;;  %v759_v45 = vld [vmem:[%s944_s0 + $0x38] ss:$20 sps:$4 sm:$0xff]  }
  0x10   :  { %643 = vmatpush3.bf16.msra.mxu0 %v724_v14  ;;  %v758_v43 = vld [vmem:[%s944_s0 + $0x10] ss:$20 sps:$4 sm:$0xff]  }
  0x11   :  { %671 = vmatpush3.bf16.msra.mxu1 %v725_v15  ;;  %644 = vmatprep.subr.bf16.mxu0 %v726_v16 }
  0x12   :  { %672 = vmatprep.subr.bf16.mxu1 %v727_v17 }
  0x14   :  { %645 = vmatpush3.bf16.msra.mxu0 %v728_v18 }
  0x15   :  { %673 = vmatpush3.bf16.msra.mxu1 %v729_v19  ;;  %646 = vmatprep.subr.bf16.mxu0 %v730_v20 }
  0x16   :  { %674 = vmatprep.subr.bf16.mxu1 %v731_v21 }
  0x18   :  { %647 = vmatpush3.bf16.msra.mxu0 %v732_v22 }
  0x19   :  { %675 = vmatpush3.bf16.msra.mxu1 %v733_v23  ;;  %648 = vmatprep.subr.bf16.mxu0 %v734_v24 }
  0x1a   :  { %676 = vmatprep.subr.bf16.mxu1 %v735_v25 }
  0x1c   :  { %649 = vmatpush3.bf16.msra.mxu0 %v736_v26 }
  0x1d   :  { %677 = vmatpush3.bf16.msra.mxu1 %v737_v27  ;;  %650 = vmatprep.subr.bf16.mxu0 %v738_v28 }
  0x1e   :  { %678 = vmatprep.subr.bf16.mxu1 %v739_v29 }
  0x20   :  { %651 = vmatpush3.bf16.msra.mxu0 %v740_v30 }
  0x21   :  { %679 = vmatpush3.bf16.msra.mxu1 %v741_v31  ;;  %698 = vmatprep.subr.bf16.mxu0 %v748_v36 }
  0x23   :  { %408 = vmatmul.mubr.bf16.vlgmr.msra.gmra.mrb[0].mxu0 %v742_v32 }
  0x24   :  { %457 = vmatmul.mubr.bf16.vlgmr.msra.gmra.mrb[0].mxu1 %v745_v34  ;;  %699 = vmatpush3.bf16.msra.mxu0 %v748_v36 }
  0x25   :  { %700 = vmatprep.subr.bf16.mxu0 %v749_v37  ;;  %415 = vmatprep.mubr.bf16.mxu0 %v750_v38 }
  0x26   :  { %464 = vmatprep.mubr.bf16.mxu1 %v752_v39 }
  0x28   :  { %701 = vmatpush3.bf16.msra.mxu0 %v749_v37 }
  0x29   :  { %702 = vmatprep.subr.bf16.mxu0 %v756_v41 }
  0x2b   :  { %416 = vmatmul.mubr.bf16.gmra.mrb[4].mxu0 %v754_v40 }
  0x2c   :  { %465 = vmatmul.mubr.bf16.gmra.mrb[4].mxu1 %v755_v42  ;;  %706 = vmatprep.mubr.msk.bf16.mxu0 %vm368_vm0, %v758_v43 }
  0x2d   :  { %703 = vmatpush3.bf16.msra.mxu0 %v756_v41 }
  0x2e   :  { %704 = vmatprep.subr.bf16.mxu0 %v757_v44 }
  0x31   :  { %705 = vmatpush3.bf16.msra.mxu0 %v757_v44 }
  0x34   :  { %707 = vmatmul.mubr.msk.bf16.vlgmr.msra.gmra.mrb[8].mxu0 %vm368_vm0, %v759_v45 }
  0xf6   :  { %v652_v46 = vpop.f32.mrb[0].mxu0 }
  0xf7   :  { %v680_v47 = vpop.f32.mrb[0].mxu1  ;;  %v653_v48 = vpop.f32.mrb[1].mxu0 }
  0xf8   :  { %v654_v49 = vadd.f32 %v653_v48, %v652_v46  ;;  %v681_v50 = vpop.f32.mrb[1].mxu1  ;;  %v655_v51 = vpop.f32.mrb[2].mxu0  ;;  %v557_v46 = vlaneseq  ;;  %v549_v48 = vld [vmem:[%s945_s2] sm:$0x1] }
  0xf9   :  { %v682_v52 = vadd.f32 %v681_v50, %v680_v47  ;;  %v683_v53 = vpop.f32.mrb[2].mxu1  ;;  %v656_v54 = vpop.f32.mrb[3].mxu0 }
  0xfa   :  { %v657_v55 = vadd.f32 %v656_v54, %v655_v51  ;;  %v684_v56 = vpop.f32.mrb[3].mxu1  ;;  %v558_v47 = vshrl.u32 %v557_v46, 7 }
  0xfb   :  { %v685_v57 = vadd.f32 %v684_v56, %v683_v53  ;;  %v459_v58 = vadd.f32 %v682_v52, %v654_v49  ;;  %v553_v52 = vld [vmem:[%s946_s3] sm:$0x1] }
  0xfc   :  { %v559_v49 = vsub.s32 0, %v558_v47 }
  0xfd   :  { %v462_v59 = vadd.f32 %v685_v57, %v657_v55 }
  0xfe   :  { %v658_v60 = vpop.f32.mrb[4].mxu0 }
  0xff   :  { %v686_v61 = vpop.f32.mrb[4].mxu1  ;;  %v659_v62 = vpop.f32.mrb[5].mxu0 }
 0x100   :  { %v660_v63 = vadd.f32 %v659_v62, %v658_v60  ;;  %v687_v0 = vpop.f32.mrb[5].mxu1  ;;  %v661_v1 = vpop.f32.mrb[6].mxu0 }
 0x101   :  { %v688_v2 = vadd.f32 %v687_v0, %v686_v61  ;;  %v689_v3 = vpop.f32.mrb[6].mxu1  ;;  %v662_v4 = vpop.f32.mrb[7].mxu0 }
 0x102   :  { %v663_v5 = vadd.f32 %v662_v4, %v661_v1  ;;  %v690_v6 = vpop.f32.mrb[7].mxu1 }
 0x103   :  { %v691_v7 = vadd.f32 %v690_v6, %v689_v3  ;;  %v467_v8 = vadd.f32 %v688_v2, %v660_v63 }
 0x105   :  { %v470_v9 = vadd.f32 %v691_v7, %v663_v5 }
 0x107   :  { %v708_v10 = vpop.f32.mrb[8].mxu0 }
 0x108   :  { %v516_v11 = vadd.f32 %v708_v10, %v467_v8  ;;  %v507_v12 = vpop.f32.mrb[9].mxu0 }
 0x109   :  { %v508_v13 = vadd.f32 %v507_v12, %v459_v58  ;;  %v709_v14 = vpop.f32.mrb[10].mxu0 }
 0x10a   :  { %v519_v15 = vadd.f32 %v709_v14, %v470_v9  ;;  %v510_v16 = vpop.f32.mrb[11].mxu0  ;;  %v534_v21 = vmul.f32 %v516_v11, %v516_v11 }
 0x10b   :  { %v511_v17 = vadd.f32 %v510_v16, %v462_v59  ;;  %v532_v18 = vmul.f32 %v508_v13, %v508_v13 }
 0x10c   :  { %v535_v24 = vmul.f32 %v519_v15, %v519_v15 }
 0x10d   :  { %v522_v19 = vadd.f32 %v511_v17, %v508_v13  ;;  %v533_v20 = vmul.f32 %v511_v17, %v511_v17 }
 0x10f   :  { %v523_v22 = vadd.f32 %v522_v19, %v516_v11  ;;  %v536_v23 = vadd.f32 %v533_v20, %v532_v18 }
 0x111   :  { %v524_v25 = vadd.f32 %v523_v22, %v519_v15  ;;  %v537_v26 = vadd.f32 %v536_v23, %v534_v21 }
 0x113   :  { %v525_v27 = vrot.slane %v524_v25, 4  ;;  %v538_v28 = vadd.f32 %v537_v26, %v535_v24 }
 0x115   :  { %v526_v29 = vadd.f32 %v525_v27, %v524_v25  ;;  %v539_v30 = vrot.slane %v538_v28, 4 }
 0x117   :  { %v527_v31 = vrot.slane %v526_v29, 2  ;;  %v540_v32 = vadd.f32 %v539_v30, %v538_v28 }
 0x119   :  { %v528_v33 = vadd.f32 %v527_v31, %v526_v29  ;;  %v541_v34 = vrot.slane %v540_v32, 2 }
 0x11b   :  { %v529_v35 = vrot.slane %v528_v33, 1  ;;  %v542_v36 = vadd.f32 %v541_v34, %v540_v32 }
 0x11d   :  { %v530_v37 = vadd.f32 %v529_v35, %v528_v33  ;;  %v543_v38 = vrot.slane %v542_v36, 1 }
 0x11f   :  { %v531_v39 = vmul.f32 0.03125, %v530_v37  ;;  %v544_v40 = vadd.f32 %v543_v38, %v542_v36 }
 0x121   :  { %v545_v41 = vmul.f32 0.03125, %v544_v40  ;;  %v546_v42 = vmul.f32 %v531_v39, %v531_v39 }
 0x123   :  { %v547_v43 = vsub.f32 %v545_v41, %v546_v42 }
 0x125   :  { %v548_v44 = vmax.f32 %v547_v43, 0.0 }
 0x127   :  { %v550_v45 = vadd.f32 1e-05, %v548_v44 }
 0x129   :  { %760 = vrsqrt.f32 %v550_v45 }
 0x133   :  { %v761_v50 = vpop.eup %760 }
 0x134   :  { %v552_v51 = vmul.f32 %v761_v50, %v549_v48 }
 0x136   :  { %v554_v53 = vmul.f32 %v552_v51, %v531_v39  ;;  %v560_v54 = vrot.slane %v552_v51, %v559_v49 }
 0x138   :  { %v555_v55 = vsub.f32 %v553_v52, %v554_v53  ;;  %v562_v56 = vmul.f32 %v560_v54, %v508_v13  ;;  %v563_v57 = vmul.f32 %v560_v54, %v511_v17  ;;  %v564_v58 = vmul.f32 %v560_v54, %v516_v11 }
 0x139   :  { %v565_v59 = vmul.f32 %v560_v54, %v519_v15 }
 0x13a   :  { %v570_v60 = vrot.slane %v555_v55, %v559_v49 }
 0x13c   :  { %v572_v61 = vadd.f32 %v570_v60, %v562_v56  ;;  %v573_v62 = vadd.f32 %v570_v60, %v563_v57  ;;  %v574_v63 = vadd.f32 %v570_v60, %v564_v58  ;;  %v575_v0 = vadd.f32 %v570_v60, %v565_v59 }
 0x13e   :  { %v576_v1 = vmax.f32 %v572_v61, 0.0  ;;  %v577_v2 = vmax.f32 %v573_v62, 0.0  ;;  %v578_v3 = vmax.f32 %v574_v63, 0.0  ;;  %v579_v4 = vmax.f32 %v575_v0, 0.0 }
 0x140   :  { %580 = vst [vmem:[%s947_s4] sm:$0xff] %v576_v1  ;;  %581 = vst [vmem:[%s947_s4 + $0x8] sm:$0xff] %v577_v2 }
 0x141   :  { %582 = vst [vmem:[%s947_s4 + $0x10] sm:$0xff] %v578_v3  ;;  %583 = vst [vmem:[%s947_s4 + $0x18] sm:$0xff] %v579_v4 }

// kernel: resnet_forward.19
= control target key start
LH: loop header
LB: loop body
LE: loop exit
PB: predicated region body
PF: predicated region fallthrough
CT: control target
= control target key end

     0   :  { %s1662_s1 = inlined_call_operand.vmem [shape: bf16[1152,128], index: 1, kind: input, shape index: {}]   ;;  %s1663_s0 = inlined_call_operand.vmem [shape: bf16[32,1152], index: 0, kind: input, shape index: {}]   ;;  %s1664_s2 = inlined_call_operand.vmem [shape: f32[1,128], index: 2, kind: input, shape index: {}]   ;;  %s1665_s3 = inlined_call_operand.vmem [shape: f32[1,128], index: 3, kind: input, shape index: {}]   ;;  %s1666_s4 = inlined_call_operand.vmem [shape: f32[32,128], index: 4, kind: output, shape index: {}]  }
   0x1   :  { %v1249_v0 = vld [vmem:[%s1662_s1 + $0x40] sm:$0xff]   ;;  %v1253_v4 = vld [vmem:[%s1662_s1 + $0x48] sm:$0xff]   ;;  %v1257_v8 = vld [vmem:[%s1662_s1 + $0x50] sm:$0xff]  }
   0x2   :  { %v1250_v1 = vld [vmem:[%s1662_s1 + $0xc0] sm:$0xff]   ;;  %1107 = vmatprep.subr.bf16.mxu0 %v1249_v0  ;;  %v1254_v5 = vld [vmem:[%s1662_s1 + $0xc8] sm:$0xff]   ;;  %v1258_v9 = vld [vmem:[%s1662_s1 + $0xd0] sm:$0xff]  }
   0x3   :  { %v1251_v2 = vld [vmem:[%s1662_s1] sm:$0xff]   ;;  %1135 = vmatprep.subr.bf16.mxu1 %v1250_v1  ;;  %v1255_v6 = vld [vmem:[%s1662_s1 + $0x8] sm:$0xff]   ;;  %v1259_v10 = vld [vmem:[%s1662_s1 + $0x10] sm:$0xff]  }
   0x4   :  { %v1252_v3 = vld [vmem:[%s1662_s1 + $0x80] sm:$0xff]   ;;  %1108 = vmatpush3.bf16.msra.mxu0 %v1251_v2  ;;  %v1256_v7 = vld [vmem:[%s1662_s1 + $0x88] sm:$0xff]   ;;  %v1260_v11 = vld [vmem:[%s1662_s1 + $0x90] sm:$0xff]  }
   0x5   :  { %1136 = vmatpush3.bf16.msra.mxu1 %v1252_v3  ;;  %1109 = vmatprep.subr.bf16.mxu0 %v1253_v4  ;;  %v1261_v12 = vld [vmem:[%s1662_s1 + $0x58] sm:$0xff]   ;;  %v1265_v16 = vld [vmem:[%s1662_s1 + $0x60] sm:$0xff]   ;;  %v1269_v20 = vld [vmem:[%s1662_s1 + $0x68] sm:$0xff]  }
   0x6   :  { %1137 = vmatprep.subr.bf16.mxu1 %v1254_v5  ;;  %v1262_v13 = vld [vmem:[%s1662_s1 + $0xd8] sm:$0xff]   ;;  %v1266_v17 = vld [vmem:[%s1662_s1 + $0xe0] sm:$0xff]   ;;  %v1270_v21 = vld [vmem:[%s1662_s1 + $0xe8] sm:$0xff]  }
   0x7   :  { %v1263_v14 = vld [vmem:[%s1662_s1 + $0x18] sm:$0xff]   ;;  %v1267_v18 = vld [vmem:[%s1662_s1 + $0x20] sm:$0xff]   ;;  %v1271_v22 = vld [vmem:[%s1662_s1 + $0x28] sm:$0xff]  }
   0x8   :  { %1110 = vmatpush3.bf16.msra.mxu0 %v1255_v6  ;;  %v1264_v15 = vld [vmem:[%s1662_s1 + $0x98] sm:$0xff]   ;;  %v1268_v19 = vld [vmem:[%s1662_s1 + $0xa0] sm:$0xff]   ;;  %v1272_v23 = vld [vmem:[%s1662_s1 + $0xa8] sm:$0xff]  }
   0x9   :  { %1138 = vmatpush3.bf16.msra.mxu1 %v1256_v7  ;;  %1111 = vmatprep.subr.bf16.mxu0 %v1257_v8  ;;  %v1273_v24 = vld [vmem:[%s1662_s1 + $0x70] sm:$0xff]   ;;  %v1277_v28 = vld [vmem:[%s1662_s1 + $0x78] sm:$0xff]   ;;  %v1281_v32 = vld [vmem:[%s1663_s0] ss:$36 sps:$4 sm:$0xff]  }
   0xa   :  { %1139 = vmatprep.subr.bf16.mxu1 %v1258_v9  ;;  %v1274_v25 = vld [vmem:[%s1662_s1 + $0xf0] sm:$0xff]   ;;  %v1278_v29 = vld [vmem:[%s1662_s1 + $0xf8] sm:$0xff]   ;;  %v1283_v33 = vld [vmem:[%s1663_s0 + $0x4] ss:$36 sps:$4 sm:$0xff]  }
   0xb   :  { %v1275_v26 = vld [vmem:[%s1662_s1 + $0x30] sm:$0xff]   ;;  %v1279_v30 = vld [vmem:[%s1662_s1 + $0x38] sm:$0xff]   ;;  %v1284_v34 = vld [vmem:[%s1663_s0 + $0x8] ss:$36 sps:$4 sm:$0xff]   ;;  %738 = vmatprep.mubr.bf16.mxu0 %v1283_v33 }
   0xc   :  { %1112 = vmatpush3.bf16.msra.mxu0 %v1259_v10  ;;  %v1276_v27 = vld [vmem:[%s1662_s1 + $0xb0] sm:$0xff]   ;;  %v1280_v31 = vld [vmem:[%s1662_s1 + $0xb8] sm:$0xff]   ;;  %v1287_v36 = vld [vmem:[%s1662_s1 + $0x140] sm:$0xff]  }
   0xd   :  { %1140 = vmatpush3.bf16.msra.mxu1 %v1260_v11  ;;  %1113 = vmatprep.subr.bf16.mxu0 %v1261_v12  ;;  %v1286_v35 = vld [vmem:[%s1663_s0 + $0xc] ss:$36 sps:$4 sm:$0xff]   ;;  %v1288_v37 = vld [vmem:[%s1662_s1 + $0x100] sm:$0xff]   ;;  %v1299_v48 = vld [vmem:[%s1662_s1 + $0x158] sm:$0xff]  }
   0xe   :  { %1141 = vmatprep.subr.bf16.mxu1 %v1262_v13  ;;  %787 = vmatprep.mubr.bf16.mxu1 %v1286_v35  ;;  %v1289_v38 = vld [vmem:[%s1662_s1 + $0x1c0] sm:$0xff]   ;;  %v1291_v40 = vld [vmem:[%s1662_s1 + $0x148] sm:$0xff]   ;;  %v1295_v44 = vld [vmem:[%s1662_s1 + $0x150] sm:$0xff]  }
   0xf   :  { %v1290_v39 = vld [vmem:[%s1662_s1 + $0x180] sm:$0xff]   ;;  %v1292_v41 = vld [vmem:[%s1662_s1 + $0x108] sm:$0xff]   ;;  %v1296_v45 = vld [vmem:[%s1662_s1 + $0x110] sm:$0xff]  }
  0x10   :  { %1114 = vmatpush3.bf16.msra.mxu0 %v1263_v14  ;;  %v1293_v42 = vld [vmem:[%s1662_s1 + $0x1c8] sm:$0xff]   ;;  %v1297_v46 = vld [vmem:[%s1662_s1 + $0x1d0] sm:$0xff]   ;;  %v1300_v49 = vld [vmem:[%s1662_s1 + $0x118] sm:$0xff]  }
  0x11   :  { %1142 = vmatpush3.bf16.msra.mxu1 %v1264_v15  ;;  %1115 = vmatprep.subr.bf16.mxu0 %v1265_v16  ;;  %v1294_v43 = vld [vmem:[%s1662_s1 + $0x188] sm:$0xff]   ;;  %v1298_v47 = vld [vmem:[%s1662_s1 + $0x190] sm:$0xff]   ;;  %v1301_v50 = vld [vmem:[%s1662_s1 + $0x1d8] sm:$0xff]  }
  0x12   :  { %1143 = vmatprep.subr.bf16.mxu1 %v1266_v17  ;;  %v1302_v51 = vld [vmem:[%s1662_s1 + $0x198] sm:$0xff]   ;;  %v1303_v52 = vld [vmem:[%s1662_s1 + $0x160] sm:$0xff]   ;;  %v1307_v56 = vld [vmem:[%s1662_s1 + $0x168] sm:$0xff]  }
  0x13   :  { %v1304_v53 = vld [vmem:[%s1662_s1 + $0x120] sm:$0xff]   ;;  %v1308_v57 = vld [vmem:[%s1663_s0 + $0x4c] ss:$36 sps:$4 sm:$0xff]   ;;  %v1310_v58 = vld [vmem:[%s1663_s0 + $0x54] ss:$36 sps:$4 sm:$0xff]  }
  0x14   :  { %1116 = vmatpush3.bf16.msra.mxu0 %v1267_v18  ;;  %v1305_v54 = vld [vmem:[%s1662_s1 + $0x1e0] sm:$0xff]   ;;  %v1312_v59 = vld [vmem:[%s1662_s1 + $0x128] sm:$0xff]   ;;  %v1314_v61 = vld [vmem:[%s1663_s0 + $0x50] ss:$36 sps:$4 sm:$0xff]  }
  0x15   :  { %1144 = vmatpush3.bf16.msra.mxu1 %v1268_v19  ;;  %1117 = vmatprep.subr.bf16.mxu0 %v1269_v20  ;;  %v1306_v55 = vld [vmem:[%s1662_s1 + $0x1a0] sm:$0xff]   ;;  %v1313_v60 = vld [vmem:[%s1663_s0 + $0x48] ss:$36 sps:$4 sm:$0xff]   ;;  %v1317_v0 = vld [vmem:[%s1662_s1 + $0x170] sm:$0xff]  }
  0x16   :  { %1145 = vmatprep.subr.bf16.mxu1 %v1270_v21  ;;  %v1315_v62 = vld [vmem:[%s1662_s1 + $0x1e8] sm:$0xff]   ;;  %v1318_v1 = vld [vmem:[%s1662_s1 + $0x130] sm:$0xff]   ;;  %v1321_v4 = vld [vmem:[%s1662_s1 + $0x178] sm:$0xff]  }
  0x17   :  { %v1316_v63 = vld [vmem:[%s1662_s1 + $0x1a8] sm:$0xff]   ;;  %v1319_v2 = vld [vmem:[%s1662_s1 + $0x1f0] sm:$0xff]   ;;  %v1322_v5 = vld [vmem:[%s1662_s1 + $0x138] sm:$0xff]  }
  0x18   :  { %1118 = vmatpush3.bf16.msra.mxu0 %v1271_v22  ;;  %v1320_v3 = vld [vmem:[%s1662_s1 + $0x1b0] sm:$0xff]   ;;  %v1323_v6 = vld [vmem:[%s1662_s1 + $0x1f8] sm:$0xff]   ;;  %v1328_v10 = vld [vmem:[%s1662_s1 + $0x200] sm:$0xff]  }
  0x19   :  { %1146 = vmatpush3.bf16.msra.mxu1 %v1272_v23  ;;  %1119 = vmatprep.subr.bf16.mxu0 %v1273_v24  ;;  %v1324_v7 = vld [vmem:[%s1663_s0 + $0x10] ss:$36 sps:$4 sm:$0xff]   ;;  %v1327_v9 = vld [vmem:[%s1662_s1 + $0x1b8] sm:$0xff]   ;;  %v1332_v13 = vld [vmem:[%s1662_s1 + $0x208] sm:$0xff]  }
  0x1a   :  { %1147 = vmatprep.subr.bf16.mxu1 %v1274_v25  ;;  %v1326_v8 = vld [vmem:[%s1663_s0 + $0x14] ss:$36 sps:$4 sm:$0xff]   ;;  %v1331_v12 = vld [vmem:[%s1663_s0 + $0x1c] ss:$36 sps:$4 sm:$0xff]   ;;  %v1337_v17 = vld [vmem:[%s1663_s0 + $0x64] ss:$36 sps:$4 sm:$0xff]  }
  0x1b   :  { %v1329_v11 = vld [vmem:[%s1663_s0 + $0x18] ss:$36 sps:$4 sm:$0xff]   ;;  %v1336_v16 = vld [vmem:[%s1662_s1 + $0x210] sm:$0xff]   ;;  %v1339_v18 = vld [vmem:[%s1663_s0 + $0x60] ss:$36 sps:$4 sm:$0xff]  }
  0x1c   :  { %1120 = vmatpush3.bf16.msra.mxu0 %v1275_v26  ;;  %v1333_v14 = vld [vmem:[%s1663_s0 + $0x5c] ss:$36 sps:$4 sm:$0xff]   ;;  %v1342_v22 = vld [vmem:[%s1662_s1 + $0x228] sm:$0xff]   ;;  %v1343_v23 = vld [vmem:[%s1662_s1 + $0x230] sm:$0xff]  }
  0x1d   :  { %1148 = vmatpush3.bf16.msra.mxu1 %v1276_v27  ;;  %1121 = vmatprep.subr.bf16.mxu0 %v1277_v28  ;;  %v1335_v15 = vld [vmem:[%s1663_s0 + $0x58] ss:$36 sps:$4 sm:$0xff]   ;;  %v1341_v20 = vld [vmem:[%s1662_s1 + $0x220] sm:$0xff]   ;;  %v1346_v25 = vld [vmem:[%s1663_s0 + $0x68] ss:$36 sps:$4 sm:$0xff]  }
  0x1e   :  { %1149 = vmatprep.subr.bf16.mxu1 %v1278_v29  ;;  %v1340_v19 = vld [vmem:[%s1662_s1 + $0x218] sm:$0xff]   ;;  %v1345_v21 = vld [vmem:[%s1663_s0 + $0x20] ss:$36 sps:$4 sm:$0xff]  }
  0x1f   :  { %v1344_v24 = vld [vmem:[%s1662_s1 + $0x238] sm:$0xff]  }
  0x20   :  { %1122 = vmatpush3.bf16.msra.mxu0 %v1279_v30 }
  0x21   :  { %1150 = vmatpush3.bf16.msra.mxu1 %v1280_v31  ;;  %1163 = vmatprep.subr.bf16.mxu0 %v1287_v36 }
  0x22   :  { %1191 = vmatprep.subr.bf16.mxu1 %v1289_v38 }
  0x23   :  { %739 = vmatmul.mubr.bf16.vlgmr.msra.gmra.mrb[0].mxu0 %v1281_v32 }
  0x24   :  { %788 = vmatmul.mubr.bf16.vlgmr.msra.gmra.mrb[0].mxu1 %v1284_v34  ;;  %1164 = vmatpush3.bf16.msra.mxu0 %v1288_v37 }
  0x25   :  { %1192 = vmatpush3.bf16.msra.mxu1 %v1290_v39  ;;  %1165 = vmatprep.subr.bf16.mxu0 %v1291_v40 }
  0x26   :  { %1193 = vmatprep.subr.bf16.mxu1 %v1293_v42  ;;  %746 = vmatprep.mubr.bf16.mxu0 %v1308_v57 }
  0x27   :  { %795 = vmatprep.mubr.bf16.mxu1 %v1310_v58 }
  0x28   :  { %1166 = vmatpush3.bf16.msra.mxu0 %v1292_v41 }
  0x29   :  { %1194 = vmatpush3.bf16.msra.mxu1 %v1294_v43  ;;  %1167 = vmatprep.subr.bf16.mxu0 %v1295_v44 }
  0x2a   :  { %1195 = vmatprep.subr.bf16.mxu1 %v1297_v46 }
  0x2b   :  { %747 = vmatmul.mubr.bf16.gmra.mrb[4].mxu0 %v1313_v60 }
  0x2c   :  { %1168 = vmatpush3.bf16.msra.mxu0 %v1296_v45  ;;  %796 = vmatmul.mubr.bf16.gmra.mrb[4].mxu1 %v1314_v61 }
  0x2d   :  { %1196 = vmatpush3.bf16.msra.mxu1 %v1298_v47  ;;  %1169 = vmatprep.subr.bf16.mxu0 %v1299_v48 }
  0x2e   :  { %1197 = vmatprep.subr.bf16.mxu1 %v1301_v50  ;;  %836 = vmatprep.mubr.bf16.mxu0 %v1326_v8 }
  0x2f   :  { %885 = vmatprep.mubr.bf16.mxu1 %v1331_v12 }
  0x30   :  { %1170 = vmatpush3.bf16.msra.mxu0 %v1300_v49 }
  0x31   :  { %1198 = vmatpush3.bf16.msra.mxu1 %v1302_v51  ;;  %1171 = vmatprep.subr.bf16.mxu0 %v1303_v52 }
  0x32   :  { %1199 = vmatprep.subr.bf16.mxu1 %v1305_v54 }
  0x34   :  { %1172 = vmatpush3.bf16.msra.mxu0 %v1304_v53 }
  0x35   :  { %1200 = vmatpush3.bf16.msra.mxu1 %v1306_v55  ;;  %1173 = vmatprep.subr.bf16.mxu0 %v1307_v56 }
  0x36   :  { %1201 = vmatprep.subr.bf16.mxu1 %v1315_v62 }
  0x38   :  { %1174 = vmatpush3.bf16.msra.mxu0 %v1312_v59 }
  0x39   :  { %1202 = vmatpush3.bf16.msra.mxu1 %v1316_v63  ;;  %1175 = vmatprep.subr.bf16.mxu0 %v1317_v0 }
  0x3a   :  { %1203 = vmatprep.subr.bf16.mxu1 %v1319_v2 }
  0x3c   :  { %1176 = vmatpush3.bf16.msra.mxu0 %v1318_v1 }
  0x3d   :  { %1204 = vmatpush3.bf16.msra.mxu1 %v1320_v3  ;;  %1177 = vmatprep.subr.bf16.mxu0 %v1321_v4 }
  0x3e   :  { %1205 = vmatprep.subr.bf16.mxu1 %v1323_v6 }
  0x40   :  { %1178 = vmatpush3.bf16.msra.mxu0 %v1322_v5 }
  0x41   :  { %1206 = vmatpush3.bf16.msra.mxu1 %v1327_v9  ;;  %1229 = vmatprep.subr.bf16.mxu0 %v1328_v10 }
  0x43   :  { %837 = vmatmul.mubr.bf16.vlgmr.msra.gmra.mrb[8].mxu0 %v1324_v7 }
  0x44   :  { %1230 = vmatpush3.bf16.msra.mxu0 %v1328_v10  ;;  %886 = vmatmul.mubr.bf16.vlgmr.msra.gmra.mrb[8].mxu1 %v1329_v11 }
  0x45   :  { %1231 = vmatprep.subr.bf16.mxu0 %v1332_v13  ;;  %844 = vmatprep.mubr.bf16.mxu0 %v1333_v14 }
  0x46   :  { %893 = vmatprep.mubr.bf16.mxu1 %v1337_v17 }
  0x48   :  { %1232 = vmatpush3.bf16.msra.mxu0 %v1332_v13 }
  0x49   :  { %1233 = vmatprep.subr.bf16.mxu0 %v1336_v16 }
  0x4b   :  { %845 = vmatmul.mubr.bf16.gmra.mrb[12].mxu0 %v1335_v15 }
  0x4c   :  { %1234 = vmatpush3.bf16.msra.mxu0 %v1336_v16  ;;  %894 = vmatmul.mubr.bf16.gmra.mrb[12].mxu1 %v1339_v18 }
  0x4d   :  { %1235 = vmatprep.subr.bf16.mxu0 %v1340_v19  ;;  %1245 = vmatprep.mubr.bf16.mxu0 %v1345_v21 }
  0x50   :  { %1236 = vmatpush3.bf16.msra.mxu0 %v1340_v19 }
  0x51   :  { %1237 = vmatprep.subr.bf16.mxu0 %v1341_v20 }
  0x54   :  { %1238 = vmatpush3.bf16.msra.mxu0 %v1341_v20 }
  0x55   :  { %1239 = vmatprep.subr.bf16.mxu0 %v1342_v22 }
  0x58   :  { %1240 = vmatpush3.bf16.msra.mxu0 %v1342_v22 }
  0x59   :  { %1241 = vmatprep.subr.bf16.mxu0 %v1343_v23 }
  0x5c   :  { %1242 = vmatpush3.bf16.msra.mxu0 %v1343_v23 }
  0x5d   :  { %1243 = vmatprep.subr.bf16.mxu0 %v1344_v24 }
  0x60   :  { %1244 = vmatpush3.bf16.msra.mxu0 %v1344_v24 }
  0x63   :  { %1246 = vmatmul.mubr.bf16.vlgmr.msra.gmra.mrb[16].mxu0 %v1346_v25 }
  0xf6   :  { %v1123_v26 = vpop.f32.mrb[0].mxu0 }
  0xf7   :  { %v1151_v27 = vpop.f32.mrb[0].mxu1  ;;  %v1124_v28 = vpop.f32.mrb[1].mxu0 }
  0xf8   :  { %v1125_v29 = vadd.f32 %v1124_v28, %v1123_v26  ;;  %v1152_v30 = vpop.f32.mrb[1].mxu1  ;;  %v1126_v31 = vpop.f32.mrb[2].mxu0 }
  0xf9   :  { %v1153_v32 = vadd.f32 %v1152_v30, %v1151_v27  ;;  %v1154_v33 = vpop.f32.mrb[2].mxu1  ;;  %v1127_v34 = vpop.f32.mrb[3].mxu0 }
  0xfa   :  { %v1128_v35 = vadd.f32 %v1127_v34, %v1126_v31  ;;  %v1155_v36 = vpop.f32.mrb[3].mxu1 }
  0xfb   :  { %v790_v37 = vadd.f32 %v1153_v32, %v1125_v29  ;;  %v1156_v38 = vadd.f32 %v1155_v36, %v1154_v33 }
  0xfd   :  { %v793_v39 = vadd.f32 %v1156_v38, %v1128_v35 }
  0xfe   :  { %v1129_v40 = vpop.f32.mrb[4].mxu0 }
  0xff   :  { %v1157_v41 = vpop.f32.mrb[4].mxu1  ;;  %v1130_v42 = vpop.f32.mrb[5].mxu0 }
 0x100   :  { %v1158_v43 = vpop.f32.mrb[5].mxu1  ;;  %v1131_v44 = vadd.f32 %v1130_v42, %v1129_v40  ;;  %v1132_v46 = vpop.f32.mrb[6].mxu0 }
 0x101   :  { %v1159_v45 = vadd.f32 %v1158_v43, %v1157_v41  ;;  %v1160_v47 = vpop.f32.mrb[6].mxu1  ;;  %v1133_v48 = vpop.f32.mrb[7].mxu0 }
 0x102   :  { %v1161_v49 = vpop.f32.mrb[7].mxu1  ;;  %v1134_v51 = vadd.f32 %v1133_v48, %v1132_v46 }
 0x103   :  { %v798_v50 = vadd.f32 %v1159_v45, %v1131_v44  ;;  %v1162_v52 = vadd.f32 %v1161_v49, %v1160_v47 }
 0x105   :  { %v801_v53 = vadd.f32 %v1162_v52, %v1134_v51 }
 0x116   :  { %v1179_v54 = vpop.f32.mrb[8].mxu0 }
 0x117   :  { %v1180_v55 = vpop.f32.mrb[9].mxu0  ;;  %v1207_v58 = vpop.f32.mrb[8].mxu1 }
 0x118   :  { %v1181_v56 = vadd.f32 %v1180_v55, %v1179_v54  ;;  %v1182_v57 = vpop.f32.mrb[10].mxu0  ;;  %v1208_v62 = vpop.f32.mrb[9].mxu1 }
 0x119   :  { %v1183_v59 = vpop.f32.mrb[11].mxu0  ;;  %v1209_v63 = vadd.f32 %v1208_v62, %v1207_v58  ;;  %v1210_v0 = vpop.f32.mrb[10].mxu1  ;;  %v986_v58 = vlaneseq }
 0x11a   :  { %v839_v60 = vadd.f32 %v1181_v56, %v790_v37  ;;  %v1184_v61 = vadd.f32 %v1183_v59, %v1182_v57  ;;  %v1211_v2 = vpop.f32.mrb[11].mxu1 }
 0x11b   :  { %v1212_v3 = vadd.f32 %v1211_v2, %v1210_v0  ;;  %v987_v59 = vshrl.u32 %v986_v58, 7  ;;  %v982_v0 = vld [vmem:[%s1665_s3] sm:$0x1] }
 0x11c   :  { %v842_v1 = vadd.f32 %v1184_v61, %v793_v39  ;;  %v888_v4 = vadd.f32 %v1209_v63, %v839_v60  ;;  %v978_v60 = vld [vmem:[%s1664_s2] sm:$0x1] }
 0x11d   :  { %v988_v61 = vsub.s32 0, %v987_v59 }
 0x11e   :  { %v1185_v5 = vpop.f32.mrb[12].mxu0  ;;  %v891_v7 = vadd.f32 %v1212_v3, %v842_v1 }
 0x11f   :  { %v1186_v6 = vpop.f32.mrb[13].mxu0  ;;  %v1213_v10 = vpop.f32.mrb[12].mxu1 }
 0x120   :  { %v1187_v8 = vadd.f32 %v1186_v6, %v1185_v5  ;;  %v1188_v9 = vpop.f32.mrb[14].mxu0  ;;  %v1214_v14 = vpop.f32.mrb[13].mxu1 }
 0x121   :  { %v1189_v11 = vpop.f32.mrb[15].mxu0  ;;  %v1215_v15 = vadd.f32 %v1214_v14, %v1213_v10  ;;  %v1216_v16 = vpop.f32.mrb[14].mxu1 }
 0x122   :  { %v847_v12 = vadd.f32 %v1187_v8, %v798_v50  ;;  %v1190_v13 = vadd.f32 %v1189_v11, %v1188_v9  ;;  %v1217_v18 = vpop.f32.mrb[15].mxu1 }
 0x123   :  { %v1218_v19 = vadd.f32 %v1217_v18, %v1216_v16 }
 0x124   :  { %v850_v17 = vadd.f32 %v1190_v13, %v801_v53  ;;  %v896_v20 = vadd.f32 %v1215_v15, %v847_v12 }
 0x126   :  { %v899_v21 = vadd.f32 %v1218_v19, %v850_v17 }
 0x136   :  { %v1247_v22 = vpop.f32.mrb[16].mxu0 }
 0x137   :  { %v945_v23 = vadd.f32 %v1247_v22, %v896_v20  ;;  %v936_v24 = vpop.f32.mrb[17].mxu0 }
 0x138   :  { %v937_v25 = vadd.f32 %v936_v24, %v888_v4  ;;  %v1248_v26 = vpop.f32.mrb[18].mxu0 }
 0x139   :  { %v948_v27 = vadd.f32 %v1248_v26, %v899_v21  ;;  %v939_v28 = vpop.f32.mrb[19].mxu0  ;;  %v963_v33 = vmul.f32 %v945_v23, %v945_v23 }
 0x13a   :  { %v940_v29 = vadd.f32 %v939_v28, %v891_v7  ;;  %v961_v30 = vmul.f32 %v937_v25, %v937_v25 }
 0x13b   :  { %v964_v36 = vmul.f32 %v948_v27, %v948_v27 }
 0x13c   :  { %v951_v31 = vadd.f32 %v940_v29, %v937_v25  ;;  %v962_v32 = vmul.f32 %v940_v29, %v940_v29 }
 0x13e   :  { %v952_v34 = vadd.f32 %v951_v31, %v945_v23  ;;  %v965_v35 = vadd.f32 %v962_v32, %v961_v30 }
 0x140   :  { %v953_v37 = vadd.f32 %v952_v34, %v948_v27  ;;  %v966_v38 = vadd.f32 %v965_v35, %v963_v33 }
 0x142   :  { %v954_v39 = vrot.slane %v953_v37, 4  ;;  %v967_v40 = vadd.f32 %v966_v38, %v964_v36 }
 0x144   :  { %v955_v41 = vadd.f32 %v954_v39, %v953_v37  ;;  %v968_v42 = vrot.slane %v967_v40, 4 }
 0x146   :  { %v956_v43 = vrot.slane %v955_v41, 2  ;;  %v969_v44 = vadd.f32 %v968_v42, %v967_v40 }
 0x148   :  { %v957_v45 = vadd.f32 %v956_v43, %v955_v41  ;;  %v970_v46 = vrot.slane %v969_v44, 2 }
 0x14a   :  { %v958_v47 = vrot.slane %v957_v45, 1  ;;  %v971_v48 = vadd.f32 %v970_v46, %v969_v44 }
 0x14c   :  { %v959_v49 = vadd.f32 %v958_v47, %v957_v45  ;;  %v972_v50 = vrot.slane %v971_v48, 1 }
 0x14e   :  { %v960_v51 = vmul.f32 0.03125, %v959_v49  ;;  %v973_v52 = vadd.f32 %v972_v50, %v971_v48 }
 0x150   :  { %v974_v53 = vmul.f32 0.03125, %v973_v52  ;;  %v975_v54 = vmul.f32 %v960_v51, %v960_v51 }
 0x152   :  { %v976_v55 = vsub.f32 %v974_v53, %v975_v54 }
 0x154   :  { %v977_v56 = vmax.f32 %v976_v55, 0.0 }
 0x156   :  { %v979_v57 = vadd.f32 1e-05, %v977_v56 }
 0x158   :  { %1347 = vrsqrt.f32 %v979_v57 }
 0x162   :  { %v1348_v62 = vpop.eup %1347 }
 0x163   :  { %v981_v63 = vmul.f32 %v1348_v62, %v978_v60 }
 0x165   :  { %v983_v1 = vmul.f32 %v981_v63, %v960_v51  ;;  %v989_v2 = vrot.slane %v981_v63, %v988_v61 }
 0x167   :  { %v984_v3 = vsub.f32 %v982_v0, %v983_v1  ;;  %v991_v4 = vmul.f32 %v989_v2, %v937_v25  ;;  %v992_v5 = vmul.f32 %v989_v2, %v940_v29  ;;  %v993_v6 = vmul.f32 %v989_v2, %v945_v23 }
 0x168   :  { %v994_v7 = vmul.f32 %v989_v2, %v948_v27 }
 0x169   :  { %v999_v8 = vrot.slane %v984_v3, %v988_v61 }
 0x16b   :  { %v1001_v9 = vadd.f32 %v999_v8, %v991_v4  ;;  %v1002_v10 = vadd.f32 %v999_v8, %v992_v5  ;;  %v1003_v11 = vadd.f32 %v999_v8, %v993_v6  ;;  %v1004_v12 = vadd.f32 %v999_v8, %v994_v7 }
 0x16d   :  { %v1005_v13 = vmax.f32 %v1001_v9, 0.0  ;;  %v1006_v14 = vmax.f32 %v1002_v10, 0.0  ;;  %v1007_v15 = vmax.f32 %v1003_v11, 0.0  ;;  %v1008_v16 = vmax.f32 %v1004_v12, 0.0 }
 0x16f   :  { %1009 = vst [vmem:[%s1666_s4] sm:$0xff] %v1005_v13  ;;  %1010 = vst [vmem:[%s1666_s4 + $0x8] sm:$0xff] %v1006_v14 }
 0x170   :  { %1011 = vst [vmem:[%s1666_s4 + $0x10] sm:$0xff] %v1007_v15  ;;  %1012 = vst [vmem:[%s1666_s4 + $0x18] sm:$0xff] %v1008_v16 }

// kernel: resnet_forward.20
= control target key start
LH: loop header
LB: loop body
LE: loop exit
PB: predicated region body
PF: predicated region fallthrough
CT: control target
= control target key end

     0   :  { %vm1160_vm0 = vmmov 0   ;;  %s1426_s1 = inlined_call_operand.vmem [shape: bf16[1152,128], index: 1, kind: input, shape index: {}]   ;;  %s1427_s0 = inlined_call_operand.vmem [shape: bf16[8,1152], index: 0, kind: input, shape index: {}]   ;;  %s1428_s2 = inlined_call_operand.vmem [shape: f32[1,128], index: 2, kind: input, shape index: {}]   ;;  %s1429_s3 = inlined_call_operand.vmem [shape: f32[1,128], index: 3, kind: input, shape index: {}]   ;;  %s1430_s4 = inlined_call_operand.vmem [shape: f32[8,128], index: 4, kind: output, shape index: {}]  }
   0x1   :  { %v1076_v0 = vld [vmem:[%s1426_s1 + $0x40] sm:$0xff]   ;;  %v1080_v4 = vld [vmem:[%s1426_s1 + $0x48] sm:$0xff]   ;;  %v1084_v8 = vld [vmem:[%s1426_s1 + $0x50] sm:$0xff]  }
   0x2   :  { %v1077_v1 = vld [vmem:[%s1426_s1 + $0xc0] sm:$0xff]   ;;  %957 = vmatprep.subr.bf16.mxu0 %v1076_v0  ;;  %v1081_v5 = vld [vmem:[%s1426_s1 + $0xc8] sm:$0xff]   ;;  %v1085_v9 = vld [vmem:[%s1426_s1 + $0xd0] sm:$0xff]  }
   0x3   :  { %v1078_v2 = vld [vmem:[%s1426_s1] sm:$0xff]   ;;  %979 = vmatprep.subr.bf16.mxu1 %v1077_v1  ;;  %v1082_v6 = vld [vmem:[%s1426_s1 + $0x8] sm:$0xff]   ;;  %v1086_v10 = vld [vmem:[%s1426_s1 + $0x10] sm:$0xff]  }
   0x4   :  { %v1079_v3 = vld [vmem:[%s1426_s1 + $0x80] sm:$0xff]   ;;  %958 = vmatpush3.bf16.msra.mxu0 %v1078_v2  ;;  %v1083_v7 = vld [vmem:[%s1426_s1 + $0x88] sm:$0xff]   ;;  %v1087_v11 = vld [vmem:[%s1426_s1 + $0x90] sm:$0xff]  }
   0x5   :  { %980 = vmatpush3.bf16.msra.mxu1 %v1079_v3  ;;  %959 = vmatprep.subr.bf16.mxu0 %v1080_v4  ;;  %v1088_v12 = vld [vmem:[%s1426_s1 + $0x58] sm:$0xff]   ;;  %v1092_v16 = vld [vmem:[%s1426_s1 + $0x60] sm:$0xff]   ;;  %v1096_v20 = vld [vmem:[%s1426_s1 + $0x68] sm:$0xff]  }
   0x6   :  { %981 = vmatprep.subr.bf16.mxu1 %v1081_v5  ;;  %v1089_v13 = vld [vmem:[%s1426_s1 + $0xd8] sm:$0xff]   ;;  %v1093_v17 = vld [vmem:[%s1426_s1 + $0xe0] sm:$0xff]   ;;  %v1097_v21 = vld [vmem:[%s1426_s1 + $0xe8] sm:$0xff]  }
   0x7   :  { %v1090_v14 = vld [vmem:[%s1426_s1 + $0x18] sm:$0xff]   ;;  %v1094_v18 = vld [vmem:[%s1426_s1 + $0x20] sm:$0xff]   ;;  %v1098_v22 = vld [vmem:[%s1426_s1 + $0x28] sm:$0xff]  }
   0x8   :  { %960 = vmatpush3.bf16.msra.mxu0 %v1082_v6  ;;  %v1091_v15 = vld [vmem:[%s1426_s1 + $0x98] sm:$0xff]   ;;  %v1095_v19 = vld [vmem:[%s1426_s1 + $0xa0] sm:$0xff]   ;;  %v1099_v23 = vld [vmem:[%s1426_s1 + $0xa8] sm:$0xff]  }
   0x9   :  { %982 = vmatpush3.bf16.msra.mxu1 %v1083_v7  ;;  %961 = vmatprep.subr.bf16.mxu0 %v1084_v8  ;;  %v1100_v24 = vld [vmem:[%s1426_s1 + $0x70] sm:$0xff]   ;;  %v1104_v28 = vld [vmem:[%s1426_s1 + $0x78] sm:$0xff]   ;;  %v18_v32 = vld [vmem:[%s1427_s0] sm:$0xff] }
   0xa   :  { %983 = vmatprep.subr.bf16.mxu1 %v1085_v9  ;;  %v1101_v25 = vld [vmem:[%s1426_s1 + $0xf0] sm:$0xff]   ;;  %v1105_v29 = vld [vmem:[%s1426_s1 + $0xf8] sm:$0xff]   ;;  %v19_v33 = vld [vmem:[%s1427_s0 + $0x8] sm:$0xff]  ;;  %v876_v34 = vcombine.low %v18_v32, %v18_v32  ;;  %v877_v35 = vcombine.high %v18_v32, %v18_v32 }
   0xb   :  { %v1102_v26 = vld [vmem:[%s1426_s1 + $0x30] sm:$0xff]   ;;  %v1106_v30 = vld [vmem:[%s1426_s1 + $0x38] sm:$0xff]   ;;  %v878_v36 = vcombine.low %v19_v33, %v19_v33  ;;  %v879_v37 = vcombine.high %v19_v33, %v19_v33  ;;  %v1112_v38 = vld [vmem:[%s1426_s1 + $0x140] sm:$0xff]  }
   0xc   :  { %962 = vmatpush3.bf16.msra.mxu0 %v1086_v10  ;;  %v1103_v27 = vld [vmem:[%s1426_s1 + $0xb0] sm:$0xff]   ;;  %v1107_v31 = vld [vmem:[%s1426_s1 + $0xb8] sm:$0xff]   ;;  %v1113_v39 = vld [vmem:[%s1426_s1 + $0x100] sm:$0xff]   ;;  %663 = vmatprep.mubr.bf16.mxu0 %v877_v35 }
   0xd   :  { %984 = vmatpush3.bf16.msra.mxu1 %v1087_v11  ;;  %963 = vmatprep.subr.bf16.mxu0 %v1088_v12  ;;  %v1114_v40 = vld [vmem:[%s1426_s1 + $0x1c0] sm:$0xff]   ;;  %v1116_v42 = vld [vmem:[%s1426_s1 + $0x148] sm:$0xff]   ;;  %v1120_v46 = vld [vmem:[%s1426_s1 + $0x150] sm:$0xff]  }
   0xe   :  { %985 = vmatprep.subr.bf16.mxu1 %v1089_v13  ;;  %703 = vmatprep.mubr.bf16.mxu1 %v879_v37  ;;  %v1115_v41 = vld [vmem:[%s1426_s1 + $0x180] sm:$0xff]   ;;  %v1117_v43 = vld [vmem:[%s1426_s1 + $0x108] sm:$0xff]   ;;  %v1121_v47 = vld [vmem:[%s1426_s1 + $0x110] sm:$0xff]   ;;  %v1159_v13 = vmov 0.0  }
   0xf   :  { %v1118_v44 = vld [vmem:[%s1426_s1 + $0x1c8] sm:$0xff]   ;;  %v1122_v48 = vld [vmem:[%s1426_s1 + $0x1d0] sm:$0xff]   ;;  %v1124_v50 = vld [vmem:[%s1426_s1 + $0x158] sm:$0xff]  }
  0x10   :  { %964 = vmatpush3.bf16.msra.mxu0 %v1090_v14  ;;  %v1119_v45 = vld [vmem:[%s1426_s1 + $0x188] sm:$0xff]   ;;  %v1123_v49 = vld [vmem:[%s1426_s1 + $0x190] sm:$0xff]   ;;  %v1125_v51 = vld [vmem:[%s1426_s1 + $0x118] sm:$0xff]  }
  0x11   :  { %986 = vmatpush3.bf16.msra.mxu1 %v1091_v15  ;;  %965 = vmatprep.subr.bf16.mxu0 %v1092_v16  ;;  %v1126_v52 = vld [vmem:[%s1426_s1 + $0x1d8] sm:$0xff]   ;;  %v1128_v54 = vld [vmem:[%s1426_s1 + $0x160] sm:$0xff]   ;;  %v1132_v58 = vld [vmem:[%s1426_s1 + $0x168] sm:$0xff]  }
  0x12   :  { %987 = vmatprep.subr.bf16.mxu1 %v1093_v17  ;;  %v1127_v53 = vld [vmem:[%s1426_s1 + $0x198] sm:$0xff]   ;;  %v1129_v55 = vld [vmem:[%s1426_s1 + $0x120] sm:$0xff]   ;;  %v1133_v59 = vld [vmem:[%s1426_s1 + $0x128] sm:$0xff]  }
  0x13   :  { %v1130_v56 = vld [vmem:[%s1426_s1 + $0x1e0] sm:$0xff]   ;;  %v1134_v60 = vld [vmem:[%s1426_s1 + $0x1e8] sm:$0xff]   ;;  %v1136_v62 = vld [vmem:[%s1426_s1 + $0x170] sm:$0xff]  }
  0x14   :  { %966 = vmatpush3.bf16.msra.mxu0 %v1094_v18  ;;  %v1131_v57 = vld [vmem:[%s1426_s1 + $0x1a0] sm:$0xff]   ;;  %v1135_v61 = vld [vmem:[%s1426_s1 + $0x1a8] sm:$0xff]   ;;  %v1137_v63 = vld [vmem:[%s1426_s1 + $0x130] sm:$0xff]  }
  0x15   :  { %988 = vmatpush3.bf16.msra.mxu1 %v1095_v19  ;;  %967 = vmatprep.subr.bf16.mxu0 %v1096_v20  ;;  %v1138_v0 = vld [vmem:[%s1426_s1 + $0x1f0] sm:$0xff]   ;;  %v1140_v2 = vld [vmem:[%s1426_s1 + $0x178] sm:$0xff]   ;;  %v1148_v12 = vld [vmem:[%s1426_s1 + $0x200] sm:$0xff]  }
  0x16   :  { %989 = vmatprep.subr.bf16.mxu1 %v1097_v21  ;;  %v1139_v1 = vld [vmem:[%s1426_s1 + $0x1b0] sm:$0xff]   ;;  %v1141_v3 = vld [vmem:[%s1426_s1 + $0x138] sm:$0xff]   ;;  %v1149_v14 = vld [vmem:[%s1426_s1 + $0x208] sm:$0xff]  }
  0x17   :  { %v1142_v4 = vld [vmem:[%s1426_s1 + $0x1f8] sm:$0xff]   ;;  %v20_v5 = vld [vmem:[%s1427_s0 + $0x10] sm:$0xff]  ;;  %v1152_v17 = vld [vmem:[%s1426_s1 + $0x220] sm:$0xff]  }
  0x18   :  { %968 = vmatpush3.bf16.msra.mxu0 %v1098_v22  ;;  %v881_v6 = vcombine.high %v20_v5, %v20_v5  ;;  %v1145_v7 = vld [vmem:[%s1426_s1 + $0x1b8] sm:$0xff]   ;;  %v880_v8 = vcombine.low %v20_v5, %v20_v5  ;;  %v1150_v15 = vld [vmem:[%s1426_s1 + $0x210] sm:$0xff]   ;;  %v1153_v18 = vld [vmem:[%s1426_s1 + $0x228] sm:$0xff]   ;;  %v857_v5 = vlaneseq }
  0x19   :  { %990 = vmatpush3.bf16.msra.mxu1 %v1099_v23  ;;  %969 = vmatprep.subr.bf16.mxu0 %v1100_v24  ;;  %v21_v9 = vld [vmem:[%s1427_s0 + $0x18] sm:$0xff]  ;;  %v1154_v19 = vld [vmem:[%s1426_s1 + $0x230] sm:$0xff]   ;;  %v1156_v21 = vld [vmem:[%s1427_s0 + $0x20] ss:$0 sps:$4 sm:$0xff]  }
  0x1a   :  { %991 = vmatprep.subr.bf16.mxu1 %v1101_v25  ;;  %v882_v10 = vcombine.low %v21_v9, %v21_v9  ;;  %v883_v11 = vcombine.high %v21_v9, %v21_v9  ;;  %v1151_v16 = vld [vmem:[%s1426_s1 + $0x218] sm:$0xff]  }
  0x1b   :  { %v1155_v20 = vld [vmem:[%s1426_s1 + $0x238] sm:$0xff]  }
  0x1c   :  { %970 = vmatpush3.bf16.msra.mxu0 %v1102_v26 }
  0x1d   :  { %992 = vmatpush3.bf16.msra.mxu1 %v1103_v27  ;;  %971 = vmatprep.subr.bf16.mxu0 %v1104_v28 }
  0x1e   :  { %993 = vmatprep.subr.bf16.mxu1 %v1105_v29 }
  0x20   :  { %972 = vmatpush3.bf16.msra.mxu0 %v1106_v30 }
  0x21   :  { %994 = vmatpush3.bf16.msra.mxu1 %v1107_v31  ;;  %1001 = vmatprep.subr.bf16.mxu0 %v1112_v38 }
  0x22   :  { %1023 = vmatprep.subr.bf16.mxu1 %v1114_v40 }
  0x23   :  { %664 = vmatmul.mubr.bf16.vlgmr.msra.gmra.mrb[0].mxu0 %v876_v34 }
  0x24   :  { %704 = vmatmul.mubr.bf16.vlgmr.msra.gmra.mrb[0].mxu1 %v878_v36  ;;  %1002 = vmatpush3.bf16.msra.mxu0 %v1113_v39 }
  0x25   :  { %1024 = vmatpush3.bf16.msra.mxu1 %v1115_v41  ;;  %1003 = vmatprep.subr.bf16.mxu0 %v1116_v42 }
  0x26   :  { %1025 = vmatprep.subr.bf16.mxu1 %v1118_v44  ;;  %743 = vmatprep.mubr.bf16.mxu0 %v881_v6  ;;  %v858_v6 = vshrl.u32 %v857_v5, 7 }
  0x27   :  { %783 = vmatprep.mubr.bf16.mxu1 %v883_v11  ;;  %v853_v11 = vld [vmem:[%s1429_s3] sm:$0x1] }
  0x28   :  { %1004 = vmatpush3.bf16.msra.mxu0 %v1117_v43 }
  0x29   :  { %1026 = vmatpush3.bf16.msra.mxu1 %v1119_v45  ;;  %1005 = vmatprep.subr.bf16.mxu0 %v1120_v46 }
  0x2a   :  { %1027 = vmatprep.subr.bf16.mxu1 %v1122_v48 }
  0x2c   :  { %1006 = vmatpush3.bf16.msra.mxu0 %v1121_v47 }
  0x2d   :  { %1028 = vmatpush3.bf16.msra.mxu1 %v1123_v49  ;;  %1007 = vmatprep.subr.bf16.mxu0 %v1124_v50 }
  0x2e   :  { %1029 = vmatprep.subr.bf16.mxu1 %v1126_v52 }
  0x30   :  { %1008 = vmatpush3.bf16.msra.mxu0 %v1125_v51 }
  0x31   :  { %1030 = vmatpush3.bf16.msra.mxu1 %v1127_v53  ;;  %1009 = vmatprep.subr.bf16.mxu0 %v1128_v54 }
  0x32   :  { %1031 = vmatprep.subr.bf16.mxu1 %v1130_v56 }
  0x34   :  { %1010 = vmatpush3.bf16.msra.mxu0 %v1129_v55 }
  0x35   :  { %1032 = vmatpush3.bf16.msra.mxu1 %v1131_v57  ;;  %1011 = vmatprep.subr.bf16.mxu0 %v1132_v58 }
  0x36   :  { %1033 = vmatprep.subr.bf16.mxu1 %v1134_v60 }
  0x38   :  { %1012 = vmatpush3.bf16.msra.mxu0 %v1133_v59 }
  0x39   :  { %1034 = vmatpush3.bf16.msra.mxu1 %v1135_v61  ;;  %1013 = vmatprep.subr.bf16.mxu0 %v1136_v62 }
  0x3a   :  { %1035 = vmatprep.subr.bf16.mxu1 %v1138_v0 }
  0x3c   :  { %1014 = vmatpush3.bf16.msra.mxu0 %v1137_v63 }
  0x3d   :  { %1036 = vmatpush3.bf16.msra.mxu1 %v1139_v1  ;;  %1015 = vmatprep.subr.bf16.mxu0 %v1140_v2 }
  0x3e   :  { %1037 = vmatprep.subr.bf16.mxu1 %v1142_v4 }
  0x40   :  { %1016 = vmatpush3.bf16.msra.mxu0 %v1141_v3 }
  0x41   :  { %1038 = vmatpush3.bf16.msra.mxu1 %v1145_v7  ;;  %1054 = vmatprep.subr.bf16.mxu0 %v1159_v13  ;;  %v849_v7 = vld [vmem:[%s1428_s2] sm:$0x1] }
  0x43   :  { %744 = vmatmul.mubr.bf16.vlgmr.msra.gmra.mrb[4].mxu0 %v880_v8  ;;  %v859_v8 = vsub.s32 0, %v858_v6 }
  0x44   :  { %1055 = vmatpush3.bf16.msra.mxu0 %v1148_v12  ;;  %784 = vmatmul.mubr.bf16.vlgmr.msra.gmra.mrb[4].mxu1 %v882_v10 }
  0x45   :  { %1056 = vmatprep.subr.bf16.mxu0 %v1159_v13  ;;  %1070 = vmatprep.mubr.msk.bf16.mxu0 %vm1160_vm0, %v1159_v13 }
  0x48   :  { %1057 = vmatpush3.bf16.msra.mxu0 %v1149_v14 }
  0x49   :  { %1058 = vmatprep.subr.bf16.mxu0 %v1159_v13 }
  0x4c   :  { %1059 = vmatpush3.bf16.msra.mxu0 %v1150_v15 }
  0x4d   :  { %1060 = vmatprep.subr.bf16.mxu0 %v1159_v13 }
  0x50   :  { %1061 = vmatpush3.bf16.msra.mxu0 %v1151_v16 }
  0x51   :  { %1062 = vmatprep.subr.bf16.mxu0 %v1159_v13 }
  0x54   :  { %1063 = vmatpush3.bf16.msra.mxu0 %v1152_v17 }
  0x55   :  { %1064 = vmatprep.subr.bf16.mxu0 %v1159_v13 }
  0x58   :  { %1065 = vmatpush3.bf16.msra.mxu0 %v1153_v18 }
  0x59   :  { %1066 = vmatprep.subr.bf16.mxu0 %v1159_v13 }
  0x5c   :  { %1067 = vmatpush3.bf16.msra.mxu0 %v1154_v19 }
  0x5d   :  { %1068 = vmatprep.subr.bf16.mxu0 %v1159_v13 }
  0x60   :  { %1069 = vmatpush3.bf16.msra.mxu0 %v1155_v20 }
  0x63   :  { %1071 = vmatmul.mubr.bf16.vlgmr.msra.gmra.mrb[8].mxu0 %v1156_v21 }
  0xf6   :  { %v973_v22 = vpop.f32.mrb[0].mxu0 }
  0xf7   :  { %v995_v23 = vpop.f32.mrb[0].mxu1  ;;  %v974_v24 = vpop.f32.mrb[1].mxu0 }
  0xf8   :  { %v996_v25 = vpop.f32.mrb[1].mxu1  ;;  %v975_v26 = vadd.f32 %v974_v24, %v973_v22  ;;  %v976_v28 = vpop.f32.mrb[2].mxu0 }
  0xf9   :  { %v997_v27 = vadd.f32 %v996_v25, %v995_v23  ;;  %v998_v29 = vpop.f32.mrb[2].mxu1  ;;  %v977_v30 = vpop.f32.mrb[3].mxu0 }
  0xfa   :  { %v999_v31 = vpop.f32.mrb[3].mxu1 }
  0xfb   :  { %v706_v32 = vadd.f32 %v997_v27, %v975_v26 }
 0x116   :  { %v1017_v33 = vpop.f32.mrb[4].mxu0 }
 0x117   :  { %v1018_v34 = vpop.f32.mrb[5].mxu0  ;;  %v1039_v35 = vpop.f32.mrb[4].mxu1 }
 0x118   :  { %v1019_v36 = vadd.f32 %v1018_v34, %v1017_v33  ;;  %v1020_v37 = vpop.f32.mrb[6].mxu0  ;;  %v1040_v38 = vpop.f32.mrb[5].mxu1 }
 0x119   :  { %v1021_v39 = vpop.f32.mrb[7].mxu0  ;;  %v1041_v40 = vadd.f32 %v1040_v38, %v1039_v35  ;;  %v1042_v41 = vpop.f32.mrb[6].mxu1 }
 0x11a   :  { %v746_v42 = vadd.f32 %v1019_v36, %v706_v32  ;;  %v1043_v43 = vpop.f32.mrb[7].mxu1 }
 0x11c   :  { %v786_v44 = vadd.f32 %v1041_v40, %v746_v42 }
 0x136   :  { %v825_v45 = vpop.f32.mrb[8].mxu0 }
 0x137   :  { %v826_v46 = vadd.f32 %v825_v45, %v786_v44  ;;  %v1072_v47 = vpop.f32.mrb[9].mxu0 }
 0x138   :  { %v828_v48 = vpop.f32.mrb[10].mxu0 }
 0x139   :  { %v831_v49 = vrot.slane %v826_v46, 4  ;;  %v838_v50 = vmul.f32 %v826_v46, %v826_v46  ;;  %v1073_v51 = vpop.f32.mrb[11].mxu0 }
 0x13b   :  { %v832_v52 = vadd.f32 %v831_v49, %v826_v46  ;;  %v839_v53 = vrot.slane %v838_v50, 4 }
 0x13d   :  { %v833_v54 = vrot.slane %v832_v52, 2  ;;  %v840_v55 = vadd.f32 %v839_v53, %v838_v50 }
 0x13f   :  { %v834_v56 = vadd.f32 %v833_v54, %v832_v52  ;;  %v841_v57 = vrot.slane %v840_v55, 2 }
 0x141   :  { %v835_v58 = vrot.slane %v834_v56, 1  ;;  %v842_v59 = vadd.f32 %v841_v57, %v840_v55 }
 0x143   :  { %v836_v60 = vadd.f32 %v835_v58, %v834_v56  ;;  %v843_v61 = vrot.slane %v842_v59, 1 }
 0x145   :  { %v837_v62 = vmul.f32 0.125, %v836_v60  ;;  %v844_v63 = vadd.f32 %v843_v61, %v842_v59 }
 0x147   :  { %v845_v0 = vmul.f32 0.125, %v844_v63  ;;  %v846_v1 = vmul.f32 %v837_v62, %v837_v62 }
 0x149   :  { %v847_v2 = vsub.f32 %v845_v0, %v846_v1 }
 0x14b   :  { %v848_v3 = vmax.f32 %v847_v2, 0.0 }
 0x14d   :  { %v850_v4 = vadd.f32 1e-05, %v848_v3 }
 0x14f   :  { %1157 = vrsqrt.f32 %v850_v4 }
 0x159   :  { %v1158_v9 = vpop.eup %1157 }
 0x15a   :  { %v852_v10 = vmul.f32 %v1158_v9, %v849_v7 }
 0x15c   :  { %v854_v12 = vmul.f32 %v852_v10, %v837_v62  ;;  %v860_v13 = vrot.slane %v852_v10, %v859_v8 }
 0x15e   :  { %v855_v14 = vsub.f32 %v853_v11, %v854_v12  ;;  %v862_v15 = vmul.f32 %v860_v13, %v826_v46 }
 0x160   :  { %v867_v16 = vrot.slane %v855_v14, %v859_v8 }
 0x162   :  { %v869_v17 = vadd.f32 %v867_v16, %v862_v15 }
 0x164   :  { %v870_v18 = vmax.f32 %v869_v17, 0.0 }
 0x166   :  { %871 = vst [vmem:[%s1430_s4] sm:$0xff] %v870_v18 }

// kernel: resnet_forward.22
= control target key start
LH: loop header
LB: loop body
LE: loop exit
PB: predicated region body
PF: predicated region fallthrough
CT: control target
= control target key end

     0   :  { %s2138_s15 = smov 0   ;;  %s2140_s16 = smov 0   ;;  %s2603_s0 = inlined_call_operand.vmem [shape: bf16[8,1152], index: 0, kind: input, shape index: {}]   ;;  %s2604_s1 = inlined_call_operand.vmem [shape: bf16[1152,256], index: 1, kind: input, shape index: {}]   ;;  %s2605_s2 = inlined_call_operand.vmem [shape: f32[1,256], index: 2, kind: input, shape index: {}]   ;;  %s2606_s3 = inlined_call_operand.vmem [shape: f32[1,256], index: 3, kind: input, shape index: {}]   ;;  %s2607_s4 = inlined_call_operand.vmem [shape: f32[8,256], index: 4, kind: output, shape index: {}]  }
   0x1   :  { %s2142_s17 = smov 0  }
   0x2 LB: > { %s1769_s18 = sadd.s32 4294967295, %s2109_s17   ;;  %s2155_s19 = sadd.s32 1, %s2109_s17   ;;  %s2109_s17 = sphi %s2142_s17, %s2610_s17   ;;  %s2105_s16 = sphi %s2140_s16, %s2609_s16   ;;  %s2101_s15 = sphi %s2138_s15, %s2608_s15  }
   0x3   : > { %s39_s20 = ssub.s32 %s2109_s17, %s2155_s19  ;;  %s42_s21 = sadd.s32 1, %s2105_s16 }
   0x4   : > { %p40_p0 = scmp.eq.s32.totalorder %s39_s20, 0  ;;  %p49_p1 = scmp.ne.s32.totalorder %s2105_s16, %s2101_s15 }
   0x5   : > { %p50_p2 = scmp.eq.s32.totalorder %s2109_s17, 0  ;;  %p1772_p4 = scmp.ge.s32.totalorder %s2109_s17, 2 }
   0x6   : > { %s2164_s22 = scalar_select %p40_p0, %s2105_s16, %s42_s21  }
   0x7   : > { %p51_p3 = por %p50_p2, %p49_p1  ;;  %156 = sbr.rel (%p1772_p4) target bundleno = 114 (0x72), region = 20 }
   0xe   : > { %159 = sbr.rel (!%p51_p3) target bundleno = 114 (0x72), region = 24  ;;  %s161_s23 = sand.u32 (%p51_p3), 1, %s2105_s16  }
   0xf   : > { %s1773_s24 = sshll.u32 (%p51_p3), %s2109_s17, 2  ;;  %s1976_s25 = smul.u32 (%p51_p3), 576, %s161_s23 }
  0x10   : > { %s2172_s28 = scalar_lea.vmem (%p51_p3), %s2604_s1, %s1773_s24 }
  0x11   : > { %v181_v0 = vld [vmem:[%s2172_s28] sm:$0xf] (%p51_p3)  ;;  %v183_v1 = vld [vmem:[%s2172_s28 + $0x8] sm:$0xf] (%p51_p3)  ;;  %v185_v2 = vld [vmem:[%s2172_s28 + $0x10] sm:$0xf] (%p51_p3) }
  0x12   : > { %v187_v3 = vld [vmem:[%s2172_s28 + $0x18] sm:$0xf] (%p51_p3)  ;;  %v189_v4 = vld [vmem:[%s2172_s28 + $0x20] sm:$0xf] (%p51_p3)  ;;  %s2179_s29 = scalar_lea.vmem (%p51_p3), [#allocation2], %s1976_s25 }
  0x13   : > { %182 = vst [vmem:[%s2179_s29] sm:$0xf] (%p51_p3), %v181_v0  ;;  %184 = vst [vmem:[%s2179_s29 + $0x4] sm:$0xf] (%p51_p3), %v183_v1  ;;  %v191_v5 = vld [vmem:[%s2172_s28 + $0x28] sm:$0xf] (%p51_p3) }
  0x14   : > { %186 = vst [vmem:[%s2179_s29 + $0x8] sm:$0xf] (%p51_p3), %v185_v2  ;;  %188 = vst [vmem:[%s2179_s29 + $0xc] sm:$0xf] (%p51_p3), %v187_v3  ;;  %v193_v6 = vld [vmem:[%s2172_s28 + $0x30] sm:$0xf] (%p51_p3) }
  0x15   : > { %190 = vst [vmem:[%s2179_s29 + $0x10] sm:$0xf] %v189_v4  ;;  %v195_v7 = vld [vmem:[%s2172_s28 + $0x38] sm:$0xf]  ;;  %192 = vst [vmem:[%s2179_s29 + $0x14] sm:$0xf] %v191_v5 }
  0x16   : > { %194 = vst [vmem:[%s2179_s29 + $0x18] sm:$0xf] %v193_v6  ;;  %196 = vst [vmem:[%s2179_s29 + $0x1c] sm:$0xf] %v195_v7  ;;  %v197_v8 = vld [vmem:[%s2172_s28 + $0x40] sm:$0xf] }
  0x17   : > { %v199_v9 = vld [vmem:[%s2172_s28 + $0x48] sm:$0xf]  ;;  %v201_v10 = vld [vmem:[%s2172_s28 + $0x50] sm:$0xf]  ;;  %198 = vst [vmem:[%s2179_s29 + $0x20] sm:$0xf] %v197_v8 }
  0x18   : > { %200 = vst [vmem:[%s2179_s29 + $0x24] sm:$0xf] %v199_v9  ;;  %202 = vst [vmem:[%s2179_s29 + $0x28] sm:$0xf] %v201_v10  ;;  %v203_v11 = vld [vmem:[%s2172_s28 + $0x58] sm:$0xf] }
  0x19   : > { %v205_v12 = vld [vmem:[%s2172_s28 + $0x60] sm:$0xf]  ;;  %v207_v13 = vld [vmem:[%s2172_s28 + $0x68] sm:$0xf]  ;;  %204 = vst [vmem:[%s2179_s29 + $0x2c] sm:$0xf] %v203_v11 }
  0x1a   : > { %206 = vst [vmem:[%s2179_s29 + $0x30] sm:$0xf] %v205_v12  ;;  %208 = vst [vmem:[%s2179_s29 + $0x34] sm:$0xf] %v207_v13  ;;  %v209_v14 = vld [vmem:[%s2172_s28 + $0x70] sm:$0xf] }
  0x1b   : > { %v211_v15 = vld [vmem:[%s2172_s28 + $0x78] sm:$0xf]  ;;  %v213_v16 = vld [vmem:[%s2172_s28 + $0x80] sm:$0xf]  ;;  %210 = vst [vmem:[%s2179_s29 + $0x38] sm:$0xf] %v209_v14 }
  0x1c   : > { %212 = vst [vmem:[%s2179_s29 + $0x3c] sm:$0xf] %v211_v15  ;;  %214 = vst [vmem:[%s2179_s29 + $0x40] sm:$0xf] %v213_v16  ;;  %v215_v17 = vld [vmem:[%s2172_s28 + $0x88] sm:$0xf] }
  0x1d   : > { %v217_v18 = vld [vmem:[%s2172_s28 + $0x90] sm:$0xf]  ;;  %v219_v19 = vld [vmem:[%s2172_s28 + $0x98] sm:$0xf]  ;;  %216 = vst [vmem:[%s2179_s29 + $0x44] sm:$0xf] %v215_v17 }
  0x1e   : > { %218 = vst [vmem:[%s2179_s29 + $0x48] sm:$0xf] %v217_v18  ;;  %220 = vst [vmem:[%s2179_s29 + $0x4c] sm:$0xf] %v219_v19  ;;  %v221_v20 = vld [vmem:[%s2172_s28 + $0xa0] sm:$0xf] }
  0x1f   : > { %v223_v21 = vld [vmem:[%s2172_s28 + $0xa8] sm:$0xf]  ;;  %v225_v22 = vld [vmem:[%s2172_s28 + $0xb0] sm:$0xf]  ;;  %222 = vst [vmem:[%s2179_s29 + $0x50] sm:$0xf] %v221_v20 }
  0x20   : > { %224 = vst [vmem:[%s2179_s29 + $0x54] sm:$0xf] %v223_v21  ;;  %226 = vst [vmem:[%s2179_s29 + $0x58] sm:$0xf] %v225_v22  ;;  %v227_v23 = vld [vmem:[%s2172_s28 + $0xb8] sm:$0xf] }
  0x21   : > { %v229_v24 = vld [vmem:[%s2172_s28 + $0xc0] sm:$0xf]  ;;  %v231_v25 = vld [vmem:[%s2172_s28 + $0xc8] sm:$0xf]  ;;  %228 = vst [vmem:[%s2179_s29 + $0x5c] sm:$0xf] %v227_v23 }
  0x22   : > { %230 = vst [vmem:[%s2179_s29 + $0x60] sm:$0xf] %v229_v24  ;;  %232 = vst [vmem:[%s2179_s29 + $0x64] sm:$0xf] %v231_v25  ;;  %v233_v26 = vld [vmem:[%s2172_s28 + $0xd0] sm:$0xf] }
  0x23   : > { %v235_v27 = vld [vmem:[%s2172_s28 + $0xd8] sm:$0xf]  ;;  %v237_v28 = vld [vmem:[%s2172_s28 + $0xe0] sm:$0xf]  ;;  %234 = vst [vmem:[%s2179_s29 + $0x68] sm:$0xf] %v233_v26 }
  0x24   : > { %236 = vst [vmem:[%s2179_s29 + $0x6c] sm:$0xf] %v235_v27  ;;  %238 = vst [vmem:[%s2179_s29 + $0x70] sm:$0xf] %v237_v28  ;;  %v239_v29 = vld [vmem:[%s2172_s28 + $0xe8] sm:$0xf] }
  0x25   : > { %v241_v30 = vld [vmem:[%s2172_s28 + $0xf0] sm:$0xf]  ;;  %v243_v31 = vld [vmem:[%s2172_s28 + $0xf8] sm:$0xf]  ;;  %240 = vst [vmem:[%s2179_s29 + $0x74] sm:$0xf] %v239_v29 }
  0x26   : > { %242 = vst [vmem:[%s2179_s29 + $0x78] sm:$0xf] %v241_v30  ;;  %244 = vst [vmem:[%s2179_s29 + $0x7c] sm:$0xf] %v243_v31  ;;  %v245_v32 = vld [vmem:[%s2172_s28 + $0x100] sm:$0xf] }
  0x27   : > { %v247_v33 = vld [vmem:[%s2172_s28 + $0x108] sm:$0xf]  ;;  %v249_v34 = vld [vmem:[%s2172_s28 + $0x110] sm:$0xf]  ;;  %246 = vst [vmem:[%s2179_s29 + $0x80] sm:$0xf] %v245_v32 }
  0x28   : > { %248 = vst [vmem:[%s2179_s29 + $0x84] sm:$0xf] %v247_v33  ;;  %250 = vst [vmem:[%s2179_s29 + $0x88] sm:$0xf] %v249_v34  ;;  %v251_v35 = vld [vmem:[%s2172_s28 + $0x118] sm:$0xf] }
  0x29   : > { %v253_v36 = vld [vmem:[%s2172_s28 + $0x120] sm:$0xf]  ;;  %v255_v37 = vld [vmem:[%s2172_s28 + $0x128] sm:$0xf]  ;;  %252 = vst [vmem:[%s2179_s29 + $0x8c] sm:$0xf] %v251_v35 }
  0x2a   : > { %254 = vst [vmem:[%s2179_s29 + $0x90] sm:$0xf] %v253_v36  ;;  %256 = vst [vmem:[%s2179_s29 + $0x94] sm:$0xf] %v255_v37  ;;  %v257_v38 = vld [vmem:[%s2172_s28 + $0x130] sm:$0xf] }
  0x2b   : > { %v259_v39 = vld [vmem:[%s2172_s28 + $0x138] sm:$0xf]  ;;  %v261_v40 = vld [vmem:[%s2172_s28 + $0x140] sm:$0xf]  ;;  %258 = vst [vmem:[%s2179_s29 + $0x98] sm:$0xf] %v257_v38 }
  0x2c   : > { %260 = vst [vmem:[%s2179_s29 + $0x9c] sm:$0xf] %v259_v39  ;;  %262 = vst [vmem:[%s2179_s29 + $0xa0] sm:$0xf] %v261_v40  ;;  %v263_v41 = vld [vmem:[%s2172_s28 + $0x148] sm:$0xf] }
  0x2d   : > { %v265_v42 = vld [vmem:[%s2172_s28 + $0x150] sm:$0xf]  ;;  %v267_v43 = vld [vmem:[%s2172_s28 + $0x158] sm:$0xf]  ;;  %264 = vst [vmem:[%s2179_s29 + $0xa4] sm:$0xf] %v263_v41 }
  0x2e   : > { %266 = vst [vmem:[%s2179_s29 + $0xa8] sm:$0xf] %v265_v42  ;;  %268 = vst [vmem:[%s2179_s29 + $0xac] sm:$0xf] %v267_v43  ;;  %v269_v44 = vld [vmem:[%s2172_s28 + $0x160] sm:$0xf] }
  0x2f   : > { %v271_v45 = vld [vmem:[%s2172_s28 + $0x168] sm:$0xf]  ;;  %v273_v46 = vld [vmem:[%s2172_s28 + $0x170] sm:$0xf]  ;;  %270 = vst [vmem:[%s2179_s29 + $0xb0] sm:$0xf] %v269_v44 }
  0x30   : > { %272 = vst [vmem:[%s2179_s29 + $0xb4] sm:$0xf] %v271_v45  ;;  %274 = vst [vmem:[%s2179_s29 + $0xb8] sm:$0xf] %v273_v46  ;;  %v275_v47 = vld [vmem:[%s2172_s28 + $0x178] sm:$0xf] }
  0x31   : > { %v277_v48 = vld [vmem:[%s2172_s28 + $0x180] sm:$0xf]  ;;  %v279_v49 = vld [vmem:[%s2172_s28 + $0x188] sm:$0xf]  ;;  %276 = vst [vmem:[%s2179_s29 + $0xbc] sm:$0xf] %v275_v47 }
  0x32   : > { %278 = vst [vmem:[%s2179_s29 + $0xc0] sm:$0xf] %v277_v48  ;;  %280 = vst [vmem:[%s2179_s29 + $0xc4] sm:$0xf] %v279_v49  ;;  %v281_v50 = vld [vmem:[%s2172_s28 + $0x190] sm:$0xf] }
  0x33   : > { %v283_v51 = vld [vmem:[%s2172_s28 + $0x198] sm:$0xf]  ;;  %v285_v52 = vld [vmem:[%s2172_s28 + $0x1a0] sm:$0xf]  ;;  %282 = vst [vmem:[%s2179_s29 + $0xc8] sm:$0xf] %v281_v50 }
  0x34   : > { %284 = vst [vmem:[%s2179_s29 + $0xcc] sm:$0xf] %v283_v51  ;;  %286 = vst [vmem:[%s2179_s29 + $0xd0] sm:$0xf] %v285_v52  ;;  %v287_v53 = vld [vmem:[%s2172_s28 + $0x1a8] sm:$0xf] }
  0x35   : > { %v289_v54 = vld [vmem:[%s2172_s28 + $0x1b0] sm:$0xf]  ;;  %v291_v55 = vld [vmem:[%s2172_s28 + $0x1b8] sm:$0xf]  ;;  %288 = vst [vmem:[%s2179_s29 + $0xd4] sm:$0xf] %v287_v53 }
  0x36   : > { %290 = vst [vmem:[%s2179_s29 + $0xd8] sm:$0xf] %v289_v54  ;;  %292 = vst [vmem:[%s2179_s29 + $0xdc] sm:$0xf] %v291_v55  ;;  %v293_v56 = vld [vmem:[%s2172_s28 + $0x1c0] sm:$0xf] }
  0x37   : > { %v295_v57 = vld [vmem:[%s2172_s28 + $0x1c8] sm:$0xf]  ;;  %v297_v58 = vld [vmem:[%s2172_s28 + $0x1d0] sm:$0xf]  ;;  %294 = vst [vmem:[%s2179_s29 + $0xe0] sm:$0xf] %v293_v56 }
  0x38   : > { %296 = vst [vmem:[%s2179_s29 + $0xe4] sm:$0xf] %v295_v57  ;;  %298 = vst [vmem:[%s2179_s29 + $0xe8] sm:$0xf] %v297_v58  ;;  %v299_v59 = vld [vmem:[%s2172_s28 + $0x1d8] sm:$0xf] }
  0x39   : > { %v301_v60 = vld [vmem:[%s2172_s28 + $0x1e0] sm:$0xf]  ;;  %v303_v61 = vld [vmem:[%s2172_s28 + $0x1e8] sm:$0xf]  ;;  %300 = vst [vmem:[%s2179_s29 + $0xec] sm:$0xf] %v299_v59 }
  0x3a   : > { %302 = vst [vmem:[%s2179_s29 + $0xf0] sm:$0xf] %v301_v60  ;;  %304 = vst [vmem:[%s2179_s29 + $0xf4] sm:$0xf] %v303_v61  ;;  %v305_v62 = vld [vmem:[%s2172_s28 + $0x1f0] sm:$0xf] }
  0x3b   : > { %v307_v63 = vld [vmem:[%s2172_s28 + $0x1f8] sm:$0xf]  ;;  %v309_v0 = vld [vmem:[%s2172_s28 + $0x200] sm:$0xf]  ;;  %306 = vst [vmem:[%s2179_s29 + $0xf8] sm:$0xf] %v305_v62 }
  0x3c   : > { %308 = vst [vmem:[%s2179_s29 + $0xfc] sm:$0xf] %v307_v63  ;;  %310 = vst [vmem:[%s2179_s29 + $0x100] sm:$0xf] %v309_v0  ;;  %v311_v1 = vld [vmem:[%s2172_s28 + $0x208] sm:$0xf] }
  0x3d   : > { %v313_v2 = vld [vmem:[%s2172_s28 + $0x210] sm:$0xf]  ;;  %v315_v3 = vld [vmem:[%s2172_s28 + $0x218] sm:$0xf]  ;;  %312 = vst [vmem:[%s2179_s29 + $0x104] sm:$0xf] %v311_v1 }
  0x3e   : > { %314 = vst [vmem:[%s2179_s29 + $0x108] sm:$0xf] %v313_v2  ;;  %316 = vst [vmem:[%s2179_s29 + $0x10c] sm:$0xf] %v315_v3  ;;  %v317_v4 = vld [vmem:[%s2172_s28 + $0x220] sm:$0xf] }
  0x3f   : > { %v319_v5 = vld [vmem:[%s2172_s28 + $0x228] sm:$0xf]  ;;  %v321_v6 = vld [vmem:[%s2172_s28 + $0x230] sm:$0xf]  ;;  %318 = vst [vmem:[%s2179_s29 + $0x110] sm:$0xf] %v317_v4 }
  0x40   : > { %320 = vst [vmem:[%s2179_s29 + $0x114] sm:$0xf] %v319_v5  ;;  %322 = vst [vmem:[%s2179_s29 + $0x118] sm:$0xf] %v321_v6  ;;  %v323_v7 = vld [vmem:[%s2172_s28 + $0x238] sm:$0xf] }
  0x41   : > { %v325_v8 = vld [vmem:[%s2172_s28 + $0x240] sm:$0xf]  ;;  %v327_v9 = vld [vmem:[%s2172_s28 + $0x248] sm:$0xf]  ;;  %324 = vst [vmem:[%s2179_s29 + $0x11c] sm:$0xf] %v323_v7 }
  0x42   : > { %326 = vst [vmem:[%s2179_s29 + $0x120] sm:$0xf] %v325_v8  ;;  %328 = vst [vmem:[%s2179_s29 + $0x124] sm:$0xf] %v327_v9  ;;  %v329_v10 = vld [vmem:[%s2172_s28 + $0x250] sm:$0xf] }
  0x43   : > { %v331_v11 = vld [vmem:[%s2172_s28 + $0x258] sm:$0xf]  ;;  %v333_v12 = vld [vmem:[%s2172_s28 + $0x260] sm:$0xf]  ;;  %330 = vst [vmem:[%s2179_s29 + $0x128] sm:$0xf] %v329_v10 }
  0x44   : > { %332 = vst [vmem:[%s2179_s29 + $0x12c] sm:$0xf] %v331_v11  ;;  %334 = vst [vmem:[%s2179_s29 + $0x130] sm:$0xf] %v333_v12  ;;  %v335_v13 = vld [vmem:[%s2172_s28 + $0x268] sm:$0xf] }
  0x45   : > { %v337_v14 = vld [vmem:[%s2172_s28 + $0x270] sm:$0xf]  ;;  %v339_v15 = vld [vmem:[%s2172_s28 + $0x278] sm:$0xf]  ;;  %336 = vst [vmem:[%s2179_s29 + $0x134] sm:$0xf] %v335_v13 }
  0x46   : > { %338 = vst [vmem:[%s2179_s29 + $0x138] sm:$0xf] %v337_v14  ;;  %340 = vst [vmem:[%s2179_s29 + $0x13c] sm:$0xf] %v339_v15  ;;  %v341_v16 = vld [vmem:[%s2172_s28 + $0x280] sm:$0xf] }
  0x47   : > { %v343_v17 = vld [vmem:[%s2172_s28 + $0x288] sm:$0xf]  ;;  %v345_v18 = vld [vmem:[%s2172_s28 + $0x290] sm:$0xf]  ;;  %342 = vst [vmem:[%s2179_s29 + $0x140] sm:$0xf] %v341_v16 }
  0x48   : > { %344 = vst [vmem:[%s2179_s29 + $0x144] sm:$0xf] %v343_v17  ;;  %346 = vst [vmem:[%s2179_s29 + $0x148] sm:$0xf] %v345_v18  ;;  %v347_v19 = vld [vmem:[%s2172_s28 + $0x298] sm:$0xf] }
  0x49   : > { %v349_v20 = vld [vmem:[%s2172_s28 + $0x2a0] sm:$0xf]  ;;  %v351_v21 = vld [vmem:[%s2172_s28 + $0x2a8] sm:$0xf]  ;;  %348 = vst [vmem:[%s2179_s29 + $0x14c] sm:$0xf] %v347_v19 }
  0x4a   : > { %350 = vst [vmem:[%s2179_s29 + $0x150] sm:$0xf] %v349_v20  ;;  %352 = vst [vmem:[%s2179_s29 + $0x154] sm:$0xf] %v351_v21  ;;  %v353_v22 = vld [vmem:[%s2172_s28 + $0x2b0] sm:$0xf] }
  0x4b   : > { %v355_v23 = vld [vmem:[%s2172_s28 + $0x2b8] sm:$0xf]  ;;  %v357_v24 = vld [vmem:[%s2172_s28 + $0x2c0] sm:$0xf]  ;;  %354 = vst [vmem:[%s2179_s29 + $0x158] sm:$0xf] %v353_v22 }
  0x4c   : > { %356 = vst [vmem:[%s2179_s29 + $0x15c] sm:$0xf] %v355_v23  ;;  %358 = vst [vmem:[%s2179_s29 + $0x160] sm:$0xf] %v357_v24  ;;  %v359_v25 = vld [vmem:[%s2172_s28 + $0x2c8] sm:$0xf] }
  0x4d   : > { %v361_v26 = vld [vmem:[%s2172_s28 + $0x2d0] sm:$0xf]  ;;  %v363_v27 = vld [vmem:[%s2172_s28 + $0x2d8] sm:$0xf]  ;;  %360 = vst [vmem:[%s2179_s29 + $0x164] sm:$0xf] %v359_v25 }
  0x4e   : > { %362 = vst [vmem:[%s2179_s29 + $0x168] sm:$0xf] %v361_v26  ;;  %364 = vst [vmem:[%s2179_s29 + $0x16c] sm:$0xf] %v363_v27  ;;  %v365_v28 = vld [vmem:[%s2172_s28 + $0x2e0] sm:$0xf] }
  0x4f   : > { %v367_v29 = vld [vmem:[%s2172_s28 + $0x2e8] sm:$0xf]  ;;  %v369_v30 = vld [vmem:[%s2172_s28 + $0x2f0] sm:$0xf]  ;;  %366 = vst [vmem:[%s2179_s29 + $0x170] sm:$0xf] %v365_v28 }
  0x50   : > { %368 = vst [vmem:[%s2179_s29 + $0x174] sm:$0xf] %v367_v29  ;;  %370 = vst [vmem:[%s2179_s29 + $0x178] sm:$0xf] %v369_v30  ;;  %v371_v31 = vld [vmem:[%s2172_s28 + $0x2f8] sm:$0xf] }
  0x51   : > { %v373_v32 = vld [vmem:[%s2172_s28 + $0x300] sm:$0xf]  ;;  %v375_v33 = vld [vmem:[%s2172_s28 + $0x308] sm:$0xf]  ;;  %372 = vst [vmem:[%s2179_s29 + $0x17c] sm:$0xf] %v371_v31 }
  0x52   : > { %374 = vst [vmem:[%s2179_s29 + $0x180] sm:$0xf] %v373_v32  ;;  %376 = vst [vmem:[%s2179_s29 + $0x184] sm:$0xf] %v375_v33  ;;  %v377_v34 = vld [vmem:[%s2172_s28 + $0x310] sm:$0xf] }
  0x53   : > { %v379_v35 = vld [vmem:[%s2172_s28 + $0x318] sm:$0xf]  ;;  %v381_v36 = vld [vmem:[%s2172_s28 + $0x320] sm:$0xf]  ;;  %378 = vst [vmem:[%s2179_s29 + $0x188] sm:$0xf] %v377_v34 }
  0x54   : > { %380 = vst [vmem:[%s2179_s29 + $0x18c] sm:$0xf] %v379_v35  ;;  %382 = vst [vmem:[%s2179_s29 + $0x190] sm:$0xf] %v381_v36  ;;  %v383_v37 = vld [vmem:[%s2172_s28 + $0x328] sm:$0xf] }
  0x55   : > { %v385_v38 = vld [vmem:[%s2172_s28 + $0x330] sm:$0xf]  ;;  %v387_v39 = vld [vmem:[%s2172_s28 + $0x338] sm:$0xf]  ;;  %384 = vst [vmem:[%s2179_s29 + $0x194] sm:$0xf] %v383_v37 }
  0x56   : > { %386 = vst [vmem:[%s2179_s29 + $0x198] sm:$0xf] %v385_v38  ;;  %388 = vst [vmem:[%s2179_s29 + $0x19c] sm:$0xf] %v387_v39  ;;  %v389_v40 = vld [vmem:[%s2172_s28 + $0x340] sm:$0xf] }
  0x57   : > { %v391_v41 = vld [vmem:[%s2172_s28 + $0x348] sm:$0xf]  ;;  %v393_v42 = vld [vmem:[%s2172_s28 + $0x350] sm:$0xf]  ;;  %390 = vst [vmem:[%s2179_s29 + $0x1a0] sm:$0xf] %v389_v40 }
  0x58   : > { %392 = vst [vmem:[%s2179_s29 + $0x1a4] sm:$0xf] %v391_v41  ;;  %394 = vst [vmem:[%s2179_s29 + $0x1a8] sm:$0xf] %v393_v42  ;;  %v395_v43 = vld [vmem:[%s2172_s28 + $0x358] sm:$0xf] }
  0x59   : > { %v397_v44 = vld [vmem:[%s2172_s28 + $0x360] sm:$0xf]  ;;  %v399_v45 = vld [vmem:[%s2172_s28 + $0x368] sm:$0xf]  ;;  %396 = vst [vmem:[%s2179_s29 + $0x1ac] sm:$0xf] %v395_v43 }
  0x5a   : > { %398 = vst [vmem:[%s2179_s29 + $0x1b0] sm:$0xf] %v397_v44  ;;  %400 = vst [vmem:[%s2179_s29 + $0x1b4] sm:$0xf] %v399_v45  ;;  %v401_v46 = vld [vmem:[%s2172_s28 + $0x370] sm:$0xf] }
  0x5b   : > { %v403_v47 = vld [vmem:[%s2172_s28 + $0x378] sm:$0xf]  ;;  %v405_v48 = vld [vmem:[%s2172_s28 + $0x380] sm:$0xf]  ;;  %402 = vst [vmem:[%s2179_s29 + $0x1b8] sm:$0xf] %v401_v46 }
  0x5c   : > { %404 = vst [vmem:[%s2179_s29 + $0x1bc] sm:$0xf] %v403_v47  ;;  %406 = vst [vmem:[%s2179_s29 + $0x1c0] sm:$0xf] %v405_v48  ;;  %v407_v49 = vld [vmem:[%s2172_s28 + $0x388] sm:$0xf] }
  0x5d   : > { %v409_v50 = vld [vmem:[%s2172_s28 + $0x390] sm:$0xf]  ;;  %v411_v51 = vld [vmem:[%s2172_s28 + $0x398] sm:$0xf]  ;;  %408 = vst [vmem:[%s2179_s29 + $0x1c4] sm:$0xf] %v407_v49 }
  0x5e   : > { %410 = vst [vmem:[%s2179_s29 + $0x1c8] sm:$0xf] %v409_v50  ;;  %412 = vst [vmem:[%s2179_s29 + $0x1cc] sm:$0xf] %v411_v51  ;;  %v413_v52 = vld [vmem:[%s2172_s28 + $0x3a0] sm:$0xf] }
  0x5f   : > { %v415_v53 = vld [vmem:[%s2172_s28 + $0x3a8] sm:$0xf]  ;;  %v417_v54 = vld [vmem:[%s2172_s28 + $0x3b0] sm:$0xf]  ;;  %414 = vst [vmem:[%s2179_s29 + $0x1d0] sm:$0xf] %v413_v52 }
  0x60   : > { %416 = vst [vmem:[%s2179_s29 + $0x1d4] sm:$0xf] %v415_v53  ;;  %418 = vst [vmem:[%s2179_s29 + $0x1d8] sm:$0xf] %v417_v54  ;;  %v419_v55 = vld [vmem:[%s2172_s28 + $0x3b8] sm:$0xf] }
  0x61   : > { %v421_v56 = vld [vmem:[%s2172_s28 + $0x3c0] sm:$0xf]  ;;  %v423_v57 = vld [vmem:[%s2172_s28 + $0x3c8] sm:$0xf]  ;;  %420 = vst [vmem:[%s2179_s29 + $0x1dc] sm:$0xf] %v419_v55 }
  0x62   : > { %422 = vst [vmem:[%s2179_s29 + $0x1e0] sm:$0xf] %v421_v56  ;;  %424 = vst [vmem:[%s2179_s29 + $0x1e4] sm:$0xf] %v423_v57  ;;  %v425_v58 = vld [vmem:[%s2172_s28 + $0x3d0] sm:$0xf] }
  0x63   : > { %v427_v59 = vld [vmem:[%s2172_s28 + $0x3d8] sm:$0xf]  ;;  %v429_v60 = vld [vmem:[%s2172_s28 + $0x3e0] sm:$0xf]  ;;  %426 = vst [vmem:[%s2179_s29 + $0x1e8] sm:$0xf] %v425_v58 }
  0x64   : > { %428 = vst [vmem:[%s2179_s29 + $0x1ec] sm:$0xf] %v427_v59  ;;  %430 = vst [vmem:[%s2179_s29 + $0x1f0] sm:$0xf] %v429_v60  ;;  %v431_v61 = vld [vmem:[%s2172_s28 + $0x3e8] sm:$0xf] }
  0x65   : > { %v433_v62 = vld [vmem:[%s2172_s28 + $0x3f0] sm:$0xf]  ;;  %v435_v63 = vld [vmem:[%s2172_s28 + $0x3f8] sm:$0xf]  ;;  %432 = vst [vmem:[%s2179_s29 + $0x1f4] sm:$0xf] %v431_v61 }
  0x66   : > { %434 = vst [vmem:[%s2179_s29 + $0x1f8] sm:$0xf] %v433_v62  ;;  %436 = vst [vmem:[%s2179_s29 + $0x1fc] sm:$0xf] %v435_v63  ;;  %v437_v0 = vld [vmem:[%s2172_s28 + $0x400] sm:$0xf] }
  0x67   : > { %v439_v1 = vld [vmem:[%s2172_s28 + $0x408] sm:$0xf]  ;;  %v441_v2 = vld [vmem:[%s2172_s28 + $0x410] sm:$0xf]  ;;  %438 = vst [vmem:[%s2179_s29 + $0x200] sm:$0xf] %v437_v0 }
  0x68   : > { %440 = vst [vmem:[%s2179_s29 + $0x204] sm:$0xf] %v439_v1  ;;  %442 = vst [vmem:[%s2179_s29 + $0x208] sm:$0xf] %v441_v2  ;;  %v443_v3 = vld [vmem:[%s2172_s28 + $0x418] sm:$0xf] }
  0x69   : > { %v445_v4 = vld [vmem:[%s2172_s28 + $0x420] sm:$0xf]  ;;  %v447_v5 = vld [vmem:[%s2172_s28 + $0x428] sm:$0xf]  ;;  %444 = vst [vmem:[%s2179_s29 + $0x20c] sm:$0xf] %v443_v3 }
  0x6a   : > { %446 = vst [vmem:[%s2179_s29 + $0x210] sm:$0xf] %v445_v4  ;;  %448 = vst [vmem:[%s2179_s29 + $0x214] sm:$0xf] %v447_v5  ;;  %v449_v6 = vld [vmem:[%s2172_s28 + $0x430] sm:$0xf] }
  0x6b   : > { %v451_v7 = vld [vmem:[%s2172_s28 + $0x438] sm:$0xf]  ;;  %v453_v8 = vld [vmem:[%s2172_s28 + $0x440] sm:$0xf]  ;;  %450 = vst [vmem:[%s2179_s29 + $0x218] sm:$0xf] %v449_v6 }
  0x6c   : > { %452 = vst [vmem:[%s2179_s29 + $0x21c] sm:$0xf] %v451_v7  ;;  %454 = vst [vmem:[%s2179_s29 + $0x220] sm:$0xf] %v453_v8  ;;  %v455_v9 = vld [vmem:[%s2172_s28 + $0x448] sm:$0xf] }
  0x6d   : > { %v457_v10 = vld [vmem:[%s2172_s28 + $0x450] sm:$0xf]  ;;  %v459_v11 = vld [vmem:[%s2172_s28 + $0x458] sm:$0xf]  ;;  %456 = vst [vmem:[%s2179_s29 + $0x224] sm:$0xf] %v455_v9 }
  0x6e   : > { %458 = vst [vmem:[%s2179_s29 + $0x228] sm:$0xf] %v457_v10  ;;  %460 = vst [vmem:[%s2179_s29 + $0x22c] sm:$0xf] %v459_v11  ;;  %v461_v12 = vld [vmem:[%s2172_s28 + $0x460] sm:$0xf] }
  0x6f   : > { %v463_v13 = vld [vmem:[%s2172_s28 + $0x468] sm:$0xf]  ;;  %v465_v14 = vld [vmem:[%s2172_s28 + $0x470] sm:$0xf]  ;;  %462 = vst [vmem:[%s2179_s29 + $0x230] sm:$0xf] %v461_v12 }
  0x70   : > { %464 = vst [vmem:[%s2179_s29 + $0x234] sm:$0xf] %v463_v13  ;;  %466 = vst [vmem:[%s2179_s29 + $0x238] sm:$0xf] %v465_v14  ;;  %v467_v15 = vld [vmem:[%s2172_s28 + $0x478] sm:$0xf] }
  0x71   : > { %468 = vst [vmem:[%s2179_s29 + $0x23c] sm:$0xf] %v467_v15 }
  0x72 PF: > { %p1774_p5 = scmp.ge.s32.totalorder %s2109_s17, 1  ;;  %p790_p6 = scmp.lt.s32.totalorder %s2109_s17, 3 }
  0x74   : > { %p791_p7 = pnand %p1774_p5, %p790_p6 }
  0x75   : > { %s797_s30 = sand.u32 (!%p791_p7), 1, %s2101_s15   ;;  %v2470_v16 = vld [vmem:[%s2603_s0] sm:$0xff] (!%p791_p7)  ;;  %v2475_v17 = vld [vmem:[%s2603_s0 + $0x8] sm:$0xff] (!%p791_p7)  ;;  %v2515_v49 = vld [vmem:[%s2603_s0 + $0x10] sm:$0xff] (!%p791_p7)  ;;  %vm2112_vm0 = vmmov (!%p791_p7), 0   ;;  %p827_p8 = scmp.lt.s32.totalorder (!%p791_p7), %s1769_s18, 1 }
  0x76   : > { %794 = sbr.rel (%p791_p7) target bundleno = 480 (0x1e0), region = 73  ;;  %v1777_v18 = vcombine.high (!%p791_p7), %v2470_v16, %v2470_v16  ;;  %v1779_v19 = vcombine.high (!%p791_p7), %v2475_v17, %v2475_v17  ;;  %v2522_v52 = vld [vmem:[%s2603_s0 + $0x18] sm:$0xff] (!%p791_p7)  ;;  %v1776_v54 = vcombine.low (!%p791_p7), %v2470_v16, %v2470_v16  ;;  %v1778_v55 = vcombine.low (!%p791_p7), %v2475_v17, %v2475_v17 }
  0x77   : > { %s1977_s9 = smul.u32 (!%p791_p7), 576, %s797_s30  ;;  %v1781_v58 = vcombine.high (!%p791_p7), %v2515_v49, %v2515_v49  ;;  %v1783_v61 = vcombine.high (!%p791_p7), %v2522_v52, %v2522_v52 }
  0x78   : > { %1483 = vmatprep.mubr.bf16.mxu0 (!%p791_p7), %v1777_v18  ;;  %1523 = vmatprep.mubr.bf16.mxu1 (!%p791_p7), %v1779_v19 }
  0x79   : > { %s2481_s10 = scalar_lea.vmem (!%p791_p7), [#allocation2], %s1977_s9 }
  0x7a   : > { %v2004_v20 = vld [vmem:[%s2481_s10 + $0x40] sm:$0xff] (!%p791_p7)   ;;  %v2008_v24 = vld [vmem:[%s2481_s10 + $0x48] sm:$0xff] (!%p791_p7)   ;;  %v2012_v28 = vld [vmem:[%s2481_s10 + $0x50] sm:$0xff] (!%p791_p7)  }
  0x7b   : > { %v2005_v21 = vld [vmem:[%s2481_s10 + $0xc0] sm:$0xff] (!%p791_p7)   ;;  %1859 = vmatprep.subr.bf16.mxu0 (!%p791_p7), %v2004_v20  ;;  %v2009_v25 = vld [vmem:[%s2481_s10 + $0xc8] sm:$0xff] (!%p791_p7)   ;;  %v2013_v29 = vld [vmem:[%s2481_s10 + $0xd0] sm:$0xff] (!%p791_p7)  }
  0x7c   : > { %v2006_v22 = vld [vmem:[%s2481_s10] sm:$0xff] (!%p791_p7)   ;;  %1881 = vmatprep.subr.bf16.mxu1 (!%p791_p7), %v2005_v21  ;;  %v2010_v26 = vld [vmem:[%s2481_s10 + $0x8] sm:$0xff] (!%p791_p7)   ;;  %v2014_v30 = vld [vmem:[%s2481_s10 + $0x10] sm:$0xff] (!%p791_p7)  }
  0x7d   : > { %v2007_v23 = vld [vmem:[%s2481_s10 + $0x80] sm:$0xff]   ;;  %1860 = vmatpush3.bf16.msra.mxu0 %v2006_v22  ;;  %v2011_v27 = vld [vmem:[%s2481_s10 + $0x88] sm:$0xff]   ;;  %v2015_v31 = vld [vmem:[%s2481_s10 + $0x90] sm:$0xff]   ;;  %s2612_s18 = smov (!%p827_p8, %s1769_s18), 1 }
  0x7e   : > { %1882 = vmatpush3.bf16.msra.mxu1 %v2007_v23  ;;  %1861 = vmatprep.subr.bf16.mxu0 %v2008_v24  ;;  %v2016_v32 = vld [vmem:[%s2481_s10 + $0x58] sm:$0xff]   ;;  %v2020_v36 = vld [vmem:[%s2481_s10 + $0x60] sm:$0xff]   ;;  %v2024_v40 = vld [vmem:[%s2481_s10 + $0x68] sm:$0xff]   ;;  %s829_s24 = scalar_lea.vmem %s2605_s2, %s2612_s18  ;;  %s832_s27 = scalar_lea.vmem %s2606_s3, %s2612_s18 }
  0x7f   : > { %1883 = vmatprep.subr.bf16.mxu1 %v2009_v25  ;;  %v2017_v33 = vld [vmem:[%s2481_s10 + $0xd8] sm:$0xff]   ;;  %v2021_v37 = vld [vmem:[%s2481_s10 + $0xe0] sm:$0xff]   ;;  %v2025_v41 = vld [vmem:[%s2481_s10 + $0xe8] sm:$0xff]   ;;  %v1780_v25 = vcombine.low %v2515_v49, %v2515_v49  ;;  %s1775_s17 = sshll.u32 %s2612_s18, 3 }
  0x80   : > { %v2018_v34 = vld [vmem:[%s2481_s10 + $0x18] sm:$0xff]   ;;  %v2022_v38 = vld [vmem:[%s2481_s10 + $0x20] sm:$0xff]   ;;  %v2026_v42 = vld [vmem:[%s2481_s10 + $0x28] sm:$0xff]   ;;  %s836_s30 = scalar_lea.vmem %s2607_s4, %s1775_s17 }
  0x81   : > { %1862 = vmatpush3.bf16.msra.mxu0 %v2010_v26  ;;  %v2019_v35 = vld [vmem:[%s2481_s10 + $0x98] sm:$0xff]   ;;  %v2023_v39 = vld [vmem:[%s2481_s10 + $0xa0] sm:$0xff]   ;;  %v2027_v43 = vld [vmem:[%s2481_s10 + $0xa8] sm:$0xff]  }
  0x82   : > { %1884 = vmatpush3.bf16.msra.mxu1 %v2011_v27  ;;  %1863 = vmatprep.subr.bf16.mxu0 %v2012_v28  ;;  %v2028_v44 = vld [vmem:[%s2481_s10 + $0x70] sm:$0xff]   ;;  %v2032_v48 = vld [vmem:[%s2481_s10 + $0x78] sm:$0xff]   ;;  %v2040_v56 = vld [vmem:[%s2481_s10 + $0x140] sm:$0xff]   ;;  %v2111_v28 = vmov 0.0  }
  0x83   : > { %1885 = vmatprep.subr.bf16.mxu1 %v2013_v29  ;;  %v2029_v45 = vld [vmem:[%s2481_s10 + $0xf0] sm:$0xff]   ;;  %v2033_v50 = vld [vmem:[%s2481_s10 + $0xf8] sm:$0xff]   ;;  %v2041_v57 = vld [vmem:[%s2481_s10 + $0x100] sm:$0xff]   ;;  %v1782_v29 = vcombine.low %v2522_v52, %v2522_v52 }
  0x84   : > { %v2030_v46 = vld [vmem:[%s2481_s10 + $0x30] sm:$0xff]   ;;  %v2034_v51 = vld [vmem:[%s2481_s10 + $0x38] sm:$0xff]   ;;  %v2042_v59 = vld [vmem:[%s2481_s10 + $0x1c0] sm:$0xff]  }
  0x85   : > { %1864 = vmatpush3.bf16.msra.mxu0 %v2014_v30  ;;  %v2031_v47 = vld [vmem:[%s2481_s10 + $0xb0] sm:$0xff]   ;;  %v2035_v53 = vld [vmem:[%s2481_s10 + $0xb8] sm:$0xff]   ;;  %v2043_v60 = vld [vmem:[%s2481_s10 + $0x180] sm:$0xff]  }
  0x86   : > { %1886 = vmatpush3.bf16.msra.mxu1 %v2015_v31  ;;  %1865 = vmatprep.subr.bf16.mxu0 %v2016_v32  ;;  %v2044_v62 = vld [vmem:[%s2481_s10 + $0x148] sm:$0xff]   ;;  %v2048_v2 = vld [vmem:[%s2481_s10 + $0x150] sm:$0xff]   ;;  %v2052_v6 = vld [vmem:[%s2481_s10 + $0x158] sm:$0xff]  }
  0x87   : > { %1887 = vmatprep.subr.bf16.mxu1 %v2017_v33  ;;  %v2045_v63 = vld [vmem:[%s2481_s10 + $0x108] sm:$0xff]   ;;  %v2049_v3 = vld [vmem:[%s2481_s10 + $0x110] sm:$0xff]   ;;  %v2053_v7 = vld [vmem:[%s2481_s10 + $0x118] sm:$0xff]  }
  0x88   : > { %v2046_v0 = vld [vmem:[%s2481_s10 + $0x1c8] sm:$0xff]   ;;  %v2050_v4 = vld [vmem:[%s2481_s10 + $0x1d0] sm:$0xff]   ;;  %v2054_v8 = vld [vmem:[%s2481_s10 + $0x1d8] sm:$0xff]  }
  0x89   : > { %1866 = vmatpush3.bf16.msra.mxu0 %v2018_v34  ;;  %v2047_v1 = vld [vmem:[%s2481_s10 + $0x188] sm:$0xff]   ;;  %v2051_v5 = vld [vmem:[%s2481_s10 + $0x190] sm:$0xff]   ;;  %v2055_v9 = vld [vmem:[%s2481_s10 + $0x198] sm:$0xff]  }
  0x8a   : > { %1888 = vmatpush3.bf16.msra.mxu1 %v2019_v35  ;;  %1867 = vmatprep.subr.bf16.mxu0 %v2020_v36  ;;  %v2056_v10 = vld [vmem:[%s2481_s10 + $0x160] sm:$0xff]   ;;  %v2060_v14 = vld [vmem:[%s2481_s10 + $0x168] sm:$0xff]   ;;  %v2064_v18 = vld [vmem:[%s2481_s10 + $0x170] sm:$0xff]  }
  0x8b   : > { %1889 = vmatprep.subr.bf16.mxu1 %v2021_v37  ;;  %v2057_v11 = vld [vmem:[%s2481_s10 + $0x120] sm:$0xff]   ;;  %v2061_v15 = vld [vmem:[%s2481_s10 + $0x128] sm:$0xff]   ;;  %v2065_v19 = vld [vmem:[%s2481_s10 + $0x130] sm:$0xff]  }
  0x8c   : > { %v2058_v12 = vld [vmem:[%s2481_s10 + $0x1e0] sm:$0xff]   ;;  %v2062_v16 = vld [vmem:[%s2481_s10 + $0x1e8] sm:$0xff]   ;;  %v2066_v20 = vld [vmem:[%s2481_s10 + $0x1f0] sm:$0xff]  }
  0x8d   : > { %1868 = vmatpush3.bf16.msra.mxu0 %v2022_v38  ;;  %v2059_v13 = vld [vmem:[%s2481_s10 + $0x1a0] sm:$0xff]   ;;  %v2063_v17 = vld [vmem:[%s2481_s10 + $0x1a8] sm:$0xff]   ;;  %v2067_v21 = vld [vmem:[%s2481_s10 + $0x1b0] sm:$0xff]  }
  0x8e   : > { %1890 = vmatpush3.bf16.msra.mxu1 %v2023_v39  ;;  %1869 = vmatprep.subr.bf16.mxu0 %v2024_v40  ;;  %v2068_v22 = vld [vmem:[%s2481_s10 + $0x178] sm:$0xff]   ;;  %v2076_v27 = vld [vmem:[%s2481_s10 + $0x200] sm:$0xff]   ;;  %v2077_v30 = vld [vmem:[%s2481_s10 + $0x208] sm:$0xff]  }
  0x8f   : > { %1891 = vmatprep.subr.bf16.mxu1 %v2025_v41  ;;  %v2069_v23 = vld [vmem:[%s2481_s10 + $0x138] sm:$0xff]   ;;  %v2078_v31 = vld [vmem:[%s2481_s10 + $0x210] sm:$0xff]   ;;  %v2080_v33 = vld [vmem:[%s2481_s10 + $0x220] sm:$0xff]  }
  0x90   : > { %v2070_v24 = vld [vmem:[%s2481_s10 + $0x1f8] sm:$0xff]   ;;  %v2081_v34 = vld [vmem:[%s2481_s10 + $0x228] sm:$0xff]   ;;  %v2082_v35 = vld [vmem:[%s2481_s10 + $0x230] sm:$0xff]  }
  0x91   : > { %1870 = vmatpush3.bf16.msra.mxu0 %v2026_v42  ;;  %v2073_v26 = vld [vmem:[%s2481_s10 + $0x1b8] sm:$0xff]   ;;  %v2084_v37 = vld [vmem:[%s2603_s0 + $0x20] ss:$0 sps:$4 sm:$0xff]  }
  0x92   : > { %1892 = vmatpush3.bf16.msra.mxu1 %v2027_v43  ;;  %1871 = vmatprep.subr.bf16.mxu0 %v2028_v44  ;;  %v2079_v32 = vld [vmem:[%s2481_s10 + $0x218] sm:$0xff]  }
  0x93   : > { %1893 = vmatprep.subr.bf16.mxu1 %v2029_v45  ;;  %v2083_v36 = vld [vmem:[%s2481_s10 + $0x238] sm:$0xff]  }
  0x95   : > { %1872 = vmatpush3.bf16.msra.mxu0 %v2030_v46 }
  0x96   : > { %1894 = vmatpush3.bf16.msra.mxu1 %v2031_v47  ;;  %1873 = vmatprep.subr.bf16.mxu0 %v2032_v48 }
  0x97   : > { %1895 = vmatprep.subr.bf16.mxu1 %v2033_v50 }
  0x99   : > { %1874 = vmatpush3.bf16.msra.mxu0 %v2034_v51 }
  0x9a   : > { %1896 = vmatpush3.bf16.msra.mxu1 %v2035_v53  ;;  %1903 = vmatprep.subr.bf16.mxu0 %v2040_v56 }
  0x9b   : > { %1925 = vmatprep.subr.bf16.mxu1 %v2042_v59 }
  0x9c   : > { %1484 = vmatmul.mubr.bf16.vlgmr.msra.gmra.mrb[0].mxu0 %v1776_v54 }
  0x9d   : > { %1524 = vmatmul.mubr.bf16.vlgmr.msra.gmra.mrb[0].mxu1 %v1778_v55  ;;  %1904 = vmatpush3.bf16.msra.mxu0 %v2041_v57 }
  0x9e   : > { %1563 = vmatprep.mubr.bf16.mxu0 %v1781_v58  ;;  %1926 = vmatpush3.bf16.msra.mxu1 %v2043_v60 }
  0x9f   : > { %1905 = vmatprep.subr.bf16.mxu0 %v2044_v62  ;;  %1603 = vmatprep.mubr.bf16.mxu1 %v1783_v61 }
  0xa0   : > { %1927 = vmatprep.subr.bf16.mxu1 %v2046_v0 }
  0xa1   : > { %1906 = vmatpush3.bf16.msra.mxu0 %v2045_v63 }
  0xa2   : > { %1928 = vmatpush3.bf16.msra.mxu1 %v2047_v1  ;;  %1907 = vmatprep.subr.bf16.mxu0 %v2048_v2 }
  0xa3   : > { %1929 = vmatprep.subr.bf16.mxu1 %v2050_v4 }
  0xa5   : > { %1908 = vmatpush3.bf16.msra.mxu0 %v2049_v3 }
  0xa6   : > { %1930 = vmatpush3.bf16.msra.mxu1 %v2051_v5  ;;  %1909 = vmatprep.subr.bf16.mxu0 %v2052_v6 }
  0xa7   : > { %1931 = vmatprep.subr.bf16.mxu1 %v2054_v8 }
  0xa9   : > { %1910 = vmatpush3.bf16.msra.mxu0 %v2053_v7 }
  0xaa   : > { %1932 = vmatpush3.bf16.msra.mxu1 %v2055_v9  ;;  %1911 = vmatprep.subr.bf16.mxu0 %v2056_v10 }
  0xab   : > { %1933 = vmatprep.subr.bf16.mxu1 %v2058_v12 }
  0xad   : > { %1912 = vmatpush3.bf16.msra.mxu0 %v2057_v11 }
  0xae   : > { %1934 = vmatpush3.bf16.msra.mxu1 %v2059_v13  ;;  %1913 = vmatprep.subr.bf16.mxu0 %v2060_v14 }
  0xaf   : > { %1935 = vmatprep.subr.bf16.mxu1 %v2062_v16 }
  0xb1   : > { %1914 = vmatpush3.bf16.msra.mxu0 %v2061_v15 }
  0xb2   : > { %1936 = vmatpush3.bf16.msra.mxu1 %v2063_v17  ;;  %1915 = vmatprep.subr.bf16.mxu0 %v2064_v18 }
  0xb3   : > { %1937 = vmatprep.subr.bf16.mxu1 %v2066_v20 }
  0xb5   : > { %1916 = vmatpush3.bf16.msra.mxu0 %v2065_v19 }
  0xb6   : > { %1938 = vmatpush3.bf16.msra.mxu1 %v2067_v21  ;;  %1917 = vmatprep.subr.bf16.mxu0 %v2068_v22  ;;  %v1677_v21 = vlaneseq }
  0xb7   : > { %1939 = vmatprep.subr.bf16.mxu1 %v2070_v24 }
  0xb8   : > { %v1678_v22 = vshrl.u32 %v1677_v21, 7 }
  0xb9   : > { %1918 = vmatpush3.bf16.msra.mxu0 %v2069_v23  ;;  %v1669_v23 = vld [vmem:[%s829_s24] sm:$0x1] }
  0xba   : > { %1956 = vmatprep.subr.bf16.mxu0 %v2111_v28  ;;  %1940 = vmatpush3.bf16.msra.mxu1 %v2073_v26  ;;  %v1679_v24 = vsub.s32 0, %v1678_v22 }
  0xbc   : > { %1564 = vmatmul.mubr.bf16.vlgmr.msra.gmra.mrb[4].mxu0 %v1780_v25 }
  0xbd   : > { %1957 = vmatpush3.bf16.msra.mxu0 %v2076_v27  ;;  %1972 = vmatprep.mubr.msk.bf16.mxu0 %vm2112_vm0, %v2111_v28  ;;  %v1673_v27 = vld [vmem:[%s832_s27] sm:$0x1] }
  0xbe   : > { %1604 = vmatmul.mubr.bf16.vlgmr.msra.gmra.mrb[4].mxu1 %v1782_v29  ;;  %1958 = vmatprep.subr.bf16.mxu0 %v2111_v28 }
  0xc1   : > { %1959 = vmatpush3.bf16.msra.mxu0 %v2077_v30 }
  0xc2   : > { %1960 = vmatprep.subr.bf16.mxu0 %v2111_v28 }
  0xc5   : > { %1961 = vmatpush3.bf16.msra.mxu0 %v2078_v31 }
  0xc6   : > { %1962 = vmatprep.subr.bf16.mxu0 %v2111_v28 }
  0xc9   : > { %1963 = vmatpush3.bf16.msra.mxu0 %v2079_v32 }
  0xca   : > { %1964 = vmatprep.subr.bf16.mxu0 %v2111_v28 }
  0xcd   : > { %1965 = vmatpush3.bf16.msra.mxu0 %v2080_v33 }
  0xce   : > { %1966 = vmatprep.subr.bf16.mxu0 %v2111_v28 }
  0xd1   : > { %1967 = vmatpush3.bf16.msra.mxu0 %v2081_v34 }
  0xd2   : > { %1968 = vmatprep.subr.bf16.mxu0 %v2111_v28 }
  0xd5   : > { %1969 = vmatpush3.bf16.msra.mxu0 %v2082_v35 }
  0xd6   : > { %1970 = vmatprep.subr.bf16.mxu0 %v2111_v28 }
  0xd9   : > { %1971 = vmatpush3.bf16.msra.mxu0 %v2083_v36 }
  0xdc   : > { %1973 = vmatmul.mubr.bf16.vlgmr.msra.gmra.mrb[8].mxu0 %v2084_v37 }
 0x16f   : > { %v1875_v38 = vpop.f32.mrb[0].mxu0 }
 0x170   : > { %v1897_v39 = vpop.f32.mrb[0].mxu1  ;;  %v1876_v40 = vpop.f32.mrb[1].mxu0 }
 0x171   : > { %v1877_v41 = vadd.f32 %v1876_v40, %v1875_v38  ;;  %v1898_v42 = vpop.f32.mrb[1].mxu1  ;;  %v1878_v43 = vpop.f32.mrb[2].mxu0 }
 0x172   : > { %v1899_v44 = vadd.f32 %v1898_v42, %v1897_v39  ;;  %v1879_v45 = vpop.f32.mrb[3].mxu0  ;;  %v1900_v46 = vpop.f32.mrb[2].mxu1 }
 0x173   : > { %v1901_v47 = vpop.f32.mrb[3].mxu1 }
 0x174   : > { %v1526_v48 = vadd.f32 %v1899_v44, %v1877_v41 }
 0x18f   : > { %v1919_v49 = vpop.f32.mrb[4].mxu0 }
 0x190   : > { %v1920_v50 = vpop.f32.mrb[5].mxu0 }
 0x191   : > { %v1921_v51 = vadd.f32 %v1920_v50, %v1919_v49  ;;  %v1922_v52 = vpop.f32.mrb[6].mxu0  ;;  %v1941_v53 = vpop.f32.mrb[4].mxu1 }
 0x192   : > { %v1923_v54 = vpop.f32.mrb[7].mxu0  ;;  %v1942_v55 = vpop.f32.mrb[5].mxu1 }
 0x193   : > { %v1566_v56 = vadd.f32 %v1921_v51, %v1526_v48  ;;  %v1943_v57 = vadd.f32 %v1942_v55, %v1941_v53  ;;  %v1944_v58 = vpop.f32.mrb[6].mxu1 }
 0x194   : > { %v1945_v59 = vpop.f32.mrb[7].mxu1 }
 0x195   : > { %v1606_v60 = vadd.f32 %v1943_v57, %v1566_v56 }
 0x1af   : > { %v1645_v61 = vpop.f32.mrb[8].mxu0 }
 0x1b0   : > { %v1646_v62 = vadd.f32 %v1645_v61, %v1606_v60  ;;  %v1974_v63 = vpop.f32.mrb[9].mxu0 }
 0x1b1   : > { %v1648_v0 = vpop.f32.mrb[10].mxu0 }
 0x1b2   : > { %v1651_v1 = vrot.slane %v1646_v62, 4  ;;  %v1658_v2 = vmul.f32 %v1646_v62, %v1646_v62  ;;  %v1975_v3 = vpop.f32.mrb[11].mxu0 }
 0x1b4   : > { %v1652_v4 = vadd.f32 %v1651_v1, %v1646_v62  ;;  %v1659_v5 = vrot.slane %v1658_v2, 4 }
 0x1b6   : > { %v1653_v6 = vrot.slane %v1652_v4, 2  ;;  %v1660_v7 = vadd.f32 %v1659_v5, %v1658_v2 }
 0x1b8   : > { %v1654_v8 = vadd.f32 %v1653_v6, %v1652_v4  ;;  %v1661_v9 = vrot.slane %v1660_v7, 2 }
 0x1ba   : > { %v1655_v10 = vrot.slane %v1654_v8, 1  ;;  %v1662_v11 = vadd.f32 %v1661_v9, %v1660_v7 }
 0x1bc   : > { %v1656_v12 = vadd.f32 %v1655_v10, %v1654_v8  ;;  %v1663_v13 = vrot.slane %v1662_v11, 1 }
 0x1be   : > { %v1657_v14 = vmul.f32 0.125, %v1656_v12  ;;  %v1664_v15 = vadd.f32 %v1663_v13, %v1662_v11 }
 0x1c0   : > { %v1665_v16 = vmul.f32 0.125, %v1664_v15  ;;  %v1666_v17 = vmul.f32 %v1657_v14, %v1657_v14 }
 0x1c2   : > { %v1667_v18 = vsub.f32 %v1665_v16, %v1666_v17 }
 0x1c4   : > { %v1668_v19 = vmax.f32 %v1667_v18, 0.0 }
 0x1c6   : > { %v1670_v20 = vadd.f32 1e-05, %v1668_v19 }
 0x1c8   : > { %2085 = vrsqrt.f32 %v1670_v20 }
 0x1d2   : > { %v2086_v25 = vpop.eup %2085 }
 0x1d3   : > { %v1672_v26 = vmul.f32 %v2086_v25, %v1669_v23 }
 0x1d5   : > { %v1674_v28 = vmul.f32 %v1672_v26, %v1657_v14  ;;  %v1680_v29 = vrot.slane %v1672_v26, %v1679_v24 }
 0x1d7   : > { %v1675_v30 = vsub.f32 %v1673_v27, %v1674_v28  ;;  %v1682_v31 = vmul.f32 %v1680_v29, %v1646_v62 }
 0x1d9   : > { %v1687_v32 = vrot.slane %v1675_v30, %v1679_v24 }
 0x1db   : > { %v1689_v33 = vadd.f32 %v1687_v32, %v1682_v31 }
 0x1dd   : > { %v1690_v34 = vmax.f32 %v1689_v33, 0.0 }
 0x1df   : > { %1691 = vst [vmem:[%s836_s30] sm:$0xff] %v1690_v34 }
 0x1e0 PF: > { %p11_p9 = scmp.ge.s32.totalorder %s2155_s19, 4   ;;  %s2608_s15 = smov %s2105_s16 }
 0x1e1   : > { %s2609_s16 = smov %s2164_s22  ;;  %s2610_s17 = smov %s2155_s19 }
 0x1e2   :  { %13 = sbr.rel (!%p11_p9) target bundleno = 2 (0x2), region = 118 }

// kernel: resnet_forward.23
= control target key start
LH: loop header
LB: loop body
LE: loop exit
PB: predicated region body
PF: predicated region fallthrough
CT: control target
= control target key end

     0   :  { %s3724_s15 = smov 0   ;;  %s3726_s16 = smov 0   ;;  %s4573_s0 = inlined_call_operand.vmem [shape: bf16[8,2304], index: 0, kind: input, shape index: {}]   ;;  %s4574_s1 = inlined_call_operand.vmem [shape: bf16[2304,256], index: 1, kind: input, shape index: {}]   ;;  %s4575_s2 = inlined_call_operand.vmem [shape: f32[1,256], index: 2, kind: input, shape index: {}]   ;;  %s4576_s3 = inlined_call_operand.vmem [shape: f32[1,256], index: 3, kind: input, shape index: {}]   ;;  %s4577_s4 = inlined_call_operand.vmem [shape: f32[8,256], index: 4, kind: output, shape index: {}]  }
   0x1   :  { %s3728_s17 = smov 0  }
   0x2 LB: > { %s3116_s18 = sadd.s32 4294967295, %s3697_s17   ;;  %s3741_s19 = sadd.s32 1, %s3697_s17   ;;  %s3697_s17 = sphi %s3728_s17, %s4580_s17   ;;  %s3693_s16 = sphi %s3726_s16, %s4579_s16   ;;  %s3689_s15 = sphi %s3724_s15, %s4578_s15  }
   0x3   : > { %s39_s20 = ssub.s32 %s3697_s17, %s3741_s19  ;;  %s42_s21 = sadd.s32 1, %s3693_s16 }
   0x4   : > { %p40_p0 = scmp.eq.s32.totalorder %s39_s20, 0  ;;  %p49_p1 = scmp.ne.s32.totalorder %s3693_s16, %s3689_s15 }
   0x5   : > { %p50_p2 = scmp.eq.s32.totalorder %s3697_s17, 0  ;;  %p3119_p4 = scmp.ge.s32.totalorder %s3697_s17, 2 }
   0x6   : > { %s3750_s22 = scalar_select %p40_p0, %s3693_s16, %s42_s21  }
   0x7   : > { %p51_p3 = por %p50_p2, %p49_p1  ;;  %156 = sbr.rel (%p3119_p4) target bundleno = 210 (0xd2), region = 20 }
   0xe   : > { %159 = sbr.rel (!%p51_p3) target bundleno = 210 (0xd2), region = 24  ;;  %s161_s23 = sand.u32 (%p51_p3), 1, %s3693_s16  }
   0xf   : > { %s3120_s24 = sshll.u32 (%p51_p3), %s3697_s17, 2  ;;  %s3485_s25 = smul.u32 (%p51_p3), 1152, %s161_s23 }
  0x10   : > { %s3758_s28 = scalar_lea.vmem (%p51_p3), %s4574_s1, %s3120_s24 }
  0x11   : > { %v181_v0 = vld [vmem:[%s3758_s28] sm:$0xf] (%p51_p3)  ;;  %v183_v1 = vld [vmem:[%s3758_s28 + $0x8] sm:$0xf] (%p51_p3)  ;;  %v185_v2 = vld [vmem:[%s3758_s28 + $0x10] sm:$0xf] (%p51_p3) }
  0x12   : > { %v187_v3 = vld [vmem:[%s3758_s28 + $0x18] sm:$0xf] (%p51_p3)  ;;  %v189_v4 = vld [vmem:[%s3758_s28 + $0x20] sm:$0xf] (%p51_p3)  ;;  %s3765_s29 = scalar_lea.vmem (%p51_p3), [#allocation2], %s3485_s25 }
  0x13   : > { %182 = vst [vmem:[%s3765_s29] sm:$0xf] (%p51_p3), %v181_v0  ;;  %184 = vst [vmem:[%s3765_s29 + $0x4] sm:$0xf] (%p51_p3), %v183_v1  ;;  %v191_v5 = vld [vmem:[%s3758_s28 + $0x28] sm:$0xf] (%p51_p3) }
  0x14   : > { %186 = vst [vmem:[%s3765_s29 + $0x8] sm:$0xf] (%p51_p3), %v185_v2  ;;  %188 = vst [vmem:[%s3765_s29 + $0xc] sm:$0xf] (%p51_p3), %v187_v3  ;;  %v193_v6 = vld [vmem:[%s3758_s28 + $0x30] sm:$0xf] (%p51_p3) }
  0x15   : > { %190 = vst [vmem:[%s3765_s29 + $0x10] sm:$0xf] %v189_v4  ;;  %v195_v7 = vld [vmem:[%s3758_s28 + $0x38] sm:$0xf]  ;;  %192 = vst [vmem:[%s3765_s29 + $0x14] sm:$0xf] %v191_v5 }
  0x16   : > { %194 = vst [vmem:[%s3765_s29 + $0x18] sm:$0xf] %v193_v6  ;;  %196 = vst [vmem:[%s3765_s29 + $0x1c] sm:$0xf] %v195_v7  ;;  %v197_v8 = vld [vmem:[%s3758_s28 + $0x40] sm:$0xf] }
  0x17   : > { %v199_v9 = vld [vmem:[%s3758_s28 + $0x48] sm:$0xf]  ;;  %v201_v10 = vld [vmem:[%s3758_s28 + $0x50] sm:$0xf]  ;;  %198 = vst [vmem:[%s3765_s29 + $0x20] sm:$0xf] %v197_v8 }
  0x18   : > { %200 = vst [vmem:[%s3765_s29 + $0x24] sm:$0xf] %v199_v9  ;;  %202 = vst [vmem:[%s3765_s29 + $0x28] sm:$0xf] %v201_v10  ;;  %v203_v11 = vld [vmem:[%s3758_s28 + $0x58] sm:$0xf] }
  0x19   : > { %v205_v12 = vld [vmem:[%s3758_s28 + $0x60] sm:$0xf]  ;;  %v207_v13 = vld [vmem:[%s3758_s28 + $0x68] sm:$0xf]  ;;  %204 = vst [vmem:[%s3765_s29 + $0x2c] sm:$0xf] %v203_v11 }
  0x1a   : > { %206 = vst [vmem:[%s3765_s29 + $0x30] sm:$0xf] %v205_v12  ;;  %208 = vst [vmem:[%s3765_s29 + $0x34] sm:$0xf] %v207_v13  ;;  %v209_v14 = vld [vmem:[%s3758_s28 + $0x70] sm:$0xf] }
  0x1b   : > { %v211_v15 = vld [vmem:[%s3758_s28 + $0x78] sm:$0xf]  ;;  %v213_v16 = vld [vmem:[%s3758_s28 + $0x80] sm:$0xf]  ;;  %210 = vst [vmem:[%s3765_s29 + $0x38] sm:$0xf] %v209_v14 }
  0x1c   : > { %212 = vst [vmem:[%s3765_s29 + $0x3c] sm:$0xf] %v211_v15  ;;  %214 = vst [vmem:[%s3765_s29 + $0x40] sm:$0xf] %v213_v16  ;;  %v215_v17 = vld [vmem:[%s3758_s28 + $0x88] sm:$0xf] }
  0x1d   : > { %v217_v18 = vld [vmem:[%s3758_s28 + $0x90] sm:$0xf]  ;;  %v219_v19 = vld [vmem:[%s3758_s28 + $0x98] sm:$0xf]  ;;  %216 = vst [vmem:[%s3765_s29 + $0x44] sm:$0xf] %v215_v17 }
  0x1e   : > { %218 = vst [vmem:[%s3765_s29 + $0x48] sm:$0xf] %v217_v18  ;;  %220 = vst [vmem:[%s3765_s29 + $0x4c] sm:$0xf] %v219_v19  ;;  %v221_v20 = vld [vmem:[%s3758_s28 + $0xa0] sm:$0xf] }
  0x1f   : > { %v223_v21 = vld [vmem:[%s3758_s28 + $0xa8] sm:$0xf]  ;;  %v225_v22 = vld [vmem:[%s3758_s28 + $0xb0] sm:$0xf]  ;;  %222 = vst [vmem:[%s3765_s29 + $0x50] sm:$0xf] %v221_v20 }
  0x20   : > { %224 = vst [vmem:[%s3765_s29 + $0x54] sm:$0xf] %v223_v21  ;;  %226 = vst [vmem:[%s3765_s29 + $0x58] sm:$0xf] %v225_v22  ;;  %v227_v23 = vld [vmem:[%s3758_s28 + $0xb8] sm:$0xf] }
  0x21   : > { %v229_v24 = vld [vmem:[%s3758_s28 + $0xc0] sm:$0xf]  ;;  %v231_v25 = vld [vmem:[%s3758_s28 + $0xc8] sm:$0xf]  ;;  %228 = vst [vmem:[%s3765_s29 + $0x5c] sm:$0xf] %v227_v23 }
  0x22   : > { %230 = vst [vmem:[%s3765_s29 + $0x60] sm:$0xf] %v229_v24  ;;  %232 = vst [vmem:[%s3765_s29 + $0x64] sm:$0xf] %v231_v25  ;;  %v233_v26 = vld [vmem:[%s3758_s28 + $0xd0] sm:$0xf] }
  0x23   : > { %v235_v27 = vld [vmem:[%s3758_s28 + $0xd8] sm:$0xf]  ;;  %v237_v28 = vld [vmem:[%s3758_s28 + $0xe0] sm:$0xf]  ;;  %234 = vst [vmem:[%s3765_s29 + $0x68] sm:$0xf] %v233_v26 }
  0x24   : > { %236 = vst [vmem:[%s3765_s29 + $0x6c] sm:$0xf] %v235_v27  ;;  %238 = vst [vmem:[%s3765_s29 + $0x70] sm:$0xf] %v237_v28  ;;  %v239_v29 = vld [vmem:[%s3758_s28 + $0xe8] sm:$0xf] }
  0x25   : > { %v241_v30 = vld [vmem:[%s3758_s28 + $0xf0] sm:$0xf]  ;;  %v243_v31 = vld [vmem:[%s3758_s28 + $0xf8] sm:$0xf]  ;;  %240 = vst [vmem:[%s3765_s29 + $0x74] sm:$0xf] %v239_v29 }
  0x26   : > { %242 = vst [vmem:[%s3765_s29 + $0x78] sm:$0xf] %v241_v30  ;;  %244 = vst [vmem:[%s3765_s29 + $0x7c] sm:$0xf] %v243_v31  ;;  %v245_v32 = vld [vmem:[%s3758_s28 + $0x100] sm:$0xf] }
  0x27   : > { %v247_v33 = vld [vmem:[%s3758_s28 + $0x108] sm:$0xf]  ;;  %v249_v34 = vld [vmem:[%s3758_s28 + $0x110] sm:$0xf]  ;;  %246 = vst [vmem:[%s3765_s29 + $0x80] sm:$0xf] %v245_v32 }
  0x28   : > { %248 = vst [vmem:[%s3765_s29 + $0x84] sm:$0xf] %v247_v33  ;;  %250 = vst [vmem:[%s3765_s29 + $0x88] sm:$0xf] %v249_v34  ;;  %v251_v35 = vld [vmem:[%s3758_s28 + $0x118] sm:$0xf] }
  0x29   : > { %v253_v36 = vld [vmem:[%s3758_s28 + $0x120] sm:$0xf]  ;;  %v255_v37 = vld [vmem:[%s3758_s28 + $0x128] sm:$0xf]  ;;  %252 = vst [vmem:[%s3765_s29 + $0x8c] sm:$0xf] %v251_v35 }
  0x2a   : > { %254 = vst [vmem:[%s3765_s29 + $0x90] sm:$0xf] %v253_v36  ;;  %256 = vst [vmem:[%s3765_s29 + $0x94] sm:$0xf] %v255_v37  ;;  %v257_v38 = vld [vmem:[%s3758_s28 + $0x130] sm:$0xf] }
  0x2b   : > { %v259_v39 = vld [vmem:[%s3758_s28 + $0x138] sm:$0xf]  ;;  %v261_v40 = vld [vmem:[%s3758_s28 + $0x140] sm:$0xf]  ;;  %258 = vst [vmem:[%s3765_s29 + $0x98] sm:$0xf] %v257_v38 }
  0x2c   : > { %260 = vst [vmem:[%s3765_s29 + $0x9c] sm:$0xf] %v259_v39  ;;  %262 = vst [vmem:[%s3765_s29 + $0xa0] sm:$0xf] %v261_v40  ;;  %v263_v41 = vld [vmem:[%s3758_s28 + $0x148] sm:$0xf] }
  0x2d   : > { %v265_v42 = vld [vmem:[%s3758_s28 + $0x150] sm:$0xf]  ;;  %v267_v43 = vld [vmem:[%s3758_s28 + $0x158] sm:$0xf]  ;;  %264 = vst [vmem:[%s3765_s29 + $0xa4] sm:$0xf] %v263_v41 }
  0x2e   : > { %266 = vst [vmem:[%s3765_s29 + $0xa8] sm:$0xf] %v265_v42  ;;  %268 = vst [vmem:[%s3765_s29 + $0xac] sm:$0xf] %v267_v43  ;;  %v269_v44 = vld [vmem:[%s3758_s28 + $0x160] sm:$0xf] }
  0x2f   : > { %v271_v45 = vld [vmem:[%s3758_s28 + $0x168] sm:$0xf]  ;;  %v273_v46 = vld [vmem:[%s3758_s28 + $0x170] sm:$0xf]  ;;  %270 = vst [vmem:[%s3765_s29 + $0xb0] sm:$0xf] %v269_v44 }
  0x30   : > { %272 = vst [vmem:[%s3765_s29 + $0xb4] sm:$0xf] %v271_v45  ;;  %274 = vst [vmem:[%s3765_s29 + $0xb8] sm:$0xf] %v273_v46  ;;  %v275_v47 = vld [vmem:[%s3758_s28 + $0x178] sm:$0xf] }
  0x31   : > { %v277_v48 = vld [vmem:[%s3758_s28 + $0x180] sm:$0xf]  ;;  %v279_v49 = vld [vmem:[%s3758_s28 + $0x188] sm:$0xf]  ;;  %276 = vst [vmem:[%s3765_s29 + $0xbc] sm:$0xf] %v275_v47 }
  0x32   : > { %278 = vst [vmem:[%s3765_s29 + $0xc0] sm:$0xf] %v277_v48  ;;  %280 = vst [vmem:[%s3765_s29 + $0xc4] sm:$0xf] %v279_v49  ;;  %v281_v50 = vld [vmem:[%s3758_s28 + $0x190] sm:$0xf] }
  0x33   : > { %v283_v51 = vld [vmem:[%s3758_s28 + $0x198] sm:$0xf]  ;;  %v285_v52 = vld [vmem:[%s3758_s28 + $0x1a0] sm:$0xf]  ;;  %282 = vst [vmem:[%s3765_s29 + $0xc8] sm:$0xf] %v281_v50 }
  0x34   : > { %284 = vst [vmem:[%s3765_s29 + $0xcc] sm:$0xf] %v283_v51  ;;  %286 = vst [vmem:[%s3765_s29 + $0xd0] sm:$0xf] %v285_v52  ;;  %v287_v53 = vld [vmem:[%s3758_s28 + $0x1a8] sm:$0xf] }
  0x35   : > { %v289_v54 = vld [vmem:[%s3758_s28 + $0x1b0] sm:$0xf]  ;;  %v291_v55 = vld [vmem:[%s3758_s28 + $0x1b8] sm:$0xf]  ;;  %288 = vst [vmem:[%s3765_s29 + $0xd4] sm:$0xf] %v287_v53 }
  0x36   : > { %290 = vst [vmem:[%s3765_s29 + $0xd8] sm:$0xf] %v289_v54  ;;  %292 = vst [vmem:[%s3765_s29 + $0xdc] sm:$0xf] %v291_v55  ;;  %v293_v56 = vld [vmem:[%s3758_s28 + $0x1c0] sm:$0xf] }
  0x37   : > { %v295_v57 = vld [vmem:[%s3758_s28 + $0x1c8] sm:$0xf]  ;;  %v297_v58 = vld [vmem:[%s3758_s28 + $0x1d0] sm:$0xf]  ;;  %294 = vst [vmem:[%s3765_s29 + $0xe0] sm:$0xf] %v293_v56 }
  0x38   : > { %296 = vst [vmem:[%s3765_s29 + $0xe4] sm:$0xf] %v295_v57  ;;  %298 = vst [vmem:[%s3765_s29 + $0xe8] sm:$0xf] %v297_v58  ;;  %v299_v59 = vld [vmem:[%s3758_s28 + $0x1d8] sm:$0xf] }
  0x39   : > { %v301_v60 = vld [vmem:[%s3758_s28 + $0x1e0] sm:$0xf]  ;;  %v303_v61 = vld [vmem:[%s3758_s28 + $0x1e8] sm:$0xf]  ;;  %300 = vst [vmem:[%s3765_s29 + $0xec] sm:$0xf] %v299_v59 }
  0x3a   : > { %302 = vst [vmem:[%s3765_s29 + $0xf0] sm:$0xf] %v301_v60  ;;  %304 = vst [vmem:[%s3765_s29 + $0xf4] sm:$0xf] %v303_v61  ;;  %v305_v62 = vld [vmem:[%s3758_s28 + $0x1f0] sm:$0xf] }
  0x3b   : > { %v307_v63 = vld [vmem:[%s3758_s28 + $0x1f8] sm:$0xf]  ;;  %v309_v0 = vld [vmem:[%s3758_s28 + $0x200] sm:$0xf]  ;;  %306 = vst [vmem:[%s3765_s29 + $0xf8] sm:$0xf] %v305_v62 }
  0x3c   : > { %308 = vst [vmem:[%s3765_s29 + $0xfc] sm:$0xf] %v307_v63  ;;  %310 = vst [vmem:[%s3765_s29 + $0x100] sm:$0xf] %v309_v0  ;;  %v311_v1 = vld [vmem:[%s3758_s28 + $0x208] sm:$0xf] }
  0x3d   : > { %v313_v2 = vld [vmem:[%s3758_s28 + $0x210] sm:$0xf]  ;;  %v315_v3 = vld [vmem:[%s3758_s28 + $0x218] sm:$0xf]  ;;  %312 = vst [vmem:[%s3765_s29 + $0x104] sm:$0xf] %v311_v1 }
  0x3e   : > { %314 = vst [vmem:[%s3765_s29 + $0x108] sm:$0xf] %v313_v2  ;;  %316 = vst [vmem:[%s3765_s29 + $0x10c] sm:$0xf] %v315_v3  ;;  %v317_v4 = vld [vmem:[%s3758_s28 + $0x220] sm:$0xf] }
  0x3f   : > { %v319_v5 = vld [vmem:[%s3758_s28 + $0x228] sm:$0xf]  ;;  %v321_v6 = vld [vmem:[%s3758_s28 + $0x230] sm:$0xf]  ;;  %318 = vst [vmem:[%s3765_s29 + $0x110] sm:$0xf] %v317_v4 }
  0x40   : > { %320 = vst [vmem:[%s3765_s29 + $0x114] sm:$0xf] %v319_v5  ;;  %322 = vst [vmem:[%s3765_s29 + $0x118] sm:$0xf] %v321_v6  ;;  %v323_v7 = vld [vmem:[%s3758_s28 + $0x238] sm:$0xf] }
  0x41   : > { %v325_v8 = vld [vmem:[%s3758_s28 + $0x240] sm:$0xf]  ;;  %v327_v9 = vld [vmem:[%s3758_s28 + $0x248] sm:$0xf]  ;;  %324 = vst [vmem:[%s3765_s29 + $0x11c] sm:$0xf] %v323_v7 }
  0x42   : > { %326 = vst [vmem:[%s3765_s29 + $0x120] sm:$0xf] %v325_v8  ;;  %328 = vst [vmem:[%s3765_s29 + $0x124] sm:$0xf] %v327_v9  ;;  %v329_v10 = vld [vmem:[%s3758_s28 + $0x250] sm:$0xf] }
  0x43   : > { %v331_v11 = vld [vmem:[%s3758_s28 + $0x258] sm:$0xf]  ;;  %v333_v12 = vld [vmem:[%s3758_s28 + $0x260] sm:$0xf]  ;;  %330 = vst [vmem:[%s3765_s29 + $0x128] sm:$0xf] %v329_v10 }
  0x44   : > { %332 = vst [vmem:[%s3765_s29 + $0x12c] sm:$0xf] %v331_v11  ;;  %334 = vst [vmem:[%s3765_s29 + $0x130] sm:$0xf] %v333_v12  ;;  %v335_v13 = vld [vmem:[%s3758_s28 + $0x268] sm:$0xf] }
  0x45   : > { %v337_v14 = vld [vmem:[%s3758_s28 + $0x270] sm:$0xf]  ;;  %v339_v15 = vld [vmem:[%s3758_s28 + $0x278] sm:$0xf]  ;;  %336 = vst [vmem:[%s3765_s29 + $0x134] sm:$0xf] %v335_v13 }
  0x46   : > { %338 = vst [vmem:[%s3765_s29 + $0x138] sm:$0xf] %v337_v14  ;;  %340 = vst [vmem:[%s3765_s29 + $0x13c] sm:$0xf] %v339_v15  ;;  %v341_v16 = vld [vmem:[%s3758_s28 + $0x280] sm:$0xf] }
  0x47   : > { %v343_v17 = vld [vmem:[%s3758_s28 + $0x288] sm:$0xf]  ;;  %v345_v18 = vld [vmem:[%s3758_s28 + $0x290] sm:$0xf]  ;;  %342 = vst [vmem:[%s3765_s29 + $0x140] sm:$0xf] %v341_v16 }
  0x48   : > { %344 = vst [vmem:[%s3765_s29 + $0x144] sm:$0xf] %v343_v17  ;;  %346 = vst [vmem:[%s3765_s29 + $0x148] sm:$0xf] %v345_v18  ;;  %v347_v19 = vld [vmem:[%s3758_s28 + $0x298] sm:$0xf] }
  0x49   : > { %v349_v20 = vld [vmem:[%s3758_s28 + $0x2a0] sm:$0xf]  ;;  %v351_v21 = vld [vmem:[%s3758_s28 + $0x2a8] sm:$0xf]  ;;  %348 = vst [vmem:[%s3765_s29 + $0x14c] sm:$0xf] %v347_v19 }
  0x4a   : > { %350 = vst [vmem:[%s3765_s29 + $0x150] sm:$0xf] %v349_v20  ;;  %352 = vst [vmem:[%s3765_s29 + $0x154] sm:$0xf] %v351_v21  ;;  %v353_v22 = vld [vmem:[%s3758_s28 + $0x2b0] sm:$0xf] }
  0x4b   : > { %v355_v23 = vld [vmem:[%s3758_s28 + $0x2b8] sm:$0xf]  ;;  %v357_v24 = vld [vmem:[%s3758_s28 + $0x2c0] sm:$0xf]  ;;  %354 = vst [vmem:[%s3765_s29 + $0x158] sm:$0xf] %v353_v22 }
  0x4c   : > { %356 = vst [vmem:[%s3765_s29 + $0x15c] sm:$0xf] %v355_v23  ;;  %358 = vst [vmem:[%s3765_s29 + $0x160] sm:$0xf] %v357_v24  ;;  %v359_v25 = vld [vmem:[%s3758_s28 + $0x2c8] sm:$0xf] }
  0x4d   : > { %v361_v26 = vld [vmem:[%s3758_s28 + $0x2d0] sm:$0xf]  ;;  %v363_v27 = vld [vmem:[%s3758_s28 + $0x2d8] sm:$0xf]  ;;  %360 = vst [vmem:[%s3765_s29 + $0x164] sm:$0xf] %v359_v25 }
  0x4e   : > { %362 = vst [vmem:[%s3765_s29 + $0x168] sm:$0xf] %v361_v26  ;;  %364 = vst [vmem:[%s3765_s29 + $0x16c] sm:$0xf] %v363_v27  ;;  %v365_v28 = vld [vmem:[%s3758_s28 + $0x2e0] sm:$0xf] }
  0x4f   : > { %v367_v29 = vld [vmem:[%s3758_s28 + $0x2e8] sm:$0xf]  ;;  %v369_v30 = vld [vmem:[%s3758_s28 + $0x2f0] sm:$0xf]  ;;  %366 = vst [vmem:[%s3765_s29 + $0x170] sm:$0xf] %v365_v28 }
  0x50   : > { %368 = vst [vmem:[%s3765_s29 + $0x174] sm:$0xf] %v367_v29  ;;  %370 = vst [vmem:[%s3765_s29 + $0x178] sm:$0xf] %v369_v30  ;;  %v371_v31 = vld [vmem:[%s3758_s28 + $0x2f8] sm:$0xf] }
  0x51   : > { %v373_v32 = vld [vmem:[%s3758_s28 + $0x300] sm:$0xf]  ;;  %v375_v33 = vld [vmem:[%s3758_s28 + $0x308] sm:$0xf]  ;;  %372 = vst [vmem:[%s3765_s29 + $0x17c] sm:$0xf] %v371_v31 }
  0x52   : > { %374 = vst [vmem:[%s3765_s29 + $0x180] sm:$0xf] %v373_v32  ;;  %376 = vst [vmem:[%s3765_s29 + $0x184] sm:$0xf] %v375_v33  ;;  %v377_v34 = vld [vmem:[%s3758_s28 + $0x310] sm:$0xf] }
  0x53   : > { %v379_v35 = vld [vmem:[%s3758_s28 + $0x318] sm:$0xf]  ;;  %v381_v36 = vld [vmem:[%s3758_s28 + $0x320] sm:$0xf]  ;;  %378 = vst [vmem:[%s3765_s29 + $0x188] sm:$0xf] %v377_v34 }
  0x54   : > { %380 = vst [vmem:[%s3765_s29 + $0x18c] sm:$0xf] %v379_v35  ;;  %382 = vst [vmem:[%s3765_s29 + $0x190] sm:$0xf] %v381_v36  ;;  %v383_v37 = vld [vmem:[%s3758_s28 + $0x328] sm:$0xf] }
  0x55   : > { %v385_v38 = vld [vmem:[%s3758_s28 + $0x330] sm:$0xf]  ;;  %v387_v39 = vld [vmem:[%s3758_s28 + $0x338] sm:$0xf]  ;;  %384 = vst [vmem:[%s3765_s29 + $0x194] sm:$0xf] %v383_v37 }
  0x56   : > { %386 = vst [vmem:[%s3765_s29 + $0x198] sm:$0xf] %v385_v38  ;;  %388 = vst [vmem:[%s3765_s29 + $0x19c] sm:$0xf] %v387_v39  ;;  %v389_v40 = vld [vmem:[%s3758_s28 + $0x340] sm:$0xf] }
  0x57   : > { %v391_v41 = vld [vmem:[%s3758_s28 + $0x348] sm:$0xf]  ;;  %v393_v42 = vld [vmem:[%s3758_s28 + $0x350] sm:$0xf]  ;;  %390 = vst [vmem:[%s3765_s29 + $0x1a0] sm:$0xf] %v389_v40 }
  0x58   : > { %392 = vst [vmem:[%s3765_s29 + $0x1a4] sm:$0xf] %v391_v41  ;;  %394 = vst [vmem:[%s3765_s29 + $0x1a8] sm:$0xf] %v393_v42  ;;  %v395_v43 = vld [vmem:[%s3758_s28 + $0x358] sm:$0xf] }
  0x59   : > { %v397_v44 = vld [vmem:[%s3758_s28 + $0x360] sm:$0xf]  ;;  %v399_v45 = vld [vmem:[%s3758_s28 + $0x368] sm:$0xf]  ;;  %396 = vst [vmem:[%s3765_s29 + $0x1ac] sm:$0xf] %v395_v43 }
  0x5a   : > { %398 = vst [vmem:[%s3765_s29 + $0x1b0] sm:$0xf] %v397_v44  ;;  %400 = vst [vmem:[%s3765_s29 + $0x1b4] sm:$0xf] %v399_v45  ;;  %v401_v46 = vld [vmem:[%s3758_s28 + $0x370] sm:$0xf] }
  0x5b   : > { %v403_v47 = vld [vmem:[%s3758_s28 + $0x378] sm:$0xf]  ;;  %v405_v48 = vld [vmem:[%s3758_s28 + $0x380] sm:$0xf]  ;;  %402 = vst [vmem:[%s3765_s29 + $0x1b8] sm:$0xf] %v401_v46 }
  0x5c   : > { %404 = vst [vmem:[%s3765_s29 + $0x1bc] sm:$0xf] %v403_v47  ;;  %406 = vst [vmem:[%s3765_s29 + $0x1c0] sm:$0xf] %v405_v48  ;;  %v407_v49 = vld [vmem:[%s3758_s28 + $0x388] sm:$0xf] }
  0x5d   : > { %v409_v50 = vld [vmem:[%s3758_s28 + $0x390] sm:$0xf]  ;;  %v411_v51 = vld [vmem:[%s3758_s28 + $0x398] sm:$0xf]  ;;  %408 = vst [vmem:[%s3765_s29 + $0x1c4] sm:$0xf] %v407_v49 }
  0x5e   : > { %410 = vst [vmem:[%s3765_s29 + $0x1c8] sm:$0xf] %v409_v50  ;;  %412 = vst [vmem:[%s3765_s29 + $0x1cc] sm:$0xf] %v411_v51  ;;  %v413_v52 = vld [vmem:[%s3758_s28 + $0x3a0] sm:$0xf] }
  0x5f   : > { %v415_v53 = vld [vmem:[%s3758_s28 + $0x3a8] sm:$0xf]  ;;  %v417_v54 = vld [vmem:[%s3758_s28 + $0x3b0] sm:$0xf]  ;;  %414 = vst [vmem:[%s3765_s29 + $0x1d0] sm:$0xf] %v413_v52 }
  0x60   : > { %416 = vst [vmem:[%s3765_s29 + $0x1d4] sm:$0xf] %v415_v53  ;;  %418 = vst [vmem:[%s3765_s29 + $0x1d8] sm:$0xf] %v417_v54  ;;  %v419_v55 = vld [vmem:[%s3758_s28 + $0x3b8] sm:$0xf] }
  0x61   : > { %v421_v56 = vld [vmem:[%s3758_s28 + $0x3c0] sm:$0xf]  ;;  %v423_v57 = vld [vmem:[%s3758_s28 + $0x3c8] sm:$0xf]  ;;  %420 = vst [vmem:[%s3765_s29 + $0x1dc] sm:$0xf] %v419_v55 }
  0x62   : > { %422 = vst [vmem:[%s3765_s29 + $0x1e0] sm:$0xf] %v421_v56  ;;  %424 = vst [vmem:[%s3765_s29 + $0x1e4] sm:$0xf] %v423_v57  ;;  %v425_v58 = vld [vmem:[%s3758_s28 + $0x3d0] sm:$0xf] }
  0x63   : > { %v427_v59 = vld [vmem:[%s3758_s28 + $0x3d8] sm:$0xf]  ;;  %v429_v60 = vld [vmem:[%s3758_s28 + $0x3e0] sm:$0xf]  ;;  %426 = vst [vmem:[%s3765_s29 + $0x1e8] sm:$0xf] %v425_v58 }
  0x64   : > { %428 = vst [vmem:[%s3765_s29 + $0x1ec] sm:$0xf] %v427_v59  ;;  %430 = vst [vmem:[%s3765_s29 + $0x1f0] sm:$0xf] %v429_v60  ;;  %v431_v61 = vld [vmem:[%s3758_s28 + $0x3e8] sm:$0xf] }
  0x65   : > { %v433_v62 = vld [vmem:[%s3758_s28 + $0x3f0] sm:$0xf]  ;;  %v435_v63 = vld [vmem:[%s3758_s28 + $0x3f8] sm:$0xf]  ;;  %432 = vst [vmem:[%s3765_s29 + $0x1f4] sm:$0xf] %v431_v61 }
  0x66   : > { %434 = vst [vmem:[%s3765_s29 + $0x1f8] sm:$0xf] %v433_v62  ;;  %436 = vst [vmem:[%s3765_s29 + $0x1fc] sm:$0xf] %v435_v63  ;;  %v437_v0 = vld [vmem:[%s3758_s28 + $0x400] sm:$0xf] }
  0x67   : > { %v439_v1 = vld [vmem:[%s3758_s28 + $0x408] sm:$0xf]  ;;  %v441_v2 = vld [vmem:[%s3758_s28 + $0x410] sm:$0xf]  ;;  %438 = vst [vmem:[%s3765_s29 + $0x200] sm:$0xf] %v437_v0 }
  0x68   : > { %440 = vst [vmem:[%s3765_s29 + $0x204] sm:$0xf] %v439_v1  ;;  %442 = vst [vmem:[%s3765_s29 + $0x208] sm:$0xf] %v441_v2  ;;  %v443_v3 = vld [vmem:[%s3758_s28 + $0x418] sm:$0xf] }
  0x69   : > { %v445_v4 = vld [vmem:[%s3758_s28 + $0x420] sm:$0xf]  ;;  %v447_v5 = vld [vmem:[%s3758_s28 + $0x428] sm:$0xf]  ;;  %444 = vst [vmem:[%s3765_s29 + $0x20c] sm:$0xf] %v443_v3 }
  0x6a   : > { %446 = vst [vmem:[%s3765_s29 + $0x210] sm:$0xf] %v445_v4  ;;  %448 = vst [vmem:[%s3765_s29 + $0x214] sm:$0xf] %v447_v5  ;;  %v449_v6 = vld [vmem:[%s3758_s28 + $0x430] sm:$0xf] }
  0x6b   : > { %v451_v7 = vld [vmem:[%s3758_s28 + $0x438] sm:$0xf]  ;;  %v453_v8 = vld [vmem:[%s3758_s28 + $0x440] sm:$0xf]  ;;  %450 = vst [vmem:[%s3765_s29 + $0x218] sm:$0xf] %v449_v6 }
  0x6c   : > { %452 = vst [vmem:[%s3765_s29 + $0x21c] sm:$0xf] %v451_v7  ;;  %454 = vst [vmem:[%s3765_s29 + $0x220] sm:$0xf] %v453_v8  ;;  %v455_v9 = vld [vmem:[%s3758_s28 + $0x448] sm:$0xf] }
  0x6d   : > { %v457_v10 = vld [vmem:[%s3758_s28 + $0x450] sm:$0xf]  ;;  %v459_v11 = vld [vmem:[%s3758_s28 + $0x458] sm:$0xf]  ;;  %456 = vst [vmem:[%s3765_s29 + $0x224] sm:$0xf] %v455_v9 }
  0x6e   : > { %458 = vst [vmem:[%s3765_s29 + $0x228] sm:$0xf] %v457_v10  ;;  %460 = vst [vmem:[%s3765_s29 + $0x22c] sm:$0xf] %v459_v11  ;;  %v461_v12 = vld [vmem:[%s3758_s28 + $0x460] sm:$0xf] }
  0x6f   : > { %v463_v13 = vld [vmem:[%s3758_s28 + $0x468] sm:$0xf]  ;;  %v465_v14 = vld [vmem:[%s3758_s28 + $0x470] sm:$0xf]  ;;  %462 = vst [vmem:[%s3765_s29 + $0x230] sm:$0xf] %v461_v12 }
  0x70   : > { %464 = vst [vmem:[%s3765_s29 + $0x234] sm:$0xf] %v463_v13  ;;  %466 = vst [vmem:[%s3765_s29 + $0x238] sm:$0xf] %v465_v14  ;;  %v467_v15 = vld [vmem:[%s3758_s28 + $0x478] sm:$0xf] }
  0x71   : > { %v469_v16 = vld [vmem:[%s3758_s28 + $0x480] sm:$0xf]  ;;  %v471_v17 = vld [vmem:[%s3758_s28 + $0x488] sm:$0xf]  ;;  %468 = vst [vmem:[%s3765_s29 + $0x23c] sm:$0xf] %v467_v15 }
  0x72   : > { %470 = vst [vmem:[%s3765_s29 + $0x240] sm:$0xf] %v469_v16  ;;  %472 = vst [vmem:[%s3765_s29 + $0x244] sm:$0xf] %v471_v17  ;;  %v473_v18 = vld [vmem:[%s3758_s28 + $0x490] sm:$0xf] }
  0x73   : > { %v475_v19 = vld [vmem:[%s3758_s28 + $0x498] sm:$0xf]  ;;  %v477_v20 = vld [vmem:[%s3758_s28 + $0x4a0] sm:$0xf]  ;;  %474 = vst [vmem:[%s3765_s29 + $0x248] sm:$0xf] %v473_v18 }
  0x74   : > { %476 = vst [vmem:[%s3765_s29 + $0x24c] sm:$0xf] %v475_v19  ;;  %478 = vst [vmem:[%s3765_s29 + $0x250] sm:$0xf] %v477_v20  ;;  %v479_v21 = vld [vmem:[%s3758_s28 + $0x4a8] sm:$0xf] }
  0x75   : > { %v481_v22 = vld [vmem:[%s3758_s28 + $0x4b0] sm:$0xf]  ;;  %v483_v23 = vld [vmem:[%s3758_s28 + $0x4b8] sm:$0xf]  ;;  %480 = vst [vmem:[%s3765_s29 + $0x254] sm:$0xf] %v479_v21 }
  0x76   : > { %482 = vst [vmem:[%s3765_s29 + $0x258] sm:$0xf] %v481_v22  ;;  %484 = vst [vmem:[%s3765_s29 + $0x25c] sm:$0xf] %v483_v23  ;;  %v485_v24 = vld [vmem:[%s3758_s28 + $0x4c0] sm:$0xf] }
  0x77   : > { %v487_v25 = vld [vmem:[%s3758_s28 + $0x4c8] sm:$0xf]  ;;  %v489_v26 = vld [vmem:[%s3758_s28 + $0x4d0] sm:$0xf]  ;;  %486 = vst [vmem:[%s3765_s29 + $0x260] sm:$0xf] %v485_v24 }
  0x78   : > { %488 = vst [vmem:[%s3765_s29 + $0x264] sm:$0xf] %v487_v25  ;;  %490 = vst [vmem:[%s3765_s29 + $0x268] sm:$0xf] %v489_v26  ;;  %v491_v27 = vld [vmem:[%s3758_s28 + $0x4d8] sm:$0xf] }
  0x79   : > { %v493_v28 = vld [vmem:[%s3758_s28 + $0x4e0] sm:$0xf]  ;;  %v495_v29 = vld [vmem:[%s3758_s28 + $0x4e8] sm:$0xf]  ;;  %492 = vst [vmem:[%s3765_s29 + $0x26c] sm:$0xf] %v491_v27 }
  0x7a   : > { %494 = vst [vmem:[%s3765_s29 + $0x270] sm:$0xf] %v493_v28  ;;  %496 = vst [vmem:[%s3765_s29 + $0x274] sm:$0xf] %v495_v29  ;;  %v497_v30 = vld [vmem:[%s3758_s28 + $0x4f0] sm:$0xf] }
  0x7b   : > { %v499_v31 = vld [vmem:[%s3758_s28 + $0x4f8] sm:$0xf]  ;;  %v501_v32 = vld [vmem:[%s3758_s28 + $0x500] sm:$0xf]  ;;  %498 = vst [vmem:[%s3765_s29 + $0x278] sm:$0xf] %v497_v30 }
  0x7c   : > { %500 = vst [vmem:[%s3765_s29 + $0x27c] sm:$0xf] %v499_v31  ;;  %502 = vst [vmem:[%s3765_s29 + $0x280] sm:$0xf] %v501_v32  ;;  %v503_v33 = vld [vmem:[%s3758_s28 + $0x508] sm:$0xf] }
  0x7d   : > { %v505_v34 = vld [vmem:[%s3758_s28 + $0x510] sm:$0xf]  ;;  %v507_v35 = vld [vmem:[%s3758_s28 + $0x518] sm:$0xf]  ;;  %504 = vst [vmem:[%s3765_s29 + $0x284] sm:$0xf] %v503_v33 }
  0x7e   : > { %506 = vst [vmem:[%s3765_s29 + $0x288] sm:$0xf] %v505_v34  ;;  %508 = vst [vmem:[%s3765_s29 + $0x28c] sm:$0xf] %v507_v35  ;;  %v509_v36 = vld [vmem:[%s3758_s28 + $0x520] sm:$0xf] }
  0x7f   : > { %v511_v37 = vld [vmem:[%s3758_s28 + $0x528] sm:$0xf]  ;;  %v513_v38 = vld [vmem:[%s3758_s28 + $0x530] sm:$0xf]  ;;  %510 = vst [vmem:[%s3765_s29 + $0x290] sm:$0xf] %v509_v36 }
  0x80   : > { %512 = vst [vmem:[%s3765_s29 + $0x294] sm:$0xf] %v511_v37  ;;  %514 = vst [vmem:[%s3765_s29 + $0x298] sm:$0xf] %v513_v38  ;;  %v515_v39 = vld [vmem:[%s3758_s28 + $0x538] sm:$0xf] }
  0x81   : > { %v517_v40 = vld [vmem:[%s3758_s28 + $0x540] sm:$0xf]  ;;  %v519_v41 = vld [vmem:[%s3758_s28 + $0x548] sm:$0xf]  ;;  %516 = vst [vmem:[%s3765_s29 + $0x29c] sm:$0xf] %v515_v39 }
  0x82   : > { %518 = vst [vmem:[%s3765_s29 + $0x2a0] sm:$0xf] %v517_v40  ;;  %520 = vst [vmem:[%s3765_s29 + $0x2a4] sm:$0xf] %v519_v41  ;;  %v521_v42 = vld [vmem:[%s3758_s28 + $0x550] sm:$0xf] }
  0x83   : > { %v523_v43 = vld [vmem:[%s3758_s28 + $0x558] sm:$0xf]  ;;  %v525_v44 = vld [vmem:[%s3758_s28 + $0x560] sm:$0xf]  ;;  %522 = vst [vmem:[%s3765_s29 + $0x2a8] sm:$0xf] %v521_v42 }
  0x84   : > { %524 = vst [vmem:[%s3765_s29 + $0x2ac] sm:$0xf] %v523_v43  ;;  %526 = vst [vmem:[%s3765_s29 + $0x2b0] sm:$0xf] %v525_v44  ;;  %v527_v45 = vld [vmem:[%s3758_s28 + $0x568] sm:$0xf] }
  0x85   : > { %v529_v46 = vld [vmem:[%s3758_s28 + $0x570] sm:$0xf]  ;;  %v531_v47 = vld [vmem:[%s3758_s28 + $0x578] sm:$0xf]  ;;  %528 = vst [vmem:[%s3765_s29 + $0x2b4] sm:$0xf] %v527_v45 }
  0x86   : > { %530 = vst [vmem:[%s3765_s29 + $0x2b8] sm:$0xf] %v529_v46  ;;  %532 = vst [vmem:[%s3765_s29 + $0x2bc] sm:$0xf] %v531_v47  ;;  %v533_v48 = vld [vmem:[%s3758_s28 + $0x580] sm:$0xf] }
  0x87   : > { %v535_v49 = vld [vmem:[%s3758_s28 + $0x588] sm:$0xf]  ;;  %v537_v50 = vld [vmem:[%s3758_s28 + $0x590] sm:$0xf]  ;;  %534 = vst [vmem:[%s3765_s29 + $0x2c0] sm:$0xf] %v533_v48 }
  0x88   : > { %536 = vst [vmem:[%s3765_s29 + $0x2c4] sm:$0xf] %v535_v49  ;;  %538 = vst [vmem:[%s3765_s29 + $0x2c8] sm:$0xf] %v537_v50  ;;  %v539_v51 = vld [vmem:[%s3758_s28 + $0x598] sm:$0xf] }
  0x89   : > { %v541_v52 = vld [vmem:[%s3758_s28 + $0x5a0] sm:$0xf]  ;;  %v543_v53 = vld [vmem:[%s3758_s28 + $0x5a8] sm:$0xf]  ;;  %540 = vst [vmem:[%s3765_s29 + $0x2cc] sm:$0xf] %v539_v51 }
  0x8a   : > { %542 = vst [vmem:[%s3765_s29 + $0x2d0] sm:$0xf] %v541_v52  ;;  %544 = vst [vmem:[%s3765_s29 + $0x2d4] sm:$0xf] %v543_v53  ;;  %v545_v54 = vld [vmem:[%s3758_s28 + $0x5b0] sm:$0xf] }
  0x8b   : > { %v547_v55 = vld [vmem:[%s3758_s28 + $0x5b8] sm:$0xf]  ;;  %v549_v56 = vld [vmem:[%s3758_s28 + $0x5c0] sm:$0xf]  ;;  %546 = vst [vmem:[%s3765_s29 + $0x2d8] sm:$0xf] %v545_v54 }
  0x8c   : > { %548 = vst [vmem:[%s3765_s29 + $0x2dc] sm:$0xf] %v547_v55  ;;  %550 = vst [vmem:[%s3765_s29 + $0x2e0] sm:$0xf] %v549_v56  ;;  %v551_v57 = vld [vmem:[%s3758_s28 + $0x5c8] sm:$0xf] }
  0x8d   : > { %v553_v58 = vld [vmem:[%s3758_s28 + $0x5d0] sm:$0xf]  ;;  %v555_v59 = vld [vmem:[%s3758_s28 + $0x5d8] sm:$0xf]  ;;  %552 = vst [vmem:[%s3765_s29 + $0x2e4] sm:$0xf] %v551_v57 }
  0x8e   : > { %554 = vst [vmem:[%s3765_s29 + $0x2e8] sm:$0xf] %v553_v58  ;;  %556 = vst [vmem:[%s3765_s29 + $0x2ec] sm:$0xf] %v555_v59  ;;  %v557_v60 = vld [vmem:[%s3758_s28 + $0x5e0] sm:$0xf] }
  0x8f   : > { %v559_v61 = vld [vmem:[%s3758_s28 + $0x5e8] sm:$0xf]  ;;  %v561_v62 = vld [vmem:[%s3758_s28 + $0x5f0] sm:$0xf]  ;;  %558 = vst [vmem:[%s3765_s29 + $0x2f0] sm:$0xf] %v557_v60 }
  0x90   : > { %560 = vst [vmem:[%s3765_s29 + $0x2f4] sm:$0xf] %v559_v61  ;;  %562 = vst [vmem:[%s3765_s29 + $0x2f8] sm:$0xf] %v561_v62  ;;  %v563_v63 = vld [vmem:[%s3758_s28 + $0x5f8] sm:$0xf] }
  0x91   : > { %v565_v0 = vld [vmem:[%s3758_s28 + $0x600] sm:$0xf]  ;;  %v567_v1 = vld [vmem:[%s3758_s28 + $0x608] sm:$0xf]  ;;  %564 = vst [vmem:[%s3765_s29 + $0x2fc] sm:$0xf] %v563_v63 }
  0x92   : > { %566 = vst [vmem:[%s3765_s29 + $0x300] sm:$0xf] %v565_v0  ;;  %568 = vst [vmem:[%s3765_s29 + $0x304] sm:$0xf] %v567_v1  ;;  %v569_v2 = vld [vmem:[%s3758_s28 + $0x610] sm:$0xf] }
  0x93   : > { %v571_v3 = vld [vmem:[%s3758_s28 + $0x618] sm:$0xf]  ;;  %v573_v4 = vld [vmem:[%s3758_s28 + $0x620] sm:$0xf]  ;;  %570 = vst [vmem:[%s3765_s29 + $0x308] sm:$0xf] %v569_v2 }
  0x94   : > { %572 = vst [vmem:[%s3765_s29 + $0x30c] sm:$0xf] %v571_v3  ;;  %574 = vst [vmem:[%s3765_s29 + $0x310] sm:$0xf] %v573_v4  ;;  %v575_v5 = vld [vmem:[%s3758_s28 + $0x628] sm:$0xf] }
  0x95   : > { %v577_v6 = vld [vmem:[%s3758_s28 + $0x630] sm:$0xf]  ;;  %v579_v7 = vld [vmem:[%s3758_s28 + $0x638] sm:$0xf]  ;;  %576 = vst [vmem:[%s3765_s29 + $0x314] sm:$0xf] %v575_v5 }
  0x96   : > { %578 = vst [vmem:[%s3765_s29 + $0x318] sm:$0xf] %v577_v6  ;;  %580 = vst [vmem:[%s3765_s29 + $0x31c] sm:$0xf] %v579_v7  ;;  %v581_v8 = vld [vmem:[%s3758_s28 + $0x640] sm:$0xf] }
  0x97   : > { %v583_v9 = vld [vmem:[%s3758_s28 + $0x648] sm:$0xf]  ;;  %v585_v10 = vld [vmem:[%s3758_s28 + $0x650] sm:$0xf]  ;;  %582 = vst [vmem:[%s3765_s29 + $0x320] sm:$0xf] %v581_v8 }
  0x98   : > { %584 = vst [vmem:[%s3765_s29 + $0x324] sm:$0xf] %v583_v9  ;;  %586 = vst [vmem:[%s3765_s29 + $0x328] sm:$0xf] %v585_v10  ;;  %v587_v11 = vld [vmem:[%s3758_s28 + $0x658] sm:$0xf] }
  0x99   : > { %v589_v12 = vld [vmem:[%s3758_s28 + $0x660] sm:$0xf]  ;;  %v591_v13 = vld [vmem:[%s3758_s28 + $0x668] sm:$0xf]  ;;  %588 = vst [vmem:[%s3765_s29 + $0x32c] sm:$0xf] %v587_v11 }
  0x9a   : > { %590 = vst [vmem:[%s3765_s29 + $0x330] sm:$0xf] %v589_v12  ;;  %592 = vst [vmem:[%s3765_s29 + $0x334] sm:$0xf] %v591_v13  ;;  %v593_v14 = vld [vmem:[%s3758_s28 + $0x670] sm:$0xf] }
  0x9b   : > { %v595_v15 = vld [vmem:[%s3758_s28 + $0x678] sm:$0xf]  ;;  %v597_v16 = vld [vmem:[%s3758_s28 + $0x680] sm:$0xf]  ;;  %594 = vst [vmem:[%s3765_s29 + $0x338] sm:$0xf] %v593_v14 }
  0x9c   : > { %596 = vst [vmem:[%s3765_s29 + $0x33c] sm:$0xf] %v595_v15  ;;  %598 = vst [vmem:[%s3765_s29 + $0x340] sm:$0xf] %v597_v16  ;;  %v599_v17 = vld [vmem:[%s3758_s28 + $0x688] sm:$0xf] }
  0x9d   : > { %v601_v18 = vld [vmem:[%s3758_s28 + $0x690] sm:$0xf]  ;;  %v603_v19 = vld [vmem:[%s3758_s28 + $0x698] sm:$0xf]  ;;  %600 = vst [vmem:[%s3765_s29 + $0x344] sm:$0xf] %v599_v17 }
  0x9e   : > { %602 = vst [vmem:[%s3765_s29 + $0x348] sm:$0xf] %v601_v18  ;;  %604 = vst [vmem:[%s3765_s29 + $0x34c] sm:$0xf] %v603_v19  ;;  %v605_v20 = vld [vmem:[%s3758_s28 + $0x6a0] sm:$0xf] }
  0x9f   : > { %v607_v21 = vld [vmem:[%s3758_s28 + $0x6a8] sm:$0xf]  ;;  %v609_v22 = vld [vmem:[%s3758_s28 + $0x6b0] sm:$0xf]  ;;  %606 = vst [vmem:[%s3765_s29 + $0x350] sm:$0xf] %v605_v20 }
  0xa0   : > { %608 = vst [vmem:[%s3765_s29 + $0x354] sm:$0xf] %v607_v21  ;;  %610 = vst [vmem:[%s3765_s29 + $0x358] sm:$0xf] %v609_v22  ;;  %v611_v23 = vld [vmem:[%s3758_s28 + $0x6b8] sm:$0xf] }
  0xa1   : > { %v613_v24 = vld [vmem:[%s3758_s28 + $0x6c0] sm:$0xf]  ;;  %v615_v25 = vld [vmem:[%s3758_s28 + $0x6c8] sm:$0xf]  ;;  %612 = vst [vmem:[%s3765_s29 + $0x35c] sm:$0xf] %v611_v23 }
  0xa2   : > { %614 = vst [vmem:[%s3765_s29 + $0x360] sm:$0xf] %v613_v24  ;;  %616 = vst [vmem:[%s3765_s29 + $0x364] sm:$0xf] %v615_v25  ;;  %v617_v26 = vld [vmem:[%s3758_s28 + $0x6d0] sm:$0xf] }
  0xa3   : > { %v619_v27 = vld [vmem:[%s3758_s28 + $0x6d8] sm:$0xf]  ;;  %v621_v28 = vld [vmem:[%s3758_s28 + $0x6e0] sm:$0xf]  ;;  %618 = vst [vmem:[%s3765_s29 + $0x368] sm:$0xf] %v617_v26 }
  0xa4   : > { %620 = vst [vmem:[%s3765_s29 + $0x36c] sm:$0xf] %v619_v27  ;;  %622 = vst [vmem:[%s3765_s29 + $0x370] sm:$0xf] %v621_v28  ;;  %v623_v29 = vld [vmem:[%s3758_s28 + $0x6e8] sm:$0xf] }
  0xa5   : > { %v625_v30 = vld [vmem:[%s3758_s28 + $0x6f0] sm:$0xf]  ;;  %v627_v31 = vld [vmem:[%s3758_s28 + $0x6f8] sm:$0xf]  ;;  %624 = vst [vmem:[%s3765_s29 + $0x374] sm:$0xf] %v623_v29 }
  0xa6   : > { %626 = vst [vmem:[%s3765_s29 + $0x378] sm:$0xf] %v625_v30  ;;  %628 = vst [vmem:[%s3765_s29 + $0x37c] sm:$0xf] %v627_v31  ;;  %v629_v32 = vld [vmem:[%s3758_s28 + $0x700] sm:$0xf] }
  0xa7   : > { %v631_v33 = vld [vmem:[%s3758_s28 + $0x708] sm:$0xf]  ;;  %v633_v34 = vld [vmem:[%s3758_s28 + $0x710] sm:$0xf]  ;;  %630 = vst [vmem:[%s3765_s29 + $0x380] sm:$0xf] %v629_v32 }
  0xa8   : > { %632 = vst [vmem:[%s3765_s29 + $0x384] sm:$0xf] %v631_v33  ;;  %634 = vst [vmem:[%s3765_s29 + $0x388] sm:$0xf] %v633_v34  ;;  %v635_v35 = vld [vmem:[%s3758_s28 + $0x718] sm:$0xf] }
  0xa9   : > { %v637_v36 = vld [vmem:[%s3758_s28 + $0x720] sm:$0xf]  ;;  %v639_v37 = vld [vmem:[%s3758_s28 + $0x728] sm:$0xf]  ;;  %636 = vst [vmem:[%s3765_s29 + $0x38c] sm:$0xf] %v635_v35 }
  0xaa   : > { %638 = vst [vmem:[%s3765_s29 + $0x390] sm:$0xf] %v637_v36  ;;  %640 = vst [vmem:[%s3765_s29 + $0x394] sm:$0xf] %v639_v37  ;;  %v641_v38 = vld [vmem:[%s3758_s28 + $0x730] sm:$0xf] }
  0xab   : > { %v643_v39 = vld [vmem:[%s3758_s28 + $0x738] sm:$0xf]  ;;  %v645_v40 = vld [vmem:[%s3758_s28 + $0x740] sm:$0xf]  ;;  %642 = vst [vmem:[%s3765_s29 + $0x398] sm:$0xf] %v641_v38 }
  0xac   : > { %644 = vst [vmem:[%s3765_s29 + $0x39c] sm:$0xf] %v643_v39  ;;  %646 = vst [vmem:[%s3765_s29 + $0x3a0] sm:$0xf] %v645_v40  ;;  %v647_v41 = vld [vmem:[%s3758_s28 + $0x748] sm:$0xf] }
  0xad   : > { %v649_v42 = vld [vmem:[%s3758_s28 + $0x750] sm:$0xf]  ;;  %v651_v43 = vld [vmem:[%s3758_s28 + $0x758] sm:$0xf]  ;;  %648 = vst [vmem:[%s3765_s29 + $0x3a4] sm:$0xf] %v647_v41 }
  0xae   : > { %650 = vst [vmem:[%s3765_s29 + $0x3a8] sm:$0xf] %v649_v42  ;;  %652 = vst [vmem:[%s3765_s29 + $0x3ac] sm:$0xf] %v651_v43  ;;  %v653_v44 = vld [vmem:[%s3758_s28 + $0x760] sm:$0xf] }
  0xaf   : > { %v655_v45 = vld [vmem:[%s3758_s28 + $0x768] sm:$0xf]  ;;  %v657_v46 = vld [vmem:[%s3758_s28 + $0x770] sm:$0xf]  ;;  %654 = vst [vmem:[%s3765_s29 + $0x3b0] sm:$0xf] %v653_v44 }
  0xb0   : > { %656 = vst [vmem:[%s3765_s29 + $0x3b4] sm:$0xf] %v655_v45  ;;  %658 = vst [vmem:[%s3765_s29 + $0x3b8] sm:$0xf] %v657_v46  ;;  %v659_v47 = vld [vmem:[%s3758_s28 + $0x778] sm:$0xf] }
  0xb1   : > { %v661_v48 = vld [vmem:[%s3758_s28 + $0x780] sm:$0xf]  ;;  %v663_v49 = vld [vmem:[%s3758_s28 + $0x788] sm:$0xf]  ;;  %660 = vst [vmem:[%s3765_s29 + $0x3bc] sm:$0xf] %v659_v47 }
  0xb2   : > { %662 = vst [vmem:[%s3765_s29 + $0x3c0] sm:$0xf] %v661_v48  ;;  %664 = vst [vmem:[%s3765_s29 + $0x3c4] sm:$0xf] %v663_v49  ;;  %v665_v50 = vld [vmem:[%s3758_s28 + $0x790] sm:$0xf] }
  0xb3   : > { %v667_v51 = vld [vmem:[%s3758_s28 + $0x798] sm:$0xf]  ;;  %v669_v52 = vld [vmem:[%s3758_s28 + $0x7a0] sm:$0xf]  ;;  %666 = vst [vmem:[%s3765_s29 + $0x3c8] sm:$0xf] %v665_v50 }
  0xb4   : > { %668 = vst [vmem:[%s3765_s29 + $0x3cc] sm:$0xf] %v667_v51  ;;  %670 = vst [vmem:[%s3765_s29 + $0x3d0] sm:$0xf] %v669_v52  ;;  %v671_v53 = vld [vmem:[%s3758_s28 + $0x7a8] sm:$0xf] }
  0xb5   : > { %v673_v54 = vld [vmem:[%s3758_s28 + $0x7b0] sm:$0xf]  ;;  %v675_v55 = vld [vmem:[%s3758_s28 + $0x7b8] sm:$0xf]  ;;  %672 = vst [vmem:[%s3765_s29 + $0x3d4] sm:$0xf] %v671_v53 }
  0xb6   : > { %674 = vst [vmem:[%s3765_s29 + $0x3d8] sm:$0xf] %v673_v54  ;;  %676 = vst [vmem:[%s3765_s29 + $0x3dc] sm:$0xf] %v675_v55  ;;  %v677_v56 = vld [vmem:[%s3758_s28 + $0x7c0] sm:$0xf] }
  0xb7   : > { %v679_v57 = vld [vmem:[%s3758_s28 + $0x7c8] sm:$0xf]  ;;  %v681_v58 = vld [vmem:[%s3758_s28 + $0x7d0] sm:$0xf]  ;;  %678 = vst [vmem:[%s3765_s29 + $0x3e0] sm:$0xf] %v677_v56 }
  0xb8   : > { %680 = vst [vmem:[%s3765_s29 + $0x3e4] sm:$0xf] %v679_v57  ;;  %682 = vst [vmem:[%s3765_s29 + $0x3e8] sm:$0xf] %v681_v58  ;;  %v683_v59 = vld [vmem:[%s3758_s28 + $0x7d8] sm:$0xf] }
  0xb9   : > { %v685_v60 = vld [vmem:[%s3758_s28 + $0x7e0] sm:$0xf]  ;;  %v687_v61 = vld [vmem:[%s3758_s28 + $0x7e8] sm:$0xf]  ;;  %684 = vst [vmem:[%s3765_s29 + $0x3ec] sm:$0xf] %v683_v59 }
  0xba   : > { %686 = vst [vmem:[%s3765_s29 + $0x3f0] sm:$0xf] %v685_v60  ;;  %688 = vst [vmem:[%s3765_s29 + $0x3f4] sm:$0xf] %v687_v61  ;;  %v689_v62 = vld [vmem:[%s3758_s28 + $0x7f0] sm:$0xf] }
  0xbb   : > { %v691_v63 = vld [vmem:[%s3758_s28 + $0x7f8] sm:$0xf]  ;;  %v693_v0 = vld [vmem:[%s3758_s28 + $0x800] sm:$0xf]  ;;  %690 = vst [vmem:[%s3765_s29 + $0x3f8] sm:$0xf] %v689_v62 }
  0xbc   : > { %692 = vst [vmem:[%s3765_s29 + $0x3fc] sm:$0xf] %v691_v63  ;;  %694 = vst [vmem:[%s3765_s29 + $0x400] sm:$0xf] %v693_v0  ;;  %v695_v1 = vld [vmem:[%s3758_s28 + $0x808] sm:$0xf] }
  0xbd   : > { %v697_v2 = vld [vmem:[%s3758_s28 + $0x810] sm:$0xf]  ;;  %v699_v3 = vld [vmem:[%s3758_s28 + $0x818] sm:$0xf]  ;;  %696 = vst [vmem:[%s3765_s29 + $0x404] sm:$0xf] %v695_v1 }
  0xbe   : > { %698 = vst [vmem:[%s3765_s29 + $0x408] sm:$0xf] %v697_v2  ;;  %700 = vst [vmem:[%s3765_s29 + $0x40c] sm:$0xf] %v699_v3  ;;  %v701_v4 = vld [vmem:[%s3758_s28 + $0x820] sm:$0xf] }
  0xbf   : > { %v703_v5 = vld [vmem:[%s3758_s28 + $0x828] sm:$0xf]  ;;  %v705_v6 = vld [vmem:[%s3758_s28 + $0x830] sm:$0xf]  ;;  %702 = vst [vmem:[%s3765_s29 + $0x410] sm:$0xf] %v701_v4 }
  0xc0   : > { %704 = vst [vmem:[%s3765_s29 + $0x414] sm:$0xf] %v703_v5  ;;  %706 = vst [vmem:[%s3765_s29 + $0x418] sm:$0xf] %v705_v6  ;;  %v707_v7 = vld [vmem:[%s3758_s28 + $0x838] sm:$0xf] }
  0xc1   : > { %v709_v8 = vld [vmem:[%s3758_s28 + $0x840] sm:$0xf]  ;;  %v711_v9 = vld [vmem:[%s3758_s28 + $0x848] sm:$0xf]  ;;  %708 = vst [vmem:[%s3765_s29 + $0x41c] sm:$0xf] %v707_v7 }
  0xc2   : > { %710 = vst [vmem:[%s3765_s29 + $0x420] sm:$0xf] %v709_v8  ;;  %712 = vst [vmem:[%s3765_s29 + $0x424] sm:$0xf] %v711_v9  ;;  %v713_v10 = vld [vmem:[%s3758_s28 + $0x850] sm:$0xf] }
  0xc3   : > { %v715_v11 = vld [vmem:[%s3758_s28 + $0x858] sm:$0xf]  ;;  %v717_v12 = vld [vmem:[%s3758_s28 + $0x860] sm:$0xf]  ;;  %714 = vst [vmem:[%s3765_s29 + $0x428] sm:$0xf] %v713_v10 }
  0xc4   : > { %716 = vst [vmem:[%s3765_s29 + $0x42c] sm:$0xf] %v715_v11  ;;  %718 = vst [vmem:[%s3765_s29 + $0x430] sm:$0xf] %v717_v12  ;;  %v719_v13 = vld [vmem:[%s3758_s28 + $0x868] sm:$0xf] }
  0xc5   : > { %v721_v14 = vld [vmem:[%s3758_s28 + $0x870] sm:$0xf]  ;;  %v723_v15 = vld [vmem:[%s3758_s28 + $0x878] sm:$0xf]  ;;  %720 = vst [vmem:[%s3765_s29 + $0x434] sm:$0xf] %v719_v13 }
  0xc6   : > { %722 = vst [vmem:[%s3765_s29 + $0x438] sm:$0xf] %v721_v14  ;;  %724 = vst [vmem:[%s3765_s29 + $0x43c] sm:$0xf] %v723_v15  ;;  %v725_v16 = vld [vmem:[%s3758_s28 + $0x880] sm:$0xf] }
  0xc7   : > { %v727_v17 = vld [vmem:[%s3758_s28 + $0x888] sm:$0xf]  ;;  %v729_v18 = vld [vmem:[%s3758_s28 + $0x890] sm:$0xf]  ;;  %726 = vst [vmem:[%s3765_s29 + $0x440] sm:$0xf] %v725_v16 }
  0xc8   : > { %728 = vst [vmem:[%s3765_s29 + $0x444] sm:$0xf] %v727_v17  ;;  %730 = vst [vmem:[%s3765_s29 + $0x448] sm:$0xf] %v729_v18  ;;  %v731_v19 = vld [vmem:[%s3758_s28 + $0x898] sm:$0xf] }
  0xc9   : > { %v733_v20 = vld [vmem:[%s3758_s28 + $0x8a0] sm:$0xf]  ;;  %v735_v21 = vld [vmem:[%s3758_s28 + $0x8a8] sm:$0xf]  ;;  %732 = vst [vmem:[%s3765_s29 + $0x44c] sm:$0xf] %v731_v19 }
  0xca   : > { %734 = vst [vmem:[%s3765_s29 + $0x450] sm:$0xf] %v733_v20  ;;  %736 = vst [vmem:[%s3765_s29 + $0x454] sm:$0xf] %v735_v21  ;;  %v737_v22 = vld [vmem:[%s3758_s28 + $0x8b0] sm:$0xf] }
  0xcb   : > { %v739_v23 = vld [vmem:[%s3758_s28 + $0x8b8] sm:$0xf]  ;;  %v741_v24 = vld [vmem:[%s3758_s28 + $0x8c0] sm:$0xf]  ;;  %738 = vst [vmem:[%s3765_s29 + $0x458] sm:$0xf] %v737_v22 }
  0xcc   : > { %740 = vst [vmem:[%s3765_s29 + $0x45c] sm:$0xf] %v739_v23  ;;  %742 = vst [vmem:[%s3765_s29 + $0x460] sm:$0xf] %v741_v24  ;;  %v743_v25 = vld [vmem:[%s3758_s28 + $0x8c8] sm:$0xf] }
  0xcd   : > { %v745_v26 = vld [vmem:[%s3758_s28 + $0x8d0] sm:$0xf]  ;;  %v747_v27 = vld [vmem:[%s3758_s28 + $0x8d8] sm:$0xf]  ;;  %744 = vst [vmem:[%s3765_s29 + $0x464] sm:$0xf] %v743_v25 }
  0xce   : > { %746 = vst [vmem:[%s3765_s29 + $0x468] sm:$0xf] %v745_v26  ;;  %748 = vst [vmem:[%s3765_s29 + $0x46c] sm:$0xf] %v747_v27  ;;  %v749_v28 = vld [vmem:[%s3758_s28 + $0x8e0] sm:$0xf] }
  0xcf   : > { %v751_v29 = vld [vmem:[%s3758_s28 + $0x8e8] sm:$0xf]  ;;  %v753_v30 = vld [vmem:[%s3758_s28 + $0x8f0] sm:$0xf]  ;;  %750 = vst [vmem:[%s3765_s29 + $0x470] sm:$0xf] %v749_v28 }
  0xd0   : > { %752 = vst [vmem:[%s3765_s29 + $0x474] sm:$0xf] %v751_v29  ;;  %754 = vst [vmem:[%s3765_s29 + $0x478] sm:$0xf] %v753_v30  ;;  %v755_v31 = vld [vmem:[%s3758_s28 + $0x8f8] sm:$0xf] }
  0xd1   : > { %756 = vst [vmem:[%s3765_s29 + $0x47c] sm:$0xf] %v755_v31 }
  0xd2 PF: > { %p3121_p5 = scmp.ge.s32.totalorder %s3697_s17, 1  ;;  %p1366_p6 = scmp.lt.s32.totalorder %s3697_s17, 3 }
  0xd4   : > { %p1367_p7 = pnand %p3121_p5, %p1366_p6 }
  0xd5   : > { %s1373_s30 = sand.u32 (!%p1367_p7), 1, %s3689_s15   ;;  %v4344_v32 = vld [vmem:[%s4573_s0] sm:$0xff] (!%p1367_p7)  ;;  %v4349_v33 = vld [vmem:[%s4573_s0 + $0x8] sm:$0xff] (!%p1367_p7)  ;;  %v4389_v1 = vld [vmem:[%s4573_s0 + $0x10] sm:$0xff] (!%p1367_p7)  ;;  %p1403_p8 = scmp.lt.s32.totalorder (!%p1367_p7), %s3116_s18, 1 }
  0xd6   : > { %1370 = sbr.rel (%p1367_p7) target bundleno = 643 (0x283), region = 73  ;;  %v3124_v34 = vcombine.high (!%p1367_p7), %v4344_v32, %v4344_v32  ;;  %v3126_v35 = vcombine.high (!%p1367_p7), %v4349_v33, %v4349_v33  ;;  %v4396_v4 = vld [vmem:[%s4573_s0 + $0x18] sm:$0xff] (!%p1367_p7)  ;;  %v3123_v6 = vcombine.low (!%p1367_p7), %v4344_v32, %v4344_v32  ;;  %v3125_v7 = vcombine.low (!%p1367_p7), %v4349_v33, %v4349_v33 }
  0xd7   : > { %s3486_s9 = smul.u32 (!%p1367_p7), 1152, %s1373_s30  ;;  %v3128_v10 = vcombine.high (!%p1367_p7), %v4389_v1, %v4389_v1  ;;  %v3130_v13 = vcombine.high (!%p1367_p7), %v4396_v4, %v4396_v4 }
  0xd8   : > { %2670 = vmatprep.mubr.bf16.mxu0 (!%p1367_p7), %v3124_v34  ;;  %2710 = vmatprep.mubr.bf16.mxu1 (!%p1367_p7), %v3126_v35 }
  0xd9   : > { %s4355_s10 = scalar_lea.vmem (!%p1367_p7), [#allocation2], %s3486_s9 }
  0xda   : > { %v3511_v36 = vld [vmem:[%s4355_s10 + $0x40] sm:$0xff] (!%p1367_p7)   ;;  %v3515_v40 = vld [vmem:[%s4355_s10 + $0x48] sm:$0xff] (!%p1367_p7)   ;;  %v3519_v44 = vld [vmem:[%s4355_s10 + $0x50] sm:$0xff] (!%p1367_p7)  }
  0xdb   : > { %v3512_v37 = vld [vmem:[%s4355_s10 + $0xc0] sm:$0xff] (!%p1367_p7)   ;;  %3287 = vmatprep.subr.bf16.mxu0 (!%p1367_p7), %v3511_v36  ;;  %v3516_v41 = vld [vmem:[%s4355_s10 + $0xc8] sm:$0xff] (!%p1367_p7)   ;;  %v3520_v45 = vld [vmem:[%s4355_s10 + $0xd0] sm:$0xff] (!%p1367_p7)  }
  0xdc   : > { %v3513_v38 = vld [vmem:[%s4355_s10] sm:$0xff] (!%p1367_p7)   ;;  %3309 = vmatprep.subr.bf16.mxu1 (!%p1367_p7), %v3512_v37  ;;  %v3517_v42 = vld [vmem:[%s4355_s10 + $0x8] sm:$0xff] (!%p1367_p7)   ;;  %v3521_v46 = vld [vmem:[%s4355_s10 + $0x10] sm:$0xff] (!%p1367_p7)  }
  0xdd   : > { %v3514_v39 = vld [vmem:[%s4355_s10 + $0x80] sm:$0xff]   ;;  %3288 = vmatpush3.bf16.msra.mxu0 %v3513_v38  ;;  %v3518_v43 = vld [vmem:[%s4355_s10 + $0x88] sm:$0xff]   ;;  %v3522_v47 = vld [vmem:[%s4355_s10 + $0x90] sm:$0xff]   ;;  %s4582_s18 = smov (!%p1403_p8, %s3116_s18), 1 }
  0xde   : > { %3310 = vmatpush3.bf16.msra.mxu1 %v3514_v39  ;;  %3289 = vmatprep.subr.bf16.mxu0 %v3515_v40  ;;  %v3523_v48 = vld [vmem:[%s4355_s10 + $0x58] sm:$0xff]   ;;  %v3527_v52 = vld [vmem:[%s4355_s10 + $0x60] sm:$0xff]   ;;  %v3531_v56 = vld [vmem:[%s4355_s10 + $0x68] sm:$0xff]   ;;  %s1405_s6 = scalar_lea.vmem %s4575_s2, %s4582_s18  ;;  %s1408_s9 = scalar_lea.vmem %s4576_s3, %s4582_s18 }
  0xdf   : > { %3311 = vmatprep.subr.bf16.mxu1 %v3516_v41  ;;  %v3524_v49 = vld [vmem:[%s4355_s10 + $0xd8] sm:$0xff]   ;;  %v3528_v53 = vld [vmem:[%s4355_s10 + $0xe0] sm:$0xff]   ;;  %v3532_v57 = vld [vmem:[%s4355_s10 + $0xe8] sm:$0xff]   ;;  %s3122_s17 = sshll.u32 %s4582_s18, 3 }
  0xe0   : > { %v3525_v50 = vld [vmem:[%s4355_s10 + $0x18] sm:$0xff]   ;;  %v3529_v54 = vld [vmem:[%s4355_s10 + $0x20] sm:$0xff]   ;;  %v3533_v58 = vld [vmem:[%s4355_s10 + $0x28] sm:$0xff]   ;;  %s1412_s12 = scalar_lea.vmem %s4577_s4, %s3122_s17 }
  0xe1   : > { %3290 = vmatpush3.bf16.msra.mxu0 %v3517_v42  ;;  %v3526_v51 = vld [vmem:[%s4355_s10 + $0x98] sm:$0xff]   ;;  %v3530_v55 = vld [vmem:[%s4355_s10 + $0xa0] sm:$0xff]   ;;  %v3534_v59 = vld [vmem:[%s4355_s10 + $0xa8] sm:$0xff]  }
  0xe2   : > { %3312 = vmatpush3.bf16.msra.mxu1 %v3518_v43  ;;  %3291 = vmatprep.subr.bf16.mxu0 %v3519_v44  ;;  %v3535_v60 = vld [vmem:[%s4355_s10 + $0x70] sm:$0xff]   ;;  %v3539_v0 = vld [vmem:[%s4355_s10 + $0x78] sm:$0xff]   ;;  %v3547_v8 = vld [vmem:[%s4355_s10 + $0x140] sm:$0xff]   ;;  %v3127_v43 = vcombine.low %v4389_v1, %v4389_v1 }
  0xe3   : > { %3313 = vmatprep.subr.bf16.mxu1 %v3520_v45  ;;  %v3536_v61 = vld [vmem:[%s4355_s10 + $0xf0] sm:$0xff]   ;;  %v3540_v2 = vld [vmem:[%s4355_s10 + $0xf8] sm:$0xff]   ;;  %v3548_v9 = vld [vmem:[%s4355_s10 + $0x100] sm:$0xff]  }
  0xe4   : > { %v3537_v62 = vld [vmem:[%s4355_s10 + $0x30] sm:$0xff]   ;;  %v3541_v3 = vld [vmem:[%s4355_s10 + $0x38] sm:$0xff]   ;;  %v3549_v11 = vld [vmem:[%s4355_s10 + $0x1c0] sm:$0xff]  }
  0xe5   : > { %3292 = vmatpush3.bf16.msra.mxu0 %v3521_v46  ;;  %v3538_v63 = vld [vmem:[%s4355_s10 + $0xb0] sm:$0xff]   ;;  %v3542_v5 = vld [vmem:[%s4355_s10 + $0xb8] sm:$0xff]   ;;  %v3550_v12 = vld [vmem:[%s4355_s10 + $0x180] sm:$0xff]   ;;  %v3129_v46 = vcombine.low %v4396_v4, %v4396_v4 }
  0xe6   : > { %3314 = vmatpush3.bf16.msra.mxu1 %v3522_v47  ;;  %3293 = vmatprep.subr.bf16.mxu0 %v3523_v48  ;;  %v3551_v14 = vld [vmem:[%s4355_s10 + $0x148] sm:$0xff]   ;;  %v3555_v18 = vld [vmem:[%s4355_s10 + $0x150] sm:$0xff]   ;;  %v3559_v22 = vld [vmem:[%s4355_s10 + $0x158] sm:$0xff]  }
  0xe7   : > { %3315 = vmatprep.subr.bf16.mxu1 %v3524_v49  ;;  %v3552_v15 = vld [vmem:[%s4355_s10 + $0x108] sm:$0xff]   ;;  %v3556_v19 = vld [vmem:[%s4355_s10 + $0x110] sm:$0xff]   ;;  %v3560_v23 = vld [vmem:[%s4355_s10 + $0x118] sm:$0xff]  }
  0xe8   : > { %v3553_v16 = vld [vmem:[%s4355_s10 + $0x1c8] sm:$0xff]   ;;  %v3557_v20 = vld [vmem:[%s4355_s10 + $0x1d0] sm:$0xff]   ;;  %v3561_v24 = vld [vmem:[%s4355_s10 + $0x1d8] sm:$0xff]  }
  0xe9   : > { %3294 = vmatpush3.bf16.msra.mxu0 %v3525_v50  ;;  %v3554_v17 = vld [vmem:[%s4355_s10 + $0x188] sm:$0xff]   ;;  %v3558_v21 = vld [vmem:[%s4355_s10 + $0x190] sm:$0xff]   ;;  %v3562_v25 = vld [vmem:[%s4355_s10 + $0x198] sm:$0xff]  }
  0xea   : > { %3316 = vmatpush3.bf16.msra.mxu1 %v3526_v51  ;;  %3295 = vmatprep.subr.bf16.mxu0 %v3527_v52  ;;  %v3563_v26 = vld [vmem:[%s4355_s10 + $0x160] sm:$0xff]   ;;  %v3567_v30 = vld [vmem:[%s4355_s10 + $0x168] sm:$0xff]   ;;  %v3571_v34 = vld [vmem:[%s4355_s10 + $0x170] sm:$0xff]  }
  0xeb   : > { %3317 = vmatprep.subr.bf16.mxu1 %v3528_v53  ;;  %v3564_v27 = vld [vmem:[%s4355_s10 + $0x120] sm:$0xff]   ;;  %v3568_v31 = vld [vmem:[%s4355_s10 + $0x128] sm:$0xff]   ;;  %v3572_v35 = vld [vmem:[%s4355_s10 + $0x130] sm:$0xff]  }
  0xec   : > { %v3565_v28 = vld [vmem:[%s4355_s10 + $0x1e0] sm:$0xff]   ;;  %v3569_v32 = vld [vmem:[%s4355_s10 + $0x1e8] sm:$0xff]   ;;  %v3573_v36 = vld [vmem:[%s4355_s10 + $0x1f0] sm:$0xff]  }
  0xed   : > { %3296 = vmatpush3.bf16.msra.mxu0 %v3529_v54  ;;  %v3566_v29 = vld [vmem:[%s4355_s10 + $0x1a0] sm:$0xff]   ;;  %v3570_v33 = vld [vmem:[%s4355_s10 + $0x1a8] sm:$0xff]   ;;  %v3574_v37 = vld [vmem:[%s4355_s10 + $0x1b0] sm:$0xff]  }
  0xee   : > { %3318 = vmatpush3.bf16.msra.mxu1 %v3530_v55  ;;  %3297 = vmatprep.subr.bf16.mxu0 %v3531_v56  ;;  %v3575_v38 = vld [vmem:[%s4355_s10 + $0x178] sm:$0xff]   ;;  %v4439_v39 = vld [vmem:[%s4573_s0 + $0x20] sm:$0xff]  ;;  %v4446_v42 = vld [vmem:[%s4573_s0 + $0x28] sm:$0xff] }
  0xef   : > { %3319 = vmatprep.subr.bf16.mxu1 %v3532_v57  ;;  %v3576_v40 = vld [vmem:[%s4355_s10 + $0x138] sm:$0xff]   ;;  %v3581_v45 = vld [vmem:[%s4355_s10 + $0x240] sm:$0xff]   ;;  %v3132_v48 = vcombine.high %v4439_v39, %v4439_v39  ;;  %v3134_v51 = vcombine.high %v4446_v42, %v4446_v42  ;;  %v3587_v52 = vld [vmem:[%s4355_s10 + $0x248] sm:$0xff]  }
  0xf0   : > { %v3577_v41 = vld [vmem:[%s4355_s10 + $0x1f8] sm:$0xff]   ;;  %v3584_v47 = vld [vmem:[%s4355_s10 + $0x200] sm:$0xff]   ;;  %v3588_v53 = vld [vmem:[%s4355_s10 + $0x208] sm:$0xff]  }
  0xf1   : > { %3298 = vmatpush3.bf16.msra.mxu0 %v3533_v58  ;;  %v3580_v44 = vld [vmem:[%s4355_s10 + $0x1b8] sm:$0xff]   ;;  %v3585_v49 = vld [vmem:[%s4355_s10 + $0x2c0] sm:$0xff]   ;;  %v3589_v54 = vld [vmem:[%s4355_s10 + $0x2c8] sm:$0xff]  }
  0xf2   : > { %3320 = vmatpush3.bf16.msra.mxu1 %v3534_v59  ;;  %3299 = vmatprep.subr.bf16.mxu0 %v3535_v60  ;;  %v3586_v50 = vld [vmem:[%s4355_s10 + $0x280] sm:$0xff]   ;;  %v3590_v55 = vld [vmem:[%s4355_s10 + $0x288] sm:$0xff]   ;;  %v3591_v56 = vld [vmem:[%s4355_s10 + $0x250] sm:$0xff]  }
  0xf3   : > { %3321 = vmatprep.subr.bf16.mxu1 %v3536_v61  ;;  %v3592_v57 = vld [vmem:[%s4355_s10 + $0x210] sm:$0xff]   ;;  %v3595_v60 = vld [vmem:[%s4355_s10 + $0x258] sm:$0xff]   ;;  %v3600_v1 = vld [vmem:[%s4355_s10 + $0x220] sm:$0xff]  }
  0xf4   : > { %v3593_v58 = vld [vmem:[%s4355_s10 + $0x2d0] sm:$0xff]   ;;  %v3596_v61 = vld [vmem:[%s4355_s10 + $0x218] sm:$0xff]   ;;  %v3603_v4 = vld [vmem:[%s4355_s10 + $0x268] sm:$0xff]  }
  0xf5   : > { %3300 = vmatpush3.bf16.msra.mxu0 %v3537_v62  ;;  %v3594_v59 = vld [vmem:[%s4355_s10 + $0x290] sm:$0xff]   ;;  %v3597_v62 = vld [vmem:[%s4355_s10 + $0x2d8] sm:$0xff]  }
  0xf6   : > { %3322 = vmatpush3.bf16.msra.mxu1 %v3538_v63  ;;  %3301 = vmatprep.subr.bf16.mxu0 %v3539_v0  ;;  %v3598_v63 = vld [vmem:[%s4355_s10 + $0x298] sm:$0xff]   ;;  %v3599_v0 = vld [vmem:[%s4355_s10 + $0x260] sm:$0xff]  }
  0xf7   : > { %3323 = vmatprep.subr.bf16.mxu1 %v3540_v2  ;;  %v3601_v2 = vld [vmem:[%s4355_s10 + $0x2e0] sm:$0xff]  }
  0xf9   : > { %3302 = vmatpush3.bf16.msra.mxu0 %v3541_v3  ;;  %v3602_v3 = vld [vmem:[%s4355_s10 + $0x2a0] sm:$0xff]  }
  0xfa   : > { %3324 = vmatpush3.bf16.msra.mxu1 %v3542_v5  ;;  %3331 = vmatprep.subr.bf16.mxu0 %v3547_v8  ;;  %v3604_v5 = vld [vmem:[%s4355_s10 + $0x228] sm:$0xff]   ;;  %v3607_v8 = vld [vmem:[%s4355_s10 + $0x270] sm:$0xff]  }
  0xfb   : > { %3353 = vmatprep.subr.bf16.mxu1 %v3549_v11  ;;  %v3610_v11 = vld [vmem:[%s4355_s10 + $0x2b0] sm:$0xff]  }
  0xfc   : > { %2671 = vmatmul.mubr.bf16.vlgmr.msra.gmra.mrb[0].mxu0 %v3123_v6  ;;  %v3605_v6 = vld [vmem:[%s4355_s10 + $0x2e8] sm:$0xff]  }
  0xfd   : > { %2711 = vmatmul.mubr.bf16.vlgmr.msra.gmra.mrb[0].mxu1 %v3125_v7  ;;  %3332 = vmatpush3.bf16.msra.mxu0 %v3548_v9  ;;  %v3606_v7 = vld [vmem:[%s4355_s10 + $0x2a8] sm:$0xff]   ;;  %v3608_v9 = vld [vmem:[%s4355_s10 + $0x230] sm:$0xff]  }
  0xfe   : > { %2750 = vmatprep.mubr.bf16.mxu0 %v3128_v10  ;;  %3354 = vmatpush3.bf16.msra.mxu1 %v3550_v12  ;;  %v3609_v10 = vld [vmem:[%s4355_s10 + $0x2f0] sm:$0xff]   ;;  %v3611_v12 = vld [vmem:[%s4355_s10 + $0x278] sm:$0xff]  }
  0xff   : > { %3333 = vmatprep.subr.bf16.mxu0 %v3551_v14  ;;  %2790 = vmatprep.mubr.bf16.mxu1 %v3130_v13  ;;  %v3612_v13 = vld [vmem:[%s4355_s10 + $0x238] sm:$0xff]  }
 0x100   : > { %3355 = vmatprep.subr.bf16.mxu1 %v3553_v16  ;;  %v3613_v14 = vld [vmem:[%s4355_s10 + $0x2f8] sm:$0xff]  }
 0x101   : > { %3334 = vmatpush3.bf16.msra.mxu0 %v3552_v15  ;;  %v3131_v15 = vcombine.low %v4439_v39, %v4439_v39  ;;  %v3616_v16 = vld [vmem:[%s4355_s10 + $0x2b8] sm:$0xff]   ;;  %v3640_v39 = vld [vmem:[%s4355_s10 + $0x328] sm:$0xff]  }
 0x102   : > { %3356 = vmatpush3.bf16.msra.mxu1 %v3554_v17  ;;  %3335 = vmatprep.subr.bf16.mxu0 %v3555_v18  ;;  %v3617_v17 = vld [vmem:[%s4355_s10 + $0x340] sm:$0xff]   ;;  %v3133_v18 = vcombine.low %v4446_v42, %v4446_v42  ;;  %v3643_v42 = vld [vmem:[%s4355_s10 + $0x370] sm:$0xff]  }
 0x103   : > { %3357 = vmatprep.subr.bf16.mxu1 %v3557_v20  ;;  %v3621_v20 = vld [vmem:[%s4355_s10 + $0x3c0] sm:$0xff]  }
 0x105   : > { %3336 = vmatpush3.bf16.msra.mxu0 %v3556_v19  ;;  %v3620_v19 = vld [vmem:[%s4355_s10 + $0x300] sm:$0xff]  }
 0x106   : > { %3358 = vmatpush3.bf16.msra.mxu1 %v3558_v21  ;;  %3337 = vmatprep.subr.bf16.mxu0 %v3559_v22  ;;  %v3622_v21 = vld [vmem:[%s4355_s10 + $0x380] sm:$0xff]   ;;  %v3623_v22 = vld [vmem:[%s4355_s10 + $0x348] sm:$0xff]  }
 0x107   : > { %3359 = vmatprep.subr.bf16.mxu1 %v3561_v24  ;;  %v3625_v24 = vld [vmem:[%s4355_s10 + $0x3c8] sm:$0xff]  }
 0x109   : > { %3338 = vmatpush3.bf16.msra.mxu0 %v3560_v23  ;;  %v3624_v23 = vld [vmem:[%s4355_s10 + $0x308] sm:$0xff]  }
 0x10a   : > { %3360 = vmatpush3.bf16.msra.mxu1 %v3562_v25  ;;  %3339 = vmatprep.subr.bf16.mxu0 %v3563_v26  ;;  %v3626_v25 = vld [vmem:[%s4355_s10 + $0x388] sm:$0xff]   ;;  %v3627_v26 = vld [vmem:[%s4355_s10 + $0x350] sm:$0xff]  }
 0x10b   : > { %3361 = vmatprep.subr.bf16.mxu1 %v3565_v28  ;;  %v3629_v28 = vld [vmem:[%s4355_s10 + $0x3d0] sm:$0xff]  }
 0x10d   : > { %3340 = vmatpush3.bf16.msra.mxu0 %v3564_v27  ;;  %v3628_v27 = vld [vmem:[%s4355_s10 + $0x310] sm:$0xff]  }
 0x10e   : > { %3362 = vmatpush3.bf16.msra.mxu1 %v3566_v29  ;;  %3341 = vmatprep.subr.bf16.mxu0 %v3567_v30  ;;  %v3630_v29 = vld [vmem:[%s4355_s10 + $0x390] sm:$0xff]   ;;  %v3631_v30 = vld [vmem:[%s4355_s10 + $0x358] sm:$0xff]  }
 0x10f   : > { %3363 = vmatprep.subr.bf16.mxu1 %v3569_v32  ;;  %v3633_v32 = vld [vmem:[%s4355_s10 + $0x3d8] sm:$0xff]  }
 0x111   : > { %3342 = vmatpush3.bf16.msra.mxu0 %v3568_v31  ;;  %v3632_v31 = vld [vmem:[%s4355_s10 + $0x318] sm:$0xff]  }
 0x112   : > { %3364 = vmatpush3.bf16.msra.mxu1 %v3570_v33  ;;  %3343 = vmatprep.subr.bf16.mxu0 %v3571_v34  ;;  %v3634_v33 = vld [vmem:[%s4355_s10 + $0x398] sm:$0xff]   ;;  %v3635_v34 = vld [vmem:[%s4355_s10 + $0x360] sm:$0xff]  }
 0x113   : > { %3365 = vmatprep.subr.bf16.mxu1 %v3573_v36  ;;  %v3637_v36 = vld [vmem:[%s4355_s10 + $0x3e0] sm:$0xff]  }
 0x115   : > { %3344 = vmatpush3.bf16.msra.mxu0 %v3572_v35  ;;  %v3636_v35 = vld [vmem:[%s4355_s10 + $0x320] sm:$0xff]  }
 0x116   : > { %3366 = vmatpush3.bf16.msra.mxu1 %v3574_v37  ;;  %3345 = vmatprep.subr.bf16.mxu0 %v3575_v38  ;;  %v3638_v37 = vld [vmem:[%s4355_s10 + $0x3a0] sm:$0xff]   ;;  %v3639_v38 = vld [vmem:[%s4355_s10 + $0x368] sm:$0xff]  }
 0x117   : > { %3367 = vmatprep.subr.bf16.mxu1 %v3577_v41  ;;  %v3642_v41 = vld [vmem:[%s4355_s10 + $0x3a8] sm:$0xff]  }
 0x119   : > { %3346 = vmatpush3.bf16.msra.mxu0 %v3576_v40  ;;  %v3641_v40 = vld [vmem:[%s4355_s10 + $0x3e8] sm:$0xff]  }
 0x11a   : > { %3368 = vmatpush3.bf16.msra.mxu1 %v3580_v44  ;;  %3375 = vmatprep.subr.bf16.mxu0 %v3581_v45  ;;  %v3645_v44 = vld [vmem:[%s4355_s10 + $0x3f0] sm:$0xff]  }
 0x11b   : > { %3397 = vmatprep.subr.bf16.mxu1 %v3585_v49  ;;  %v3646_v45 = vld [vmem:[%s4355_s10 + $0x3b0] sm:$0xff]  }
 0x11c   : > { %2751 = vmatmul.mubr.bf16.vlgmr.msra.gmra.mrb[4].mxu0 %v3127_v43  ;;  %v3644_v43 = vld [vmem:[%s4355_s10 + $0x330] sm:$0xff]  }
 0x11d   : > { %3376 = vmatpush3.bf16.msra.mxu0 %v3584_v47  ;;  %2791 = vmatmul.mubr.bf16.vlgmr.msra.gmra.mrb[4].mxu1 %v3129_v46  ;;  %v3647_v46 = vld [vmem:[%s4355_s10 + $0x378] sm:$0xff]   ;;  %v1420_v49 = vld [vmem:[%s4573_s0 + $0x30] sm:$0xff] }
 0x11e   : > { %2830 = vmatprep.mubr.bf16.mxu0 %v3132_v48  ;;  %3398 = vmatpush3.bf16.msra.mxu1 %v3586_v50  ;;  %v3648_v47 = vld [vmem:[%s4355_s10 + $0x338] sm:$0xff]   ;;  %v3135_v50 = vcombine.low %v1420_v49, %v1420_v49 }
 0x11f   : > { %3377 = vmatprep.subr.bf16.mxu0 %v3587_v52  ;;  %2870 = vmatprep.mubr.bf16.mxu1 %v3134_v51  ;;  %v3649_v48 = vld [vmem:[%s4355_s10 + $0x3f8] sm:$0xff]   ;;  %v3136_v51 = vcombine.high %v1420_v49, %v1420_v49 }
 0x120   : > { %3399 = vmatprep.subr.bf16.mxu1 %v3589_v54  ;;  %v3652_v52 = vld [vmem:[%s4355_s10 + $0x3b8] sm:$0xff]  }
 0x121   : > { %3378 = vmatpush3.bf16.msra.mxu0 %v3588_v53  ;;  %v3653_v53 = vld [vmem:[%s4355_s10 + $0x440] sm:$0xff]   ;;  %v1421_v54 = vld [vmem:[%s4573_s0 + $0x38] sm:$0xff] }
 0x122   : > { %3400 = vmatpush3.bf16.msra.mxu1 %v3590_v55  ;;  %3379 = vmatprep.subr.bf16.mxu0 %v3591_v56  ;;  %v3137_v55 = vcombine.low %v1421_v54, %v1421_v54  ;;  %v3138_v56 = vcombine.high %v1421_v54, %v1421_v54 }
 0x123   : > { %3401 = vmatprep.subr.bf16.mxu1 %v3593_v58  ;;  %v3657_v58 = vld [vmem:[%s4355_s10 + $0x448] sm:$0xff]  }
 0x125   : > { %3380 = vmatpush3.bf16.msra.mxu0 %v3592_v57  ;;  %v3656_v57 = vld [vmem:[%s4355_s10 + $0x400] sm:$0xff]  }
 0x126   : > { %3402 = vmatpush3.bf16.msra.mxu1 %v3594_v59  ;;  %3381 = vmatprep.subr.bf16.mxu0 %v3595_v60  ;;  %v3658_v59 = vld [vmem:[%s4355_s10 + $0x408] sm:$0xff]   ;;  %v3659_v60 = vld [vmem:[%s4355_s10 + $0x450] sm:$0xff]  }
 0x127   : > { %3403 = vmatprep.subr.bf16.mxu1 %v3597_v62  ;;  %v3661_v62 = vld [vmem:[%s4355_s10 + $0x458] sm:$0xff]  }
 0x129   : > { %3382 = vmatpush3.bf16.msra.mxu0 %v3596_v61  ;;  %v3660_v61 = vld [vmem:[%s4355_s10 + $0x410] sm:$0xff]  }
 0x12a   : > { %3404 = vmatpush3.bf16.msra.mxu1 %v3598_v63  ;;  %3383 = vmatprep.subr.bf16.mxu0 %v3599_v0  ;;  %v3662_v63 = vld [vmem:[%s4355_s10 + $0x418] sm:$0xff]   ;;  %v3663_v0 = vld [vmem:[%s4355_s10 + $0x460] sm:$0xff]  }
 0x12b   : > { %3405 = vmatprep.subr.bf16.mxu1 %v3601_v2  ;;  %v1422_v2 = vld [vmem:[%s4573_s0 + $0x40] sm:$0xff] }
 0x12d   : > { %3384 = vmatpush3.bf16.msra.mxu0 %v3600_v1  ;;  %v3664_v1 = vld [vmem:[%s4355_s10 + $0x420] sm:$0xff]  }
 0x12e   : > { %3406 = vmatpush3.bf16.msra.mxu1 %v3602_v3  ;;  %3385 = vmatprep.subr.bf16.mxu0 %v3603_v4  ;;  %v3665_v3 = vld [vmem:[%s4355_s10 + $0x468] sm:$0xff]   ;;  %v3140_v4 = vcombine.high %v1422_v2, %v1422_v2 }
 0x12f   : > { %3407 = vmatprep.subr.bf16.mxu1 %v3605_v6  ;;  %v3667_v6 = vld [vmem:[%s4355_s10 + $0x470] sm:$0xff]  }
 0x131   : > { %3386 = vmatpush3.bf16.msra.mxu0 %v3604_v5  ;;  %v3666_v5 = vld [vmem:[%s4355_s10 + $0x428] sm:$0xff]  }
 0x132   : > { %3408 = vmatpush3.bf16.msra.mxu1 %v3606_v7  ;;  %3387 = vmatprep.subr.bf16.mxu0 %v3607_v8  ;;  %v3668_v7 = vld [vmem:[%s4355_s10 + $0x430] sm:$0xff]   ;;  %v3669_v8 = vld [vmem:[%s4355_s10 + $0x478] sm:$0xff]  }
 0x133   : > { %3409 = vmatprep.subr.bf16.mxu1 %v3609_v10  ;;  %v3139_v10 = vcombine.low %v1422_v2, %v1422_v2 }
 0x135   : > { %3388 = vmatpush3.bf16.msra.mxu0 %v3608_v9  ;;  %v3670_v9 = vld [vmem:[%s4355_s10 + $0x438] sm:$0xff]  }
 0x136   : > { %3410 = vmatpush3.bf16.msra.mxu1 %v3610_v11  ;;  %3389 = vmatprep.subr.bf16.mxu0 %v3611_v12 }
 0x137   : > { %3411 = vmatprep.subr.bf16.mxu1 %v3613_v14 }
 0x139   : > { %3390 = vmatpush3.bf16.msra.mxu0 %v3612_v13 }
 0x13a   : > { %3412 = vmatpush3.bf16.msra.mxu1 %v3616_v16  ;;  %3419 = vmatprep.subr.bf16.mxu0 %v3617_v17 }
 0x13b   : > { %3441 = vmatprep.subr.bf16.mxu1 %v3621_v20 }
 0x13c   : > { %2831 = vmatmul.mubr.bf16.vlgmr.msra.gmra.mrb[8].mxu0 %v3131_v15 }
 0x13d   : > { %3420 = vmatpush3.bf16.msra.mxu0 %v3620_v19  ;;  %2871 = vmatmul.mubr.bf16.vlgmr.msra.gmra.mrb[8].mxu1 %v3133_v18 }
 0x13e   : > { %3442 = vmatpush3.bf16.msra.mxu1 %v3622_v21  ;;  %3421 = vmatprep.subr.bf16.mxu0 %v3623_v22 }
 0x13f   : > { %3443 = vmatprep.subr.bf16.mxu1 %v3625_v24  ;;  %2910 = vmatprep.mubr.bf16.mxu0 %v3136_v51 }
 0x140   : > { %2950 = vmatprep.mubr.bf16.mxu1 %v3138_v56 }
 0x141   : > { %3422 = vmatpush3.bf16.msra.mxu0 %v3624_v23 }
 0x142   : > { %3444 = vmatpush3.bf16.msra.mxu1 %v3626_v25  ;;  %3423 = vmatprep.subr.bf16.mxu0 %v3627_v26 }
 0x143   : > { %3445 = vmatprep.subr.bf16.mxu1 %v3629_v28 }
 0x145   : > { %3424 = vmatpush3.bf16.msra.mxu0 %v3628_v27 }
 0x146   : > { %3446 = vmatpush3.bf16.msra.mxu1 %v3630_v29  ;;  %3425 = vmatprep.subr.bf16.mxu0 %v3631_v30 }
 0x147   : > { %3447 = vmatprep.subr.bf16.mxu1 %v3633_v32 }
 0x149   : > { %3426 = vmatpush3.bf16.msra.mxu0 %v3632_v31 }
 0x14a   : > { %3448 = vmatpush3.bf16.msra.mxu1 %v3634_v33  ;;  %3427 = vmatprep.subr.bf16.mxu0 %v3635_v34 }
 0x14b   : > { %3449 = vmatprep.subr.bf16.mxu1 %v3637_v36 }
 0x14d   : > { %3428 = vmatpush3.bf16.msra.mxu0 %v3636_v35 }
 0x14e   : > { %3450 = vmatpush3.bf16.msra.mxu1 %v3638_v37  ;;  %3429 = vmatprep.subr.bf16.mxu0 %v3639_v38 }
 0x14f   : > { %3451 = vmatprep.subr.bf16.mxu1 %v3641_v40 }
 0x151   : > { %3430 = vmatpush3.bf16.msra.mxu0 %v3640_v39 }
 0x152   : > { %3452 = vmatpush3.bf16.msra.mxu1 %v3642_v41  ;;  %3431 = vmatprep.subr.bf16.mxu0 %v3643_v42 }
 0x153   : > { %3453 = vmatprep.subr.bf16.mxu1 %v3645_v44 }
 0x155   : > { %3432 = vmatpush3.bf16.msra.mxu0 %v3644_v43 }
 0x156   : > { %3454 = vmatpush3.bf16.msra.mxu1 %v3646_v45  ;;  %3433 = vmatprep.subr.bf16.mxu0 %v3647_v46 }
 0x157   : > { %3455 = vmatprep.subr.bf16.mxu1 %v3649_v48 }
 0x159   : > { %3434 = vmatpush3.bf16.msra.mxu0 %v3648_v47 }
 0x15a   : > { %3456 = vmatpush3.bf16.msra.mxu1 %v3652_v52  ;;  %3463 = vmatprep.subr.bf16.mxu0 %v3653_v53 }
 0x15c   : > { %2911 = vmatmul.mubr.bf16.vlgmr.msra.gmra.mrb[12].mxu0 %v3135_v50 }
 0x15d   : > { %3464 = vmatpush3.bf16.msra.mxu0 %v3656_v57  ;;  %2951 = vmatmul.mubr.bf16.vlgmr.msra.gmra.mrb[12].mxu1 %v3137_v55 }
 0x15e   : > { %3465 = vmatprep.subr.bf16.mxu0 %v3657_v58  ;;  %2990 = vmatprep.mubr.bf16.mxu0 %v3140_v4 }
 0x161   : > { %3466 = vmatpush3.bf16.msra.mxu0 %v3658_v59 }
 0x162   : > { %3467 = vmatprep.subr.bf16.mxu0 %v3659_v60 }
 0x165   : > { %3468 = vmatpush3.bf16.msra.mxu0 %v3660_v61 }
 0x166   : > { %3469 = vmatprep.subr.bf16.mxu0 %v3661_v62 }
 0x169   : > { %3470 = vmatpush3.bf16.msra.mxu0 %v3662_v63 }
 0x16a   : > { %3471 = vmatprep.subr.bf16.mxu0 %v3663_v0 }
 0x16d   : > { %3472 = vmatpush3.bf16.msra.mxu0 %v3664_v1 }
 0x16e   : > { %3473 = vmatprep.subr.bf16.mxu0 %v3665_v3 }
 0x171   : > { %3474 = vmatpush3.bf16.msra.mxu0 %v3666_v5 }
 0x172   : > { %3475 = vmatprep.subr.bf16.mxu0 %v3667_v6 }
 0x175   : > { %3476 = vmatpush3.bf16.msra.mxu0 %v3668_v7 }
 0x176   : > { %3477 = vmatprep.subr.bf16.mxu0 %v3669_v8 }
 0x179   : > { %3478 = vmatpush3.bf16.msra.mxu0 %v3670_v9 }
 0x17c   : > { %2991 = vmatmul.mubr.bf16.vlgmr.msra.gmra.mrb[16].mxu0 %v3139_v10 }
 0x1cf   : > { %v3303_v11 = vpop.f32.mrb[0].mxu0 }
 0x1d0   : > { %v3325_v12 = vpop.f32.mrb[0].mxu1  ;;  %v3304_v13 = vpop.f32.mrb[1].mxu0 }
 0x1d1   : > { %v3305_v14 = vadd.f32 %v3304_v13, %v3303_v11  ;;  %v3326_v15 = vpop.f32.mrb[1].mxu1  ;;  %v3306_v16 = vpop.f32.mrb[2].mxu0 }
 0x1d2   : > { %v3327_v17 = vadd.f32 %v3326_v15, %v3325_v12  ;;  %v3307_v18 = vpop.f32.mrb[3].mxu0  ;;  %v3328_v19 = vpop.f32.mrb[2].mxu1 }
 0x1d3   : > { %v3329_v20 = vpop.f32.mrb[3].mxu1  ;;  %v3024_v19 = vlaneseq }
 0x1d4   : > { %v2713_v21 = vadd.f32 %v3327_v17, %v3305_v14 }
 0x1d5   : > { %v3025_v20 = vshrl.u32 %v3024_v19, 7 }
 0x1ef   : > { %v3347_v22 = vpop.f32.mrb[4].mxu0 }
 0x1f0   : > { %v3348_v23 = vpop.f32.mrb[5].mxu0  ;;  %v3369_v26 = vpop.f32.mrb[4].mxu1 }
 0x1f1   : > { %v3349_v24 = vadd.f32 %v3348_v23, %v3347_v22  ;;  %v3350_v25 = vpop.f32.mrb[6].mxu0  ;;  %v3370_v28 = vpop.f32.mrb[5].mxu1  ;;  %v3026_v22 = vsub.s32 0, %v3025_v20 }
 0x1f2   : > { %v3351_v27 = vpop.f32.mrb[7].mxu0  ;;  %v3371_v30 = vadd.f32 %v3370_v28, %v3369_v26  ;;  %v3372_v31 = vpop.f32.mrb[6].mxu1  ;;  %v3020_v25 = vld [vmem:[%s1408_s9] sm:$0x1] }
 0x1f3   : > { %v2753_v29 = vadd.f32 %v3349_v24, %v2713_v21  ;;  %v3373_v32 = vpop.f32.mrb[7].mxu1  ;;  %v3016_v21 = vld [vmem:[%s1405_s6] sm:$0x1] }
 0x1f5   : > { %v2793_v33 = vadd.f32 %v3371_v30, %v2753_v29 }
 0x20f   : > { %v3391_v34 = vpop.f32.mrb[8].mxu0 }
 0x210   : > { %v3392_v35 = vpop.f32.mrb[9].mxu0  ;;  %v3413_v38 = vpop.f32.mrb[8].mxu1 }
 0x211   : > { %v3393_v36 = vadd.f32 %v3392_v35, %v3391_v34  ;;  %v3394_v37 = vpop.f32.mrb[10].mxu0  ;;  %v3414_v40 = vpop.f32.mrb[9].mxu1 }
 0x212   : > { %v3395_v39 = vpop.f32.mrb[11].mxu0  ;;  %v3415_v42 = vadd.f32 %v3414_v40, %v3413_v38  ;;  %v3416_v43 = vpop.f32.mrb[10].mxu1 }
 0x213   : > { %v2833_v41 = vadd.f32 %v3393_v36, %v2793_v33  ;;  %v3417_v44 = vpop.f32.mrb[11].mxu1 }
 0x215   : > { %v2873_v45 = vadd.f32 %v3415_v42, %v2833_v41 }
 0x22f   : > { %v3435_v46 = vpop.f32.mrb[12].mxu0 }
 0x230   : > { %v3436_v47 = vpop.f32.mrb[13].mxu0  ;;  %v3457_v50 = vpop.f32.mrb[12].mxu1 }
 0x231   : > { %v3437_v48 = vadd.f32 %v3436_v47, %v3435_v46  ;;  %v3438_v49 = vpop.f32.mrb[14].mxu0  ;;  %v3458_v52 = vpop.f32.mrb[13].mxu1 }
 0x232   : > { %v3439_v51 = vpop.f32.mrb[15].mxu0  ;;  %v3459_v54 = vadd.f32 %v3458_v52, %v3457_v50  ;;  %v3460_v55 = vpop.f32.mrb[14].mxu1 }
 0x233   : > { %v2913_v53 = vadd.f32 %v3437_v48, %v2873_v45  ;;  %v3461_v56 = vpop.f32.mrb[15].mxu1 }
 0x235   : > { %v2953_v57 = vadd.f32 %v3459_v54, %v2913_v53 }
 0x24f   : > { %v3479_v58 = vpop.f32.mrb[16].mxu0 }
 0x250   : > { %v3480_v59 = vpop.f32.mrb[17].mxu0 }
 0x251   : > { %v3481_v60 = vadd.f32 %v3480_v59, %v3479_v58  ;;  %v3482_v61 = vpop.f32.mrb[18].mxu0 }
 0x252   : > { %v3483_v62 = vpop.f32.mrb[19].mxu0 }
 0x253   : > { %v2993_v63 = vadd.f32 %v3481_v60, %v2953_v57 }
 0x255   : > { %v2998_v0 = vrot.slane %v2993_v63, 4  ;;  %v3005_v1 = vmul.f32 %v2993_v63, %v2993_v63 }
 0x257   : > { %v2999_v2 = vadd.f32 %v2998_v0, %v2993_v63  ;;  %v3006_v3 = vrot.slane %v3005_v1, 4 }
 0x259   : > { %v3000_v4 = vrot.slane %v2999_v2, 2  ;;  %v3007_v5 = vadd.f32 %v3006_v3, %v3005_v1 }
 0x25b   : > { %v3001_v6 = vadd.f32 %v3000_v4, %v2999_v2  ;;  %v3008_v7 = vrot.slane %v3007_v5, 2 }
 0x25d   : > { %v3002_v8 = vrot.slane %v3001_v6, 1  ;;  %v3009_v9 = vadd.f32 %v3008_v7, %v3007_v5 }
 0x25f   : > { %v3003_v10 = vadd.f32 %v3002_v8, %v3001_v6  ;;  %v3010_v11 = vrot.slane %v3009_v9, 1 }
 0x261   : > { %v3004_v12 = vmul.f32 0.125, %v3003_v10  ;;  %v3011_v13 = vadd.f32 %v3010_v11, %v3009_v9 }
 0x263   : > { %v3012_v14 = vmul.f32 0.125, %v3011_v13  ;;  %v3013_v15 = vmul.f32 %v3004_v12, %v3004_v12 }
 0x265   : > { %v3014_v16 = vsub.f32 %v3012_v14, %v3013_v15 }
 0x267   : > { %v3015_v17 = vmax.f32 %v3014_v16, 0.0 }
 0x269   : > { %v3017_v18 = vadd.f32 1e-05, %v3015_v17 }
 0x26b   : > { %3673 = vrsqrt.f32 %v3017_v18 }
 0x275   : > { %v3674_v23 = vpop.eup %3673 }
 0x276   : > { %v3019_v24 = vmul.f32 %v3674_v23, %v3016_v21 }
 0x278   : > { %v3021_v26 = vmul.f32 %v3019_v24, %v3004_v12  ;;  %v3027_v27 = vrot.slane %v3019_v24, %v3026_v22 }
 0x27a   : > { %v3022_v28 = vsub.f32 %v3020_v25, %v3021_v26  ;;  %v3029_v29 = vmul.f32 %v3027_v27, %v2993_v63 }
 0x27c   : > { %v3034_v30 = vrot.slane %v3022_v28, %v3026_v22 }
 0x27e   : > { %v3036_v31 = vadd.f32 %v3034_v30, %v3029_v29 }
 0x280   : > { %v3037_v32 = vmax.f32 %v3036_v31, 0.0 }
 0x282   : > { %3038 = vst [vmem:[%s1412_s12] sm:$0xff] %v3037_v32 }
 0x283 PF: > { %p11_p9 = scmp.ge.s32.totalorder %s3741_s19, 4   ;;  %s4578_s15 = smov %s3693_s16 }
 0x284   : > { %s4579_s16 = smov %s3750_s22  ;;  %s4580_s17 = smov %s3741_s19 }
 0x285   :  { %13 = sbr.rel (!%p11_p9) target bundleno = 2 (0x2), region = 118 }

// kernel: resnet_forward.25
= control target key start
LH: loop header
LB: loop body
LE: loop exit
PB: predicated region body
PF: predicated region fallthrough
CT: control target
= control target key end

     0   :  { %v433_v2 = vmov 0.0   ;;  %vm434_vm0 = vmmov 0   ;;  %v68_v12 = vlaneseq  ;;  %v435_v17 = vmov 1966171168   ;;  %s541_s0 = inlined_call_operand.vmem [shape: bf16[2,288], index: 0, kind: input, shape index: {}]   ;;  %s542_s1 = inlined_call_operand.vmem [shape: bf16[288,128], index: 1, kind: input, shape index: {}]   ;;  %s543_s2 = inlined_call_operand.vmem [shape: f32[1,128], index: 2, kind: input, shape index: {}]   ;;  %s544_s3 = inlined_call_operand.vmem [shape: f32[1,128], index: 3, kind: input, shape index: {}]   ;;  %s545_s4 = inlined_call_operand.hbm [shape: f32[2,128], index: 4, kind: output, shape index: {}]  }
   0x1   :  { %v389_v0 = vld [vmem:[%s542_s1 + $0x40] sm:$0xff]   ;;  %377 = vmatprep.subr.bf16.mxu1 %v433_v2  ;;  %v391_v3 = vld [vmem:[%s542_s1 + $0x48] sm:$0xff]   ;;  %381 = vmatprep.mubr.msk.bf16.mxu1 %vm434_vm0, %v433_v2  ;;  %v393_v5 = vld [vmem:[%s542_s1 + $0x50] sm:$0xff]   ;;  %v66_v18 = vunpack.c.l.s4 %v435_v17 }
   0x2   :  { %v390_v1 = vld [vmem:[%s542_s1] sm:$0xff]   ;;  %352 = vmatprep.subr.bf16.mxu0 %v389_v0  ;;  %v392_v4 = vld [vmem:[%s542_s1 + $0x8] sm:$0xff]   ;;  %v394_v6 = vld [vmem:[%s542_s1 + $0x10] sm:$0xff]   ;;  %v507_v19 = vshrl.u32 %v68_v12, 7 }
   0x3   :  { %353 = vmatpush3.bf16.msra.mxu0 %v390_v1  ;;  %v395_v7 = vld [vmem:[%s542_s1 + $0x58] sm:$0xff]   ;;  %v397_v9 = vld [vmem:[%s542_s1 + $0x60] sm:$0xff]   ;;  %v399_v13 = vld [vmem:[%s542_s1 + $0x68] sm:$0xff]  }
   0x4   :  { %354 = vmatprep.subr.bf16.mxu0 %v391_v3  ;;  %v396_v8 = vld [vmem:[%s542_s1 + $0x18] sm:$0xff]   ;;  %v403_v10 = vld [vmem:[%s542_s1 + $0x80] sm:$0xff]   ;;  %v406_v14 = vld [vmem:[%s542_s1 + $0x88] sm:$0xff]  }
   0x5   :  { %v398_v11 = vld [vmem:[%s542_s1 + $0x20] sm:$0xff]   ;;  %378 = vmatpush3.bf16.msra.mxu1 %v403_v10  ;;  %v400_v16 = vld [vmem:[%s542_s1 + $0x28] sm:$0xff]  }
   0x6   :  { %379 = vmatprep.subr.bf16.mxu1 %v433_v2  ;;  %v332_v15 = vld.sshfl [vmem:[%s541_s0] sm:$0x13 pattern:$0x75316420] }
   0x7   :  { %355 = vmatpush3.bf16.msra.mxu0 %v392_v4 }
   0x8   :  { %356 = vmatprep.subr.bf16.mxu0 %v393_v5 }
   0xb   :  { %357 = vmatpush3.bf16.msra.mxu0 %v394_v6 }
   0xc   :  { %358 = vmatprep.subr.bf16.mxu0 %v395_v7 }
   0xf   :  { %359 = vmatpush3.bf16.msra.mxu0 %v396_v8 }
  0x10   :  { %360 = vmatprep.subr.bf16.mxu0 %v397_v9 }
  0x13   :  { %361 = vmatpush3.bf16.msra.mxu0 %v398_v11 }
  0x14   :  { %9 = vsyncpa [#allocation3], 0  ;;  %362 = vmatprep.subr.bf16.mxu0 %v399_v13  ;;  %v401_v20 = vld [vmem:[%s542_s1 + $0x70] sm:$0xff]   ;;  %380 = vmatpush3.bf16.msra.mxu1 %v406_v14  ;;  %v64_v21 = vcombine.high %v332_v15, %v332_v15  ;;  %v67_v22 = vunpack.c.0.s8 %v66_v18  ;;  %v404_v25 = vld [vmem:[%s542_s1 + $0x78] sm:$0xff]   ;;  %vm190_vm1 = vcmask 261120   ;;  %vm274_vm2 = vcmask 1041408  }
  0x15   :  { %v402_v23 = vld [vmem:[%s542_s1 + $0x30] sm:$0xff]   ;;  %v405_v28 = vld [vmem:[%s542_s1 + $0x38] sm:$0xff]   ;;  %v295_v61 = vld [vmem:[%s543_s2] sm:$0x1]  ;;  %v305_v62 = vsub.s32 0, %v507_v19  ;;  %s436_s29 = smov [#allocation2]  }
  0x16   :  { %v70_v24 = vsub.s32 %v67_v22, %v507_v19  ;;  %v299_v1 = vld [vmem:[%s544_s3] sm:$0x1]  ;;  %s324_s30 = sshll.u32 %s436_s29, 4  ;;  %s325_s30 = int_to_ptr.vmem [resolvable:$true] %s324_s30 }
  0x17   :  { %363 = vmatpush3.bf16.msra.mxu0 %v400_v16  ;;  %s409_s2 = scalar_lea.vmem %s325_s30, 32  ;;  %p414_p1 = scmp.lt.s32.totalorder %s325_s30, %s325_s30 }
  0x18   :  { %364 = vmatprep.subr.bf16.mxu0 %v401_v20  ;;  %v78_v26 = vrot.slane %v64_v21, %v70_v24  ;;  %v71_v27 = vrot.slane %v332_v15, %v70_v24  ;;  %p410_p0 = scmp.ne.s32.totalorder %s325_s30, %s409_s2  ;;  %p415_p2 = scmp.lt.s32.totalorder %s409_s2, %s409_s2 }
  0x1a   :  { %226 = vmatprep.mubr.bf16.mxu0 %v78_v26  ;;  %v79_v29 = vcombine.high %v71_v27, %v71_v27  ;;  %p416_p3 = por %p415_p2, %p414_p1 }
  0x1b   :  { %365 = vmatpush3.bf16.msra.mxu0 %v402_v23 }
  0x1c   :  { %366 = vmatprep.subr.bf16.mxu0 %v404_v25  ;;  %382 = vmatmul.mubr.msk.bf16.vlgmr.msra.gmra.mrb[0].mxu1 %vm190_vm1, %v79_v29  ;;  %p417_p4 = pnand %p416_p3, %p410_p0 }
  0x1f   :  { %367 = vmatpush3.bf16.msra.mxu0 %v405_v28 }
  0x22   :  { %227 = vmatmul.mubr.bf16.vlgmr.msra.gmra.mrb[0].mxu0 %v71_v27 }
  0xef   :  { %v268_v30 = vpop.f32.mrb[0].mxu1 }
  0xf0   :  { %v383_v31 = vpop.f32.mrb[1].mxu1 }
  0xf1   :  { %v271_v32 = vpop.f32.mrb[2].mxu1 }
  0xf2   :  { %v384_v33 = vpop.f32.mrb[3].mxu1 }
  0xf5   :  { %v368_v34 = vpop.f32.mrb[0].mxu0 }
  0xf6   :  { %v369_v35 = vpop.f32.mrb[1].mxu0 }
  0xf7   :  { %v370_v36 = vadd.f32 %v369_v35, %v368_v34  ;;  %v371_v37 = vpop.f32.mrb[2].mxu0 }
  0xf8   :  { %v372_v38 = vpop.f32.mrb[3].mxu0 }
  0xf9   :  { %v269_v39 = vadd.f32 %v370_v36, %v268_v30 }
  0xfb   :  { %v275_v40 = vsel %vm274_vm2, %v269_v39, 0.0  ;;  %v283_v41 = vmul.f32 %v269_v39, %v269_v39 }
  0xfc   :  { %v276_v42 = vrot.slane %v275_v40, 4 }
  0xfd   :  { %v284_v43 = vsel %vm274_vm2, %v283_v41, 0.0 }
  0xfe   :  { %v277_v44 = vadd.f32 %v276_v42, %v275_v40  ;;  %v285_v45 = vrot.slane %v284_v43, 4 }
 0x100   :  { %v278_v46 = vrot.slane %v277_v44, 2  ;;  %v286_v47 = vadd.f32 %v285_v45, %v284_v43 }
 0x102   :  { %v279_v48 = vadd.f32 %v278_v46, %v277_v44  ;;  %v287_v49 = vrot.slane %v286_v47, 2 }
 0x104   :  { %v280_v50 = vrot.slane %v279_v48, 1  ;;  %v288_v51 = vadd.f32 %v287_v49, %v286_v47 }
 0x106   :  { %v289_v52 = vrot.slane %v288_v51, 1  ;;  %v281_v53 = vadd.f32 %v280_v50, %v279_v48 }
 0x108   :  { %v290_v54 = vadd.f32 %v289_v52, %v288_v51  ;;  %v282_v55 = vmul.f32 0.5, %v281_v53 }
 0x10a   :  { %v291_v56 = vmul.f32 0.5, %v290_v54  ;;  %v292_v57 = vmul.f32 %v282_v55, %v282_v55 }
 0x10c   :  { %v293_v58 = vsub.f32 %v291_v56, %v292_v57 }
 0x10e   :  { %v294_v59 = vmax.f32 %v293_v58, 0.0 }
 0x110   :  { %v296_v60 = vadd.f32 1e-05, %v294_v59 }
 0x112   :  { %407 = vrsqrt.f32 %v296_v60 }
 0x11c   :  { %v408_v63 = vpop.eup %407 }
 0x11d   :  { %v298_v0 = vmul.f32 %v408_v63, %v295_v61 }
 0x11f   :  { %v300_v2 = vmul.f32 %v298_v0, %v282_v55  ;;  %v306_v3 = vrot.slane %v298_v0, %v305_v62 }
 0x121   :  { %v301_v4 = vsub.f32 %v299_v1, %v300_v2  ;;  %v308_v5 = vmul.f32 %v306_v3, %v269_v39 }
 0x123   :  { %v313_v6 = vrot.slane %v301_v4, %v305_v62 }
 0x125   :  { %v315_v7 = vadd.f32 %v313_v6, %v308_v5 }
 0x127   :  { %v316_v8 = vmax.f32 %v315_v7, 0.0 }
 0x129   :  { %317 = vst [vmem:[#allocation2] sm:$0x3] %v316_v8 }
 0x12a   :  { %420 = shalt.err (!%p417_p4)
}
 0x12b   :  { %s421_s6 = scalar_lea.hbm %s545_s4, 32 }
 0x12c   :  { %p422_p5 = scmp.ne.s32.totalorder %s545_s4, %s421_s6  ;;  %p425_p6 = scmp.lt.u32.totalorder %s421_s6, %s545_s4 }
 0x12e   :  { %p427_p7 = pnand %p425_p6, %p422_p5 }
 0x130   :  { %430 = shalt.err (!%p427_p7)
}
 0x131   :  { %327 = dma.vmem_to_hbm [thread:$0]  %s325_s30, 32, %s545_s4, [#allocation3]  }
 0x132   :  { %431 = dma.done.wait [#allocation3], 32  }
 0x133   :  { %432 = vsyncadd [#allocation3], 4294967264 }
 0x134   :  { %331 = vsyncpa [#allocation3], 1 }

// kernel: resnet_forward.24
= control target key start
LH: loop header
LB: loop body
LE: loop exit
PB: predicated region body
PF: predicated region fallthrough
CT: control target
= control target key end

     0   :  { %v2214_v22 = vmov 1966171168   ;;  %v316_v24 = vlaneseq  ;;  %vm1674_vm0 = vcmask 1041408   ;;  %s2720_s1 = inlined_call_operand.vmem [shape: bf16[2304,128], index: 1, kind: input, shape index: {}]   ;;  %s2721_s0 = inlined_call_operand.vmem [shape: bf16[2,2304], index: 0, kind: input, shape index: {}]   ;;  %s2722_s2 = inlined_call_operand.vmem [shape: f32[1,128], index: 2, kind: input, shape index: {}]   ;;  %s2723_s3 = inlined_call_operand.vmem [shape: f32[1,128], index: 3, kind: input, shape index: {}]   ;;  %s2724_s4 = inlined_call_operand.vmem [shape: f32[2,128], index: 4, kind: output, shape index: {}]  }
   0x1   :  { %v2066_v0 = vld [vmem:[%s2720_s1 + $0x40] sm:$0xff]   ;;  %v2070_v4 = vld [vmem:[%s2720_s1 + $0x48] sm:$0xff]   ;;  %v2074_v8 = vld [vmem:[%s2720_s1 + $0x50] sm:$0xff]   ;;  %v314_v23 = vunpack.c.l.s4 %v2214_v22 }
   0x2   :  { %v2067_v1 = vld [vmem:[%s2720_s1 + $0xc0] sm:$0xff]   ;;  %1867 = vmatprep.subr.bf16.mxu0 %v2066_v0  ;;  %v2071_v5 = vld [vmem:[%s2720_s1 + $0xc8] sm:$0xff]   ;;  %v2075_v9 = vld [vmem:[%s2720_s1 + $0xd0] sm:$0xff]   ;;  %v2318_v30 = vshrl.u32 %v316_v24, 7 }
   0x3   :  { %v2068_v2 = vld [vmem:[%s2720_s1] sm:$0xff]   ;;  %1889 = vmatprep.subr.bf16.mxu1 %v2067_v1  ;;  %v2072_v6 = vld [vmem:[%s2720_s1 + $0x8] sm:$0xff]   ;;  %v2076_v10 = vld [vmem:[%s2720_s1 + $0x10] sm:$0xff]   ;;  %v315_v29 = vunpack.c.0.s8 %v314_v23 }
   0x4   :  { %v2069_v3 = vld [vmem:[%s2720_s1 + $0x80] sm:$0xff]   ;;  %1868 = vmatpush3.bf16.msra.mxu0 %v2068_v2  ;;  %v2073_v7 = vld [vmem:[%s2720_s1 + $0x88] sm:$0xff]   ;;  %v2077_v11 = vld [vmem:[%s2720_s1 + $0x90] sm:$0xff]  }
   0x5   :  { %1890 = vmatpush3.bf16.msra.mxu1 %v2069_v3  ;;  %1869 = vmatprep.subr.bf16.mxu0 %v2070_v4  ;;  %v2078_v12 = vld [vmem:[%s2720_s1 + $0x58] sm:$0xff]   ;;  %v2082_v16 = vld [vmem:[%s2720_s1 + $0x60] sm:$0xff]   ;;  %v2086_v20 = vld [vmem:[%s2720_s1 + $0x68] sm:$0xff]   ;;  %v2333_v35 = vsub.s32 %v315_v29, %v2318_v30 }
   0x6   :  { %1891 = vmatprep.subr.bf16.mxu1 %v2071_v5  ;;  %v2079_v13 = vld [vmem:[%s2720_s1 + $0xd8] sm:$0xff]   ;;  %v2083_v17 = vld [vmem:[%s2720_s1 + $0xe0] sm:$0xff]   ;;  %v2087_v21 = vld [vmem:[%s2720_s1 + $0xe8] sm:$0xff]  }
   0x7   :  { %v2080_v14 = vld [vmem:[%s2720_s1 + $0x18] sm:$0xff]   ;;  %v2084_v18 = vld [vmem:[%s2720_s1 + $0x20] sm:$0xff]   ;;  %v2088_v25 = vld [vmem:[%s2720_s1 + $0x28] sm:$0xff]  }
   0x8   :  { %1870 = vmatpush3.bf16.msra.mxu0 %v2072_v6  ;;  %v2081_v15 = vld [vmem:[%s2720_s1 + $0x98] sm:$0xff]   ;;  %v2085_v19 = vld [vmem:[%s2720_s1 + $0xa0] sm:$0xff]   ;;  %v2089_v26 = vld [vmem:[%s2720_s1 + $0xa8] sm:$0xff]  }
   0x9   :  { %1892 = vmatpush3.bf16.msra.mxu1 %v2073_v7  ;;  %1871 = vmatprep.subr.bf16.mxu0 %v2074_v8  ;;  %v2090_v27 = vld [vmem:[%s2720_s1 + $0x70] sm:$0xff]   ;;  %v2094_v33 = vld [vmem:[%s2720_s1 + $0x78] sm:$0xff]   ;;  %v18_v38 = vld [vmem:[%s2721_s0] sm:$0xff] }
   0xa   :  { %1893 = vmatprep.subr.bf16.mxu1 %v2075_v9  ;;  %v2091_v28 = vld [vmem:[%s2720_s1 + $0xf0] sm:$0xff]   ;;  %v2095_v34 = vld [vmem:[%s2720_s1 + $0xf8] sm:$0xff]   ;;  %v312_v39 = vcombine.high %v18_v38, %v18_v38  ;;  %v319_v40 = vrot.slane %v18_v38, %v2333_v35  ;;  %v2099_v41 = vld [vmem:[%s2720_s1 + $0x140] sm:$0xff]  }
   0xb   :  { %v2092_v31 = vld [vmem:[%s2720_s1 + $0x30] sm:$0xff]   ;;  %v2096_v36 = vld [vmem:[%s2720_s1 + $0x38] sm:$0xff]   ;;  %v2101_v44 = vld [vmem:[%s2720_s1 + $0x1c0] sm:$0xff]  }
   0xc   :  { %1872 = vmatpush3.bf16.msra.mxu0 %v2076_v10  ;;  %v2093_v32 = vld [vmem:[%s2720_s1 + $0xb0] sm:$0xff]   ;;  %v2097_v37 = vld [vmem:[%s2720_s1 + $0xb8] sm:$0xff]   ;;  %v327_v42 = vcombine.high %v319_v40, %v319_v40  ;;  %v335_v43 = vrot.slane %v319_v40, %v2333_v35  ;;  %v2353_v45 = vrot.slane %v312_v39, %v2333_v35  ;;  %v2100_v47 = vld [vmem:[%s2720_s1 + $0x100] sm:$0xff]  }
   0xd   :  { %1894 = vmatpush3.bf16.msra.mxu1 %v2077_v11  ;;  %1873 = vmatprep.subr.bf16.mxu0 %v2078_v12  ;;  %v2103_v50 = vld [vmem:[%s2720_s1 + $0x148] sm:$0xff]   ;;  %v2102_v52 = vld [vmem:[%s2720_s1 + $0x180] sm:$0xff]   ;;  %v2107_v57 = vld [vmem:[%s2720_s1 + $0x150] sm:$0xff]  }
   0xe   :  { %1895 = vmatprep.subr.bf16.mxu1 %v2079_v13  ;;  %v349_v46 = vrot.slane %v327_v42, %v2333_v35  ;;  %v328_v48 = vcombine.high %v2353_v45, %v2353_v45  ;;  %v357_v49 = vcombine.high %v335_v43, %v335_v43  ;;  %v2105_v54 = vld [vmem:[%s2720_s1 + $0x1c8] sm:$0xff]   ;;  %v2109_v59 = vld [vmem:[%s2720_s1 + $0x1d0] sm:$0xff]   ;;  %v2111_v61 = vld [vmem:[%s2720_s1 + $0x158] sm:$0xff]  }
   0xf   :  { %v2104_v55 = vld [vmem:[%s2720_s1 + $0x108] sm:$0xff]   ;;  %v2108_v60 = vld [vmem:[%s2720_s1 + $0x110] sm:$0xff]   ;;  %v2113_v63 = vld [vmem:[%s2720_s1 + $0x1d8] sm:$0xff]  }
  0x10   :  { %1874 = vmatpush3.bf16.msra.mxu0 %v2080_v14  ;;  %1346 = vmatprep.mubr.bf16.mxu0 %v349_v46  ;;  %v359_v51 = vcombine.high %v349_v46, %v349_v46  ;;  %v356_v53 = vrot.slane %v328_v48, %v2333_v35  ;;  %v2106_v58 = vld [vmem:[%s2720_s1 + $0x188] sm:$0xff]   ;;  %v2110_v62 = vld [vmem:[%s2720_s1 + $0x190] sm:$0xff]   ;;  %v2112_v0 = vld [vmem:[%s2720_s1 + $0x118] sm:$0xff]  }
  0x11   :  { %1896 = vmatpush3.bf16.msra.mxu1 %v2081_v15  ;;  %1875 = vmatprep.subr.bf16.mxu0 %v2082_v16  ;;  %v2115_v1 = vld [vmem:[%s2720_s1 + $0x160] sm:$0xff]   ;;  %v2114_v2 = vld [vmem:[%s2720_s1 + $0x198] sm:$0xff]   ;;  %v2119_v5 = vld [vmem:[%s2720_s1 + $0x168] sm:$0xff]  }
  0x12   :  { %1897 = vmatprep.subr.bf16.mxu1 %v2083_v17  ;;  %1386 = vmatprep.mubr.bf16.mxu1 %v359_v51  ;;  %v360_v56 = vcombine.high %v356_v53, %v356_v53  ;;  %v2117_v3 = vld [vmem:[%s2720_s1 + $0x1e0] sm:$0xff]   ;;  %v2121_v7 = vld [vmem:[%s2720_s1 + $0x1e8] sm:$0xff]   ;;  %v2123_v9 = vld [vmem:[%s2720_s1 + $0x170] sm:$0xff]   ;;  %v342_v17 = vrot.slane %v2353_v45, %v2333_v35 }
  0x13   :  { %v2116_v4 = vld [vmem:[%s2720_s1 + $0x120] sm:$0xff]   ;;  %v2120_v8 = vld [vmem:[%s2720_s1 + $0x128] sm:$0xff]   ;;  %v2125_v11 = vld [vmem:[%s2720_s1 + $0x1f0] sm:$0xff]  }
  0x14   :  { %1876 = vmatpush3.bf16.msra.mxu0 %v2084_v18  ;;  %v2118_v6 = vld [vmem:[%s2720_s1 + $0x1a0] sm:$0xff]   ;;  %v2122_v10 = vld [vmem:[%s2720_s1 + $0x1a8] sm:$0xff]   ;;  %v2124_v12 = vld [vmem:[%s2720_s1 + $0x130] sm:$0xff]   ;;  %v358_v22 = vcombine.high %v342_v17, %v342_v17 }
  0x15   :  { %1898 = vmatpush3.bf16.msra.mxu1 %v2085_v19  ;;  %1877 = vmatprep.subr.bf16.mxu0 %v2086_v20  ;;  %v2127_v13 = vld [vmem:[%s2720_s1 + $0x178] sm:$0xff]   ;;  %v2126_v14 = vld [vmem:[%s2720_s1 + $0x1b0] sm:$0xff]   ;;  %v2131_v18 = vld [vmem:[%s2720_s1 + $0x240] sm:$0xff]  }
  0x16   :  { %1899 = vmatprep.subr.bf16.mxu1 %v2087_v21  ;;  %v2129_v15 = vld [vmem:[%s2720_s1 + $0x1f8] sm:$0xff]   ;;  %v2133_v20 = vld [vmem:[%s2720_s1 + $0x2c0] sm:$0xff]   ;;  %v2135_v23 = vld [vmem:[%s2720_s1 + $0x248] sm:$0xff]  }
  0x17   :  { %v2128_v16 = vld [vmem:[%s2720_s1 + $0x138] sm:$0xff]   ;;  %v2132_v21 = vld [vmem:[%s2720_s1 + $0x200] sm:$0xff]   ;;  %v2141_v29 = vld [vmem:[%s2720_s1 + $0x2d0] sm:$0xff]  }
  0x18   :  { %1878 = vmatpush3.bf16.msra.mxu0 %v2088_v25  ;;  %v2130_v19 = vld [vmem:[%s2720_s1 + $0x1b8] sm:$0xff]   ;;  %v2134_v24 = vld [vmem:[%s2720_s1 + $0x280] sm:$0xff]   ;;  %v2137_v25 = vld [vmem:[%s2720_s1 + $0x2c8] sm:$0xff]  }
  0x19   :  { %1900 = vmatpush3.bf16.msra.mxu1 %v2089_v26  ;;  %1879 = vmatprep.subr.bf16.mxu0 %v2090_v27  ;;  %v2136_v26 = vld [vmem:[%s2720_s1 + $0x208] sm:$0xff]   ;;  %v2139_v27 = vld [vmem:[%s2720_s1 + $0x250] sm:$0xff]   ;;  %v2146_v38 = vld [vmem:[%s2720_s1 + $0x298] sm:$0xff]  }
  0x1a   :  { %1901 = vmatprep.subr.bf16.mxu1 %v2091_v28  ;;  %v2138_v28 = vld [vmem:[%s2720_s1 + $0x288] sm:$0xff]   ;;  %v2149_v39 = vld [vmem:[%s2720_s1 + $0x2e0] sm:$0xff]   ;;  %v2155_v45 = vld [vmem:[%s2720_s1 + $0x270] sm:$0xff]  }
  0x1b   :  { %v2148_v40 = vld [vmem:[%s2720_s1 + $0x220] sm:$0xff]   ;;  %v2154_v46 = vld [vmem:[%s2720_s1 + $0x2a8] sm:$0xff]   ;;  %v2156_v48 = vld [vmem:[%s2720_s1 + $0x230] sm:$0xff]  }
  0x1c   :  { %1880 = vmatpush3.bf16.msra.mxu0 %v2092_v31  ;;  %v2140_v31 = vld [vmem:[%s2720_s1 + $0x210] sm:$0xff]   ;;  %v2150_v42 = vld [vmem:[%s2720_s1 + $0x2a0] sm:$0xff]   ;;  %v19_v51 = vld [vmem:[%s2721_s0 + $0x8] sm:$0xff] }
  0x1d   :  { %1902 = vmatpush3.bf16.msra.mxu1 %v2093_v32  ;;  %1881 = vmatprep.subr.bf16.mxu0 %v2094_v33  ;;  %v2143_v32 = vld [vmem:[%s2720_s1 + $0x258] sm:$0xff]   ;;  %v2142_v33 = vld [vmem:[%s2720_s1 + $0x290] sm:$0xff]  }
  0x1e   :  { %1903 = vmatprep.subr.bf16.mxu1 %v2095_v34  ;;  %v2145_v34 = vld [vmem:[%s2720_s1 + $0x2d8] sm:$0xff]  }
  0x20   :  { %1882 = vmatpush3.bf16.msra.mxu0 %v2096_v36  ;;  %v2144_v36 = vld [vmem:[%s2720_s1 + $0x218] sm:$0xff]  }
  0x21   :  { %1904 = vmatpush3.bf16.msra.mxu1 %v2097_v37  ;;  %1911 = vmatprep.subr.bf16.mxu0 %v2099_v41  ;;  %v2147_v37 = vld [vmem:[%s2720_s1 + $0x260] sm:$0xff]   ;;  %v2151_v41 = vld [vmem:[%s2720_s1 + $0x268] sm:$0xff]  }
  0x22   :  { %1933 = vmatprep.subr.bf16.mxu1 %v2101_v44  ;;  %v2152_v44 = vld [vmem:[%s2720_s1 + $0x228] sm:$0xff]  }
  0x23   :  { %1347 = vmatmul.mubr.bf16.vlgmr.msra.gmra.mrb[0].mxu0 %v335_v43  ;;  %v2153_v43 = vld [vmem:[%s2720_s1 + $0x2e8] sm:$0xff]  }
  0x24   :  { %1912 = vmatpush3.bf16.msra.mxu0 %v2100_v47  ;;  %1387 = vmatmul.mubr.bf16.vlgmr.msra.gmra.mrb[0].mxu1 %v357_v49  ;;  %v2157_v47 = vld [vmem:[%s2720_s1 + $0x2f0] sm:$0xff]   ;;  %v2159_v49 = vld [vmem:[%s2720_s1 + $0x278] sm:$0xff]  }
  0x25   :  { %1913 = vmatprep.subr.bf16.mxu0 %v2103_v50  ;;  %1934 = vmatpush3.bf16.msra.mxu1 %v2102_v52  ;;  %v2158_v50 = vld [vmem:[%s2720_s1 + $0x2b0] sm:$0xff]   ;;  %v2161_v52 = vld [vmem:[%s2720_s1 + $0x2f8] sm:$0xff]  }
  0x26   :  { %1426 = vmatprep.mubr.bf16.mxu0 %v356_v53  ;;  %1935 = vmatprep.subr.bf16.mxu1 %v2105_v54  ;;  %v368_v53 = vrot.slane %v19_v51, %v2333_v35  ;;  %v361_v54 = vcombine.high %v19_v51, %v19_v51  ;;  %v2206_v51 = vld [vmem:[%s2720_s1 + $0x468] sm:$0xff]  }
  0x27   :  { %1466 = vmatprep.mubr.bf16.mxu1 %v360_v56 }
  0x28   :  { %1914 = vmatpush3.bf16.msra.mxu0 %v2104_v55  ;;  %v2160_v55 = vld [vmem:[%s2720_s1 + $0x238] sm:$0xff]   ;;  %v376_v56 = vcombine.high %v368_v53, %v368_v53 }
  0x29   :  { %1915 = vmatprep.subr.bf16.mxu0 %v2107_v57  ;;  %1936 = vmatpush3.bf16.msra.mxu1 %v2106_v58  ;;  %v384_v57 = vrot.slane %v368_v53, %v2333_v35  ;;  %v2163_v58 = vld [vmem:[%s2720_s1 + $0x340] sm:$0xff]   ;;  %v2208_v53 = vld [vmem:[%s2720_s1 + $0x470] sm:$0xff]  }
  0x2a   :  { %1937 = vmatprep.subr.bf16.mxu1 %v2109_v59  ;;  %v2553_v59 = vrot.slane %v361_v54, %v2333_v35  ;;  %v2209_v54 = vld [vmem:[%s2720_s1 + $0x430] sm:$0xff]  }
  0x2c   :  { %1916 = vmatpush3.bf16.msra.mxu0 %v2108_v60  ;;  %v2162_v60 = vld [vmem:[%s2720_s1 + $0x2b8] sm:$0xff]  }
  0x2d   :  { %1917 = vmatprep.subr.bf16.mxu0 %v2111_v61  ;;  %1938 = vmatpush3.bf16.msra.mxu1 %v2110_v62  ;;  %v398_v61 = vrot.slane %v376_v56, %v2333_v35  ;;  %v2164_v62 = vld [vmem:[%s2720_s1 + $0x300] sm:$0xff]   ;;  %v2211_v56 = vld [vmem:[%s2720_s1 + $0x438] sm:$0xff]  }
  0x2e   :  { %1939 = vmatprep.subr.bf16.mxu1 %v2113_v63  ;;  %v377_v63 = vcombine.high %v2553_v59, %v2553_v59 }
  0x30   :  { %1918 = vmatpush3.bf16.msra.mxu0 %v2112_v0  ;;  %v2165_v0 = vld [vmem:[%s2720_s1 + $0x3c0] sm:$0xff]  }
  0x31   :  { %1919 = vmatprep.subr.bf16.mxu0 %v2115_v1  ;;  %1940 = vmatpush3.bf16.msra.mxu1 %v2114_v2  ;;  %v408_v1 = vcombine.high %v398_v61, %v398_v61  ;;  %v406_v2 = vcombine.high %v384_v57, %v384_v57 }
  0x32   :  { %1941 = vmatprep.subr.bf16.mxu1 %v2117_v3  ;;  %v2167_v3 = vld [vmem:[%s2720_s1 + $0x348] sm:$0xff]  }
  0x34   :  { %1920 = vmatpush3.bf16.msra.mxu0 %v2116_v4  ;;  %v405_v4 = vrot.slane %v377_v63, %v2333_v35 }
  0x35   :  { %1921 = vmatprep.subr.bf16.mxu0 %v2119_v5  ;;  %1942 = vmatpush3.bf16.msra.mxu1 %v2118_v6  ;;  %v2166_v5 = vld [vmem:[%s2720_s1 + $0x380] sm:$0xff]   ;;  %v2169_v6 = vld [vmem:[%s2720_s1 + $0x3c8] sm:$0xff]  }
  0x36   :  { %1943 = vmatprep.subr.bf16.mxu1 %v2121_v7  ;;  %v409_v7 = vcombine.high %v405_v4, %v405_v4 }
  0x38   :  { %1922 = vmatpush3.bf16.msra.mxu0 %v2120_v8  ;;  %v2168_v8 = vld [vmem:[%s2720_s1 + $0x308] sm:$0xff]  }
  0x39   :  { %1923 = vmatprep.subr.bf16.mxu0 %v2123_v9  ;;  %1944 = vmatpush3.bf16.msra.mxu1 %v2122_v10  ;;  %v2171_v9 = vld [vmem:[%s2720_s1 + $0x350] sm:$0xff]   ;;  %v2170_v10 = vld [vmem:[%s2720_s1 + $0x388] sm:$0xff]  }
  0x3a   :  { %1945 = vmatprep.subr.bf16.mxu1 %v2125_v11  ;;  %v2173_v11 = vld [vmem:[%s2720_s1 + $0x3d0] sm:$0xff]  }
  0x3c   :  { %1924 = vmatpush3.bf16.msra.mxu0 %v2124_v12  ;;  %v2172_v12 = vld [vmem:[%s2720_s1 + $0x310] sm:$0xff]  }
  0x3d   :  { %1925 = vmatprep.subr.bf16.mxu0 %v2127_v13  ;;  %1946 = vmatpush3.bf16.msra.mxu1 %v2126_v14  ;;  %v2175_v13 = vld [vmem:[%s2720_s1 + $0x358] sm:$0xff]   ;;  %v2174_v14 = vld [vmem:[%s2720_s1 + $0x390] sm:$0xff]  }
  0x3e   :  { %1947 = vmatprep.subr.bf16.mxu1 %v2129_v15  ;;  %v2177_v15 = vld [vmem:[%s2720_s1 + $0x3d8] sm:$0xff]  }
  0x40   :  { %1926 = vmatpush3.bf16.msra.mxu0 %v2128_v16  ;;  %v2176_v16 = vld [vmem:[%s2720_s1 + $0x318] sm:$0xff]  }
  0x41   :  { %1955 = vmatprep.subr.bf16.mxu0 %v2131_v18  ;;  %1948 = vmatpush3.bf16.msra.mxu1 %v2130_v19  ;;  %v2178_v18 = vld [vmem:[%s2720_s1 + $0x398] sm:$0xff]   ;;  %v2181_v19 = vld [vmem:[%s2720_s1 + $0x3e0] sm:$0xff]  }
  0x42   :  { %1977 = vmatprep.subr.bf16.mxu1 %v2133_v20  ;;  %v2180_v20 = vld [vmem:[%s2720_s1 + $0x320] sm:$0xff]  }
  0x43   :  { %1427 = vmatmul.mubr.bf16.vlgmr.msra.gmra.mrb[4].mxu0 %v342_v17  ;;  %v2179_v17 = vld [vmem:[%s2720_s1 + $0x360] sm:$0xff]  }
  0x44   :  { %1956 = vmatpush3.bf16.msra.mxu0 %v2132_v21  ;;  %1467 = vmatmul.mubr.bf16.vlgmr.msra.gmra.mrb[4].mxu1 %v358_v22  ;;  %v2183_v21 = vld [vmem:[%s2720_s1 + $0x368] sm:$0xff]   ;;  %v2182_v22 = vld [vmem:[%s2720_s1 + $0x3a0] sm:$0xff]  }
  0x45   :  { %1957 = vmatprep.subr.bf16.mxu0 %v2135_v23  ;;  %1978 = vmatpush3.bf16.msra.mxu1 %v2134_v24  ;;  %v2185_v23 = vld [vmem:[%s2720_s1 + $0x3e8] sm:$0xff]  }
  0x46   :  { %1979 = vmatprep.subr.bf16.mxu1 %v2137_v25  ;;  %1506 = vmatprep.mubr.bf16.mxu0 %v398_v61  ;;  %v2184_v24 = vld [vmem:[%s2720_s1 + $0x328] sm:$0xff]   ;;  %v2187_v25 = vld [vmem:[%s2720_s1 + $0x370] sm:$0xff]  }
  0x47   :  { %1546 = vmatprep.mubr.bf16.mxu1 %v408_v1 }
  0x48   :  { %1958 = vmatpush3.bf16.msra.mxu0 %v2136_v26  ;;  %v2186_v26 = vld [vmem:[%s2720_s1 + $0x3a8] sm:$0xff]  }
  0x49   :  { %1959 = vmatprep.subr.bf16.mxu0 %v2139_v27  ;;  %1980 = vmatpush3.bf16.msra.mxu1 %v2138_v28  ;;  %v2189_v27 = vld [vmem:[%s2720_s1 + $0x3f0] sm:$0xff]  }
  0x4a   :  { %1981 = vmatprep.subr.bf16.mxu1 %v2141_v29  ;;  %v2188_v28 = vld [vmem:[%s2720_s1 + $0x330] sm:$0xff]   ;;  %v2191_v29 = vld [vmem:[%s2720_s1 + $0x378] sm:$0xff]  }
  0x4c   :  { %1960 = vmatpush3.bf16.msra.mxu0 %v2140_v31  ;;  %v2190_v31 = vld [vmem:[%s2720_s1 + $0x3b0] sm:$0xff]  }
  0x4d   :  { %1961 = vmatprep.subr.bf16.mxu0 %v2143_v32  ;;  %1982 = vmatpush3.bf16.msra.mxu1 %v2142_v33  ;;  %v2193_v32 = vld [vmem:[%s2720_s1 + $0x3f8] sm:$0xff]  }
  0x4e   :  { %1983 = vmatprep.subr.bf16.mxu1 %v2145_v34  ;;  %v2192_v33 = vld [vmem:[%s2720_s1 + $0x338] sm:$0xff]   ;;  %v391_v34 = vrot.slane %v2553_v59, %v2333_v35 }
  0x50   :  { %1962 = vmatpush3.bf16.msra.mxu0 %v2144_v36  ;;  %v2196_v36 = vld [vmem:[%s2720_s1 + $0x440] sm:$0xff]  }
  0x51   :  { %1963 = vmatprep.subr.bf16.mxu0 %v2147_v37  ;;  %1984 = vmatpush3.bf16.msra.mxu1 %v2146_v38  ;;  %v2195_v37 = vld [vmem:[%s2720_s1 + $0x3b8] sm:$0xff]   ;;  %v2197_v38 = vld [vmem:[%s2720_s1 + $0x400] sm:$0xff]  }
  0x52   :  { %1985 = vmatprep.subr.bf16.mxu1 %v2149_v39  ;;  %v407_v39 = vcombine.high %v391_v34, %v391_v34 }
  0x54   :  { %1964 = vmatpush3.bf16.msra.mxu0 %v2148_v40  ;;  %v2198_v40 = vld [vmem:[%s2720_s1 + $0x448] sm:$0xff]  }
  0x55   :  { %1965 = vmatprep.subr.bf16.mxu0 %v2151_v41  ;;  %1986 = vmatpush3.bf16.msra.mxu1 %v2150_v42  ;;  %v2199_v41 = vld [vmem:[%s2720_s1 + $0x408] sm:$0xff]   ;;  %v2200_v42 = vld [vmem:[%s2720_s1 + $0x450] sm:$0xff]  }
  0x56   :  { %1987 = vmatprep.subr.bf16.mxu1 %v2153_v43  ;;  %v2201_v43 = vld [vmem:[%s2720_s1 + $0x410] sm:$0xff]  }
  0x58   :  { %1966 = vmatpush3.bf16.msra.mxu0 %v2152_v44  ;;  %v2202_v44 = vld [vmem:[%s2720_s1 + $0x458] sm:$0xff]  }
  0x59   :  { %1967 = vmatprep.subr.bf16.mxu0 %v2155_v45  ;;  %1988 = vmatpush3.bf16.msra.mxu1 %v2154_v46  ;;  %v2203_v45 = vld [vmem:[%s2720_s1 + $0x418] sm:$0xff]   ;;  %v1722_v46 = vld.sshfl [vmem:[%s2721_s0 + $0x10] sm:$0x11 pattern:$0x75316420] }
  0x5a   :  { %1989 = vmatprep.subr.bf16.mxu1 %v2157_v47  ;;  %v2204_v47 = vld [vmem:[%s2720_s1 + $0x460] sm:$0xff]  }
  0x5c   :  { %1968 = vmatpush3.bf16.msra.mxu0 %v2156_v48  ;;  %v417_v48 = vcombine.high %v1722_v46, %v1722_v46 }
  0x5d   :  { %1969 = vmatprep.subr.bf16.mxu0 %v2159_v49  ;;  %1990 = vmatpush3.bf16.msra.mxu1 %v2158_v50  ;;  %v2205_v50 = vld [vmem:[%s2720_s1 + $0x420] sm:$0xff]  }
  0x5e   :  { %1991 = vmatprep.subr.bf16.mxu1 %v2161_v52  ;;  %v431_v49 = vrot.slane %v417_v48, %v2333_v35  ;;  %v2207_v52 = vld [vmem:[%s2720_s1 + $0x428] sm:$0xff]  }
  0x60   :  { %1970 = vmatpush3.bf16.msra.mxu0 %v2160_v55  ;;  %v2210_v55 = vld [vmem:[%s2720_s1 + $0x478] sm:$0xff]  }
  0x61   :  { %1999 = vmatprep.subr.bf16.mxu0 %v2163_v58  ;;  %1992 = vmatpush3.bf16.msra.mxu1 %v2162_v60 }
  0x62   :  { %2021 = vmatprep.subr.bf16.mxu1 %v2165_v0 }
  0x63   :  { %1507 = vmatmul.mubr.bf16.vlgmr.msra.gmra.mrb[8].mxu0 %v384_v57  ;;  %v424_v57 = vrot.slane %v1722_v46, %v2333_v35 }
  0x64   :  { %2000 = vmatpush3.bf16.msra.mxu0 %v2164_v62  ;;  %1547 = vmatmul.mubr.bf16.vlgmr.msra.gmra.mrb[8].mxu1 %v406_v2 }
  0x65   :  { %2001 = vmatprep.subr.bf16.mxu0 %v2167_v3  ;;  %2022 = vmatpush3.bf16.msra.mxu1 %v2166_v5 }
  0x66   :  { %1586 = vmatprep.mubr.bf16.mxu0 %v405_v4  ;;  %2023 = vmatprep.subr.bf16.mxu1 %v2169_v6 }
  0x67   :  { %1626 = vmatprep.mubr.bf16.mxu1 %v409_v7 }
  0x68   :  { %2002 = vmatpush3.bf16.msra.mxu0 %v2168_v8 }
  0x69   :  { %2003 = vmatprep.subr.bf16.mxu0 %v2171_v9  ;;  %2024 = vmatpush3.bf16.msra.mxu1 %v2170_v10 }
  0x6a   :  { %2025 = vmatprep.subr.bf16.mxu1 %v2173_v11 }
  0x6c   :  { %2004 = vmatpush3.bf16.msra.mxu0 %v2172_v12 }
  0x6d   :  { %2005 = vmatprep.subr.bf16.mxu0 %v2175_v13  ;;  %2026 = vmatpush3.bf16.msra.mxu1 %v2174_v14 }
  0x6e   :  { %2027 = vmatprep.subr.bf16.mxu1 %v2177_v15 }
  0x70   :  { %2006 = vmatpush3.bf16.msra.mxu0 %v2176_v16 }
  0x71   :  { %2007 = vmatprep.subr.bf16.mxu0 %v2179_v17  ;;  %2028 = vmatpush3.bf16.msra.mxu1 %v2178_v18 }
  0x72   :  { %2029 = vmatprep.subr.bf16.mxu1 %v2181_v19 }
  0x74   :  { %2008 = vmatpush3.bf16.msra.mxu0 %v2180_v20 }
  0x75   :  { %2009 = vmatprep.subr.bf16.mxu0 %v2183_v21  ;;  %2030 = vmatpush3.bf16.msra.mxu1 %v2182_v22 }
  0x76   :  { %2031 = vmatprep.subr.bf16.mxu1 %v2185_v23 }
  0x78   :  { %2010 = vmatpush3.bf16.msra.mxu0 %v2184_v24 }
  0x79   :  { %2011 = vmatprep.subr.bf16.mxu0 %v2187_v25  ;;  %2032 = vmatpush3.bf16.msra.mxu1 %v2186_v26 }
  0x7a   :  { %2033 = vmatprep.subr.bf16.mxu1 %v2189_v27 }
  0x7c   :  { %2012 = vmatpush3.bf16.msra.mxu0 %v2188_v28 }
  0x7d   :  { %2013 = vmatprep.subr.bf16.mxu0 %v2191_v29  ;;  %2034 = vmatpush3.bf16.msra.mxu1 %v2190_v31 }
  0x7e   :  { %2035 = vmatprep.subr.bf16.mxu1 %v2193_v32 }
  0x80   :  { %2014 = vmatpush3.bf16.msra.mxu0 %v2192_v33 }
  0x81   :  { %2043 = vmatprep.subr.bf16.mxu0 %v2196_v36  ;;  %2036 = vmatpush3.bf16.msra.mxu1 %v2195_v37 }
  0x83   :  { %1587 = vmatmul.mubr.bf16.vlgmr.msra.gmra.mrb[12].mxu0 %v391_v34 }
  0x84   :  { %2044 = vmatpush3.bf16.msra.mxu0 %v2197_v38  ;;  %1627 = vmatmul.mubr.bf16.vlgmr.msra.gmra.mrb[12].mxu1 %v407_v39 }
  0x85   :  { %2045 = vmatprep.subr.bf16.mxu0 %v2198_v40  ;;  %1666 = vmatprep.mubr.bf16.mxu0 %v431_v49 }
  0x88   :  { %2046 = vmatpush3.bf16.msra.mxu0 %v2199_v41 }
  0x89   :  { %2047 = vmatprep.subr.bf16.mxu0 %v2200_v42 }
  0x8c   :  { %2048 = vmatpush3.bf16.msra.mxu0 %v2201_v43 }
  0x8d   :  { %2049 = vmatprep.subr.bf16.mxu0 %v2202_v44 }
  0x90   :  { %2050 = vmatpush3.bf16.msra.mxu0 %v2203_v45 }
  0x91   :  { %2051 = vmatprep.subr.bf16.mxu0 %v2204_v47 }
  0x94   :  { %2052 = vmatpush3.bf16.msra.mxu0 %v2205_v50 }
  0x95   :  { %2053 = vmatprep.subr.bf16.mxu0 %v2206_v51 }
  0x98   :  { %2054 = vmatpush3.bf16.msra.mxu0 %v2207_v52 }
  0x99   :  { %2055 = vmatprep.subr.bf16.mxu0 %v2208_v53 }
  0x9c   :  { %2056 = vmatpush3.bf16.msra.mxu0 %v2209_v54 }
  0x9d   :  { %2057 = vmatprep.subr.bf16.mxu0 %v2210_v55 }
  0xa0   :  { %2058 = vmatpush3.bf16.msra.mxu0 %v2211_v56 }
  0xa3   :  { %1667 = vmatmul.mubr.bf16.vlgmr.msra.gmra.mrb[16].mxu0 %v424_v57 }
  0xf6   :  { %v1883_v58 = vpop.f32.mrb[0].mxu0 }
  0xf7   :  { %v1884_v59 = vpop.f32.mrb[1].mxu0  ;;  %v1905_v60 = vpop.f32.mrb[0].mxu1 }
  0xf8   :  { %v1885_v61 = vadd.f32 %v1884_v59, %v1883_v58  ;;  %v1886_v62 = vpop.f32.mrb[2].mxu0  ;;  %v1906_v63 = vpop.f32.mrb[1].mxu1 }
  0xf9   :  { %v1887_v0 = vpop.f32.mrb[3].mxu0  ;;  %v1907_v1 = vadd.f32 %v1906_v63, %v1905_v60  ;;  %v1908_v2 = vpop.f32.mrb[2].mxu1 }
  0xfa   :  { %v1909_v3 = vpop.f32.mrb[3].mxu1 }
  0xfb   :  { %v1389_v4 = vadd.f32 %v1907_v1, %v1885_v61 }
 0x116   :  { %v1927_v5 = vpop.f32.mrb[4].mxu0 }
 0x117   :  { %v1928_v6 = vpop.f32.mrb[5].mxu0  ;;  %v1949_v9 = vpop.f32.mrb[4].mxu1 }
 0x118   :  { %v1929_v7 = vadd.f32 %v1928_v6, %v1927_v5  ;;  %v1930_v8 = vpop.f32.mrb[6].mxu0  ;;  %v1950_v35 = vpop.f32.mrb[5].mxu1  ;;  %v1695_v5 = vld [vmem:[%s2722_s2] sm:$0x1]  ;;  %v1705_v6 = vsub.s32 0, %v2318_v30 }
 0x119   :  { %v1931_v10 = vpop.f32.mrb[7].mxu0  ;;  %v1951_v12 = vadd.f32 %v1950_v35, %v1949_v9  ;;  %v1952_v13 = vpop.f32.mrb[6].mxu1  ;;  %v1699_v9 = vld [vmem:[%s2723_s3] sm:$0x1] }
 0x11a   :  { %v1429_v11 = vadd.f32 %v1929_v7, %v1389_v4  ;;  %v1953_v14 = vpop.f32.mrb[7].mxu1 }
 0x11c   :  { %v1469_v15 = vadd.f32 %v1951_v12, %v1429_v11 }
 0x136   :  { %v1971_v16 = vpop.f32.mrb[8].mxu0 }
 0x137   :  { %v1972_v17 = vpop.f32.mrb[9].mxu0  ;;  %v1993_v20 = vpop.f32.mrb[8].mxu1 }
 0x138   :  { %v1973_v18 = vadd.f32 %v1972_v17, %v1971_v16  ;;  %v1974_v19 = vpop.f32.mrb[10].mxu0  ;;  %v1994_v22 = vpop.f32.mrb[9].mxu1 }
 0x139   :  { %v1975_v21 = vpop.f32.mrb[11].mxu0  ;;  %v1995_v24 = vadd.f32 %v1994_v22, %v1993_v20  ;;  %v1996_v25 = vpop.f32.mrb[10].mxu1 }
 0x13a   :  { %v1509_v23 = vadd.f32 %v1973_v18, %v1469_v15  ;;  %v1997_v26 = vpop.f32.mrb[11].mxu1 }
 0x13c   :  { %v1549_v27 = vadd.f32 %v1995_v24, %v1509_v23 }
 0x156   :  { %v2015_v28 = vpop.f32.mrb[12].mxu0 }
 0x157   :  { %v2016_v29 = vpop.f32.mrb[13].mxu0  ;;  %v2037_v33 = vpop.f32.mrb[12].mxu1 }
 0x158   :  { %v2017_v31 = vadd.f32 %v2016_v29, %v2015_v28  ;;  %v2018_v32 = vpop.f32.mrb[14].mxu0  ;;  %v2038_v36 = vpop.f32.mrb[13].mxu1 }
 0x159   :  { %v2019_v34 = vpop.f32.mrb[15].mxu0  ;;  %v2039_v38 = vadd.f32 %v2038_v36, %v2037_v33  ;;  %v2040_v39 = vpop.f32.mrb[14].mxu1 }
 0x15a   :  { %v1589_v37 = vadd.f32 %v2017_v31, %v1549_v27  ;;  %v2041_v40 = vpop.f32.mrb[15].mxu1 }
 0x15c   :  { %v1629_v41 = vadd.f32 %v2039_v38, %v1589_v37 }
 0x176   :  { %v2059_v42 = vpop.f32.mrb[16].mxu0 }
 0x177   :  { %v2060_v43 = vpop.f32.mrb[17].mxu0 }
 0x178   :  { %v2061_v44 = vadd.f32 %v2060_v43, %v2059_v42  ;;  %v2062_v45 = vpop.f32.mrb[18].mxu0 }
 0x179   :  { %v2063_v46 = vpop.f32.mrb[19].mxu0 }
 0x17a   :  { %v1669_v47 = vadd.f32 %v2061_v44, %v1629_v41 }
 0x17c   :  { %v1675_v48 = vsel %vm1674_vm0, %v1669_v47, 0.0  ;;  %v1683_v49 = vmul.f32 %v1669_v47, %v1669_v47 }
 0x17d   :  { %v1676_v50 = vrot.slane %v1675_v48, 4 }
 0x17e   :  { %v1684_v51 = vsel %vm1674_vm0, %v1683_v49, 0.0 }
 0x17f   :  { %v1677_v52 = vadd.f32 %v1676_v50, %v1675_v48  ;;  %v1685_v53 = vrot.slane %v1684_v51, 4 }
 0x181   :  { %v1678_v54 = vrot.slane %v1677_v52, 2  ;;  %v1686_v55 = vadd.f32 %v1685_v53, %v1684_v51 }
 0x183   :  { %v1679_v56 = vadd.f32 %v1678_v54, %v1677_v52  ;;  %v1687_v57 = vrot.slane %v1686_v55, 2 }
 0x185   :  { %v1680_v58 = vrot.slane %v1679_v56, 1  ;;  %v1688_v59 = vadd.f32 %v1687_v57, %v1686_v55 }
 0x187   :  { %v1681_v60 = vadd.f32 %v1680_v58, %v1679_v56  ;;  %v1689_v61 = vrot.slane %v1688_v59, 1 }
 0x189   :  { %v1682_v62 = vmul.f32 0.5, %v1681_v60  ;;  %v1690_v63 = vadd.f32 %v1689_v61, %v1688_v59 }
 0x18b   :  { %v1691_v0 = vmul.f32 0.5, %v1690_v63  ;;  %v1692_v1 = vmul.f32 %v1682_v62, %v1682_v62 }
 0x18d   :  { %v1693_v2 = vsub.f32 %v1691_v0, %v1692_v1 }
 0x18f   :  { %v1694_v3 = vmax.f32 %v1693_v2, 0.0 }
 0x191   :  { %v1696_v4 = vadd.f32 1e-05, %v1694_v3 }
 0x193   :  { %2212 = vrsqrt.f32 %v1696_v4 }
 0x19d   :  { %v2213_v7 = vpop.eup %2212 }
 0x19e   :  { %v1698_v8 = vmul.f32 %v2213_v7, %v1695_v5 }
 0x1a0   :  { %v1700_v10 = vmul.f32 %v1698_v8, %v1682_v62  ;;  %v1706_v35 = vrot.slane %v1698_v8, %v1705_v6 }
 0x1a2   :  { %v1701_v11 = vsub.f32 %v1699_v9, %v1700_v10  ;;  %v1708_v12 = vmul.f32 %v1706_v35, %v1669_v47 }
 0x1a4   :  { %v1713_v13 = vrot.slane %v1701_v11, %v1705_v6 }
 0x1a6   :  { %v1715_v14 = vadd.f32 %v1713_v13, %v1708_v12 }
 0x1a8   :  { %v1716_v15 = vmax.f32 %v1715_v14, 0.0 }
 0x1aa   :  { %1717 = vst [vmem:[%s2724_s4] sm:$0x3] %v1716_v15 }

</bundles_post_ra>
